<compile_context>
chip_gen: v7x
topology: tpu7x:2x2x1
jax: 0.10.0
libtpu: 0.0.40
codegen_flags: <defaults>
</compile_context>

<pallas_src>
import functools

import jax
import jax.numpy as jnp
from jax.experimental import pallas as pl
from jax.experimental.pallas import tpu as pltpu

MATMUL_DTYPE = jnp.bfloat16   # MXU operand dtype for layers 2..4 and the head.
# Per-point encodings are ~4 KB/point in f32 vs sub-ns of MXU work per point:
# the PointNet pass is HBM-store-bound on v5e/v6e.  f32 matches the PyTorch
# reference; set to jnp.bfloat16 to halve the dominant HBM write.
ENC_DTYPE = jnp.float32
VMEM_LIMIT_BYTES = 32 * 1024 * 1024   # explicit scoped-VMEM budget (fits all gens)


# ----------------------------------------------------------------------------
# Fused kernel: per-point MLP encoder + max-pool over points + dense MLP head.
# grid = (B, N // tile_n); axis 0 is "parallel" (batch), axis 1 is the
# "arbitrary" reduction over point tiles.  The max-pool accumulates in an
# (8, D) VMEM scratch; the head runs only on the last tile of each batch.
# ----------------------------------------------------------------------------
def _fused_pointnet_kernel(x_ref, w1, b1, w2, b2, w3, b3, w4, b4,
                           hw1, hb1, hw2, hb2, hw3, hb3,
                           *outs_and_scratch, write_enc):
    if write_enc:
        enc_ref, head_ref, gmax = outs_and_scratch
    else:
        head_ref, gmax = outs_and_scratch

    n = pl.program_id(1)

    def dense(v, w_ref, b_ref):
        # bf16 (or f32) MXU operands, f32 accumulate, f32 bias add.
        return jnp.dot(v.astype(w_ref.dtype), w_ref[...],
                       preferred_element_type=jnp.float32) + b_ref[...]

    # ---- layer 1 (C -> H0) on the VPU: K = C = 3, an MXU dot would be ~2%
    # utilized and its x tile is ~97% lane padding.
    x = x_ref[...]                      # (tile_n, C) f32
    w1v = w1[...]                       # (C, H0)    f32 (per-batch when folded)
    h = x[:, 0:1] * w1v[0:1, :]
    for k in range(1, x.shape[1]):      # static, C-1 iterations
        h = h + x[:, k:k + 1] * w1v[k:k + 1, :]
    h = jnp.maximum(h + b1[...], 0.0)

    # ---- layers 2..4 (MXU)
    h = jnp.maximum(dense(h, w2, b2), 0.0)
    h = jnp.maximum(dense(h, w3, b3), 0.0)
    h = dense(h, w4, b4)                # final encoder layer: no BN / ReLU

    if write_enc:
        enc_ref[...] = h.astype(enc_ref.dtype)   # (tile_n, D) per-point encodings

    # ---- max-pool over points, accumulated in VMEM scratch.  Keep the per-tile
    # reduce on the VPU (pairwise vreg maxes down to 8 sublane rows); the 8->1
    # cross-sublane XLU reduce happens once per batch in the last-tile branch.
    @pl.when(n == 0)
    def _():
        gmax[...] = jnp.full(gmax.shape, -jnp.inf, gmax.dtype)

    tn, d = h.shape
    rows = gmax.shape[0]
    if rows > 1 and tn % rows == 0:
        part = h.reshape(tn // rows, rows, d).max(axis=0)     # (rows, D), VPU only
    else:
        part = jnp.max(h, axis=0, keepdims=True)               # fallback (1, D)
    gmax[...] = jnp.maximum(gmax[...], part)

    # ---- fused dense head on the pooled feature (once per batch)
    @pl.when(n == pl.num_programs(1) - 1)
    def _():
        g = jnp.max(gmax[...], axis=0, keepdims=True)          # 8 -> 1 (XLU), once
        t = jnp.maximum(dense(g, hw1, hb1), 0.0)
        t = jnp.maximum(dense(t, hw2, hb2), 0.0)
        head_ref[...] = dense(t, hw3, hb3)


def _pick_tile_n(n, target):
    """Largest multiple-of-8 divisor of N that is <= target; falls back to N.

    tile_n must be a multiple of 8 (second-minor-dim (8,128) constraint on the
    x / enc BlockSpecs) or equal to the full point count.
    """
    best = None
    for t in range(8, min(n, target) + 1, 8):
        if n % t == 0:
            best = t
    return best if best is not None else n


def fused_pointnet_forward(x, enc_params, head_params, *, return_encodings,
                           tile_target=512, enc_dtype=ENC_DTYPE):
    """x: (B, N, C) -> head output (B, O) [, per-point encodings (B, N, D)].

    enc_params[0][0] may be (C, H0) (shared weight) or (B, C, H0) (per-batch
    weight, used to fold the TNet transform into PointNet layer 1).
    """
    (w1, b1), (w2, b2), (w3, b3), (w4, b4) = enc_params
    (hw1, hb1), (hw2, hb2), (hw3, hb3) = head_params
    B, N, C = x.shape
    D = w4.shape[1]
    O = hw3.shape[1]
    tile_n = _pick_tile_n(N, tile_target)

    def shared(a):
        # Grid-invariant weights/biases: constant index map, DMA'd once.
        # Single-buffer them (default double-buffering wastes ~1.5 MiB, mostly
        # hw1's second 1 MiB bf16 buffer) — critical headroom on v7x VMEM.
        return pl.BlockSpec(a.shape, lambda b, n: (0,) * a.ndim,
                            pipeline_mode=pl.Buffered(1))

    if w1.ndim == 3:        # per-batch folded T @ W1 (tiny; normal pipelining)
        w1_spec = pl.BlockSpec((pl.Squeezed(),) + tuple(w1.shape[1:]),
                               lambda b, n: (b, 0, 0))
    else:
        w1_spec = shared(w1)

    out_shape = []
    out_specs = []
    if return_encodings:
        out_shape.append(jax.ShapeDtypeStruct((B, N, D), enc_dtype))
        out_specs.append(pl.BlockSpec((pl.Squeezed(), tile_n, D),
                                      lambda b, n: (b, n, 0)))
    out_shape.append(jax.ShapeDtypeStruct((B, 1, O), jnp.float32))
    out_specs.append(pl.BlockSpec((pl.Squeezed(), 1, O), lambda b, n: (b, 0, 0)))

    pool_rows = 8 if tile_n % 8 == 0 else 1

    outs = pl.pallas_call(
        functools.partial(_fused_pointnet_kernel, write_enc=return_encodings),
        out_shape=tuple(out_shape),
        grid_spec=pltpu.PrefetchScalarGridSpec(
            num_scalar_prefetch=0,
            grid=(B, N // tile_n),
            in_specs=[
                pl.BlockSpec((pl.Squeezed(), tile_n, C), lambda b, n: (b, n, 0)),
                w1_spec, shared(b1),
                shared(w2), shared(b2),
                shared(w3), shared(b3),
                shared(w4), shared(b4),
                shared(hw1), shared(hb1),
                shared(hw2), shared(hb2),
                shared(hw3), shared(hb3),
            ],
            out_specs=out_specs,
            scratch_shapes=[pltpu.VMEM((pool_rows, D), jnp.float32)],
        ),
        # Batch stays the leading "parallel" dim (keeps both v7x TCs busy);
        # the point-tile reduction axis is "arbitrary".
        compiler_params=pltpu.CompilerParams(
            dimension_semantics=("parallel", "arbitrary"),
            vmem_limit_bytes=VMEM_LIMIT_BYTES),
    )(x, w1, b1, w2, b2, w3, b3, w4, b4, hw1, hb1, hw2, hb2, hw3, hb3)

    if return_encodings:
        enc, head = outs
        return head.reshape(B, O), enc
    return outs[0].reshape(B, O)


# ----------------------------------------------------------------------------
# Parameter construction (deterministic, synthetic).
# ----------------------------------------------------------------------------
def _linear_params(key, fan_in, fan_out):
    kw, kb = jax.random.split(key)
    bound = 1.0 / (fan_in ** 0.5)
    w = jax.random.uniform(kw, (fan_in, fan_out), jnp.float32, -bound, bound)
    b = jax.random.uniform(kb, (1, fan_out), jnp.float32, -bound, bound)
    return w, b


def _bn_params(key, dim):
    kg, kb = jax.random.split(key)
    gamma = jax.random.uniform(kg, (1, dim), jnp.float32, 0.5, 1.5)
    beta = jax.random.uniform(kb, (1, dim), jnp.float32, -0.1, 0.1)
    return gamma, beta


def _fold_bn(w, b, gamma, beta, eps=1e-5):
    # eval-mode BatchNorm1d with running_mean=0, running_var=1 folded into Linear
    s = gamma / jnp.sqrt(1.0 + eps)
    return w * s, b * s + beta


def make_encoder_params(key, in_dim, hidden_dims):
    dims = [in_dim, hidden_dims[0], hidden_dims[0], hidden_dims[1], hidden_dims[2]]
    keys = jax.random.split(key, 8)
    params = []
    for i in range(4):
        w, b = _linear_params(keys[2 * i], dims[i], dims[i + 1])
        if i < 3:
            gamma, beta = _bn_params(keys[2 * i + 1], dims[i + 1])
            w, b = _fold_bn(w, b, gamma, beta)
        if i > 0:
            w = w.astype(MATMUL_DTYPE)   # layers 2..4 are MXU matmuls
        params.append((w, b))             # layer-1 weight stays f32 (VPU / T-fold)
    return params


def make_head_params(key, feat_dim, mid_dims, out_dim, add_identity_dim=None):
    all_dims = [feat_dim, *mid_dims, out_dim]
    keys = jax.random.split(key, len(all_dims) - 1)
    params = []
    for i in range(len(all_dims) - 1):
        w, b = _linear_params(keys[i], all_dims[i], all_dims[i + 1])
        params.append((w.astype(MATMUL_DTYPE), b))
    if add_identity_dim is not None:
        # TNet "+ eye(in_dim)" folded into the final bias
        w, b = params[-1]
        eye = jnp.eye(add_identity_dim, dtype=jnp.float32).reshape(1, -1)
        params[-1] = (w, b + eye)
    return params


# ----------------------------------------------------------------------------
# Full PointNetTNet forward.
# ----------------------------------------------------------------------------
def pointnet_tnet_forward(x, params):
    B, N, C = x.shape

    # --- TNet: encoder + max-pool + regression head in ONE kernel; the
    # per-point encodings (discarded by the reference) are never written to
    # HBM, and with no enc writeback the pass is grid-step bound -> use the
    # fattest point tile that fits (target 1024).
    t_flat = fused_pointnet_forward(
        x, params["tnet_encoder"], params["tnet_head"],
        return_encodings=False, tile_target=1024)
    T = t_flat.reshape(B, C, C)          # identity already folded into final bias

    # --- fold torch.bmm(x, T) into PointNet layer 1:
    #     relu((x @ T) @ W1 + b1) == relu(x @ (T @ W1) + b1)
    w1, b1 = params["pn_encoder"][0]
    w1_per_batch = jnp.einsum("bij,jk->bik", T, w1)        # (B, C, H0), tiny
    pn_enc_params = ((w1_per_batch, b1),) + tuple(params["pn_encoder"][1:])

    # --- PointNet: encoder -> encodings + global max -> classifier (fused)
    class_outputs, encodings = fused_pointnet_forward(
        x, pn_enc_params, params["pn_head"],
        return_encodings=True, tile_target=512)
    return class_outputs, encodings


if __name__ == "__main__":
    B, N, in_dim, classes = 2, 128, 3, 4
    hidden_dims = (64, 128, 1024)
    classifier_dims = (512, 256)

    key = jax.random.PRNGKey(0)
    kx, k1, k2, k3, k4 = jax.random.split(key, 5)
    x = jax.random.normal(kx, (B, N, in_dim), dtype=jnp.float32)

    params = {
        "tnet_encoder": make_encoder_params(k1, in_dim, hidden_dims),
        "tnet_head": make_head_params(k2, hidden_dims[2], classifier_dims,
                                      in_dim * in_dim, add_identity_dim=in_dim),
        "pn_encoder": make_encoder_params(k3, in_dim, hidden_dims),
        "pn_head": make_head_params(k4, hidden_dims[2], classifier_dims, classes),
    }

    class_outputs, encodings = jax.jit(pointnet_tnet_forward)(x, params)
    jax.block_until_ready((class_outputs, encodings))

    assert class_outputs.shape == (B, classes)
    assert encodings.shape == (B, N, hidden_dims[2])
    assert jnp.all(jnp.isfinite(class_outputs)) and jnp.all(jnp.isfinite(encodings))
    print("KERNEL_OK")
</pallas_src>

<mosaic_0001>
module attributes {stable_mosaic.version = 11 : i64} {
  func.func @_fused_pointnet_kernel(%arg0: i32, %arg1: i32, %arg2: memref<1x128x3xf32, #tpu.memory_space<vmem>>, %arg3: memref<3x64xf32, #tpu.memory_space<vmem>>, %arg4: memref<1x64xf32, #tpu.memory_space<vmem>>, %arg5: memref<64x64xbf16, #tpu.memory_space<vmem>>, %arg6: memref<1x64xf32, #tpu.memory_space<vmem>>, %arg7: memref<64x128xbf16, #tpu.memory_space<vmem>>, %arg8: memref<1x128xf32, #tpu.memory_space<vmem>>, %arg9: memref<128x1024xbf16, #tpu.memory_space<vmem>>, %arg10: memref<1x1024xf32, #tpu.memory_space<vmem>>, %arg11: memref<1024x512xbf16, #tpu.memory_space<vmem>>, %arg12: memref<1x512xf32, #tpu.memory_space<vmem>>, %arg13: memref<512x256xbf16, #tpu.memory_space<vmem>>, %arg14: memref<1x256xf32, #tpu.memory_space<vmem>>, %arg15: memref<256x9xbf16, #tpu.memory_space<vmem>>, %arg16: memref<1x9xf32, #tpu.memory_space<vmem>>, %arg17: memref<1x1x9xf32, #tpu.memory_space<vmem>>, %arg18: memref<8x1024xf32, #tpu.memory_space<vmem>>) attributes {dimension_semantics = [#tpu.dimension_semantics<parallel>, #tpu.dimension_semantics<arbitrary>], iteration_bounds = array<i64: 2, 1>, scalar_prefetch = 0 : i64, scratch_operands = 1 : i64, tpu.core_type = #tpu.core_type<tc>, window_params = [{transform_indices = @transform_0, window_bounds = array<i64: 1, 128, 3>}, {pipeline_mode = #tpu.pipeline_mode<synchronous>, transform_indices = @transform_1, window_bounds = array<i64: 3, 64>}, {pipeline_mode = #tpu.pipeline_mode<synchronous>, transform_indices = @transform_2, window_bounds = array<i64: 1, 64>}, {pipeline_mode = #tpu.pipeline_mode<synchronous>, transform_indices = @transform_3, window_bounds = array<i64: 64, 64>}, {pipeline_mode = #tpu.pipeline_mode<synchronous>, transform_indices = @transform_4, window_bounds = array<i64: 1, 64>}, {pipeline_mode = #tpu.pipeline_mode<synchronous>, transform_indices = @transform_5, window_bounds = array<i64: 64, 128>}, {pipeline_mode = #tpu.pipeline_mode<synchronous>, transform_indices = @transform_6, window_bounds = array<i64: 1, 128>}, {pipeline_mode = #tpu.pipeline_mode<synchronous>, transform_indices = @transform_7, window_bounds = array<i64: 128, 1024>}, {pipeline_mode = #tpu.pipeline_mode<synchronous>, transform_indices = @transform_8, window_bounds = array<i64: 1, 1024>}, {pipeline_mode = #tpu.pipeline_mode<synchronous>, transform_indices = @transform_9, window_bounds = array<i64: 1024, 512>}, {pipeline_mode = #tpu.pipeline_mode<synchronous>, transform_indices = @transform_10, window_bounds = array<i64: 1, 512>}, {pipeline_mode = #tpu.pipeline_mode<synchronous>, transform_indices = @transform_11, window_bounds = array<i64: 512, 256>}, {pipeline_mode = #tpu.pipeline_mode<synchronous>, transform_indices = @transform_12, window_bounds = array<i64: 1, 256>}, {pipeline_mode = #tpu.pipeline_mode<synchronous>, transform_indices = @transform_13, window_bounds = array<i64: 256, 9>}, {pipeline_mode = #tpu.pipeline_mode<synchronous>, transform_indices = @transform_14, window_bounds = array<i64: 1, 9>}, {transform_indices = @transform_15, window_bounds = array<i64: 1, 1, 9>}]} {
    %c0 = arith.constant 0 : index
    %c0_0 = arith.constant 0 : index
    %c0_1 = arith.constant 0 : index
    %0 = vector.load %arg2[%c0, %c0_0, %c0_1] : memref<1x128x3xf32, #tpu.memory_space<vmem>>, vector<1x128x3xf32>
    %1 = vector.shape_cast %0 : vector<1x128x3xf32> to vector<128x3xf32>
    %c0_2 = arith.constant 0 : index
    %c0_3 = arith.constant 0 : index
    %2 = vector.load %arg3[%c0_2, %c0_3] : memref<3x64xf32, #tpu.memory_space<vmem>>, vector<3x64xf32>
    %3 = vector.extract_strided_slice %1 {offsets = [0, 0], sizes = [128, 1], strides = [1, 1]} : vector<128x3xf32> to vector<128x1xf32>
    %4 = vector.extract_strided_slice %2 {offsets = [0, 0], sizes = [1, 64], strides = [1, 1]} : vector<3x64xf32> to vector<1x64xf32>
    %5 = vector.broadcast %3 : vector<128x1xf32> to vector<128x64xf32>
    %6 = vector.broadcast %4 : vector<1x64xf32> to vector<128x64xf32>
    %7 = arith.mulf %5, %6 : vector<128x64xf32>
    %8 = vector.extract_strided_slice %1 {offsets = [0, 1], sizes = [128, 1], strides = [1, 1]} : vector<128x3xf32> to vector<128x1xf32>
    %9 = vector.extract_strided_slice %2 {offsets = [1, 0], sizes = [1, 64], strides = [1, 1]} : vector<3x64xf32> to vector<1x64xf32>
    %10 = vector.broadcast %8 : vector<128x1xf32> to vector<128x64xf32>
    %11 = vector.broadcast %9 : vector<1x64xf32> to vector<128x64xf32>
    %12 = arith.mulf %10, %11 : vector<128x64xf32>
    %13 = arith.addf %7, %12 : vector<128x64xf32>
    %14 = vector.extract_strided_slice %1 {offsets = [0, 2], sizes = [128, 1], strides = [1, 1]} : vector<128x3xf32> to vector<128x1xf32>
    %15 = vector.extract_strided_slice %2 {offsets = [2, 0], sizes = [1, 64], strides = [1, 1]} : vector<3x64xf32> to vector<1x64xf32>
    %16 = vector.broadcast %14 : vector<128x1xf32> to vector<128x64xf32>
    %17 = vector.broadcast %15 : vector<1x64xf32> to vector<128x64xf32>
    %18 = arith.mulf %16, %17 : vector<128x64xf32>
    %19 = arith.addf %13, %18 : vector<128x64xf32>
    %c0_4 = arith.constant 0 : index
    %c0_5 = arith.constant 0 : index
    %20 = vector.load %arg4[%c0_4, %c0_5] : memref<1x64xf32, #tpu.memory_space<vmem>>, vector<1x64xf32>
    %21 = vector.broadcast %20 : vector<1x64xf32> to vector<128x64xf32>
    %22 = arith.addf %19, %21 : vector<128x64xf32>
    %cst = arith.constant 0.000000e+00 : f32
    %23 = vector.broadcast %cst : f32 to vector<128x64xf32>
    %24 = arith.maximumf %22, %23 : vector<128x64xf32>
    %25 = arith.truncf %24 : vector<128x64xf32> to vector<128x64xbf16>
    %c0_6 = arith.constant 0 : index
    %c0_7 = arith.constant 0 : index
    %26 = vector.load %arg5[%c0_6, %c0_7] : memref<64x64xbf16, #tpu.memory_space<vmem>>, vector<64x64xbf16>
    %cst_8 = arith.constant dense<0.000000e+00> : vector<128x64xf32>
    %27 = tpu.matmul %25, %26, %cst_8 {dimension_numbers = #tpu.dot_dimension_numbers<[1], [0], [0], [1], [0, 0, 1, 1], [], []>} : vector<128x64xbf16>, vector<64x64xbf16>, vector<128x64xf32> -> vector<128x64xf32>
    %c0_9 = arith.constant 0 : index
    %c0_10 = arith.constant 0 : index
    %28 = vector.load %arg6[%c0_9, %c0_10] : memref<1x64xf32, #tpu.memory_space<vmem>>, vector<1x64xf32>
    %29 = vector.broadcast %28 : vector<1x64xf32> to vector<128x64xf32>
    %30 = arith.addf %27, %29 : vector<128x64xf32>
    %cst_11 = arith.constant 0.000000e+00 : f32
    %31 = vector.broadcast %cst_11 : f32 to vector<128x64xf32>
    %32 = arith.maximumf %30, %31 : vector<128x64xf32>
    %33 = arith.truncf %32 : vector<128x64xf32> to vector<128x64xbf16>
    %c0_12 = arith.constant 0 : index
    %c0_13 = arith.constant 0 : index
    %34 = vector.load %arg7[%c0_12, %c0_13] : memref<64x128xbf16, #tpu.memory_space<vmem>>, vector<64x128xbf16>
    %cst_14 = arith.constant dense<0.000000e+00> : vector<128x128xf32>
    %35 = tpu.matmul %33, %34, %cst_14 {dimension_numbers = #tpu.dot_dimension_numbers<[1], [0], [0], [1], [0, 0, 1, 1], [], []>} : vector<128x64xbf16>, vector<64x128xbf16>, vector<128x128xf32> -> vector<128x128xf32>
    %c0_15 = arith.constant 0 : index
    %c0_16 = arith.constant 0 : index
    %36 = vector.load %arg8[%c0_15, %c0_16] : memref<1x128xf32, #tpu.memory_space<vmem>>, vector<1x128xf32>
    %37 = vector.broadcast %36 : vector<1x128xf32> to vector<128x128xf32>
    %38 = arith.addf %35, %37 : vector<128x128xf32>
    %cst_17 = arith.constant 0.000000e+00 : f32
    %39 = vector.broadcast %cst_17 : f32 to vector<128x128xf32>
    %40 = arith.maximumf %38, %39 : vector<128x128xf32>
    %41 = arith.truncf %40 : vector<128x128xf32> to vector<128x128xbf16>
    %c0_18 = arith.constant 0 : index
    %c0_19 = arith.constant 0 : index
    %42 = vector.load %arg9[%c0_18, %c0_19] : memref<128x1024xbf16, #tpu.memory_space<vmem>>, vector<128x1024xbf16>
    %cst_20 = arith.constant dense<0.000000e+00> : vector<128x1024xf32>
    %43 = tpu.matmul %41, %42, %cst_20 {dimension_numbers = #tpu.dot_dimension_numbers<[1], [0], [0], [1], [0, 0, 1, 1], [], []>} : vector<128x128xbf16>, vector<128x1024xbf16>, vector<128x1024xf32> -> vector<128x1024xf32>
    %c0_21 = arith.constant 0 : index
    %c0_22 = arith.constant 0 : index
    %44 = vector.load %arg10[%c0_21, %c0_22] : memref<1x1024xf32, #tpu.memory_space<vmem>>, vector<1x1024xf32>
    %45 = vector.broadcast %44 : vector<1x1024xf32> to vector<128x1024xf32>
    %46 = arith.addf %43, %45 : vector<128x1024xf32>
    %c0_i32 = arith.constant 0 : i32
    %47 = arith.cmpi eq, %arg1, %c0_i32 : i32
    %48 = arith.extui %47 : i1 to i32
    %c0_i32_23 = arith.constant 0 : i32
    %49 = arith.cmpi ne, %48, %c0_i32_23 : i32
    scf.if %49 {
      %cst_31 = arith.constant 0xFF800000 : f32
      %58 = vector.broadcast %cst_31 : f32 to vector<8x1024xf32>
      %c0_32 = arith.constant 0 : index
      %c0_33 = arith.constant 0 : index
      %59 = vector.load %arg18[%c0_32, %c0_33] : memref<8x1024xf32, #tpu.memory_space<vmem>>, vector<8x1024xf32>
      tpu.vector_store %arg18[%c0_32, %c0_33], %58 {strides = array<i32>} : memref<8x1024xf32, #tpu.memory_space<vmem>>, vector<8x1024xf32>,
    } else {
    }
    %50 = vector.shape_cast %46 : vector<128x1024xf32> to vector<16x8x1024xf32>
    %cst_24 = arith.constant dense<0xFF800000> : vector<8x1024xf32>
    %51 = vector.multi_reduction <maximumf>, %50, %cst_24 [0] : vector<16x8x1024xf32> to vector<8x1024xf32>
    %c0_25 = arith.constant 0 : index
    %c0_26 = arith.constant 0 : index
    %52 = vector.load %arg18[%c0_25, %c0_26] : memref<8x1024xf32, #tpu.memory_space<vmem>>, vector<8x1024xf32>
    %53 = arith.maximumf %52, %51 : vector<8x1024xf32>
    %c0_27 = arith.constant 0 : index
    %c0_28 = arith.constant 0 : index
    %54 = vector.load %arg18[%c0_27, %c0_28] : memref<8x1024xf32, #tpu.memory_space<vmem>>, vector<8x1024xf32>
    tpu.vector_store %arg18[%c0_27, %c0_28], %53 {strides = array<i32>} : memref<8x1024xf32, #tpu.memory_space<vmem>>, vector<8x1024xf32>,
    %c0_i32_29 = arith.constant 0 : i32
    %55 = arith.cmpi eq, %arg1, %c0_i32_29 : i32
    %56 = arith.extui %55 : i1 to i32
    %c0_i32_30 = arith.constant 0 : i32
    %57 = arith.cmpi ne, %56, %c0_i32_30 : i32
    scf.if %57 {
      %c0_31 = arith.constant 0 : index
      %c0_32 = arith.constant 0 : index
      %58 = vector.load %arg18[%c0_31, %c0_32] : memref<8x1024xf32, #tpu.memory_space<vmem>>, vector<8x1024xf32>
      %cst_33 = arith.constant dense<0xFF800000> : vector<1024xf32>
      %59 = vector.multi_reduction <maximumf>, %58, %cst_33 [0] : vector<8x1024xf32> to vector<1024xf32>
      %60 = vector.shape_cast %59 : vector<1024xf32> to vector<1x1024xf32>
      %61 = arith.truncf %60 : vector<1x1024xf32> to vector<1x1024xbf16>
      %c0_34 = arith.constant 0 : index
      %c0_35 = arith.constant 0 : index
      %62 = vector.load %arg11[%c0_34, %c0_35] : memref<1024x512xbf16, #tpu.memory_space<vmem>>, vector<1024x512xbf16>
      %cst_36 = arith.constant dense<0.000000e+00> : vector<1x512xf32>
      %63 = tpu.matmul %61, %62, %cst_36 {dimension_numbers = #tpu.dot_dimension_numbers<[1], [0], [0], [1], [0, 0, 1, 1], [], []>} : vector<1x1024xbf16>, vector<1024x512xbf16>, vector<1x512xf32> -> vector<1x512xf32>
      %c0_37 = arith.constant 0 : index
      %c0_38 = arith.constant 0 : index
      %64 = vector.load %arg12[%c0_37, %c0_38] : memref<1x512xf32, #tpu.memory_space<vmem>>, vector<1x512xf32>
      %65 = arith.addf %63, %64 : vector<1x512xf32>
      %cst_39 = arith.constant 0.000000e+00 : f32
      %66 = vector.broadcast %cst_39 : f32 to vector<1x512xf32>
      %67 = arith.maximumf %65, %66 : vector<1x512xf32>
      %68 = arith.truncf %67 : vector<1x512xf32> to vector<1x512xbf16>
      %c0_40 = arith.constant 0 : index
      %c0_41 = arith.constant 0 : index
      %69 = vector.load %arg13[%c0_40, %c0_41] : memref<512x256xbf16, #tpu.memory_space<vmem>>, vector<512x256xbf16>
      %cst_42 = arith.constant dense<0.000000e+00> : vector<1x256xf32>
      %70 = tpu.matmul %68, %69, %cst_42 {dimension_numbers = #tpu.dot_dimension_numbers<[1], [0], [0], [1], [0, 0, 1, 1], [], []>} : vector<1x512xbf16>, vector<512x256xbf16>, vector<1x256xf32> -> vector<1x256xf32>
      %c0_43 = arith.constant 0 : index
      %c0_44 = arith.constant 0 : index
      %71 = vector.load %arg14[%c0_43, %c0_44] : memref<1x256xf32, #tpu.memory_space<vmem>>, vector<1x256xf32>
      %72 = arith.addf %70, %71 : vector<1x256xf32>
      %cst_45 = arith.constant 0.000000e+00 : f32
      %73 = vector.broadcast %cst_45 : f32 to vector<1x256xf32>
      %74 = arith.maximumf %72, %73 : vector<1x256xf32>
      %75 = arith.truncf %74 : vector<1x256xf32> to vector<1x256xbf16>
      %c0_46 = arith.constant 0 : index
      %c0_47 = arith.constant 0 : index
      %76 = vector.load %arg15[%c0_46, %c0_47] : memref<256x9xbf16, #tpu.memory_space<vmem>>, vector<256x9xbf16>
      %cst_48 = arith.constant dense<0.000000e+00> : vector<1x9xf32>
      %77 = tpu.matmul %75, %76, %cst_48 {dimension_numbers = #tpu.dot_dimension_numbers<[1], [0], [0], [1], [0, 0, 1, 1], [], []>} : vector<1x256xbf16>, vector<256x9xbf16>, vector<1x9xf32> -> vector<1x9xf32>
      %c0_49 = arith.constant 0 : index
      %c0_50 = arith.constant 0 : index
      %78 = vector.load %arg16[%c0_49, %c0_50] : memref<1x9xf32, #tpu.memory_space<vmem>>, vector<1x9xf32>
      %79 = arith.addf %77, %78 : vector<1x9xf32>
      %c0_51 = arith.constant 0 : index
      %c0_52 = arith.constant 0 : index
      %c0_53 = arith.constant 0 : index
      %80 = vector.load %arg17[%c0_51, %c0_52, %c0_53] : memref<1x1x9xf32, #tpu.memory_space<vmem>>, vector<1x1x9xf32>
      %81 = vector.shape_cast %80 : vector<1x1x9xf32> to vector<1x9xf32>
      %82 = vector.shape_cast %79 : vector<1x9xf32> to vector<1x1x9xf32>
      tpu.vector_store %arg17[%c0_51, %c0_52, %c0_53], %82 {strides = array<i32>} : memref<1x1x9xf32, #tpu.memory_space<vmem>>, vector<1x1x9xf32>,
    } else {
    }
    return
  }
  func.func @transform_0(%arg0: i32, %arg1: i32) -> (i32, i32, i32) {
    %c0_i32 = arith.constant 0 : i32
    %c0_i32_0 = arith.constant 0 : i32
    return %arg0, %arg1, %c0_i32 : i32, i32, i32
  }
  func.func @transform_1(%arg0: i32, %arg1: i32) -> (i32, i32) {
    %c0_i32 = arith.constant 0 : i32
    %c0_i32_0 = arith.constant 0 : i32
    %c0_i32_1 = arith.constant 0 : i32
    return %c0_i32, %c0_i32_0 : i32, i32
  }
  func.func @transform_2(%arg0: i32, %arg1: i32) -> (i32, i32) {
    %c0_i32 = arith.constant 0 : i32
    %c0_i32_0 = arith.constant 0 : i32
    %c0_i32_1 = arith.constant 0 : i32
    return %c0_i32, %c0_i32_0 : i32, i32
  }
  func.func @transform_3(%arg0: i32, %arg1: i32) -> (i32, i32) {
    %c0_i32 = arith.constant 0 : i32
    %c0_i32_0 = arith.constant 0 : i32
    %c0_i32_1 = arith.constant 0 : i32
    return %c0_i32, %c0_i32_0 : i32, i32
  }
  func.func @transform_4(%arg0: i32, %arg1: i32) -> (i32, i32) {
    %c0_i32 = arith.constant 0 : i32
    %c0_i32_0 = arith.constant 0 : i32
    %c0_i32_1 = arith.constant 0 : i32
    return %c0_i32, %c0_i32_0 : i32, i32
  }
  func.func @transform_5(%arg0: i32, %arg1: i32) -> (i32, i32) {
    %c0_i32 = arith.constant 0 : i32
    %c0_i32_0 = arith.constant 0 : i32
    %c0_i32_1 = arith.constant 0 : i32
    return %c0_i32, %c0_i32_0 : i32, i32
  }
  func.func @transform_6(%arg0: i32, %arg1: i32) -> (i32, i32) {
    %c0_i32 = arith.constant 0 : i32
    %c0_i32_0 = arith.constant 0 : i32
    %c0_i32_1 = arith.constant 0 : i32
    return %c0_i32, %c0_i32_0 : i32, i32
  }
  func.func @transform_7(%arg0: i32, %arg1: i32) -> (i32, i32) {
    %c0_i32 = arith.constant 0 : i32
    %c0_i32_0 = arith.constant 0 : i32
    %c0_i32_1 = arith.constant 0 : i32
    return %c0_i32, %c0_i32_0 : i32, i32
  }
  func.func @transform_8(%arg0: i32, %arg1: i32) -> (i32, i32) {
    %c0_i32 = arith.constant 0 : i32
    %c0_i32_0 = arith.constant 0 : i32
    %c0_i32_1 = arith.constant 0 : i32
    return %c0_i32, %c0_i32_0 : i32, i32
  }
  func.func @transform_9(%arg0: i32, %arg1: i32) -> (i32, i32) {
    %c0_i32 = arith.constant 0 : i32
    %c0_i32_0 = arith.constant 0 : i32
    %c0_i32_1 = arith.constant 0 : i32
    return %c0_i32, %c0_i32_0 : i32, i32
  }
  func.func @transform_10(%arg0: i32, %arg1: i32) -> (i32, i32) {
    %c0_i32 = arith.constant 0 : i32
    %c0_i32_0 = arith.constant 0 : i32
    %c0_i32_1 = arith.constant 0 : i32
    return %c0_i32, %c0_i32_0 : i32, i32
  }
  func.func @transform_11(%arg0: i32, %arg1: i32) -> (i32, i32) {
    %c0_i32 = arith.constant 0 : i32
    %c0_i32_0 = arith.constant 0 : i32
    %c0_i32_1 = arith.constant 0 : i32
    return %c0_i32, %c0_i32_0 : i32, i32
  }
  func.func @transform_12(%arg0: i32, %arg1: i32) -> (i32, i32) {
    %c0_i32 = arith.constant 0 : i32
    %c0_i32_0 = arith.constant 0 : i32
    %c0_i32_1 = arith.constant 0 : i32
    return %c0_i32, %c0_i32_0 : i32, i32
  }
  func.func @transform_13(%arg0: i32, %arg1: i32) -> (i32, i32) {
    %c0_i32 = arith.constant 0 : i32
    %c0_i32_0 = arith.constant 0 : i32
    %c0_i32_1 = arith.constant 0 : i32
    return %c0_i32, %c0_i32_0 : i32, i32
  }
  func.func @transform_14(%arg0: i32, %arg1: i32) -> (i32, i32) {
    %c0_i32 = arith.constant 0 : i32
    %c0_i32_0 = arith.constant 0 : i32
    %c0_i32_1 = arith.constant 0 : i32
    return %c0_i32, %c0_i32_0 : i32, i32
  }
  func.func @transform_15(%arg0: i32, %arg1: i32) -> (i32, i32, i32) {
    %c0_i32 = arith.constant 0 : i32
    %c0_i32_0 = arith.constant 0 : i32
    %c0_i32_1 = arith.constant 0 : i32
    return %arg0, %c0_i32, %c0_i32_0 : i32, i32, i32
  }
}

module attributes {stable_mosaic.version = 11 : i64} {
  func.func @_fused_pointnet_kernel(%arg0: i32, %arg1: i32, %arg2: memref<1x128x3xf32, #tpu.memory_space<vmem>>, %arg3: memref<1x3x64xf32, #tpu.memory_space<vmem>>, %arg4: memref<1x64xf32, #tpu.memory_space<vmem>>, %arg5: memref<64x64xbf16, #tpu.memory_space<vmem>>, %arg6: memref<1x64xf32, #tpu.memory_space<vmem>>, %arg7: memref<64x128xbf16, #tpu.memory_space<vmem>>, %arg8: memref<1x128xf32, #tpu.memory_space<vmem>>, %arg9: memref<128x1024xbf16, #tpu.memory_space<vmem>>, %arg10: memref<1x1024xf32, #tpu.memory_space<vmem>>, %arg11: memref<1024x512xbf16, #tpu.memory_space<vmem>>, %arg12: memref<1x512xf32, #tpu.memory_space<vmem>>, %arg13: memref<512x256xbf16, #tpu.memory_space<vmem>>, %arg14: memref<1x256xf32, #tpu.memory_space<vmem>>, %arg15: memref<256x4xbf16, #tpu.memory_space<vmem>>, %arg16: memref<1x4xf32, #tpu.memory_space<vmem>>, %arg17: memref<1x128x1024xf32, #tpu.memory_space<vmem>>, %arg18: memref<1x1x4xf32, #tpu.memory_space<vmem>>, %arg19: memref<8x1024xf32, #tpu.memory_space<vmem>>) attributes {dimension_semantics = [#tpu.dimension_semantics<parallel>, #tpu.dimension_semantics<arbitrary>], iteration_bounds = array<i64: 2, 1>, scalar_prefetch = 0 : i64, scratch_operands = 1 : i64, tpu.core_type = #tpu.core_type<tc>, window_params = [{transform_indices = @transform_0, window_bounds = array<i64: 1, 128, 3>}, {transform_indices = @transform_1, window_bounds = array<i64: 1, 3, 64>}, {pipeline_mode = #tpu.pipeline_mode<synchronous>, transform_indices = @transform_2, window_bounds = array<i64: 1, 64>}, {pipeline_mode = #tpu.pipeline_mode<synchronous>, transform_indices = @transform_3, window_bounds = array<i64: 64, 64>}, {pipeline_mode = #tpu.pipeline_mode<synchronous>, transform_indices = @transform_4, window_bounds = array<i64: 1, 64>}, {pipeline_mode = #tpu.pipeline_mode<synchronous>, transform_indices = @transform_5, window_bounds = array<i64: 64, 128>}, {pipeline_mode = #tpu.pipeline_mode<synchronous>, transform_indices = @transform_6, window_bounds = array<i64: 1, 128>}, {pipeline_mode = #tpu.pipeline_mode<synchronous>, transform_indices = @transform_7, window_bounds = array<i64: 128, 1024>}, {pipeline_mode = #tpu.pipeline_mode<synchronous>, transform_indices = @transform_8, window_bounds = array<i64: 1, 1024>}, {pipeline_mode = #tpu.pipeline_mode<synchronous>, transform_indices = @transform_9, window_bounds = array<i64: 1024, 512>}, {pipeline_mode = #tpu.pipeline_mode<synchronous>, transform_indices = @transform_10, window_bounds = array<i64: 1, 512>}, {pipeline_mode = #tpu.pipeline_mode<synchronous>, transform_indices = @transform_11, window_bounds = array<i64: 512, 256>}, {pipeline_mode = #tpu.pipeline_mode<synchronous>, transform_indices = @transform_12, window_bounds = array<i64: 1, 256>}, {pipeline_mode = #tpu.pipeline_mode<synchronous>, transform_indices = @transform_13, window_bounds = array<i64: 256, 4>}, {pipeline_mode = #tpu.pipeline_mode<synchronous>, transform_indices = @transform_14, window_bounds = array<i64: 1, 4>}, {transform_indices = @transform_15, window_bounds = array<i64: 1, 128, 1024>}, {transform_indices = @transform_16, window_bounds = array<i64: 1, 1, 4>}]} {
    %c0 = arith.constant 0 : index
    %c0_0 = arith.constant 0 : index
    %c0_1 = arith.constant 0 : index
    %0 = vector.load %arg2[%c0, %c0_0, %c0_1] : memref<1x128x3xf32, #tpu.memory_space<vmem>>, vector<1x128x3xf32>
    %1 = vector.shape_cast %0 : vector<1x128x3xf32> to vector<128x3xf32>
    %c0_2 = arith.constant 0 : index
    %c0_3 = arith.constant 0 : index
    %c0_4 = arith.constant 0 : index
    %2 = vector.load %arg3[%c0_2, %c0_3, %c0_4] : memref<1x3x64xf32, #tpu.memory_space<vmem>>, vector<1x3x64xf32>
    %3 = vector.shape_cast %2 : vector<1x3x64xf32> to vector<3x64xf32>
    %4 = vector.extract_strided_slice %1 {offsets = [0, 0], sizes = [128, 1], strides = [1, 1]} : vector<128x3xf32> to vector<128x1xf32>
    %5 = vector.extract_strided_slice %3 {offsets = [0, 0], sizes = [1, 64], strides = [1, 1]} : vector<3x64xf32> to vector<1x64xf32>
    %6 = vector.broadcast %4 : vector<128x1xf32> to vector<128x64xf32>
    %7 = vector.broadcast %5 : vector<1x64xf32> to vector<128x64xf32>
    %8 = arith.mulf %6, %7 : vector<128x64xf32>
    %9 = vector.extract_strided_slice %1 {offsets = [0, 1], sizes = [128, 1], strides = [1, 1]} : vector<128x3xf32> to vector<128x1xf32>
    %10 = vector.extract_strided_slice %3 {offsets = [1, 0], sizes = [1, 64], strides = [1, 1]} : vector<3x64xf32> to vector<1x64xf32>
    %11 = vector.broadcast %9 : vector<128x1xf32> to vector<128x64xf32>
    %12 = vector.broadcast %10 : vector<1x64xf32> to vector<128x64xf32>
    %13 = arith.mulf %11, %12 : vector<128x64xf32>
    %14 = arith.addf %8, %13 : vector<128x64xf32>
    %15 = vector.extract_strided_slice %1 {offsets = [0, 2], sizes = [128, 1], strides = [1, 1]} : vector<128x3xf32> to vector<128x1xf32>
    %16 = vector.extract_strided_slice %3 {offsets = [2, 0], sizes = [1, 64], strides = [1, 1]} : vector<3x64xf32> to vector<1x64xf32>
    %17 = vector.broadcast %15 : vector<128x1xf32> to vector<128x64xf32>
    %18 = vector.broadcast %16 : vector<1x64xf32> to vector<128x64xf32>
    %19 = arith.mulf %17, %18 : vector<128x64xf32>
    %20 = arith.addf %14, %19 : vector<128x64xf32>
    %c0_5 = arith.constant 0 : index
    %c0_6 = arith.constant 0 : index
    %21 = vector.load %arg4[%c0_5, %c0_6] : memref<1x64xf32, #tpu.memory_space<vmem>>, vector<1x64xf32>
    %22 = vector.broadcast %21 : vector<1x64xf32> to vector<128x64xf32>
    %23 = arith.addf %20, %22 : vector<128x64xf32>
    %cst = arith.constant 0.000000e+00 : f32
    %24 = vector.broadcast %cst : f32 to vector<128x64xf32>
    %25 = arith.maximumf %23, %24 : vector<128x64xf32>
    %26 = arith.truncf %25 : vector<128x64xf32> to vector<128x64xbf16>
    %c0_7 = arith.constant 0 : index
    %c0_8 = arith.constant 0 : index
    %27 = vector.load %arg5[%c0_7, %c0_8] : memref<64x64xbf16, #tpu.memory_space<vmem>>, vector<64x64xbf16>
    %cst_9 = arith.constant dense<0.000000e+00> : vector<128x64xf32>
    %28 = tpu.matmul %26, %27, %cst_9 {dimension_numbers = #tpu.dot_dimension_numbers<[1], [0], [0], [1], [0, 0, 1, 1], [], []>} : vector<128x64xbf16>, vector<64x64xbf16>, vector<128x64xf32> -> vector<128x64xf32>
    %c0_10 = arith.constant 0 : index
    %c0_11 = arith.constant 0 : index
    %29 = vector.load %arg6[%c0_10, %c0_11] : memref<1x64xf32, #tpu.memory_space<vmem>>, vector<1x64xf32>
    %30 = vector.broadcast %29 : vector<1x64xf32> to vector<128x64xf32>
    %31 = arith.addf %28, %30 : vector<128x64xf32>
    %cst_12 = arith.constant 0.000000e+00 : f32
    %32 = vector.broadcast %cst_12 : f32 to vector<128x64xf32>
    %33 = arith.maximumf %31, %32 : vector<128x64xf32>
    %34 = arith.truncf %33 : vector<128x64xf32> to vector<128x64xbf16>
    %c0_13 = arith.constant 0 : index
    %c0_14 = arith.constant 0 : index
    %35 = vector.load %arg7[%c0_13, %c0_14] : memref<64x128xbf16, #tpu.memory_space<vmem>>, vector<64x128xbf16>
    %cst_15 = arith.constant dense<0.000000e+00> : vector<128x128xf32>
    %36 = tpu.matmul %34, %35, %cst_15 {dimension_numbers = #tpu.dot_dimension_numbers<[1], [0], [0], [1], [0, 0, 1, 1], [], []>} : vector<128x64xbf16>, vector<64x128xbf16>, vector<128x128xf32> -> vector<128x128xf32>
    %c0_16 = arith.constant 0 : index
    %c0_17 = arith.constant 0 : index
    %37 = vector.load %arg8[%c0_16, %c0_17] : memref<1x128xf32, #tpu.memory_space<vmem>>, vector<1x128xf32>
    %38 = vector.broadcast %37 : vector<1x128xf32> to vector<128x128xf32>
    %39 = arith.addf %36, %38 : vector<128x128xf32>
    %cst_18 = arith.constant 0.000000e+00 : f32
    %40 = vector.broadcast %cst_18 : f32 to vector<128x128xf32>
    %41 = arith.maximumf %39, %40 : vector<128x128xf32>
    %42 = arith.truncf %41 : vector<128x128xf32> to vector<128x128xbf16>
    %c0_19 = arith.constant 0 : index
    %c0_20 = arith.constant 0 : index
    %43 = vector.load %arg9[%c0_19, %c0_20] : memref<128x1024xbf16, #tpu.memory_space<vmem>>, vector<128x1024xbf16>
    %cst_21 = arith.constant dense<0.000000e+00> : vector<128x1024xf32>
    %44 = tpu.matmul %42, %43, %cst_21 {dimension_numbers = #tpu.dot_dimension_numbers<[1], [0], [0], [1], [0, 0, 1, 1], [], []>} : vector<128x128xbf16>, vector<128x1024xbf16>, vector<128x1024xf32> -> vector<128x1024xf32>
    %c0_22 = arith.constant 0 : index
    %c0_23 = arith.constant 0 : index
    %45 = vector.load %arg10[%c0_22, %c0_23] : memref<1x1024xf32, #tpu.memory_space<vmem>>, vector<1x1024xf32>
    %46 = vector.broadcast %45 : vector<1x1024xf32> to vector<128x1024xf32>
    %47 = arith.addf %44, %46 : vector<128x1024xf32>
    %c0_24 = arith.constant 0 : index
    %c0_25 = arith.constant 0 : index
    %c0_26 = arith.constant 0 : index
    %48 = vector.load %arg17[%c0_24, %c0_25, %c0_26] : memref<1x128x1024xf32, #tpu.memory_space<vmem>>, vector<1x128x1024xf32>
    %49 = vector.shape_cast %48 : vector<1x128x1024xf32> to vector<128x1024xf32>
    %50 = vector.shape_cast %47 : vector<128x1024xf32> to vector<1x128x1024xf32>
    tpu.vector_store %arg17[%c0_24, %c0_25, %c0_26], %50 {strides = array<i32>} : memref<1x128x1024xf32, #tpu.memory_space<vmem>>, vector<1x128x1024xf32>,
    %c0_i32 = arith.constant 0 : i32
    %51 = arith.cmpi eq, %arg1, %c0_i32 : i32
    %52 = arith.extui %51 : i1 to i32
    %c0_i32_27 = arith.constant 0 : i32
    %53 = arith.cmpi ne, %52, %c0_i32_27 : i32
    scf.if %53 {
      %cst_35 = arith.constant 0xFF800000 : f32
      %62 = vector.broadcast %cst_35 : f32 to vector<8x1024xf32>
      %c0_36 = arith.constant 0 : index
      %c0_37 = arith.constant 0 : index
      %63 = vector.load %arg19[%c0_36, %c0_37] : memref<8x1024xf32, #tpu.memory_space<vmem>>, vector<8x1024xf32>
      tpu.vector_store %arg19[%c0_36, %c0_37], %62 {strides = array<i32>} : memref<8x1024xf32, #tpu.memory_space<vmem>>, vector<8x1024xf32>,
    } else {
    }
    %54 = vector.shape_cast %47 : vector<128x1024xf32> to vector<16x8x1024xf32>
    %cst_28 = arith.constant dense<0xFF800000> : vector<8x1024xf32>
    %55 = vector.multi_reduction <maximumf>, %54, %cst_28 [0] : vector<16x8x1024xf32> to vector<8x1024xf32>
    %c0_29 = arith.constant 0 : index
    %c0_30 = arith.constant 0 : index
    %56 = vector.load %arg19[%c0_29, %c0_30] : memref<8x1024xf32, #tpu.memory_space<vmem>>, vector<8x1024xf32>
    %57 = arith.maximumf %56, %55 : vector<8x1024xf32>
    %c0_31 = arith.constant 0 : index
    %c0_32 = arith.constant 0 : index
    %58 = vector.load %arg19[%c0_31, %c0_32] : memref<8x1024xf32, #tpu.memory_space<vmem>>, vector<8x1024xf32>
    tpu.vector_store %arg19[%c0_31, %c0_32], %57 {strides = array<i32>} : memref<8x1024xf32, #tpu.memory_space<vmem>>, vector<8x1024xf32>,
    %c0_i32_33 = arith.constant 0 : i32
    %59 = arith.cmpi eq, %arg1, %c0_i32_33 : i32
    %60 = arith.extui %59 : i1 to i32
    %c0_i32_34 = arith.constant 0 : i32
    %61 = arith.cmpi ne, %60, %c0_i32_34 : i32
    scf.if %61 {
      %c0_35 = arith.constant 0 : index
      %c0_36 = arith.constant 0 : index
      %62 = vector.load %arg19[%c0_35, %c0_36] : memref<8x1024xf32, #tpu.memory_space<vmem>>, vector<8x1024xf32>
      %cst_37 = arith.constant dense<0xFF800000> : vector<1024xf32>
      %63 = vector.multi_reduction <maximumf>, %62, %cst_37 [0] : vector<8x1024xf32> to vector<1024xf32>
      %64 = vector.shape_cast %63 : vector<1024xf32> to vector<1x1024xf32>
      %65 = arith.truncf %64 : vector<1x1024xf32> to vector<1x1024xbf16>
      %c0_38 = arith.constant 0 : index
      %c0_39 = arith.constant 0 : index
      %66 = vector.load %arg11[%c0_38, %c0_39] : memref<1024x512xbf16, #tpu.memory_space<vmem>>, vector<1024x512xbf16>
      %cst_40 = arith.constant dense<0.000000e+00> : vector<1x512xf32>
      %67 = tpu.matmul %65, %66, %cst_40 {dimension_numbers = #tpu.dot_dimension_numbers<[1], [0], [0], [1], [0, 0, 1, 1], [], []>} : vector<1x1024xbf16>, vector<1024x512xbf16>, vector<1x512xf32> -> vector<1x512xf32>
      %c0_41 = arith.constant 0 : index
      %c0_42 = arith.constant 0 : index
      %68 = vector.load %arg12[%c0_41, %c0_42] : memref<1x512xf32, #tpu.memory_space<vmem>>, vector<1x512xf32>
      %69 = arith.addf %67, %68 : vector<1x512xf32>
      %cst_43 = arith.constant 0.000000e+00 : f32
      %70 = vector.broadcast %cst_43 : f32 to vector<1x512xf32>
      %71 = arith.maximumf %69, %70 : vector<1x512xf32>
      %72 = arith.truncf %71 : vector<1x512xf32> to vector<1x512xbf16>
      %c0_44 = arith.constant 0 : index
      %c0_45 = arith.constant 0 : index
      %73 = vector.load %arg13[%c0_44, %c0_45] : memref<512x256xbf16, #tpu.memory_space<vmem>>, vector<512x256xbf16>
      %cst_46 = arith.constant dense<0.000000e+00> : vector<1x256xf32>
      %74 = tpu.matmul %72, %73, %cst_46 {dimension_numbers = #tpu.dot_dimension_numbers<[1], [0], [0], [1], [0, 0, 1, 1], [], []>} : vector<1x512xbf16>, vector<512x256xbf16>, vector<1x256xf32> -> vector<1x256xf32>
      %c0_47 = arith.constant 0 : index
      %c0_48 = arith.constant 0 : index
      %75 = vector.load %arg14[%c0_47, %c0_48] : memref<1x256xf32, #tpu.memory_space<vmem>>, vector<1x256xf32>
      %76 = arith.addf %74, %75 : vector<1x256xf32>
      %cst_49 = arith.constant 0.000000e+00 : f32
      %77 = vector.broadcast %cst_49 : f32 to vector<1x256xf32>
      %78 = arith.maximumf %76, %77 : vector<1x256xf32>
      %79 = arith.truncf %78 : vector<1x256xf32> to vector<1x256xbf16>
      %c0_50 = arith.constant 0 : index
      %c0_51 = arith.constant 0 : index
      %80 = vector.load %arg15[%c0_50, %c0_51] : memref<256x4xbf16, #tpu.memory_space<vmem>>, vector<256x4xbf16>
      %cst_52 = arith.constant dense<0.000000e+00> : vector<1x4xf32>
      %81 = tpu.matmul %79, %80, %cst_52 {dimension_numbers = #tpu.dot_dimension_numbers<[1], [0], [0], [1], [0, 0, 1, 1], [], []>} : vector<1x256xbf16>, vector<256x4xbf16>, vector<1x4xf32> -> vector<1x4xf32>
      %c0_53 = arith.constant 0 : index
      %c0_54 = arith.constant 0 : index
      %82 = vector.load %arg16[%c0_53, %c0_54] : memref<1x4xf32, #tpu.memory_space<vmem>>, vector<1x4xf32>
      %83 = arith.addf %81, %82 : vector<1x4xf32>
      %c0_55 = arith.constant 0 : index
      %c0_56 = arith.constant 0 : index
      %c0_57 = arith.constant 0 : index
      %84 = vector.load %arg18[%c0_55, %c0_56, %c0_57] : memref<1x1x4xf32, #tpu.memory_space<vmem>>, vector<1x1x4xf32>
      %85 = vector.shape_cast %84 : vector<1x1x4xf32> to vector<1x4xf32>
      %86 = vector.shape_cast %83 : vector<1x4xf32> to vector<1x1x4xf32>
      tpu.vector_store %arg18[%c0_55, %c0_56, %c0_57], %86 {strides = array<i32>} : memref<1x1x4xf32, #tpu.memory_space<vmem>>, vector<1x1x4xf32>,
    } else {
    }
    return
  }
  func.func @transform_0(%arg0: i32, %arg1: i32) -> (i32, i32, i32) {
    %c0_i32 = arith.constant 0 : i32
    %c0_i32_0 = arith.constant 0 : i32
    return %arg0, %arg1, %c0_i32 : i32, i32, i32
  }
  func.func @transform_1(%arg0: i32, %arg1: i32) -> (i32, i32, i32) {
    %c0_i32 = arith.constant 0 : i32
    %c0_i32_0 = arith.constant 0 : i32
    %c0_i32_1 = arith.constant 0 : i32
    return %arg0, %c0_i32, %c0_i32_0 : i32, i32, i32
  }
  func.func @transform_2(%arg0: i32, %arg1: i32) -> (i32, i32) {
    %c0_i32 = arith.constant 0 : i32
    %c0_i32_0 = arith.constant 0 : i32
    %c0_i32_1 = arith.constant 0 : i32
    return %c0_i32, %c0_i32_0 : i32, i32
  }
  func.func @transform_3(%arg0: i32, %arg1: i32) -> (i32, i32) {
    %c0_i32 = arith.constant 0 : i32
    %c0_i32_0 = arith.constant 0 : i32
    %c0_i32_1 = arith.constant 0 : i32
    return %c0_i32, %c0_i32_0 : i32, i32
  }
  func.func @transform_4(%arg0: i32, %arg1: i32) -> (i32, i32) {
    %c0_i32 = arith.constant 0 : i32
    %c0_i32_0 = arith.constant 0 : i32
    %c0_i32_1 = arith.constant 0 : i32
    return %c0_i32, %c0_i32_0 : i32, i32
  }
  func.func @transform_5(%arg0: i32, %arg1: i32) -> (i32, i32) {
    %c0_i32 = arith.constant 0 : i32
    %c0_i32_0 = arith.constant 0 : i32
    %c0_i32_1 = arith.constant 0 : i32
    return %c0_i32, %c0_i32_0 : i32, i32
  }
  func.func @transform_6(%arg0: i32, %arg1: i32) -> (i32, i32) {
    %c0_i32 = arith.constant 0 : i32
    %c0_i32_0 = arith.constant 0 : i32
    %c0_i32_1 = arith.constant 0 : i32
    return %c0_i32, %c0_i32_0 : i32, i32
  }
  func.func @transform_7(%arg0: i32, %arg1: i32) -> (i32, i32) {
    %c0_i32 = arith.constant 0 : i32
    %c0_i32_0 = arith.constant 0 : i32
    %c0_i32_1 = arith.constant 0 : i32
    return %c0_i32, %c0_i32_0 : i32, i32
  }
  func.func @transform_8(%arg0: i32, %arg1: i32) -> (i32, i32) {
    %c0_i32 = arith.constant 0 : i32
    %c0_i32_0 = arith.constant 0 : i32
    %c0_i32_1 = arith.constant 0 : i32
    return %c0_i32, %c0_i32_0 : i32, i32
  }
  func.func @transform_9(%arg0: i32, %arg1: i32) -> (i32, i32) {
    %c0_i32 = arith.constant 0 : i32
    %c0_i32_0 = arith.constant 0 : i32
    %c0_i32_1 = arith.constant 0 : i32
    return %c0_i32, %c0_i32_0 : i32, i32
  }
  func.func @transform_10(%arg0: i32, %arg1: i32) -> (i32, i32) {
    %c0_i32 = arith.constant 0 : i32
    %c0_i32_0 = arith.constant 0 : i32
    %c0_i32_1 = arith.constant 0 : i32
    return %c0_i32, %c0_i32_0 : i32, i32
  }
  func.func @transform_11(%arg0: i32, %arg1: i32) -> (i32, i32) {
    %c0_i32 = arith.constant 0 : i32
    %c0_i32_0 = arith.constant 0 : i32
    %c0_i32_1 = arith.constant 0 : i32
    return %c0_i32, %c0_i32_0 : i32, i32
  }
  func.func @transform_12(%arg0: i32, %arg1: i32) -> (i32, i32) {
    %c0_i32 = arith.constant 0 : i32
    %c0_i32_0 = arith.constant 0 : i32
    %c0_i32_1 = arith.constant 0 : i32
    return %c0_i32, %c0_i32_0 : i32, i32
  }
  func.func @transform_13(%arg0: i32, %arg1: i32) -> (i32, i32) {
    %c0_i32 = arith.constant 0 : i32
    %c0_i32_0 = arith.constant 0 : i32
    %c0_i32_1 = arith.constant 0 : i32
    return %c0_i32, %c0_i32_0 : i32, i32
  }
  func.func @transform_14(%arg0: i32, %arg1: i32) -> (i32, i32) {
    %c0_i32 = arith.constant 0 : i32
    %c0_i32_0 = arith.constant 0 : i32
    %c0_i32_1 = arith.constant 0 : i32
    return %c0_i32, %c0_i32_0 : i32, i32
  }
  func.func @transform_15(%arg0: i32, %arg1: i32) -> (i32, i32, i32) {
    %c0_i32 = arith.constant 0 : i32
    %c0_i32_0 = arith.constant 0 : i32
    return %arg0, %arg1, %c0_i32 : i32, i32, i32
  }
  func.func @transform_16(%arg0: i32, %arg1: i32) -> (i32, i32, i32) {
    %c0_i32 = arith.constant 0 : i32
    %c0_i32_0 = arith.constant 0 : i32
    %c0_i32_1 = arith.constant 0 : i32
    return %arg0, %c0_i32, %c0_i32_0 : i32, i32, i32
  }
}

</mosaic_0001>

<bundles_post_ra>
// kernel: pointnet_tnet_forward.2
= control target key start
LH: loop header
LB: loop body
LE: loop exit
PB: predicated region body
PF: predicated region fallthrough
CT: control target
= control target key end

     0   :  { %s7215_s0 = inlined_call_operand.vmem [shape: f32[2,128,3], index: 0, kind: input, shape index: {}]   ;;  %s7216_s1 = inlined_call_operand.vmem [shape: f32[3,64], index: 1, kind: input, shape index: {}]   ;;  %s7217_s2 = inlined_call_operand.vmem [shape: f32[1,64], index: 2, kind: input, shape index: {}]   ;;  %s7218_s3 = inlined_call_operand.vmem [shape: bf16[64,64], index: 3, kind: input, shape index: {}]   ;;  %s7219_s4 = inlined_call_operand.vmem [shape: f32[1,64], index: 4, kind: input, shape index: {}]   ;;  %s7220_s5 = inlined_call_operand.vmem [shape: bf16[64,128], index: 5, kind: input, shape index: {}]   ;;  %s7221_s6 = inlined_call_operand.vmem [shape: f32[1,128], index: 6, kind: input, shape index: {}]   ;;  %s7222_s7 = inlined_call_operand.vmem [shape: bf16[128,1024], index: 7, kind: input, shape index: {}]   ;;  %s7223_s8 = inlined_call_operand.vmem [shape: f32[1,1024], index: 8, kind: input, shape index: {}]   ;;  %s7224_s9 = inlined_call_operand.hbm [shape: bf16[1024,512], index: 9, kind: input, shape index: {}]   ;;  %s7225_s10 = inlined_call_operand.vmem [shape: f32[1,512], index: 10, kind: input, shape index: {}]   ;;  %s7226_s11 = inlined_call_operand.hbm [shape: bf16[512,256], index: 11, kind: input, shape index: {}]   ;;  %s7227_s12 = inlined_call_operand.vmem [shape: f32[1,256], index: 12, kind: input, shape index: {}]   ;;  %s7228_s13 = inlined_call_operand.vmem [shape: bf16[256,9], index: 13, kind: input, shape index: {}]   ;;  %s7229_s14 = inlined_call_operand.vmem [shape: f32[1,9], index: 14, kind: input, shape index: {}]   ;;  %s7230_s15 = inlined_call_operand.vmem [shape: f32[2,1,9], index: 15, kind: output, shape index: {}]  }
   0x1   :  { %7236 = sst [smem:[#allocation12_spill]] %s7229_s14 }
   0x2   :  { %7237 = sst [smem:[#allocation13_spill]] %s7230_s15 }
   0x3   :  { %20 = vsyncpa [#allocation4], 0 }
   0x4   :  { %21 = vsyncpa [#allocation6], 0  ;;  %s6342_s18 = smov 0   ;;  %s6344_s19 = smov 0  }
   0x5   :  { %s6346_s20 = smov 0  }
   0x6 LB: > { %7238 = sst [smem:[#allocation9_spill]] %s6247_s19  ;;  %s5015_s21 = sadd.s32 4294967295, %s6251_s20   ;;  %s6251_s20 = sphi %s6346_s20, %s27_s20   ;;  %s6247_s19 = sphi %s6344_s19, %s7250_s19   ;;  %s6243_s18 = sphi %s6342_s18, %s7249_s18  }
   0x7   : > { %7239 = sst [smem:[#allocation10_spill]] %s6251_s20  ;;  %s39_s22 = sadd.s32 1, %s6247_s19 }
   0x8   : > { %p41_p0 = scmp.ge.s32.totalorder %s39_s22, 2  ;;  %p5017_p1 = scmp.ge.s32.totalorder %s6251_s20, 1 }
   0x9   : > { %p392_p2 = scmp.lt.s32.totalorder %s6251_s20, 3  ;;  %p6367_p4 = scmp.eq.s32.totalorder %s5015_s21, 0 }
   0xa   : > { %s7252_s22 = smov (%p41_p0, %s39_s22), 0  ;;  %s6253_s25 = smov [#allocation3]  }
   0xb   : > { %7240 = sst [smem:[#allocation11_spill]] %s7252_s22  ;;  %p6363_p3 = pnand %p5017_p1, %p392_p2 }
   0xc   : > { %s7242_s24 = scalar_select %p6367_p4, 1, 0 }
   0xd   : > { %s7241_s23 = scalar_select %p6363_p3, 1, 0 }
   0xe   : > { %p5592_p5 = pneg %p6363_p3  ;;  %s428_s26 = sshll.u32 %s6253_s25, 4  ;;  %s429_s26 = int_to_ptr.vmem [resolvable:$true] %s428_s26 }
   0xf   : > { %s6254_s28 = smov [#allocation5]   ;;  %s6165_s17 = scalar_lea.hbm %s7224_s9, 32768 }
  0x10   : > { %p6375_p6 = pnand %p6367_p4, %p5592_p5  ;;  %s444_s29 = sshll.u32 %s6254_s28, 4  ;;  %s6379_s29 = int_to_ptr.vmem [resolvable:$true] %s444_s29 }
  0x11   : > { %p6166_p7 = scmp.ne.s32.totalorder %s7224_s9, %s6165_s17  ;;  %p6172_p11 = scmp.lt.u32.totalorder %s6165_s17, %s7224_s9 }
  0x12   : > { %p6167_p8 = pneg %p6375_p6 }
  0x14   : > { %p6168_p9 = pnand %p6167_p8, %p6166_p7 }
  0x16   : > { %p6169_p10 = pneg %p6168_p9 }
  0x18   : > { %p6174_p12 = pnand %p6172_p11, %p6169_p10 }
  0x1a   : > { %6177 = shalt.err (!%p6174_p12)
}
  0x1b   : > { %s6178_s28 = scalar_lea.vmem %s429_s26, 32768  ;;  %p6186_p2 = scmp.lt.s32.totalorder %s429_s26, %s429_s26 }
  0x1c   : > { %p6179_p13 = scmp.ne.s32.totalorder %s429_s26, %s6178_s28  ;;  %p6187_p5 = scmp.lt.s32.totalorder %s6178_s28, %s6178_s28 }
  0x1e   : > { %p6181_p0 = pnand %p6179_p13, %p6167_p8  ;;  %p6188_p4 = por %p6187_p5, %p6186_p2 }
  0x20   : > { %p6182_p1 = pneg %p6181_p0 }
  0x22   : > { %p6189_p3 = pnand %p6188_p4, %p6182_p1 }
  0x24   : > { %6192 = shalt.err (!%p6189_p3)
}
  0x25   : > { %s6255_s22 = smov 256   ;;  %s6256_s30 = smov 16  }
  0x26   : > { %5595 = dma.hbm_to_vmem [thread:$0]  (!%p6375_p6), %s7224_s9, 32768, %s429_s26, [#allocation4], %s6255_s22, %s6255_s22, %s6256_s30  }
  0x27   : > { %s6193_s25 = scalar_lea.hbm %s7226_s11, 8192 }
  0x28   : > { %p6194_p7 = scmp.ne.s32.totalorder %s7226_s11, %s6193_s25  ;;  %p6200_p9 = scmp.lt.u32.totalorder %s6193_s25, %s7226_s11 }
  0x2a   : > { %p6196_p3 = pnand %p6194_p7, %p6167_p8 }
  0x2c   : > { %p6197_p4 = pneg %p6196_p3 }
  0x2e   : > { %p6202_p10 = pnand %p6200_p9, %p6197_p4 }
  0x30   : > { %6205 = shalt.err (!%p6202_p10)
}
  0x31   : > { %s6206_s26 = scalar_lea.vmem %s6379_s29, 8192  ;;  %p6214_p0 = scmp.lt.s32.totalorder %s6379_s29, %s6379_s29 }
  0x32   : > { %p6207_p11 = scmp.ne.s32.totalorder %s6379_s29, %s6206_s26  ;;  %p6215_p1 = scmp.lt.s32.totalorder %s6206_s26, %s6206_s26 }
  0x34   : > { %p6209_p12 = pnand %p6207_p11, %p6167_p8  ;;  %p6216_p2 = por %p6215_p1, %p6214_p0 }
  0x36   : > { %p6210_p13 = pneg %p6209_p12 }
  0x38   : > { %p6217_p5 = pnand %p6216_p2, %p6210_p13 }
  0x3a   : > { %6220 = shalt.err (!%p6217_p5)
}
  0x3b   : > { %s6257_s14 = smov 128   ;;  %s6258_s15 = smov 8  }
  0x3c   : > { %5598 = dma.hbm_to_vmem [thread:$0]  (!%p6375_p6), %s7226_s11, 8192, %s6379_s29, [#allocation6], %s6257_s14, %s6257_s14, %s6258_s15  }
  0x3d   : > { %p7244_p7 = scmp.ne.s32.totalorder %s7241_s23, 0 }
  0x3e   : > { %p7245_p8 = scmp.ne.s32.totalorder (!%p7244_p7), %s7242_s24, 0 }
  0x3f   : > { %482 = sbr.rel (%p7244_p7) target bundleno = 1946 (0x79a), region = 80 }
  0x46   : > { %6234 = dma.done.wait (%p7245_p8), [#allocation4], 32768  }
  0x47   : > { %6236 = vsyncadd (%p7245_p8), [#allocation4], 4294934528 }
  0x48   : > { %6238 = dma.done.wait (%p7245_p8), [#allocation6], 8192  }
  0x49   : > { %6240 = vsyncadd (%p7245_p8), [#allocation6], 4294959104  ;;  %p537_p3 = scmp.lt.s32.totalorder %s6243_s18, 1  ;;  %v6259_v0 = vmov 1   ;;  %v6260_v1 = vmov 0   ;;  %v6261_v8 = vmov 2   ;;  %v647_v25 = vlaneseq }
  0x4a   : > { %5637 = vset.pattern.permute.xlu1 %v6259_v0  ;;  %5636 = vset.pattern.permute.xlu0 %v6260_v1  ;;  %v5661_v9 = vld [vmem:[%s7218_s3] sm:$0xff]   ;;  %v5662_v10 = vld [vmem:[%s7218_s3 + $0x8] sm:$0xff]   ;;  %v5663_v12 = vld [vmem:[%s7218_s3 + $0x10] sm:$0xff]   ;;  %vm953_vm0 = vcmask 523264   ;;  %s7246_s24 = sld [smem:[#allocation12_spill]]  ;;  %s7247_s17 = sld [smem:[#allocation13_spill]] }
  0x4b   : > { %s7254_s18 = smov (!%p537_p3, %s6243_s18), 1  ;;  %5502 = vmatprep.subr.bf16.mxu0 %v5661_v9  ;;  %v5664_v14 = vld [vmem:[%s7218_s3 + $0x18] sm:$0xff]   ;;  %v6501_v28 = vshrl.u32 %v647_v25, 7  ;;  %v566_v33 = vld [vmem:[%s7216_s1] sm:$0x7]  ;;  %v5666_v37 = vld [vmem:[%s7220_s5 + $0x8] sm:$0xff]  }
  0x4c   : > { %s5455_s23 = sshll.u32 %s7254_s18, 7  ;;  %5503 = vmatpush3.bf16.msra.mxu0 %v5661_v9  ;;  %v5665_v36 = vld [vmem:[%s7220_s5] sm:$0xff]   ;;  %vm4929_vm1 = vcmask 65536  }
  0x4d   : > { %s6448_s30 = scalar_lea.vmem %s7215_s0, %s5455_s23  ;;  %5504 = vmatprep.subr.bf16.mxu0 %v5662_v10  ;;  %v6504_v31 = vsub.s32 1, %v6501_v28  ;;  %v6507_v32 = vsub.s32 0, %v6501_v28  ;;  %v6513_v35 = vsub.s32 2, %v6501_v28  ;;  %5526 = vmatprep.subr.bf16.mxu1 %v5665_v36  ;;  %v6543_v59 = vld [vmem:[%s7217_s2] ss:$0 sm:$0xff] }
  0x4e   : > { %v550_v2 = vld [vmem:[%s6448_s30] sm:$0xff]  ;;  %v551_v3 = vld [vmem:[%s6448_s30 + $0x8] sm:$0xff]  ;;  %v552_v4 = vld [vmem:[%s6448_s30 + $0x10] sm:$0xff]  ;;  %5527 = vmatpush3.bf16.msra.mxu1 %v5665_v36 }
  0x4f   : > { %668 = vperm.xlu1 %5637, %v550_v2   ;;  %569 = vperm.xlu0 %5636, %v550_v2   ;;  %v553_v5 = vld [vmem:[%s6448_s30 + $0x18] sm:$0xff]  ;;  %v555_v6 = vld [vmem:[%s6448_s30 + $0x28] sm:$0xff]  ;;  %v556_v7 = vld [vmem:[%s6448_s30 + $0x30] sm:$0xff]  ;;  %v6522_v39 = vrot.slane %v566_v33, %v6504_v31  ;;  %v6525_v40 = vrot.slane %v566_v33, %v6507_v32  ;;  %v6528_v42 = vrot.slane %v566_v33, %v6513_v35 }
  0x50   : > { %v554_v11 = vld [vmem:[%s6448_s30 + $0x20] sm:$0xff]  ;;  %5505 = vmatpush3.bf16.msra.mxu0 %v5662_v10  ;;  %v557_v13 = vld [vmem:[%s6448_s30 + $0x38] sm:$0xff]  ;;  %v559_v15 = vld [vmem:[%s6448_s30 + $0x48] sm:$0xff]  ;;  %5528 = vmatprep.subr.bf16.mxu1 %v5666_v37  ;;  %s548_s21 = scalar_lea.vmem %s7247_s17, %s7254_s18 }
  0x51   : > { %5506 = vmatprep.subr.bf16.mxu0 %v5663_v12  ;;  %v560_v16 = vld [vmem:[%s6448_s30 + $0x50] sm:$0xff]  ;;  %v562_v17 = vld [vmem:[%s6448_s30 + $0x60] sm:$0xff]  ;;  %v563_v18 = vld [vmem:[%s6448_s30 + $0x68] sm:$0xff] }
  0x52   : > { %v558_v19 = vld [vmem:[%s6448_s30 + $0x40] sm:$0xff]  ;;  %v564_v20 = vld [vmem:[%s6448_s30 + $0x70] sm:$0xff]  ;;  %v561_v21 = vld [vmem:[%s6448_s30 + $0x58] sm:$0xff]  ;;  %5529 = vmatpush3.bf16.msra.mxu1 %v5666_v37 }
  0x53   : > { %672 = vperm.xlu1 %5637, %v551_v3   ;;  %574 = vperm.xlu0 %5636, %v551_v3   ;;  %v565_v22 = vld [vmem:[%s6448_s30 + $0x78] sm:$0xff] }
  0x54   : > { %5507 = vmatpush3.bf16.msra.mxu0 %v5663_v12 }
  0x55   : > { %5508 = vmatprep.subr.bf16.mxu0 %v5664_v14 }
  0x57   : > { %5638 = vset.pattern.permute.xlu1 %v6260_v1  ;;  %579 = vperm.xlu0 %5636, %v552_v4  }
  0x58   : > { %584 = vperm.xlu1 %5638, %v553_v5   ;;  %5509 = vmatpush3.bf16.msra.mxu0 %v5664_v14 }
  0x5b   : > { %5639 = vset.pattern.permute.xlu0 %v6259_v0 }
  0x5c   : > { %5640 = vset.pattern.permute.xlu1 %v6259_v0  ;;  %676 = vperm.xlu0 %5639, %v552_v4  }
  0x5d   : > { %680 = vperm.xlu1 %5640, %v553_v5  }
  0x60   : > { %688 = vperm.xlu0 %5639, %v555_v6  }
  0x61   : > { %5641 = vset.pattern.permute.xlu1 %v6261_v8 }
  0x62   : > { %768 = vperm.xlu1 %5641, %v550_v2  }
  0x64   : > { %692 = vperm.xlu0 %5639, %v556_v7  }
  0x66   : > { %776 = vperm.xlu1 %5641, %v552_v4  }
  0x68   : > { %5645 = vset.pattern.permute.xlu0 %v6261_v8 }
  0x69   : > { %772 = vperm.xlu0 %5645, %v551_v3  }
  0x6a   : > { %780 = vperm.xlu1 %5641, %v553_v5  }
  0x6d   : > { %784 = vperm.xlu0 %5645, %v554_v11  }
  0x6e   : > { %5642 = vset.pattern.permute.xlu1 %v6260_v1 }
  0x6f   : > { %594 = vperm.xlu1 %5642, %v555_v6  }
  0x71   : > { %796 = vperm.xlu0 %5645, %v557_v13  }
  0x73   : > { %5643 = vset.pattern.permute.xlu1 %v6259_v0 }
  0x74   : > { %684 = vperm.xlu1 %5643, %v554_v11  }
  0x75   : > { %804 = vperm.xlu0 %5645, %v559_v15  }
  0x78   : > { %5644 = vset.pattern.permute.xlu1 %v6260_v1 }
  0x79   : > { %599 = vperm.xlu1 %5644, %v556_v7   ;;  %5653 = vset.pattern.permute.xlu0 %v6260_v1 }
  0x7a   : > { %589 = vperm.xlu0 %5653, %v554_v11  }
  0x7d   : > { %604 = vperm.xlu1 %5644, %v557_v13  }
  0x7e   : > { %614 = vperm.xlu0 %5653, %v559_v15  }
  0x81   : > { %5646 = vset.pattern.permute.xlu1 %v6259_v0 }
  0x82   : > { %696 = vperm.xlu1 %5646, %v557_v13   ;;  %619 = vperm.xlu0 %5653, %v560_v16  }
  0x86   : > { %5647 = vset.pattern.permute.xlu1 %v6261_v8  ;;  %629 = vperm.xlu0 %5653, %v562_v17  }
  0x87   : > { %788 = vperm.xlu1 %5647, %v555_v6  }
  0x8a   : > { %5654 = vset.pattern.permute.xlu0 %v6259_v0 }
  0x8b   : > { %792 = vperm.xlu1 %5647, %v556_v7   ;;  %708 = vperm.xlu0 %5654, %v560_v16  }
  0x8f   : > { %5648 = vset.pattern.permute.xlu1 %v6260_v1  ;;  %720 = vperm.xlu0 %5654, %v563_v18  }
  0x90   : > { %609 = vperm.xlu1 %5648, %v558_v19  }
  0x93   : > { %724 = vperm.xlu0 %5654, %v564_v20  }
  0x94   : > { %5649 = vset.pattern.permute.xlu1 %v6259_v0 }
  0x95   : > { %700 = vperm.xlu1 %5649, %v558_v19  }
  0x97   : > { %5659 = vset.pattern.permute.xlu0 %v6261_v8 }
  0x98   : > { %816 = vperm.xlu0 %5659, %v562_v17  }
  0x99   : > { %704 = vperm.xlu1 %5649, %v559_v15  }
  0x9c   : > { %828 = vperm.xlu0 %5659, %v565_v22  }
  0x9d   : > { %5650 = vset.pattern.permute.xlu1 %v6260_v1 }
  0x9e   : > { %624 = vperm.xlu1 %5650, %v561_v21  }
  0xa2   : > { %5651 = vset.pattern.permute.xlu1 %v6259_v0 }
  0xa3   : > { %712 = vperm.xlu1 %5651, %v561_v21  }
  0xa7   : > { %5652 = vset.pattern.permute.xlu1 %v6261_v8 }
  0xa8   : > { %800 = vperm.xlu1 %5652, %v558_v19  }
  0xac   : > { %808 = vperm.xlu1 %5652, %v560_v16  }
  0xb0   : > { %812 = vperm.xlu1 %5652, %v561_v21  }
  0xb4   : > { %5655 = vset.pattern.permute.xlu1 %v6260_v1 }
  0xb5   : > { %634 = vperm.xlu1 %5655, %v563_v18  }
  0xb9   : > { %5656 = vset.pattern.permute.xlu1 %v6259_v0 }
  0xba   : > { %716 = vperm.xlu1 %5656, %v562_v17  }
  0xbe   : > { %5657 = vset.pattern.permute.xlu1 %v6260_v1 }
  0xbf   : > { %639 = vperm.xlu1 %5657, %v564_v20  }
  0xc3   : > { %644 = vperm.xlu1 %5657, %v565_v22  }
  0xc7   : > { %5658 = vset.pattern.permute.xlu1 %v6259_v0 }
  0xc8   : > { %728 = vperm.xlu1 %5658, %v565_v22  }
  0xcc   : > { %5660 = vset.pattern.permute.xlu1 %v6261_v8 }
  0xcd   : > { %820 = vperm.xlu1 %5660, %v563_v18  }
  0xce   : > { %v669_v23 = vpop.permute.xlu1 %668  ;;  %v570_v24 = vpop.permute.xlu0 %569 }
  0xcf   : > { %v735_v45 = vmul.f32 %v6522_v39, %v669_v23  ;;  %v651_v46 = vmul.f32 %v6525_v40, %v570_v24 }
  0xd1   : > { %824 = vperm.xlu1 %5660, %v564_v20   ;;  %v751_v51 = vadd.f32 %v735_v45, %v651_v46 }
  0xd2   : > { %v673_v26 = vpop.permute.xlu1 %672  ;;  %v575_v27 = vpop.permute.xlu0 %574 }
  0xd3   : > { %v736_v52 = vmul.f32 %v6522_v39, %v673_v26  ;;  %v652_v53 = vmul.f32 %v6525_v40, %v575_v27 }
  0xd5   : > { %v752_v62 = vadd.f32 %v736_v52, %v652_v53 }
  0xd6   : > { %v580_v29 = vpop.permute.xlu0 %579 }
  0xd7   : > { %v585_v30 = vpop.permute.xlu1 %584  ;;  %v653_v43 = vmul.f32 %v6525_v40, %v580_v29 }
  0xd8   : > { %v654_v58 = vmul.f32 %v6525_v40, %v585_v30 }
  0xdb   : > { %v677_v34 = vpop.permute.xlu0 %676 }
  0xdc   : > { %v681_v38 = vpop.permute.xlu1 %680  ;;  %v737_v44 = vmul.f32 %v6522_v39, %v677_v34 }
  0xdd   : > { %v738_v55 = vmul.f32 %v6522_v39, %v681_v38 }
  0xde   : > { %v753_v50 = vadd.f32 %v737_v44, %v653_v43 }
  0xdf   : > { %v689_v41 = vpop.permute.xlu0 %688  ;;  %v754_v2 = vadd.f32 %v738_v55, %v654_v58 }
  0xe0   : > { %v740_v33 = vmul.f32 %v6522_v39, %v689_v41 }
  0xe1   : > { %v769_v47 = vpop.permute.xlu1 %768 }
  0xe2   : > { %v835_v48 = vmul.f32 %v6528_v42, %v769_v47 }
  0xe3   : > { %v693_v49 = vpop.permute.xlu0 %692 }
  0xe4   : > { %v851_v57 = vadd.f32 %v835_v48, %v751_v51  ;;  %v741_v45 = vmul.f32 %v6522_v39, %v693_v49 }
  0xe5   : > { %v777_v54 = vpop.permute.xlu1 %776 }
  0xe6   : > { %v837_v56 = vmul.f32 %v6528_v42, %v777_v54  ;;  %v874_v5 = vadd.f32 %v6543_v59, %v851_v57 }
  0xe8   : > { %v853_v60 = vadd.f32 %v837_v56, %v753_v50  ;;  %v773_v61 = vpop.permute.xlu0 %772  ;;  %v890_v12 = vmax.f32 %v874_v5, 0.0 }
  0xe9   : > { %v836_v63 = vmul.f32 %v6528_v42, %v773_v61  ;;  %v781_v0 = vpop.permute.xlu1 %780 }
  0xea   : > { %v838_v3 = vmul.f32 %v6528_v42, %v781_v0  ;;  %v876_v6 = vadd.f32 %v6543_v59, %v853_v60 }
  0xeb   : > { %v852_v4 = vadd.f32 %v836_v63, %v752_v62 }
  0xec   : > { %v854_v7 = vadd.f32 %v838_v3, %v754_v2  ;;  %v785_v8 = vpop.permute.xlu0 %784  ;;  %v892_v14 = vmax.f32 %v876_v6, 0.0 }
  0xed   : > { %v875_v9 = vadd.f32 %v6543_v59, %v852_v4  ;;  %v839_v26 = vmul.f32 %v6528_v42, %v785_v8 }
  0xee   : > { %v877_v10 = vadd.f32 %v6543_v59, %v854_v7  ;;  %v595_v11 = vpop.permute.xlu1 %594 }
  0xef   : > { %v891_v13 = vmax.f32 %v875_v9, 0.0  ;;  %v656_v34 = vmul.f32 %v6525_v40, %v595_v11 }
  0xf0   : > { %v893_v15 = vmax.f32 %v877_v10, 0.0  ;;  %v797_v16 = vpop.permute.xlu0 %796 }
  0xf1   : > { %v906_v17 = vpack.c.bf16 %v891_v13, %v890_v12  ;;  %v842_v37 = vmul.f32 %v6528_v42, %v797_v16  ;;  %v756_v46 = vadd.f32 %v740_v33, %v656_v34 }
  0xf2   : > { %v907_v18 = vpack.c.bf16 %v893_v15, %v892_v14 }
  0xf3   : > { %v685_v19 = vpop.permute.xlu1 %684  ;;  %5510 = vmatprep.mubr.msk.bf16.mxu0 %vm953_vm0, %v906_v17 }
  0xf4   : > { %5511 = vmatmul.mubr.msk.bf16.vlgmr.msra.gmra.mrb[0].mxu0 %vm953_vm0, %v907_v18  ;;  %v805_v20 = vpop.permute.xlu0 %804  ;;  %v739_v25 = vmul.f32 %v6522_v39, %v685_v19 }
  0xf5   : > { %v844_v11 = vmul.f32 %v6528_v42, %v805_v20 }
  0xf8   : > { %v600_v21 = vpop.permute.xlu1 %599 }
  0xf9   : > { %v590_v22 = vpop.permute.xlu0 %589  ;;  %v657_v47 = vmul.f32 %v6525_v40, %v600_v21 }
  0xfa   : > { %v655_v24 = vmul.f32 %v6525_v40, %v590_v22 }
  0xfb   : > { %v757_v53 = vadd.f32 %v741_v45, %v657_v47 }
  0xfc   : > { %v605_v23 = vpop.permute.xlu1 %604  ;;  %v755_v27 = vadd.f32 %v739_v25, %v655_v24 }
  0xfd   : > { %v658_v36 = vmul.f32 %v6525_v40, %v605_v23  ;;  %v615_v3 = vpop.permute.xlu0 %614 }
  0xfe   : > { %v855_v38 = vadd.f32 %v839_v26, %v755_v27  ;;  %v660_v10 = vmul.f32 %v6525_v40, %v615_v3  ;;  %v5667_v3 = vld [vmem:[%s7220_s5 + $0x10] sm:$0xff]  }
  0xff   : > { %5530 = vmatprep.subr.bf16.mxu1 %v5667_v3 }
 0x100   : > { %v878_v50 = vadd.f32 %v6543_v59, %v855_v38  ;;  %5531 = vmatpush3.bf16.msra.mxu1 %v5667_v3 }
 0x101   : > { %v697_v29 = vpop.permute.xlu1 %696  ;;  %v620_v5 = vpop.permute.xlu0 %619 }
 0x102   : > { %v742_v30 = vmul.f32 %v6522_v39, %v697_v29  ;;  %v894_v56 = vmax.f32 %v878_v50, 0.0  ;;  %v661_v18 = vmul.f32 %v6525_v40, %v620_v5 }
 0x104   : > { %v758_v43 = vadd.f32 %v742_v30, %v658_v36 }
 0x105   : > { %v630_v8 = vpop.permute.xlu0 %629 }
 0x106   : > { %v789_v44 = vpop.permute.xlu1 %788  ;;  %v858_v51 = vadd.f32 %v842_v37, %v758_v43 }
 0x107   : > { %v840_v48 = vmul.f32 %v6528_v42, %v789_v44 }
 0x108   : > { %v881_v57 = vadd.f32 %v6543_v59, %v858_v51 }
 0x109   : > { %v856_v41 = vadd.f32 %v840_v48, %v756_v46 }
 0x10a   : > { %v793_v52 = vpop.permute.xlu1 %792  ;;  %v897_v63 = vmax.f32 %v881_v57, 0.0  ;;  %v709_v14 = vpop.permute.xlu0 %708 }
 0x10b   : > { %v879_v54 = vadd.f32 %v6543_v59, %v856_v41  ;;  %v841_v55 = vmul.f32 %v6528_v42, %v793_v52  ;;  %v745_v19 = vmul.f32 %v6522_v39, %v709_v14 }
 0x10d   : > { %v895_v58 = vmax.f32 %v879_v54, 0.0  ;;  %v857_v49 = vadd.f32 %v841_v55, %v757_v53  ;;  %v761_v20 = vadd.f32 %v745_v19, %v661_v18 }
 0x10e   : > { %v721_v53 = vpop.permute.xlu0 %720 }
 0x10f   : > { %v908_v60 = vpack.c.bf16 %v895_v58, %v894_v56  ;;  %v880_v61 = vadd.f32 %v6543_v59, %v857_v49  ;;  %v610_v62 = vpop.permute.xlu1 %609 }
 0x110   : > { %v659_v16 = vmul.f32 %v6525_v40, %v610_v62 }
 0x111   : > { %v896_v0 = vmax.f32 %v880_v61, 0.0  ;;  %5514 = vmatprep.mubr.msk.bf16.mxu0 %vm953_vm0, %v908_v60  ;;  %v663_v60 = vmul.f32 %v6525_v40, %v630_v8 }
 0x112   : > { %v725_v55 = vpop.permute.xlu0 %724 }
 0x113   : > { %v909_v2 = vpack.c.bf16 %v897_v63, %v896_v0 }
 0x114   : > { %v701_v4 = vpop.permute.xlu1 %700 }
 0x115   : > { %5515 = vmatmul.mubr.msk.bf16.gmra.mrb[4].mxu0 %vm953_vm0, %v909_v2  ;;  %v743_v15 = vmul.f32 %v6522_v39, %v701_v4  ;;  %v748_v4 = vmul.f32 %v6522_v39, %v721_v53 }
 0x117   : > { %v759_v22 = vadd.f32 %v743_v15, %v659_v16  ;;  %v817_v49 = vpop.permute.xlu0 %816 }
 0x118   : > { %v705_v6 = vpop.permute.xlu1 %704  ;;  %v847_v62 = vmul.f32 %v6528_v42, %v817_v49 }
 0x119   : > { %v744_v9 = vmul.f32 %v6522_v39, %v705_v6 }
 0x11b   : > { %v760_v12 = vadd.f32 %v744_v9, %v660_v10  ;;  %v829_v2 = vpop.permute.xlu0 %828 }
 0x11c   : > { %v850_v9 = vmul.f32 %v6528_v42, %v829_v2 }
 0x11d   : > { %v625_v7 = vpop.permute.xlu1 %624  ;;  %v860_v17 = vadd.f32 %v844_v11, %v760_v12  ;;  %v5668_v11 = vld [vmem:[%s7220_s5 + $0x18] sm:$0xff]  }
 0x11e   : > { %v662_v34 = vmul.f32 %v6525_v40, %v625_v7  ;;  %5532 = vmatprep.subr.bf16.mxu1 %v5668_v11 }
 0x11f   : > { %v883_v24 = vadd.f32 %v6543_v59, %v860_v17  ;;  %5533 = vmatpush3.bf16.msra.mxu1 %v5668_v11 }
 0x121   : > { %v899_v33 = vmax.f32 %v883_v24, 0.0 }
 0x122   : > { %v713_v13 = vpop.permute.xlu1 %712 }
 0x123   : > { %v746_v27 = vmul.f32 %v6522_v39, %v713_v13  ;;  %v749_v13 = vmul.f32 %v6522_v39, %v725_v55  ;;  %v1321_v55 = vld [vmem:[%s7222_s7 + $0x130] sm:$0xff] }
 0x125   : > { %v762_v43 = vadd.f32 %v746_v27, %v662_v34 }
 0x127   : > { %v801_v21 = vpop.permute.xlu1 %800 }
 0x128   : > { %v843_v23 = vmul.f32 %v6528_v42, %v801_v21 }
 0x12a   : > { %v859_v25 = vadd.f32 %v843_v23, %v759_v22 }
 0x12b   : > { %v809_v26 = vpop.permute.xlu1 %808 }
 0x12c   : > { %v882_v29 = vadd.f32 %v6543_v59, %v859_v25  ;;  %v845_v30 = vmul.f32 %v6528_v42, %v809_v26 }
 0x12e   : > { %v898_v36 = vmax.f32 %v882_v29, 0.0  ;;  %v861_v37 = vadd.f32 %v845_v30, %v761_v20 }
 0x12f   : > { %v813_v38 = vpop.permute.xlu1 %812 }
 0x130   : > { %v910_v44 = vpack.c.bf16 %v899_v33, %v898_v36  ;;  %v846_v45 = vmul.f32 %v6528_v42, %v813_v38  ;;  %v884_v46 = vadd.f32 %v6543_v59, %v861_v37  ;;  %v1287_v33 = vld [vmem:[%s7222_s7 + $0x20] sm:$0xff]  ;;  %v1289_v36 = vld [vmem:[%s7222_s7 + $0x30] sm:$0xff] }
 0x132   : > { %v862_v47 = vadd.f32 %v846_v45, %v762_v43  ;;  %5518 = vmatprep.mubr.msk.bf16.mxu0 %vm953_vm0, %v910_v44  ;;  %v900_v51 = vmax.f32 %v884_v46, 0.0  ;;  %v1293_v43 = vld [vmem:[%s7222_s7 + $0x50] sm:$0xff] }
 0x133   : > { %v1297_v44 = vld [vmem:[%s7222_s7 + $0x70] sm:$0xff] }
 0x134   : > { %v885_v48 = vadd.f32 %v6543_v59, %v862_v47  ;;  %v635_v50 = vpop.permute.xlu1 %634  ;;  %v5066_v45 = vcombine.high %v1293_v43, %v1297_v44  ;;  %v1301_v46 = vld [vmem:[%s7222_s7 + $0x90] sm:$0xff] }
 0x135   : > { %v664_v5 = vmul.f32 %v6525_v40, %v635_v50  ;;  %v1305_v47 = vld [vmem:[%s7222_s7 + $0xb0] sm:$0xff] }
 0x136   : > { %v901_v41 = vmax.f32 %v885_v48, 0.0  ;;  %v5065_v48 = vcombine.low %v1293_v43, %v1297_v44  ;;  %v5074_v50 = vcombine.high %v1301_v46, %v1305_v47 }
 0x137   : > { %v764_v12 = vadd.f32 %v748_v4, %v664_v5 }
 0x138   : > { %v911_v52 = vpack.c.bf16 %v901_v41, %v900_v51  ;;  %v1309_v51 = vld [vmem:[%s7222_s7 + $0xd0] sm:$0xff] }
 0x139   : > { %v717_v54 = vpop.permute.xlu1 %716  ;;  %v1313_v41 = vld [vmem:[%s7222_s7 + $0xf0] sm:$0xff] }
 0x13a   : > { %5519 = vmatmul.mubr.msk.bf16.gmra.mrb[8].mxu0 %vm953_vm0, %v911_v52  ;;  %v747_v58 = vmul.f32 %v6522_v39, %v717_v54  ;;  %v5073_v52 = vcombine.low %v1301_v46, %v1305_v47  ;;  %v5082_v53 = vcombine.high %v1309_v51, %v1313_v41  ;;  %v1317_v54 = vld [vmem:[%s7222_s7 + $0x110] sm:$0xff] }
 0x13b   : > { %v5090_v49 = vcombine.high %v1317_v54, %v1321_v55  ;;  %v5089_v5 = vcombine.low %v1317_v54, %v1321_v55 }
 0x13c   : > { %v763_v61 = vadd.f32 %v747_v58, %v663_v60 }
 0x13e   : > { %v640_v56 = vpop.permute.xlu1 %639  ;;  %v863_v7 = vadd.f32 %v847_v62, %v763_v61  ;;  %v1325_v62 = vld [vmem:[%s7222_s7 + $0x150] sm:$0xff] }
 0x13f   : > { %v665_v14 = vmul.f32 %v6525_v40, %v640_v56  ;;  %v6656_v56 = vld [vmem:[%s7219_s4] ss:$0 sm:$0xff] }
 0x140   : > { %v886_v16 = vadd.f32 %v6543_v59, %v863_v7 }
 0x141   : > { %v765_v21 = vadd.f32 %v749_v13, %v665_v14  ;;  %v1295_v13 = vld [vmem:[%s7222_s7 + $0x60] sm:$0xff] }
 0x142   : > { %v645_v57 = vpop.permute.xlu1 %644  ;;  %v902_v24 = vmax.f32 %v886_v16, 0.0 }
 0x143   : > { %v666_v6 = vmul.f32 %v6525_v40, %v645_v57  ;;  %v5081_v57 = vcombine.low %v1309_v51, %v1313_v41 }
 0x147   : > { %v729_v63 = vpop.permute.xlu1 %728 }
 0x148   : > { %v750_v0 = vmul.f32 %v6522_v39, %v729_v63  ;;  %v1329_v63 = vld [vmem:[%s7222_s7 + $0x170] sm:$0xff] }
 0x149   : > { %v5098_v7 = vcombine.high %v1325_v62, %v1329_v63 }
 0x14a   : > { %v766_v8 = vadd.f32 %v750_v0, %v666_v6 }
 0x14c   : > { %v821_v10 = vpop.permute.xlu1 %820  ;;  %v866_v17 = vadd.f32 %v850_v9, %v766_v8 }
 0x14d   : > { %v848_v15 = vmul.f32 %v6528_v42, %v821_v10 }
 0x14e   : > { %v889_v25 = vadd.f32 %v6543_v59, %v866_v17 }
 0x14f   : > { %v864_v18 = vadd.f32 %v848_v15, %v764_v12  ;;  %v1291_v12 = vld [vmem:[%s7222_s7 + $0x40] sm:$0xff]  ;;  %v5097_v15 = vcombine.low %v1325_v62, %v1329_v63 }
 0x150   : > { %v825_v19 = vpop.permute.xlu1 %824  ;;  %v905_v27 = vmax.f32 %v889_v25, 0.0  ;;  %v1311_v25 = vld [vmem:[%s7222_s7 + $0xe0] sm:$0xff] }
 0x151   : > { %v887_v22 = vadd.f32 %v6543_v59, %v864_v18  ;;  %v849_v23 = vmul.f32 %v6528_v42, %v825_v19  ;;  %v6617_v42 = vld [vmem:[%s7222_s7] sm:$0xff]  ;;  %v5062_v18 = vcombine.high %v1291_v12, %v1295_v13 }
 0x152   : > { %v5054_v34 = vcombine.high %v6617_v42, %v1287_v33  ;;  %v5053_v17 = vcombine.low %v6617_v42, %v1287_v33  ;;  %v1299_v19 = vld [vmem:[%s7222_s7 + $0x80] sm:$0xff] }
 0x153   : > { %v903_v39 = vmax.f32 %v887_v22, 0.0  ;;  %v865_v20 = vadd.f32 %v849_v23, %v765_v21  ;;  %v1303_v21 = vld [vmem:[%s7222_s7 + $0xa0] sm:$0xff]  ;;  %v5061_v22 = vcombine.low %v1291_v12, %v1295_v13 }
 0x154   : > { %1709 = vmatprep.subr.bf16.mxu1 %v5054_v34  ;;  %v5070_v23 = vcombine.high %v1299_v19, %v1303_v21  ;;  %v1327_v42 = vld [vmem:[%s7222_s7 + $0x160] sm:$0xff] }
 0x155   : > { %v912_v40 = vpack.c.bf16 %v903_v39, %v902_v24  ;;  %v888_v26 = vadd.f32 %v6543_v59, %v865_v20  ;;  %v1285_v59 = vld [vmem:[%s7222_s7 + $0x10] sm:$0xff]  ;;  %v1307_v24 = vld [vmem:[%s7222_s7 + $0xc0] sm:$0xff]  ;;  %v5069_v39 = vcombine.low %v1299_v19, %v1303_v21 }
 0x156   : > { %v5057_v37 = vcombine.low %v1285_v59, %v1289_v36  ;;  %v5058_v38 = vcombine.high %v1285_v59, %v1289_v36  ;;  %v5078_v20 = vcombine.high %v1307_v24, %v1311_v25 }
 0x157   : > { %v904_v29 = vmax.f32 %v888_v26, 0.0  ;;  %5522 = vmatprep.mubr.msk.bf16.mxu0 %vm953_vm0, %v912_v40  ;;  %v1315_v40 = vld [vmem:[%s7222_s7 + $0x100] sm:$0xff] }
 0x158   : > { %1935 = vmatprep.subr.bf16.mxu0 %v5058_v38  ;;  %v1319_v26 = vld [vmem:[%s7222_s7 + $0x120] sm:$0xff] }
 0x159   : > { %v913_v30 = vpack.c.bf16 %v905_v27, %v904_v29  ;;  %1936 = vmatpush1.bf16.msra.mxu0 %v5057_v37  ;;  %v5077_v27 = vcombine.low %v1307_v24, %v1311_v25  ;;  %v5086_v29 = vcombine.high %v1315_v40, %v1319_v26  ;;  %v5085_v33 = vcombine.low %v1315_v40, %v1319_v26 }
 0x15a   : > { %1937 = vmatprep.subr.bf16.mxu0 %v5066_v45 }
 0x15b   : > { %5523 = vmatmul.mubr.msk.bf16.gmra.mrb[12].mxu0 %vm953_vm0, %v913_v30  ;;  %v1323_v30 = vld [vmem:[%s7222_s7 + $0x140] sm:$0xff] }
 0x15c   : > { %1967 = vmatprep.mubr.bf16.mxu0 %v6260_v1  ;;  %v5094_v59 = vcombine.high %v1323_v30, %v1327_v42  ;;  %v5093_v34 = vcombine.low %v1323_v30, %v1327_v42 }
 0x15d   : > { %1938 = vmatpush1.bf16.msra.mxu0 %v5065_v48 }
 0x15e   : > { %1939 = vmatprep.subr.bf16.mxu0 %v5074_v50 }
 0x161   : > { %1940 = vmatpush1.bf16.msra.mxu0 %v5073_v52 }
 0x162   : > { %1941 = vmatprep.subr.bf16.mxu0 %v5082_v53 }
 0x165   : > { %1942 = vmatpush1.bf16.msra.mxu0 %v5081_v57 }
 0x166   : > { %1943 = vmatprep.subr.bf16.mxu0 %v5090_v49 }
 0x169   : > { %1944 = vmatpush1.bf16.msra.mxu0 %v5089_v5 }
 0x16a   : > { %1945 = vmatprep.subr.bf16.mxu0 %v5098_v7  ;;  %v1335_v7 = vld [vmem:[%s7222_s7 + $0x1a0] sm:$0xff] }
 0x16d   : > { %1946 = vmatpush1.bf16.msra.mxu0 %v5097_v15  ;;  %v1343_v15 = vld [vmem:[%s7222_s7 + $0x1e0] sm:$0xff] }
 0x1c7   : > { %v5512_v58 = vpop.f32.mrb[0].mxu0 }
 0x1c8   : > { %v1021_v60 = vadd.f32 %v5512_v58, %v6656_v56  ;;  %v1012_v61 = vpop.f32.mrb[1].mxu0 }
 0x1c9   : > { %v1013_v0 = vadd.f32 %v6656_v56, %v1012_v61  ;;  %v5513_v2 = vpop.f32.mrb[2].mxu0 }
 0x1ca   : > { %v1024_v3 = vadd.f32 %v5513_v2, %v6656_v56  ;;  %v1015_v4 = vpop.f32.mrb[3].mxu0  ;;  %v1077_v8 = vmax.f32 %v1021_v60, 0.0 }
 0x1cb   : > { %v1016_v6 = vadd.f32 %v6656_v56, %v1015_v4  ;;  %v1075_v10 = vmax.f32 %v1013_v0, 0.0 }
 0x1cc   : > { %v1078_v9 = vmax.f32 %v1024_v3, 0.0 }
 0x1cd   : > { %v1076_v11 = vmax.f32 %v1016_v6, 0.0  ;;  %v1331_v6 = vld [vmem:[%s7222_s7 + $0x180] sm:$0xff] }
 0x1ce   : > { %v1092_v14 = vpack.c.bf16 %v1078_v9, %v1077_v8  ;;  %v1333_v8 = vld [vmem:[%s7222_s7 + $0x190] sm:$0xff]  ;;  %v5102_v9 = vcombine.high %v1331_v6, %v1335_v7 }
 0x1cf   : > { %v1091_v16 = vpack.c.bf16 %v1076_v11, %v1075_v10  ;;  %v1337_v10 = vld [vmem:[%s7222_s7 + $0x1b0] sm:$0xff]  ;;  %v5101_v11 = vcombine.low %v1331_v6, %v1335_v7  ;;  %v1316_v7 = vld [vmem:[%s7222_s7 + $0x108] sm:$0xff] }
 0x1d0   : > { %v5105_v12 = vcombine.low %v1333_v8, %v1337_v10  ;;  %v5106_v13 = vcombine.high %v1333_v8, %v1337_v10  ;;  %v1320_v8 = vld [vmem:[%s7222_s7 + $0x128] sm:$0xff] }
 0x1d1   : > { %5534 = vmatprep.mubr.msk.bf16.mxu1 %vm953_vm0, %v1091_v16  ;;  %v1341_v16 = vld [vmem:[%s7222_s7 + $0x1d0] sm:$0xff]  ;;  %v5088_v10 = vcombine.high %v1316_v7, %v1320_v8 }
 0x1d2   : > { %5535 = vmatmul.mubr.msk.bf16.vlgmr.msra.gmra.mrb[0].mxu1 %vm953_vm0, %v1092_v14  ;;  %1947 = vmatprep.subr.bf16.mxu0 %v5106_v13  ;;  %v1339_v14 = vld [vmem:[%s7222_s7 + $0x1c0] sm:$0xff]  ;;  %v5087_v13 = vcombine.low %v1316_v7, %v1320_v8 }
 0x1d3   : > { %1710 = vmatpush1.bf16.msra.mxu1 %v5053_v17  ;;  %1948 = vmatpush1.bf16.msra.mxu0 %v5105_v12  ;;  %v5110_v17 = vcombine.high %v1339_v14, %v1343_v15  ;;  %v5109_v19 = vcombine.low %v1339_v14, %v1343_v15  ;;  %v1328_v12 = vld [vmem:[%s7222_s7 + $0x168] sm:$0xff] }
 0x1d4   : > { %1711 = vmatprep.subr.bf16.mxu1 %v5062_v18  ;;  %v1345_v18 = vld [vmem:[%s7222_s7 + $0x1f0] sm:$0xff]  ;;  %v1332_v15 = vld [vmem:[%s7222_s7 + $0x188] sm:$0xff] }
 0x1d5   : > { %v5113_v21 = vcombine.low %v1341_v16, %v1345_v18 }
 0x1d7   : > { %1712 = vmatpush1.bf16.msra.mxu1 %v5061_v22  ;;  %v5114_v22 = vcombine.high %v1341_v16, %v1345_v18  ;;  %v1336_v16 = vld [vmem:[%s7222_s7 + $0x1a8] sm:$0xff] }
 0x1d8   : > { %1713 = vmatprep.subr.bf16.mxu1 %v5070_v23  ;;  %v5104_v18 = vcombine.high %v1332_v15, %v1336_v16 }
 0x1d9   : > { %1949 = vmatprep.subr.bf16.mxu0 %v5114_v22  ;;  %v6816_v22 = vld [vmem:[%s7222_s7 + $0x18] sm:$0xff] }
 0x1da   : > { %1950 = vmatpush1.bf16.msra.mxu0 %v5113_v21  ;;  %v1344_v21 = vld [vmem:[%s7222_s7 + $0x1e8] sm:$0xff] }
 0x1db   : > { %1714 = vmatpush1.bf16.msra.mxu1 %v5069_v39 }
 0x1dc   : > { %1715 = vmatprep.subr.bf16.mxu1 %v5078_v20 }
 0x1df   : > { %1716 = vmatpush1.bf16.msra.mxu1 %v5077_v27 }
 0x1e0   : > { %1717 = vmatprep.subr.bf16.mxu1 %v5086_v29 }
 0x1e3   : > { %1718 = vmatpush1.bf16.msra.mxu1 %v5085_v33 }
 0x1e4   : > { %1719 = vmatprep.subr.bf16.mxu1 %v5094_v59 }
 0x1e7   : > { %1720 = vmatpush1.bf16.msra.mxu1 %v5093_v34 }
 0x1e8   : > { %v5516_v36 = vpop.f32.mrb[4].mxu0  ;;  %1721 = vmatprep.subr.bf16.mxu1 %v5102_v9 }
 0x1e9   : > { %v1037_v37 = vadd.f32 %v5516_v36, %v6656_v56  ;;  %v1028_v38 = vpop.f32.mrb[5].mxu0  ;;  %v1284_v36 = vld [vmem:[%s7222_s7 + $0x8] sm:$0xff] }
 0x1ea   : > { %v1029_v43 = vadd.f32 %v6656_v56, %v1028_v38  ;;  %v5517_v44 = vpop.f32.mrb[6].mxu0 }
 0x1eb   : > { %v1040_v45 = vadd.f32 %v5517_v44, %v6656_v56  ;;  %v1031_v46 = vpop.f32.mrb[7].mxu0  ;;  %v1081_v48 = vmax.f32 %v1037_v37, 0.0  ;;  %1722 = vmatpush1.bf16.msra.mxu1 %v5101_v11  ;;  %v1324_v11 = vld [vmem:[%s7222_s7 + $0x148] sm:$0xff] }
 0x1ec   : > { %v1032_v47 = vadd.f32 %v6656_v56, %v1031_v46  ;;  %v1079_v51 = vmax.f32 %v1029_v43, 0.0  ;;  %1723 = vmatprep.subr.bf16.mxu1 %v5110_v17  ;;  %v6753_v43 = vld [vmem:[%s7221_s6] ss:$0 sm:$0xff]  ;;  %v5096_v14 = vcombine.high %v1324_v11, %v1328_v12  ;;  %v5095_v17 = vcombine.low %v1324_v11, %v1328_v12 }
 0x1ed   : > { %v1082_v50 = vmax.f32 %v1040_v45, 0.0 }
 0x1ee   : > { %v1080_v41 = vmax.f32 %v1032_v47, 0.0 }
 0x1ef   : > { %v1094_v52 = vpack.c.bf16 %v1082_v50, %v1081_v48  ;;  %1724 = vmatpush1.bf16.msra.mxu1 %v5109_v19  ;;  %v1340_v19 = vld [vmem:[%s7222_s7 + $0x1c8] sm:$0xff] }
 0x1f0   : > { %v1093_v53 = vpack.c.bf16 %v1080_v41, %v1079_v51 }
 0x1f2   : > { %5538 = vmatprep.mubr.msk.bf16.mxu1 %vm953_vm0, %v1093_v53 }
 0x1f3   : > { %5539 = vmatmul.mubr.msk.bf16.gmra.mrb[4].mxu1 %vm953_vm0, %v1094_v52 }
 0x20d   : > { %v5520_v54 = vpop.f32.mrb[8].mxu0 }
 0x20e   : > { %v1053_v55 = vadd.f32 %v5520_v54, %v6656_v56  ;;  %v1044_v57 = vpop.f32.mrb[9].mxu0 }
 0x20f   : > { %v1045_v58 = vadd.f32 %v6656_v56, %v1044_v57  ;;  %v5521_v49 = vpop.f32.mrb[10].mxu0  ;;  %v1292_v57 = vld [vmem:[%s7222_s7 + $0x48] sm:$0xff] }
 0x210   : > { %v1056_v60 = vadd.f32 %v5521_v49, %v6656_v56  ;;  %v1047_v61 = vpop.f32.mrb[11].mxu0  ;;  %v1085_v63 = vmax.f32 %v1053_v55, 0.0 }
 0x211   : > { %v1048_v62 = vadd.f32 %v6656_v56, %v1047_v61  ;;  %v1083_v2 = vmax.f32 %v1045_v58, 0.0  ;;  %v1296_v58 = vld [vmem:[%s7222_s7 + $0x68] sm:$0xff] }
 0x212   : > { %v1086_v0 = vmax.f32 %v1056_v60, 0.0  ;;  %v5064_v61 = vcombine.high %v1292_v57, %v1296_v58 }
 0x213   : > { %v1084_v3 = vmax.f32 %v1048_v62, 0.0  ;;  %v1300_v62 = vld [vmem:[%s7222_s7 + $0x88] sm:$0xff] }
 0x214   : > { %v1096_v4 = vpack.c.bf16 %v1086_v0, %v1085_v63  ;;  %v1304_v63 = vld [vmem:[%s7222_s7 + $0xa8] sm:$0xff]  ;;  %v5063_v0 = vcombine.low %v1292_v57, %v1296_v58 }
 0x215   : > { %v1095_v5 = vpack.c.bf16 %v1084_v3, %v1083_v2  ;;  %v5072_v2 = vcombine.high %v1300_v62, %v1304_v63  ;;  %v1308_v3 = vld [vmem:[%s7222_s7 + $0xc8] sm:$0xff] }
 0x217   : > { %5542 = vmatprep.mubr.msk.bf16.mxu1 %vm953_vm0, %v1095_v5  ;;  %v5071_v5 = vcombine.low %v1300_v62, %v1304_v63 }
 0x218   : > { %5543 = vmatmul.mubr.msk.bf16.gmra.mrb[8].mxu1 %vm953_vm0, %v1096_v4  ;;  %v1312_v4 = vld [vmem:[%s7222_s7 + $0xe8] sm:$0xff] }
 0x219   : > { %v5080_v6 = vcombine.high %v1308_v3, %v1312_v4  ;;  %v5079_v9 = vcombine.low %v1308_v3, %v1312_v4 }
 0x22e   : > { %v5524_v23 = vpop.f32.mrb[12].mxu0 }
 0x22f   : > { %v1069_v24 = vadd.f32 %v5524_v23, %v6656_v56  ;;  %v1060_v25 = vpop.f32.mrb[13].mxu0  ;;  %v6821_v23 = vld [vmem:[%s7222_s7 + $0x38] sm:$0xff] }
 0x230   : > { %v1061_v39 = vadd.f32 %v6656_v56, %v1060_v25  ;;  %v5525_v20 = vpop.f32.mrb[14].mxu0  ;;  %v5059_v25 = vcombine.low %v6816_v22, %v6821_v23 }
 0x231   : > { %v1072_v40 = vadd.f32 %v5525_v20, %v6656_v56  ;;  %v1063_v26 = vpop.f32.mrb[15].mxu0  ;;  %v1089_v29 = vmax.f32 %v1069_v24, 0.0  ;;  %v5103_v24 = vcombine.low %v1332_v15, %v1336_v16  ;;  %v5112_v20 = vcombine.high %v1340_v19, %v1344_v21  ;;  %v1302_v16 = vld [vmem:[%s7222_s7 + $0x98] sm:$0xff] }
 0x232   : > { %v1064_v27 = vadd.f32 %v6656_v56, %v1063_v26  ;;  %v1087_v42 = vmax.f32 %v1061_v39, 0.0  ;;  %v1288_v56 = vld [vmem:[%s7222_s7 + $0x28] sm:$0xff] }
 0x233   : > { %v1090_v30 = vmax.f32 %v1072_v40, 0.0  ;;  %v5055_v37 = vcombine.low %v1284_v36, %v1288_v56  ;;  %v5056_v38 = vcombine.high %v1284_v36, %v1288_v56 }
 0x234   : > { %v1088_v33 = vmax.f32 %v1064_v27, 0.0 }
 0x235   : > { %v1098_v59 = vpack.c.bf16 %v1090_v30, %v1089_v29  ;;  %1822 = vmatprep.subr.bf16.mxu1 %v5056_v38 }
 0x236   : > { %v1097_v34 = vpack.c.bf16 %v1088_v33, %v1087_v42  ;;  %v5111_v33 = vcombine.low %v1340_v19, %v1344_v21  ;;  %v1310_v21 = vld [vmem:[%s7222_s7 + $0xd8] sm:$0xff] }
 0x238   : > { %5546 = vmatprep.mubr.msk.bf16.mxu1 %vm953_vm0, %v1097_v34  ;;  %v5060_v34 = vcombine.high %v6816_v22, %v6821_v23  ;;  %v1318_v22 = vld [vmem:[%s7222_s7 + $0x118] sm:$0xff] }
 0x239   : > { %5547 = vmatmul.mubr.msk.bf16.gmra.mrb[12].mxu1 %vm953_vm0, %v1098_v59  ;;  %v1322_v23 = vld [vmem:[%s7222_s7 + $0x138] sm:$0xff] }
 0x23a   : > { %1741 = vmatprep.mubr.bf16.mxu1 %v6260_v1 }
 0x2a5   : > { %v5536_v44 = vpop.f32.mrb[0].mxu1 }
 0x2a6   : > { %v1205_v45 = vadd.f32 %v5536_v44, %v6753_v43  ;;  %v1196_v46 = vpop.f32.mrb[1].mxu1 }
 0x2a7   : > { %v1197_v47 = vadd.f32 %v6753_v43, %v1196_v46  ;;  %v5537_v48 = vpop.f32.mrb[2].mxu1 }
 0x2a8   : > { %v1208_v50 = vadd.f32 %v5537_v48, %v6753_v43  ;;  %v1199_v51 = vpop.f32.mrb[3].mxu1  ;;  %v1261_v52 = vmax.f32 %v1205_v45, 0.0 }
 0x2a9   : > { %v1200_v41 = vadd.f32 %v6753_v43, %v1199_v51  ;;  %v1259_v54 = vmax.f32 %v1197_v47, 0.0 }
 0x2aa   : > { %v1262_v53 = vmax.f32 %v1208_v50, 0.0 }
 0x2ab   : > { %v1260_v55 = vmax.f32 %v1200_v41, 0.0 }
 0x2ac   : > { %v6765_v49 = vpack.c.bf16 %v1262_v53, %v1261_v52 }
 0x2ad   : > { %v6767_v60 = vpack.c.bf16 %v1260_v55, %v1259_v54 }
 0x2af   : > { %1742 = vmatmul.mubr.bf16.vlgmr.msra.gmra.mrb[16].mxu1 %v6767_v60  ;;  %1968 = vmatmul.mubr.bf16.vlgmr.msra.gmra.mrb[16].mxu0 %v6767_v60 }
 0x2b0   : > { %1751 = vmatprep.mubr.bf16.mxu1 %v6260_v1  ;;  %1977 = vmatprep.mubr.bf16.mxu0 %v6260_v1 }
 0x2b1   : > { %1823 = vmatpush1.bf16.msra.mxu1 %v5055_v37 }
 0x2b2   : > { %1824 = vmatprep.subr.bf16.mxu1 %v5064_v61 }
 0x2b5   : > { %1825 = vmatpush1.bf16.msra.mxu1 %v5063_v0 }
 0x2b6   : > { %1826 = vmatprep.subr.bf16.mxu1 %v5072_v2 }
 0x2b7   : > { %1752 = vmatmul.mubr.bf16.gmra.mrb[20].mxu1 %v6765_v49  ;;  %1978 = vmatmul.mubr.bf16.gmra.mrb[20].mxu0 %v6765_v49 }
 0x2b8   : > { %1761 = vmatprep.mubr.bf16.mxu1 %v6260_v1  ;;  %1987 = vmatprep.mubr.bf16.mxu0 %v6260_v1 }
 0x2b9   : > { %1827 = vmatpush1.bf16.msra.mxu1 %v5071_v5 }
 0x2ba   : > { %1828 = vmatprep.subr.bf16.mxu1 %v5080_v6 }
 0x2bd   : > { %1829 = vmatpush1.bf16.msra.mxu1 %v5079_v9 }
 0x2be   : > { %1830 = vmatprep.subr.bf16.mxu1 %v5088_v10 }
 0x2c1   : > { %1831 = vmatpush1.bf16.msra.mxu1 %v5087_v13 }
 0x2c2   : > { %1832 = vmatprep.subr.bf16.mxu1 %v5096_v14  ;;  %v1298_v14 = vld [vmem:[%s7222_s7 + $0x78] sm:$0xff] }
 0x2c5   : > { %1833 = vmatpush1.bf16.msra.mxu1 %v5095_v17  ;;  %v1306_v17 = vld [vmem:[%s7222_s7 + $0xb8] sm:$0xff] }
 0x2c6   : > { %v5540_v39 = vpop.f32.mrb[4].mxu1  ;;  %1834 = vmatprep.subr.bf16.mxu1 %v5104_v18  ;;  %v5076_v19 = vcombine.high %v1302_v16, %v1306_v17 }
 0x2c7   : > { %v1221_v40 = vadd.f32 %v5540_v39, %v6753_v43  ;;  %v1212_v26 = vpop.f32.mrb[5].mxu1  ;;  %v5075_v39 = vcombine.low %v1302_v16, %v1306_v17  ;;  %v5692_v16 = vld [vmem:[#allocation3 + $0x6c] ss:$16 sps:$4 sm:$0xff]   ;;  %v5731_v17 = vld [vmem:[#allocation3 + $0x144] ss:$16 sps:$4 sm:$0xff]  }
 0x2c8   : > { %v1213_v27 = vadd.f32 %v6753_v43, %v1212_v26  ;;  %v5541_v29 = vpop.f32.mrb[6].mxu1  ;;  %v1326_v26 = vld [vmem:[%s7222_s7 + $0x158] sm:$0xff] }
 0x2c9   : > { %v1224_v30 = vadd.f32 %v5541_v29, %v6753_v43  ;;  %v1215_v42 = vpop.f32.mrb[7].mxu1  ;;  %1835 = vmatpush1.bf16.msra.mxu1 %v5103_v24  ;;  %v1265_v36 = vmax.f32 %v1221_v40, 0.0  ;;  %v1314_v24 = vld [vmem:[%s7222_s7 + $0xf8] sm:$0xff]  ;;  %v5092_v40 = vcombine.high %v1318_v22, %v1322_v23  ;;  %v5669_v29 = vld [vmem:[#allocation3] ss:$16 sps:$4 sm:$0xff]  }
 0x2ca   : > { %v1216_v59 = vadd.f32 %v6753_v43, %v1215_v42  ;;  %1836 = vmatprep.subr.bf16.mxu1 %v5112_v20  ;;  %v1263_v37 = vmax.f32 %v1213_v27, 0.0  ;;  %v5084_v20 = vcombine.high %v1310_v21, %v1314_v24  ;;  %v1330_v27 = vld [vmem:[%s7222_s7 + $0x178] sm:$0xff]  ;;  %v5091_v42 = vcombine.low %v1318_v22, %v1322_v23  ;;  %v5743_v22 = vld [vmem:[#allocation3 + $0x184] ss:$16 sps:$4 sm:$0xff]  }
 0x2cb   : > { %v1266_v56 = vmax.f32 %v1224_v30, 0.0  ;;  %v5671_v30 = vld [vmem:[#allocation3 + $0x4] ss:$16 sps:$4 sm:$0xff]   ;;  %v5702_v23 = vld [vmem:[#allocation3 + $0xa8] ss:$16 sps:$4 sm:$0xff]  }
 0x2cc   : > { %v1264_v38 = vmax.f32 %v1216_v59, 0.0  ;;  %3942 = vmatprep.subr.bf16.mxu0 %v5671_v30  ;;  %v1334_v59 = vld [vmem:[%s7222_s7 + $0x198] sm:$0xff]  ;;  %v1367_v30 = vsub.s32 4, %v6501_v28 }
 0x2cd   : > { %v6831_v44 = vpack.c.bf16 %v1266_v56, %v1265_v36  ;;  %1837 = vmatpush1.bf16.msra.mxu1 %v5111_v33  ;;  %v5100_v33 = vcombine.high %v1326_v26, %v1330_v27  ;;  %3943 = vmatpush1.bf16.msra.mxu0 %v5669_v29  ;;  %v5099_v36 = vcombine.low %v1326_v26, %v1330_v27  ;;  %v5747_v26 = vld [vmem:[#allocation3 + $0x1a0] ss:$16 sps:$4 sm:$0xff]   ;;  %v5708_v27 = vld [vmem:[#allocation3 + $0xc8] ss:$16 sps:$4 sm:$0xff]   ;;  %v5716_v29 = vld [vmem:[#allocation3 + $0xec] ss:$16 sps:$4 sm:$0xff]  }
 0x2ce   : > { %v6833_v45 = vpack.c.bf16 %v1264_v38, %v1263_v37  ;;  %2048 = vmatprep.subr.bf16.mxu1 %v5060_v34  ;;  %v1338_v34 = vld [vmem:[%s7222_s7 + $0x1b8] sm:$0xff] }
 0x2cf   : > { %v5108_v56 = vcombine.high %v1334_v59, %v1338_v34  ;;  %v1342_v37 = vld [vmem:[%s7222_s7 + $0x1d8] sm:$0xff] }
 0x2d0   : > { %1762 = vmatmul.mubr.bf16.gmra.mrb[24].mxu1 %v6833_v45  ;;  %1988 = vmatmul.mubr.bf16.gmra.mrb[24].mxu0 %v6833_v45  ;;  %v1346_v38 = vld [vmem:[%s7222_s7 + $0x1f8] sm:$0xff] }
 0x2d1   : > { %1771 = vmatprep.mubr.bf16.mxu1 %v6260_v1  ;;  %1997 = vmatprep.mubr.bf16.mxu0 %v6260_v1 }
 0x2d8   : > { %1772 = vmatmul.mubr.bf16.gmra.mrb[28].mxu1 %v6831_v44  ;;  %1998 = vmatmul.mubr.bf16.gmra.mrb[28].mxu0 %v6831_v44 }
 0x2d9   : > { %1781 = vmatprep.mubr.bf16.mxu1 %v6260_v1  ;;  %2007 = vmatprep.mubr.bf16.mxu0 %v6260_v1 }
 0x2eb   : > { %v5544_v46 = vpop.f32.mrb[8].mxu1 }
 0x2ec   : > { %v1237_v47 = vadd.f32 %v5544_v46, %v6753_v43  ;;  %v1228_v48 = vpop.f32.mrb[9].mxu1  ;;  %v5107_v46 = vcombine.low %v1334_v59, %v1338_v34  ;;  %v5753_v59 = vld [vmem:[#allocation3 + $0x1c0] ss:$16 sps:$4 sm:$0xff]   ;;  %v5714_v34 = vld [vmem:[#allocation3 + $0xe8] ss:$16 sps:$4 sm:$0xff]  }
 0x2ed   : > { %v1229_v50 = vadd.f32 %v6753_v43, %v1228_v48  ;;  %v5545_v51 = vpop.f32.mrb[10].mxu1  ;;  %v5115_v48 = vcombine.low %v1342_v37, %v1346_v38 }
 0x2ee   : > { %v1240_v41 = vadd.f32 %v5545_v51, %v6753_v43  ;;  %v1231_v52 = vpop.f32.mrb[11].mxu1  ;;  %v1269_v54 = vmax.f32 %v1237_v47, 0.0  ;;  %v5116_v47 = vcombine.high %v1342_v37, %v1346_v38  ;;  %v5677_v51 = vld [vmem:[#allocation3 + $0x24] ss:$16 sps:$4 sm:$0xff]  }
 0x2ef   : > { %v1232_v53 = vadd.f32 %v6753_v43, %v1231_v52  ;;  %v1267_v57 = vmax.f32 %v1229_v50, 0.0  ;;  %v5674_v50 = vld [vmem:[#allocation3 + $0xc] ss:$16 sps:$4 sm:$0xff]   ;;  %3944 = vmatprep.subr.bf16.mxu0 %v5677_v51  ;;  %v5683_v52 = vld [vmem:[#allocation3 + $0x44] ss:$16 sps:$4 sm:$0xff]  }
 0x2f0   : > { %v1270_v55 = vmax.f32 %v1240_v41, 0.0  ;;  %v5675_v41 = vld [vmem:[#allocation3 + $0x20] ss:$16 sps:$4 sm:$0xff]   ;;  %v5761_v37 = vld [vmem:[#allocation3 + $0x1e4] ss:$16 sps:$4 sm:$0xff]  }
 0x2f1   : > { %v1268_v58 = vmax.f32 %v1232_v53, 0.0  ;;  %3945 = vmatpush1.bf16.msra.mxu0 %v5675_v41  ;;  %v5681_v53 = vld [vmem:[#allocation3 + $0x40] ss:$16 sps:$4 sm:$0xff]  }
 0x2f2   : > { %v6847_v61 = vpack.c.bf16 %v1270_v55, %v1269_v54  ;;  %3946 = vmatprep.subr.bf16.mxu0 %v5683_v52  ;;  %v5689_v54 = vld [vmem:[#allocation3 + $0x64] ss:$16 sps:$4 sm:$0xff]   ;;  %v5687_v55 = vld [vmem:[#allocation3 + $0x60] ss:$16 sps:$4 sm:$0xff]   ;;  %v5720_v52 = vld [vmem:[#allocation3 + $0x108] ss:$16 sps:$4 sm:$0xff]  }
 0x2f3   : > { %v6849_v62 = vpack.c.bf16 %v1268_v58, %v1267_v57  ;;  %v5695_v57 = vld [vmem:[#allocation3 + $0x84] ss:$16 sps:$4 sm:$0xff]   ;;  %v5693_v58 = vld [vmem:[#allocation3 + $0x80] ss:$16 sps:$4 sm:$0xff]  }
 0x2f5   : > { %1782 = vmatmul.mubr.bf16.gmra.mrb[32].mxu1 %v6849_v62  ;;  %2008 = vmatmul.mubr.bf16.gmra.mrb[32].mxu0 %v6849_v62 }
 0x2f6   : > { %1791 = vmatprep.mubr.bf16.mxu1 %v6260_v1  ;;  %2017 = vmatprep.mubr.bf16.mxu0 %v6260_v1 }
 0x2f7   : > { %3947 = vmatpush1.bf16.msra.mxu0 %v5681_v53 }
 0x2f8   : > { %3948 = vmatprep.subr.bf16.mxu0 %v5689_v54 }
 0x2fb   : > { %3949 = vmatpush1.bf16.msra.mxu0 %v5687_v55  ;;  %v5728_v55 = vld [vmem:[#allocation3 + $0x12c] ss:$16 sps:$4 sm:$0xff]  }
 0x2fc   : > { %3950 = vmatprep.subr.bf16.mxu0 %v5695_v57 }
 0x2fd   : > { %1792 = vmatmul.mubr.bf16.gmra.mrb[36].mxu1 %v6847_v61  ;;  %2018 = vmatmul.mubr.bf16.gmra.mrb[36].mxu0 %v6847_v61 }
 0x2fe   : > { %1801 = vmatprep.mubr.bf16.mxu1 %v6260_v1  ;;  %2027 = vmatprep.mubr.bf16.mxu0 %v6260_v1 }
 0x2ff   : > { %3951 = vmatpush1.bf16.msra.mxu0 %v5693_v58 }
 0x30c   : > { %v5548_v63 = vpop.f32.mrb[12].mxu1 }
 0x30d   : > { %v1253_v0 = vadd.f32 %v5548_v63, %v6753_v43  ;;  %v1244_v2 = vpop.f32.mrb[13].mxu1  ;;  %v5701_v63 = vld [vmem:[#allocation3 + $0xa4] ss:$16 sps:$4 sm:$0xff]  }
 0x30e   : > { %v1245_v3 = vadd.f32 %v6753_v43, %v1244_v2  ;;  %v5549_v4 = vpop.f32.mrb[14].mxu1  ;;  %3952 = vmatprep.subr.bf16.mxu0 %v5701_v63  ;;  %v5707_v2 = vld [vmem:[#allocation3 + $0xc4] ss:$16 sps:$4 sm:$0xff]  }
 0x30f   : > { %v1256_v5 = vadd.f32 %v5549_v4, %v6753_v43  ;;  %v1247_v6 = vpop.f32.mrb[15].mxu1  ;;  %v1273_v8 = vmax.f32 %v1253_v0, 0.0  ;;  %v5699_v0 = vld [vmem:[#allocation3 + $0xa0] ss:$16 sps:$4 sm:$0xff]   ;;  %v5713_v4 = vld [vmem:[#allocation3 + $0xe4] ss:$16 sps:$4 sm:$0xff]  }
 0x310   : > { %v1248_v7 = vadd.f32 %v6753_v43, %v1247_v6  ;;  %v1271_v10 = vmax.f32 %v1245_v3, 0.0  ;;  %v1294_v43 = vld [vmem:[%s7222_s7 + $0x58] sm:$0xff]  ;;  %3953 = vmatpush1.bf16.msra.mxu0 %v5699_v0  ;;  %v5705_v3 = vld [vmem:[#allocation3 + $0xc0] ss:$16 sps:$4 sm:$0xff]   ;;  %v5719_v6 = vld [vmem:[#allocation3 + $0x104] ss:$16 sps:$4 sm:$0xff]  }
 0x311   : > { %v1274_v9 = vmax.f32 %v1256_v5, 0.0  ;;  %v5068_v15 = vcombine.high %v1294_v43, %v1298_v14  ;;  %v5067_v18 = vcombine.low %v1294_v43, %v1298_v14  ;;  %3954 = vmatprep.subr.bf16.mxu0 %v5707_v2  ;;  %v5711_v5 = vld [vmem:[#allocation3 + $0xe0] ss:$16 sps:$4 sm:$0xff]   ;;  %v5725_v43 = vld [vmem:[#allocation3 + $0x124] ss:$16 sps:$4 sm:$0xff]  }
 0x312   : > { %v1272_v11 = vmax.f32 %v1248_v7, 0.0  ;;  %v5672_v7 = vld [vmem:[#allocation3 + $0x8] ss:$16 sps:$4 sm:$0xff]   ;;  %v5723_v14 = vld [vmem:[#allocation3 + $0x120] ss:$16 sps:$4 sm:$0xff]  }
 0x313   : > { %v6863_v12 = vpack.c.bf16 %v1274_v9, %v1273_v8  ;;  %v5680_v8 = vld [vmem:[#allocation3 + $0x2c] ss:$16 sps:$4 sm:$0xff]   ;;  %v5717_v9 = vld [vmem:[#allocation3 + $0x100] ss:$16 sps:$4 sm:$0xff]  }
 0x314   : > { %v6865_v13 = vpack.c.bf16 %v1272_v11, %v1271_v10  ;;  %3955 = vmatpush1.bf16.msra.mxu0 %v5705_v3  ;;  %v5678_v10 = vld [vmem:[#allocation3 + $0x28] ss:$16 sps:$4 sm:$0xff]   ;;  %v5686_v11 = vld [vmem:[#allocation3 + $0x4c] ss:$16 sps:$4 sm:$0xff]  }
 0x315   : > { %3956 = vmatprep.subr.bf16.mxu0 %v5713_v4  ;;  %v5767_v4 = vld [vmem:[#allocation3 + $0x204] ss:$16 sps:$4 sm:$0xff]  }
 0x316   : > { %1802 = vmatmul.mubr.bf16.gmra.mrb[40].mxu1 %v6865_v13  ;;  %2028 = vmatmul.mubr.bf16.gmra.mrb[40].mxu0 %v6865_v13 }
 0x317   : > { %1811 = vmatprep.mubr.bf16.mxu1 %v6260_v1  ;;  %2037 = vmatprep.mubr.bf16.mxu0 %v6260_v1 }
 0x318   : > { %3957 = vmatpush1.bf16.msra.mxu0 %v5711_v5 }
 0x319   : > { %3958 = vmatprep.subr.bf16.mxu0 %v5719_v6 }
 0x31c   : > { %3959 = vmatpush1.bf16.msra.mxu0 %v5717_v9 }
 0x31d   : > { %3960 = vmatprep.subr.bf16.mxu0 %v5725_v43 }
 0x31e   : > { %1812 = vmatmul.mubr.bf16.gmra.mrb[44].mxu1 %v6863_v12  ;;  %2038 = vmatmul.mubr.bf16.gmra.mrb[44].mxu0 %v6863_v12 }
 0x31f   : > { %1854 = vmatprep.mubr.bf16.mxu1 %v6260_v1 }
 0x320   : > { %3961 = vmatpush1.bf16.msra.mxu0 %v5723_v14 }
 0x321   : > { %3962 = vmatprep.subr.bf16.mxu0 %v5731_v17 }
 0x326   : > { %1855 = vmatmul.mubr.bf16.vlgmr.msra.gmra.mrb[48].mxu1 %v6767_v60 }
 0x327   : > { %1864 = vmatprep.mubr.bf16.mxu1 %v6260_v1  ;;  %2049 = vmatpush1.bf16.msra.mxu1 %v5059_v25  ;;  %v5083_v25 = vcombine.low %v1310_v21, %v1314_v24  ;;  %v5737_v21 = vld [vmem:[#allocation3 + $0x164] ss:$16 sps:$4 sm:$0xff]   ;;  %v5735_v24 = vld [vmem:[#allocation3 + $0x160] ss:$16 sps:$4 sm:$0xff]  }
 0x328   : > { %2050 = vmatprep.subr.bf16.mxu1 %v5068_v15  ;;  %v5684_v15 = vld [vmem:[#allocation3 + $0x48] ss:$16 sps:$4 sm:$0xff]  }
 0x32b   : > { %2051 = vmatpush1.bf16.msra.mxu1 %v5067_v18  ;;  %v5729_v18 = vld [vmem:[#allocation3 + $0x140] ss:$16 sps:$4 sm:$0xff]  }
 0x32c   : > { %2052 = vmatprep.subr.bf16.mxu1 %v5076_v19  ;;  %v5698_v19 = vld [vmem:[#allocation3 + $0x8c] ss:$16 sps:$4 sm:$0xff]   ;;  %3963 = vmatpush1.bf16.msra.mxu0 %v5729_v18 }
 0x32d   : > { %3964 = vmatprep.subr.bf16.mxu0 %v5737_v21 }
 0x32e   : > { %1865 = vmatmul.mubr.bf16.gmra.mrb[52].mxu1 %v6765_v49 }
 0x32f   : > { %1874 = vmatprep.mubr.bf16.mxu1 %v6260_v1  ;;  %2053 = vmatpush1.bf16.msra.mxu1 %v5075_v39  ;;  %v5696_v39 = vld [vmem:[#allocation3 + $0x88] ss:$16 sps:$4 sm:$0xff]  }
 0x330   : > { %2054 = vmatprep.subr.bf16.mxu1 %v5084_v20  ;;  %v5704_v20 = vld [vmem:[#allocation3 + $0xac] ss:$16 sps:$4 sm:$0xff]   ;;  %3965 = vmatpush1.bf16.msra.mxu0 %v5735_v24 }
 0x331   : > { %3966 = vmatprep.subr.bf16.mxu0 %v5743_v22 }
 0x333   : > { %2055 = vmatpush1.bf16.msra.mxu1 %v5083_v25  ;;  %v5710_v25 = vld [vmem:[#allocation3 + $0xcc] ss:$16 sps:$4 sm:$0xff]  }
 0x334   : > { %2056 = vmatprep.subr.bf16.mxu1 %v5092_v40  ;;  %v5749_v40 = vld [vmem:[#allocation3 + $0x1a4] ss:$16 sps:$4 sm:$0xff]  }
 0x336   : > { %1875 = vmatmul.mubr.bf16.gmra.mrb[56].mxu1 %v6833_v45 }
 0x337   : > { %1884 = vmatprep.mubr.bf16.mxu1 %v6260_v1  ;;  %2057 = vmatpush1.bf16.msra.mxu1 %v5091_v42  ;;  %v6946_v42 = vld [vmem:[%s7223_s8] sm:$0xff] }
 0x338   : > { %2058 = vmatprep.subr.bf16.mxu1 %v5100_v33  ;;  %v1371_v33 = vsub.s32 5, %v6501_v28 }
 0x33b   : > { %2059 = vmatpush1.bf16.msra.mxu1 %v5099_v36  ;;  %v5722_v36 = vld [vmem:[#allocation3 + $0x10c] ss:$16 sps:$4 sm:$0xff]  }
 0x33c   : > { %2060 = vmatprep.subr.bf16.mxu1 %v5108_v56  ;;  %v6952_v56 = vrot.slane %v6946_v42, %v6507_v32 }
 0x33e   : > { %1885 = vmatmul.mubr.bf16.gmra.mrb[60].mxu1 %v6831_v44 }
 0x33f   : > { %1894 = vmatprep.mubr.bf16.mxu1 %v6260_v1  ;;  %2061 = vmatpush1.bf16.msra.mxu1 %v5107_v46 }
 0x340   : > { %2062 = vmatprep.subr.bf16.mxu1 %v5116_v47  ;;  %v6959_v47 = vrot.slane %v6946_v42, %v6504_v31 }
 0x343   : > { %2063 = vmatpush1.bf16.msra.mxu1 %v5115_v48  ;;  %v6962_v48 = vrot.slane %v6946_v42, %v1371_v33 }
 0x344   : > { %4106 = vmatprep.subr.bf16.mxu1 %v5674_v50  ;;  %v5759_v50 = vld [vmem:[#allocation3 + $0x1e0] ss:$16 sps:$4 sm:$0xff]  }
 0x346   : > { %1895 = vmatmul.mubr.bf16.gmra.mrb[64].mxu1 %v6849_v62 }
 0x347   : > { %1904 = vmatprep.mubr.bf16.mxu1 %v6260_v1 }
 0x34e   : > { %1905 = vmatmul.mubr.bf16.gmra.mrb[68].mxu1 %v6847_v61 }
 0x34f   : > { %1914 = vmatprep.mubr.bf16.mxu1 %v6260_v1 }
 0x356   : > { %1915 = vmatmul.mubr.bf16.gmra.mrb[72].mxu1 %v6865_v13 }
 0x357   : > { %1924 = vmatprep.mubr.bf16.mxu1 %v6260_v1 }
 0x35e   : > { %1925 = vmatmul.mubr.bf16.gmra.mrb[76].mxu1 %v6863_v12 }
 0x35f   : > { %2080 = vmatprep.mubr.bf16.mxu1 %v6260_v1 }
 0x366   : > { %2081 = vmatmul.mubr.bf16.vlgmr.msra.gmra.mrb[80].mxu1 %v6767_v60  ;;  %v5690_v60 = vld [vmem:[#allocation3 + $0x68] ss:$16 sps:$4 sm:$0xff]  }
 0x367   : > { %2090 = vmatprep.mubr.bf16.mxu1 %v6260_v1  ;;  %4107 = vmatpush1.bf16.msra.mxu1 %v5672_v7 }
 0x368   : > { %4108 = vmatprep.subr.bf16.mxu1 %v5680_v8 }
 0x36b   : > { %4109 = vmatpush1.bf16.msra.mxu1 %v5678_v10 }
 0x36c   : > { %4110 = vmatprep.subr.bf16.mxu1 %v5686_v11  ;;  %v5726_v11 = vld [vmem:[#allocation3 + $0x128] ss:$16 sps:$4 sm:$0xff]  }
 0x36e   : > { %2091 = vmatmul.mubr.bf16.gmra.mrb[84].mxu1 %v6765_v49  ;;  %v5741_v49 = vld [vmem:[#allocation3 + $0x180] ss:$16 sps:$4 sm:$0xff]  }
 0x36f   : > { %2100 = vmatprep.mubr.bf16.mxu1 %v6260_v1  ;;  %4111 = vmatpush1.bf16.msra.mxu1 %v5684_v15  ;;  %v5734_v15 = vld [vmem:[#allocation3 + $0x14c] ss:$16 sps:$4 sm:$0xff]  }
 0x370   : > { %4112 = vmatprep.subr.bf16.mxu1 %v5692_v16  ;;  %3967 = vmatpush1.bf16.msra.mxu0 %v5741_v49  ;;  %v5740_v49 = vld [vmem:[#allocation3 + $0x16c] ss:$16 sps:$4 sm:$0xff]  }
 0x371   : > { %3968 = vmatprep.subr.bf16.mxu0 %v5749_v40 }
 0x373   : > { %4113 = vmatpush1.bf16.msra.mxu1 %v5690_v60 }
 0x374   : > { %4114 = vmatprep.subr.bf16.mxu1 %v5698_v19  ;;  %3969 = vmatpush1.bf16.msra.mxu0 %v5747_v26 }
 0x376   : > { %2101 = vmatmul.mubr.bf16.gmra.mrb[88].mxu1 %v6833_v45  ;;  %v5755_v45 = vld [vmem:[#allocation3 + $0x1c4] ss:$16 sps:$4 sm:$0xff]  }
 0x377   : > { %2110 = vmatprep.mubr.bf16.mxu1 %v6260_v1  ;;  %4115 = vmatpush1.bf16.msra.mxu1 %v5696_v39 }
 0x378   : > { %4116 = vmatprep.subr.bf16.mxu1 %v5704_v20  ;;  %3970 = vmatprep.subr.bf16.mxu0 %v5755_v45 }
 0x379   : > { %3971 = vmatpush1.bf16.msra.mxu0 %v5753_v59 }
 0x37a   : > { %3972 = vmatprep.subr.bf16.mxu0 %v5761_v37  ;;  %v5738_v37 = vld [vmem:[#allocation3 + $0x168] ss:$16 sps:$4 sm:$0xff]  }
 0x37b   : > { %4117 = vmatpush1.bf16.msra.mxu1 %v5702_v23 }
 0x37c   : > { %4118 = vmatprep.subr.bf16.mxu1 %v5710_v25 }
 0x37d   : > { %3973 = vmatpush1.bf16.msra.mxu0 %v5759_v50  ;;  %v5746_v50 = vld [vmem:[#allocation3 + $0x18c] ss:$16 sps:$4 sm:$0xff]  }
 0x37e   : > { %2111 = vmatmul.mubr.bf16.gmra.mrb[92].mxu1 %v6831_v44  ;;  %v6955_v44 = vrot.slane %v6946_v42, %v1367_v30  ;;  %3983 = vmatprep.subr.bf16.mxu0 %v5767_v4 }
 0x37f   : > { %2120 = vmatprep.mubr.bf16.mxu1 %v6260_v1  ;;  %4119 = vmatpush1.bf16.msra.mxu1 %v5708_v27 }
 0x380   : > { %4120 = vmatprep.subr.bf16.mxu1 %v5716_v29 }
 0x382   : > { %v1743_v38 = vpop.f32.mrb[16].mxu1  ;;  %v1969_v46 = vpop.f32.mrb[16].mxu0 }
 0x383   : > { %v1745_v51 = vpop.f32.mrb[17].mxu1  ;;  %v1971_v41 = vpop.f32.mrb[17].mxu0  ;;  %4121 = vmatpush1.bf16.msra.mxu1 %v5714_v34  ;;  %v1744_v57 = vadd.f32 %v1743_v38, %v6952_v56  ;;  %v1970_v58 = vadd.f32 %v1969_v46, %v6955_v44 }
 0x384   : > { %v1747_v53 = vpop.f32.mrb[18].mxu1  ;;  %v1973_v54 = vpop.f32.mrb[18].mxu0  ;;  %4122 = vmatprep.subr.bf16.mxu1 %v5722_v36  ;;  %v1746_v5 = vadd.f32 %v1745_v51, %v6959_v47  ;;  %v1972_v6 = vadd.f32 %v1971_v41, %v6962_v48  ;;  %v5744_v51 = vld [vmem:[#allocation3 + $0x188] ss:$16 sps:$4 sm:$0xff]   ;;  %v5752_v41 = vld [vmem:[#allocation3 + $0x1ac] ss:$16 sps:$4 sm:$0xff]  }
 0x385   : > { %v1748_v63 = vadd.f32 %v1747_v53, %v6952_v56  ;;  %v1974_v0 = vadd.f32 %v1973_v54, %v6955_v44  ;;  %v1749_v2 = vpop.f32.mrb[19].mxu1  ;;  %v1975_v3 = vpop.f32.mrb[19].mxu0  ;;  %v5756_v53 = vld [vmem:[#allocation3 + $0x1c8] ss:$16 sps:$4 sm:$0xff]   ;;  %v5764_v54 = vld [vmem:[#allocation3 + $0x1ec] ss:$16 sps:$4 sm:$0xff]  }
 0x386   : > { %v1750_v7 = vadd.f32 %v1749_v2, %v6959_v47  ;;  %v1976_v8 = vadd.f32 %v1975_v3, %v6962_v48  ;;  %2121 = vmatmul.mubr.bf16.gmra.mrb[96].mxu1 %v6849_v62  ;;  %v5732_v62 = vld [vmem:[#allocation3 + $0x148] ss:$16 sps:$4 sm:$0xff]  }
 0x387   : > { %v2173_v9 = vmax.f32 %v1744_v57, %v1748_v63  ;;  %v2233_v10 = vmax.f32 %v1970_v58, %v1974_v0  ;;  %2130 = vmatprep.mubr.bf16.mxu1 %v6260_v1  ;;  %4123 = vmatpush1.bf16.msra.mxu1 %v5720_v52  ;;  %v5758_v52 = vld [vmem:[#allocation3 + $0x1cc] ss:$16 sps:$4 sm:$0xff]  }
 0x388   : > { %v2188_v43 = vmax.f32 %v1746_v5, %v1750_v7  ;;  %v2248_v14 = vmax.f32 %v1972_v6, %v1976_v8  ;;  %4124 = vmatprep.subr.bf16.mxu1 %v5728_v55  ;;  %v5762_v55 = vld [vmem:[#allocation3 + $0x1e8] ss:$16 sps:$4 sm:$0xff]   ;;  %v5770_v57 = vld [vmem:[#allocation3 + $0x20c] ss:$16 sps:$4 sm:$0xff]  }
 0x38a   : > { %v1753_v16 = vpop.f32.mrb[20].mxu1  ;;  %v1979_v17 = vpop.f32.mrb[20].mxu0 }
 0x38b   : > { %v1754_v18 = vadd.f32 %v1753_v16, %v6952_v56  ;;  %v1980_v60 = vadd.f32 %v1979_v17, %v6955_v44  ;;  %v1755_v19 = vpop.f32.mrb[21].mxu1  ;;  %v1981_v21 = vpop.f32.mrb[21].mxu0  ;;  %4125 = vmatpush1.bf16.msra.mxu1 %v5726_v11 }
 0x38c   : > { %v1756_v24 = vadd.f32 %v1755_v19, %v6959_v47  ;;  %v1982_v39 = vadd.f32 %v1981_v21, %v6962_v48  ;;  %v1757_v20 = vpop.f32.mrb[22].mxu1  ;;  %v1983_v22 = vpop.f32.mrb[22].mxu0  ;;  %4126 = vmatprep.subr.bf16.mxu1 %v5734_v15 }
 0x38d   : > { %v2174_v23 = vmax.f32 %v2173_v9, %v1754_v18  ;;  %v2234_v25 = vmax.f32 %v2233_v10, %v1980_v60  ;;  %v1758_v40 = vadd.f32 %v1757_v20, %v6952_v56  ;;  %v1984_v26 = vadd.f32 %v1983_v22, %v6955_v44  ;;  %v1759_v27 = vpop.f32.mrb[23].mxu1  ;;  %v1985_v29 = vpop.f32.mrb[23].mxu0 }
 0x38e   : > { %v2189_v30 = vmax.f32 %v2188_v43, %v1756_v24  ;;  %v2249_v45 = vmax.f32 %v2248_v14, %v1982_v39  ;;  %v1760_v33 = vadd.f32 %v1759_v27, %v6959_v47  ;;  %v1986_v59 = vadd.f32 %v1985_v29, %v6962_v48  ;;  %2131 = vmatmul.mubr.bf16.gmra.mrb[100].mxu1 %v6847_v61  ;;  %v5750_v61 = vld [vmem:[#allocation3 + $0x1a8] ss:$16 sps:$4 sm:$0xff]  }
 0x38f   : > { %v2175_v34 = vmax.f32 %v2174_v23, %v1758_v40  ;;  %v2235_v36 = vmax.f32 %v2234_v25, %v1984_v26  ;;  %2140 = vmatprep.mubr.bf16.mxu1 %v6260_v1  ;;  %4127 = vmatpush1.bf16.msra.mxu1 %v5732_v62 }
 0x390   : > { %v2190_v38 = vmax.f32 %v2189_v30, %v1760_v33  ;;  %v2250_v46 = vmax.f32 %v2249_v45, %v1986_v59  ;;  %4128 = vmatprep.subr.bf16.mxu1 %v5740_v49 }
 0x393   : > { %4129 = vmatpush1.bf16.msra.mxu1 %v5738_v37 }
 0x394   : > { %4130 = vmatprep.subr.bf16.mxu1 %v5746_v50 }
 0x396   : > { %2141 = vmatmul.mubr.bf16.gmra.mrb[104].mxu1 %v6865_v13 }
 0x397   : > { %2150 = vmatprep.mubr.bf16.mxu1 %v6260_v1  ;;  %4131 = vmatpush1.bf16.msra.mxu1 %v5744_v51 }
 0x398   : > { %4132 = vmatprep.subr.bf16.mxu1 %v5752_v41 }
 0x39b   : > { %4133 = vmatpush1.bf16.msra.mxu1 %v5750_v61 }
 0x39c   : > { %4134 = vmatprep.subr.bf16.mxu1 %v5758_v52 }
 0x39e   : > { %2151 = vmatmul.mubr.bf16.gmra.mrb[108].mxu1 %v6863_v12 }
 0x39f   : > { %4135 = vmatpush1.bf16.msra.mxu1 %v5756_v53 }
 0x3a0   : > { %4136 = vmatprep.subr.bf16.mxu1 %v5764_v54 }
 0x3a3   : > { %v1763_v58 = vpop.f32.mrb[24].mxu1  ;;  %v1989_v63 = vpop.f32.mrb[24].mxu0  ;;  %4137 = vmatpush1.bf16.msra.mxu1 %v5762_v55 }
 0x3a4   : > { %v1764_v13 = vadd.f32 %v1763_v58, %v6952_v56  ;;  %v1990_v1 = vadd.f32 %v1989_v63, %v6955_v44  ;;  %v1765_v0 = vpop.f32.mrb[25].mxu1  ;;  %v1991_v2 = vpop.f32.mrb[25].mxu0  ;;  %4147 = vmatprep.subr.bf16.mxu1 %v5770_v57 }
 0x3a5   : > { %v1766_v3 = vadd.f32 %v1765_v0, %v6959_v47  ;;  %v1992_v4 = vadd.f32 %v1991_v2, %v6962_v48  ;;  %v1767_v5 = vpop.f32.mrb[26].mxu1  ;;  %v1993_v12 = vpop.f32.mrb[26].mxu0 }
 0x3a6   : > { %v2176_v6 = vmax.f32 %v2175_v34, %v1764_v13  ;;  %v2236_v7 = vmax.f32 %v2235_v36, %v1990_v1  ;;  %v1768_v8 = vadd.f32 %v1767_v5, %v6952_v56  ;;  %v1994_v9 = vadd.f32 %v1993_v12, %v6955_v44  ;;  %v1769_v10 = vpop.f32.mrb[27].mxu1  ;;  %v1995_v11 = vpop.f32.mrb[27].mxu0 }
 0x3a7   : > { %v2191_v43 = vmax.f32 %v2190_v38, %v1766_v3  ;;  %v2251_v14 = vmax.f32 %v2250_v46, %v1992_v4  ;;  %v1770_v15 = vadd.f32 %v1769_v10, %v6959_v47  ;;  %v1996_v16 = vadd.f32 %v1995_v11, %v6962_v48 }
 0x3a8   : > { %v2177_v17 = vmax.f32 %v2176_v6, %v1768_v8  ;;  %v2237_v18 = vmax.f32 %v2236_v7, %v1994_v9 }
 0x3a9   : > { %v2192_v60 = vmax.f32 %v2191_v43, %v1770_v15  ;;  %v2252_v19 = vmax.f32 %v2251_v14, %v1996_v16 }
 0x3ab   : > { %v1773_v21 = vpop.f32.mrb[28].mxu1  ;;  %v1999_v62 = vpop.f32.mrb[28].mxu0 }
 0x3ac   : > { %v1774_v24 = vadd.f32 %v1773_v21, %v6952_v56  ;;  %v2000_v39 = vadd.f32 %v1999_v62, %v6955_v44  ;;  %v1775_v20 = vpop.f32.mrb[29].mxu1  ;;  %v2001_v22 = vpop.f32.mrb[29].mxu0 }
 0x3ad   : > { %v1776_v49 = vadd.f32 %v1775_v20, %v6959_v47  ;;  %v2002_v23 = vadd.f32 %v2001_v22, %v6962_v48  ;;  %v1777_v25 = vpop.f32.mrb[30].mxu1  ;;  %v2003_v40 = vpop.f32.mrb[30].mxu0 }
 0x3ae   : > { %v2178_v26 = vmax.f32 %v2177_v17, %v1774_v24  ;;  %v2238_v27 = vmax.f32 %v2237_v18, %v2000_v39  ;;  %v1778_v29 = vadd.f32 %v1777_v25, %v6952_v56  ;;  %v2004_v30 = vadd.f32 %v2003_v40, %v6955_v44  ;;  %v1779_v45 = vpop.f32.mrb[31].mxu1  ;;  %v2005_v33 = vpop.f32.mrb[31].mxu0 }
 0x3af   : > { %v2193_v59 = vmax.f32 %v2192_v60, %v1776_v49  ;;  %v2253_v34 = vmax.f32 %v2252_v19, %v2002_v23  ;;  %v1780_v36 = vadd.f32 %v1779_v45, %v6959_v47  ;;  %v2006_v37 = vadd.f32 %v2005_v33, %v6962_v48 }
 0x3b0   : > { %v2179_v38 = vmax.f32 %v2178_v26, %v1778_v29  ;;  %v2239_v46 = vmax.f32 %v2238_v27, %v2004_v30 }
 0x3b1   : > { %v2194_v50 = vmax.f32 %v2193_v59, %v1780_v36  ;;  %v2254_v51 = vmax.f32 %v2253_v34, %v2006_v37 }
 0x3c8   : > { %v1783_v41 = vpop.f32.mrb[32].mxu1  ;;  %v2009_v61 = vpop.f32.mrb[32].mxu0 }
 0x3c9   : > { %v1784_v52 = vadd.f32 %v1783_v41, %v6952_v56  ;;  %v2010_v53 = vadd.f32 %v2009_v61, %v6955_v44  ;;  %v1785_v54 = vpop.f32.mrb[33].mxu1  ;;  %v2011_v55 = vpop.f32.mrb[33].mxu0 }
 0x3ca   : > { %v1786_v57 = vadd.f32 %v1785_v54, %v6959_v47  ;;  %v2012_v58 = vadd.f32 %v2011_v55, %v6962_v48  ;;  %v1787_v63 = vpop.f32.mrb[34].mxu1  ;;  %v2013_v13 = vpop.f32.mrb[34].mxu0 }
 0x3cb   : > { %v2180_v1 = vmax.f32 %v2179_v38, %v1784_v52  ;;  %v2240_v0 = vmax.f32 %v2239_v46, %v2010_v53  ;;  %v1788_v2 = vadd.f32 %v1787_v63, %v6952_v56  ;;  %v2014_v3 = vadd.f32 %v2013_v13, %v6955_v44  ;;  %v1789_v4 = vpop.f32.mrb[35].mxu1  ;;  %v2015_v5 = vpop.f32.mrb[35].mxu0 }
 0x3cc   : > { %v2195_v12 = vmax.f32 %v2194_v50, %v1786_v57  ;;  %v2255_v6 = vmax.f32 %v2254_v51, %v2012_v58  ;;  %v1790_v7 = vadd.f32 %v1789_v4, %v6959_v47  ;;  %v2016_v8 = vadd.f32 %v2015_v5, %v6962_v48 }
 0x3cd   : > { %v2181_v9 = vmax.f32 %v2180_v1, %v1788_v2  ;;  %v2241_v10 = vmax.f32 %v2240_v0, %v2014_v3 }
 0x3ce   : > { %v2196_v11 = vmax.f32 %v2195_v12, %v1790_v7  ;;  %v2256_v43 = vmax.f32 %v2255_v6, %v2016_v8 }
 0x3d0   : > { %v1793_v14 = vpop.f32.mrb[36].mxu1  ;;  %v2019_v15 = vpop.f32.mrb[36].mxu0 }
 0x3d1   : > { %v1794_v16 = vadd.f32 %v1793_v14, %v6952_v56  ;;  %v2020_v17 = vadd.f32 %v2019_v15, %v6955_v44  ;;  %v1795_v18 = vpop.f32.mrb[37].mxu1  ;;  %v2021_v60 = vpop.f32.mrb[37].mxu0 }
 0x3d2   : > { %v1796_v19 = vadd.f32 %v1795_v18, %v6959_v47  ;;  %v2022_v21 = vadd.f32 %v2021_v60, %v6962_v48  ;;  %v1797_v62 = vpop.f32.mrb[38].mxu1  ;;  %v2023_v24 = vpop.f32.mrb[38].mxu0 }
 0x3d3   : > { %v2182_v39 = vmax.f32 %v2181_v9, %v1794_v16  ;;  %v2242_v20 = vmax.f32 %v2241_v10, %v2020_v17  ;;  %v1798_v22 = vadd.f32 %v1797_v62, %v6952_v56  ;;  %v2024_v49 = vadd.f32 %v2023_v24, %v6955_v44  ;;  %v1799_v23 = vpop.f32.mrb[39].mxu1  ;;  %v2025_v25 = vpop.f32.mrb[39].mxu0 }
 0x3d4   : > { %v2197_v40 = vmax.f32 %v2196_v11, %v1796_v19  ;;  %v2257_v26 = vmax.f32 %v2256_v43, %v2022_v21  ;;  %v1800_v27 = vadd.f32 %v1799_v23, %v6959_v47  ;;  %v2026_v29 = vadd.f32 %v2025_v25, %v6962_v48 }
 0x3d5   : > { %v2183_v30 = vmax.f32 %v2182_v39, %v1798_v22  ;;  %v2243_v45 = vmax.f32 %v2242_v20, %v2024_v49  ;;  %v1363_v17 = vsub.s32 3, %v6501_v28 }
 0x3d6   : > { %v2198_v33 = vmax.f32 %v2197_v40, %v1800_v27  ;;  %v2258_v59 = vmax.f32 %v2257_v26, %v2026_v29 }
 0x3e9   : > { %v1803_v34 = vpop.f32.mrb[40].mxu1  ;;  %v2029_v36 = vpop.f32.mrb[40].mxu0 }
 0x3ea   : > { %v1804_v37 = vadd.f32 %v1803_v34, %v6952_v56  ;;  %v2030_v38 = vadd.f32 %v2029_v36, %v6955_v44  ;;  %v1805_v46 = vpop.f32.mrb[41].mxu1  ;;  %v2031_v50 = vpop.f32.mrb[41].mxu0 }
 0x3eb   : > { %v1806_v51 = vadd.f32 %v1805_v46, %v6959_v47  ;;  %v2032_v41 = vadd.f32 %v2031_v50, %v6962_v48  ;;  %v1807_v61 = vpop.f32.mrb[42].mxu1  ;;  %v2033_v52 = vpop.f32.mrb[42].mxu0 }
 0x3ec   : > { %v2184_v53 = vmax.f32 %v2183_v30, %v1804_v37  ;;  %v2244_v54 = vmax.f32 %v2243_v45, %v2030_v38  ;;  %v1808_v55 = vadd.f32 %v1807_v61, %v6952_v56  ;;  %v2034_v57 = vadd.f32 %v2033_v52, %v6955_v44  ;;  %v1809_v58 = vpop.f32.mrb[43].mxu1  ;;  %v2035_v63 = vpop.f32.mrb[43].mxu0 }
 0x3ed   : > { %v2199_v13 = vmax.f32 %v2198_v33, %v1806_v51  ;;  %v2259_v1 = vmax.f32 %v2258_v59, %v2032_v41  ;;  %v1810_v0 = vadd.f32 %v1809_v58, %v6959_v47  ;;  %v2036_v2 = vadd.f32 %v2035_v63, %v6962_v48 }
 0x3ee   : > { %v2185_v3 = vmax.f32 %v2184_v53, %v1808_v55  ;;  %v2245_v4 = vmax.f32 %v2244_v54, %v2034_v57  ;;  %v7047_v30 = vrot.slane %v6946_v42, %v1363_v17 }
 0x3ef   : > { %v2200_v5 = vmax.f32 %v2199_v13, %v1810_v0  ;;  %v2260_v12 = vmax.f32 %v2259_v1, %v2036_v2 }
 0x3f1   : > { %v1813_v6 = vpop.f32.mrb[44].mxu1  ;;  %v2039_v7 = vpop.f32.mrb[44].mxu0 }
 0x3f2   : > { %v1814_v8 = vadd.f32 %v1813_v6, %v6952_v56  ;;  %v2040_v9 = vadd.f32 %v2039_v7, %v6955_v44  ;;  %v1815_v10 = vpop.f32.mrb[45].mxu1  ;;  %v2041_v11 = vpop.f32.mrb[45].mxu0  ;;  %v5765_v7 = vld [vmem:[#allocation3 + $0x200] ss:$16 sps:$4 sm:$0xff]  }
 0x3f3   : > { %v1816_v43 = vadd.f32 %v1815_v10, %v6959_v47  ;;  %v2042_v14 = vadd.f32 %v2041_v11, %v6962_v48  ;;  %v1817_v15 = vpop.f32.mrb[46].mxu1  ;;  %v2043_v16 = vpop.f32.mrb[46].mxu0  ;;  %v5773_v11 = vld [vmem:[#allocation3 + $0x224] ss:$16 sps:$4 sm:$0xff]  }
 0x3f4   : > { %v2186_v18 = vmax.f32 %v2185_v3, %v1814_v8  ;;  %v2246_v60 = vmax.f32 %v2245_v4, %v2040_v9  ;;  %v1818_v19 = vadd.f32 %v1817_v15, %v6952_v56  ;;  %v2044_v21 = vadd.f32 %v2043_v16, %v6955_v44  ;;  %v1819_v62 = vpop.f32.mrb[47].mxu1  ;;  %v2045_v24 = vpop.f32.mrb[47].mxu0  ;;  %v5768_v8 = vld [vmem:[#allocation3 + $0x208] ss:$16 sps:$4 sm:$0xff]   ;;  %v5771_v16 = vld [vmem:[#allocation3 + $0x220] ss:$16 sps:$4 sm:$0xff]  }
 0x3f5   : > { %v2201_v39 = vmax.f32 %v2200_v5, %v1816_v43  ;;  %v2261_v20 = vmax.f32 %v2260_v12, %v2042_v14  ;;  %v1820_v22 = vadd.f32 %v1819_v62, %v6959_v47  ;;  %v2046_v49 = vadd.f32 %v2045_v24, %v6962_v48  ;;  %v5776_v43 = vld [vmem:[#allocation3 + $0x22c] ss:$16 sps:$4 sm:$0xff]  }
 0x3f6   : > { %v2187_v23 = vmax.f32 %v2186_v18, %v1818_v19  ;;  %v7036_v25 = vmax.f32 %v2246_v60, %v2044_v21  ;;  %v7042_v56 = vrot.slane %v6946_v42, %v6513_v35  ;;  %v5774_v18 = vld [vmem:[#allocation3 + $0x228] ss:$16 sps:$4 sm:$0xff]   ;;  %v5779_v21 = vld [vmem:[#allocation3 + $0x244] ss:$16 sps:$4 sm:$0xff]   ;;  %v5782_v62 = vld [vmem:[#allocation3 + $0x24c] ss:$16 sps:$4 sm:$0xff]  }
 0x3f7   : > { %v2202_v40 = vmax.f32 %v2201_v39, %v1820_v22  ;;  %v7038_v26 = vmax.f32 %v2261_v20, %v2046_v49 }
 0x3f8   : > { %v2328_v27 = vrot.slane %v2187_v23, 4 }
 0x3f9   : > { %v2334_v44 = vrot.slane %v2202_v40, 4  ;;  %v1856_v29 = vpop.f32.mrb[48].mxu1 }
 0x3fa   : > { %v2329_v47 = vmax.f32 %v2187_v23, %v2328_v27  ;;  %v1858_v48 = vpop.f32.mrb[49].mxu1  ;;  %v1857_v34 = vadd.f32 %v1856_v29, %v7042_v56  ;;  %v5777_v27 = vld [vmem:[#allocation3 + $0x240] ss:$16 sps:$4 sm:$0xff]  }
 0x3fb   : > { %v2335_v45 = vmax.f32 %v2202_v40, %v2334_v44  ;;  %v1860_v33 = vpop.f32.mrb[50].mxu1  ;;  %v1859_v46 = vadd.f32 %v1858_v48, %v7047_v30  ;;  %v5780_v44 = vld [vmem:[#allocation3 + $0x248] ss:$16 sps:$4 sm:$0xff]   ;;  %v5788_v48 = vld [vmem:[#allocation3 + $0x26c] ss:$16 sps:$4 sm:$0xff]  }
 0x3fc   : > { %v2330_v59 = vrot.slane %v2329_v47, 2  ;;  %v1861_v36 = vadd.f32 %v1860_v33, %v7042_v56  ;;  %v1862_v37 = vpop.f32.mrb[51].mxu1 }
 0x3fd   : > { %v2336_v38 = vrot.slane %v2335_v45, 2  ;;  %v1863_v50 = vadd.f32 %v1862_v37, %v7047_v30 }
 0x3fe   : > { %v2331_v51 = vmax.f32 %v2329_v47, %v2330_v59  ;;  %v2203_v41 = vmax.f32 %v1857_v34, %v1861_v36  ;;  %v5785_v47 = vld [vmem:[#allocation3 + $0x264] ss:$16 sps:$4 sm:$0xff]   ;;  %v5783_v59 = vld [vmem:[#allocation3 + $0x260] ss:$16 sps:$4 sm:$0xff]   ;;  %v5786_v34 = vld [vmem:[#allocation3 + $0x268] ss:$16 sps:$4 sm:$0xff]  }
 0x3ff   : > { %v2218_v61 = vmax.f32 %v1859_v46, %v1863_v50  ;;  %v2337_v52 = vmax.f32 %v2335_v45, %v2336_v38  ;;  %v5791_v38 = vld [vmem:[#allocation3 + $0x284] ss:$16 sps:$4 sm:$0xff]   ;;  %v5794_v46 = vld [vmem:[#allocation3 + $0x28c] ss:$16 sps:$4 sm:$0xff]  }
 0x400   : > { %v2332_v53 = vrot.slane %v2331_v51, 1 }
 0x401   : > { %v1866_v54 = vpop.f32.mrb[52].mxu1  ;;  %v2338_v55 = vrot.slane %v2337_v52, 1 }
 0x402   : > { %v2333_v57 = vmax.f32 %v2331_v51, %v2332_v53  ;;  %v1867_v58 = vadd.f32 %v1866_v54, %v7042_v56  ;;  %v1868_v63 = vpop.f32.mrb[53].mxu1 }
 0x403   : > { %v1869_v13 = vadd.f32 %v1868_v63, %v7047_v30  ;;  %v1870_v1 = vpop.f32.mrb[54].mxu1  ;;  %v2339_v0 = vmax.f32 %v2337_v52, %v2338_v55  ;;  %v5789_v55 = vld [vmem:[#allocation3 + $0x280] ss:$16 sps:$4 sm:$0xff]   ;;  %v5797_v63 = vld [vmem:[#allocation3 + $0x2a4] ss:$16 sps:$4 sm:$0xff]  }
 0x404   : > { %v2204_v2 = vmax.f32 %v2203_v41, %v1867_v58  ;;  %v1871_v3 = vadd.f32 %v1870_v1, %v7042_v56  ;;  %v1872_v4 = vpop.f32.mrb[55].mxu1  ;;  %v2376_v9 = vpack.c.bf16 %v2333_v57, %v2333_v57  ;;  %v5792_v57 = vld [vmem:[#allocation3 + $0x288] ss:$16 sps:$4 sm:$0xff]  }
 0x405   : > { %v2219_v5 = vmax.f32 %v2218_v61, %v1869_v13  ;;  %v1873_v12 = vadd.f32 %v1872_v4, %v7047_v30  ;;  %v2377_v6 = vpack.c.bf16 %v2339_v0, %v2339_v0  ;;  %v5800_v13 = vld [vmem:[#allocation3 + $0x2ac] ss:$16 sps:$4 sm:$0xff]  }
 0x406   : > { %v2205_v10 = vmax.f32 %v2204_v2, %v1871_v3  ;;  %v5795_v2 = vld [vmem:[#allocation3 + $0x2a0] ss:$16 sps:$4 sm:$0xff]   ;;  %v5798_v3 = vld [vmem:[#allocation3 + $0x2a8] ss:$16 sps:$4 sm:$0xff]  }
 0x407   : > { %v2220_v14 = vmax.f32 %v2219_v5, %v1873_v12  ;;  %3974 = vmatprep.mubr.bf16.mxu0 %v2377_v6  ;;  %4138 = vmatprep.mubr.bf16.mxu1 %v2377_v6  ;;  %v5803_v12 = vld [vmem:[#allocation3 + $0x2c4] ss:$16 sps:$4 sm:$0xff]   ;;  %v5806_v6 = vld [vmem:[#allocation3 + $0x2cc] ss:$16 sps:$4 sm:$0xff]  }
 0x408   : > { %3975 = vmatmul.mubr.bf16.vlgmr.msra.gmra.mrb[48].mxu0 %v2376_v9  ;;  %4139 = vmatmul.mubr.bf16.vlgmr.msra.gmra.mrb[112].mxu1 %v2376_v9 }
 0x409   : > { %3984 = vmatpush1.bf16.msra.mxu0 %v5765_v7  ;;  %4148 = vmatpush1.bf16.msra.mxu1 %v5768_v8  ;;  %v1876_v15 = vpop.f32.mrb[56].mxu1 }
 0x40a   : > { %v1877_v60 = vadd.f32 %v1876_v15, %v7042_v56  ;;  %v1878_v19 = vpop.f32.mrb[57].mxu1  ;;  %3985 = vmatprep.subr.bf16.mxu0 %v5773_v11  ;;  %4149 = vmatprep.subr.bf16.mxu1 %v5776_v43  ;;  %v5801_v15 = vld [vmem:[#allocation3 + $0x2c0] ss:$16 sps:$4 sm:$0xff]  }
 0x40b   : > { %v1879_v24 = vadd.f32 %v1878_v19, %v7047_v30  ;;  %v1880_v39 = vpop.f32.mrb[58].mxu1  ;;  %v5812_v19 = vld [vmem:[#allocation3 + $0x2ec] ss:$16 sps:$4 sm:$0xff]  }
 0x40c   : > { %v2206_v20 = vmax.f32 %v2205_v10, %v1877_v60  ;;  %v1881_v22 = vadd.f32 %v1880_v39, %v7042_v56  ;;  %v1882_v49 = vpop.f32.mrb[59].mxu1  ;;  %v5809_v60 = vld [vmem:[#allocation3 + $0x2e4] ss:$16 sps:$4 sm:$0xff]   ;;  %v5810_v39 = vld [vmem:[#allocation3 + $0x2e8] ss:$16 sps:$4 sm:$0xff]  }
 0x40d   : > { %v2221_v23 = vmax.f32 %v2220_v14, %v1879_v24  ;;  %v1883_v40 = vadd.f32 %v1882_v49, %v7047_v30  ;;  %3986 = vmatpush1.bf16.msra.mxu0 %v5771_v16  ;;  %4150 = vmatpush1.bf16.msra.mxu1 %v5774_v18  ;;  %v5804_v16 = vld [vmem:[#allocation3 + $0x2c8] ss:$16 sps:$4 sm:$0xff]   ;;  %v5807_v24 = vld [vmem:[#allocation3 + $0x2e0] ss:$16 sps:$4 sm:$0xff]   ;;  %v5815_v49 = vld [vmem:[#allocation3 + $0x304] ss:$16 sps:$4 sm:$0xff]  }
 0x40e   : > { %v2207_v29 = vmax.f32 %v2206_v20, %v1881_v22  ;;  %3987 = vmatprep.subr.bf16.mxu0 %v5779_v21  ;;  %4151 = vmatprep.subr.bf16.mxu1 %v5782_v62 }
 0x40f   : > { %v2222_v45 = vmax.f32 %v2221_v23, %v1883_v40  ;;  %v5818_v23 = vld [vmem:[#allocation3 + $0x30c] ss:$16 sps:$4 sm:$0xff]  }
 0x411   : > { %3988 = vmatpush1.bf16.msra.mxu0 %v5777_v27  ;;  %4152 = vmatpush1.bf16.msra.mxu1 %v5780_v44  ;;  %v1886_v33 = vpop.f32.mrb[60].mxu1 }
 0x412   : > { %v1887_v36 = vadd.f32 %v1886_v33, %v7042_v56  ;;  %v1888_v37 = vpop.f32.mrb[61].mxu1  ;;  %3989 = vmatprep.subr.bf16.mxu0 %v5785_v47  ;;  %4153 = vmatprep.subr.bf16.mxu1 %v5788_v48  ;;  %v5813_v33 = vld [vmem:[#allocation3 + $0x300] ss:$16 sps:$4 sm:$0xff]  }
 0x413   : > { %v1889_v50 = vadd.f32 %v1888_v37, %v7047_v30  ;;  %v1890_v51 = vpop.f32.mrb[62].mxu1  ;;  %v5824_v37 = vld [vmem:[#allocation3 + $0x32c] ss:$16 sps:$4 sm:$0xff]  }
 0x414   : > { %v2208_v41 = vmax.f32 %v2207_v29, %v1887_v36  ;;  %v1891_v61 = vadd.f32 %v1890_v51, %v7042_v56  ;;  %v1892_v52 = vpop.f32.mrb[63].mxu1  ;;  %v5821_v36 = vld [vmem:[#allocation3 + $0x324] ss:$16 sps:$4 sm:$0xff]   ;;  %v5822_v51 = vld [vmem:[#allocation3 + $0x328] ss:$16 sps:$4 sm:$0xff]  }
 0x415   : > { %v2223_v53 = vmax.f32 %v2222_v45, %v1889_v50  ;;  %v1893_v54 = vadd.f32 %v1892_v52, %v7047_v30  ;;  %3990 = vmatpush1.bf16.msra.mxu0 %v5783_v59  ;;  %4154 = vmatpush1.bf16.msra.mxu1 %v5786_v34  ;;  %v5816_v59 = vld [vmem:[#allocation3 + $0x308] ss:$16 sps:$4 sm:$0xff]   ;;  %v5819_v50 = vld [vmem:[#allocation3 + $0x320] ss:$16 sps:$4 sm:$0xff]   ;;  %v5827_v52 = vld [vmem:[#allocation3 + $0x344] ss:$16 sps:$4 sm:$0xff]  }
 0x416   : > { %v2209_v58 = vmax.f32 %v2208_v41, %v1891_v61  ;;  %3991 = vmatprep.subr.bf16.mxu0 %v5791_v38  ;;  %4155 = vmatprep.subr.bf16.mxu1 %v5794_v46 }
 0x417   : > { %v2224_v1 = vmax.f32 %v2223_v53, %v1893_v54  ;;  %v5830_v53 = vld [vmem:[#allocation3 + $0x34c] ss:$16 sps:$4 sm:$0xff]  }
 0x419   : > { %3992 = vmatpush1.bf16.msra.mxu0 %v5789_v55  ;;  %4156 = vmatpush1.bf16.msra.mxu1 %v5792_v57  ;;  %v1896_v0 = vpop.f32.mrb[64].mxu1 }
 0x41a   : > { %v1897_v4 = vadd.f32 %v1896_v0, %v7042_v56  ;;  %v1898_v5 = vpop.f32.mrb[65].mxu1  ;;  %3993 = vmatprep.subr.bf16.mxu0 %v5797_v63  ;;  %4157 = vmatprep.subr.bf16.mxu1 %v5800_v13  ;;  %v5825_v0 = vld [vmem:[#allocation3 + $0x340] ss:$16 sps:$4 sm:$0xff]  }
 0x41b   : > { %v1899_v7 = vadd.f32 %v1898_v5, %v7047_v30  ;;  %v1900_v8 = vpop.f32.mrb[66].mxu1  ;;  %v5836_v5 = vld [vmem:[#allocation3 + $0x36c] ss:$16 sps:$4 sm:$0xff]  }
 0x41c   : > { %v2210_v9 = vmax.f32 %v2209_v58, %v1897_v4  ;;  %v1901_v10 = vadd.f32 %v1900_v8, %v7042_v56  ;;  %v1902_v11 = vpop.f32.mrb[67].mxu1  ;;  %v5833_v4 = vld [vmem:[#allocation3 + $0x364] ss:$16 sps:$4 sm:$0xff]   ;;  %v5831_v8 = vld [vmem:[#allocation3 + $0x360] ss:$16 sps:$4 sm:$0xff]  }
 0x41d   : > { %v2225_v43 = vmax.f32 %v2224_v1, %v1899_v7  ;;  %v1903_v14 = vadd.f32 %v1902_v11, %v7047_v30  ;;  %3994 = vmatpush1.bf16.msra.mxu0 %v5795_v2  ;;  %4158 = vmatpush1.bf16.msra.mxu1 %v5798_v3  ;;  %v5828_v2 = vld [vmem:[#allocation3 + $0x348] ss:$16 sps:$4 sm:$0xff]  }
 0x41e   : > { %v2211_v18 = vmax.f32 %v2210_v9, %v1901_v10  ;;  %3995 = vmatprep.subr.bf16.mxu0 %v5803_v12  ;;  %4159 = vmatprep.subr.bf16.mxu1 %v5806_v6  ;;  %v2358_v6 = vrot.slane %v7038_v26, 4  ;;  %v5834_v9 = vld [vmem:[#allocation3 + $0x368] ss:$16 sps:$4 sm:$0xff]  }
 0x41f   : > { %v2226_v21 = vmax.f32 %v2225_v43, %v1903_v14  ;;  %v5839_v43 = vld [vmem:[#allocation3 + $0x384] ss:$16 sps:$4 sm:$0xff]   ;;  %v5842_v14 = vld [vmem:[#allocation3 + $0x38c] ss:$16 sps:$4 sm:$0xff]  }
 0x421   : > { %3996 = vmatpush1.bf16.msra.mxu0 %v5801_v15  ;;  %4160 = vmatpush1.bf16.msra.mxu1 %v5804_v16  ;;  %v1906_v62 = vpop.f32.mrb[68].mxu1 }
 0x422   : > { %v1907_v20 = vadd.f32 %v1906_v62, %v7042_v56  ;;  %v1908_v22 = vpop.f32.mrb[69].mxu1  ;;  %3997 = vmatprep.subr.bf16.mxu0 %v5809_v60  ;;  %4161 = vmatprep.subr.bf16.mxu1 %v5812_v19  ;;  %v1375_v62 = vsub.s32 6, %v6501_v28 }
 0x423   : > { %v1909_v40 = vadd.f32 %v1908_v22, %v7047_v30  ;;  %v1910_v27 = vpop.f32.mrb[70].mxu1  ;;  %v5840_v22 = vld [vmem:[#allocation3 + $0x388] ss:$16 sps:$4 sm:$0xff]  }
 0x424   : > { %v2212_v44 = vmax.f32 %v2211_v18, %v1907_v20  ;;  %v1911_v29 = vadd.f32 %v1910_v27, %v7042_v56  ;;  %v1912_v47 = vpop.f32.mrb[71].mxu1  ;;  %v2359_v18 = vmax.f32 %v7038_v26, %v2358_v6  ;;  %v5837_v20 = vld [vmem:[#allocation3 + $0x380] ss:$16 sps:$4 sm:$0xff]   ;;  %v5848_v26 = vld [vmem:[#allocation3 + $0x3ac] ss:$16 sps:$4 sm:$0xff]  }
 0x425   : > { %v2227_v48 = vmax.f32 %v2226_v21, %v1909_v40  ;;  %v1913_v45 = vadd.f32 %v1912_v47, %v7047_v30  ;;  %3998 = vmatpush1.bf16.msra.mxu0 %v5807_v24  ;;  %4162 = vmatpush1.bf16.msra.mxu1 %v5810_v39  ;;  %v5845_v40 = vld [vmem:[#allocation3 + $0x3a4] ss:$16 sps:$4 sm:$0xff]   ;;  %v5858_v6 = vld [vmem:[#allocation3 + $0x3e8] ss:$16 sps:$4 sm:$0xff]  }
 0x426   : > { %v2213_v34 = vmax.f32 %v2212_v44, %v1911_v29  ;;  %3999 = vmatprep.subr.bf16.mxu0 %v5815_v49  ;;  %4163 = vmatprep.subr.bf16.mxu1 %v5818_v23  ;;  %v1379_v49 = vsub.s32 7, %v6501_v28  ;;  %v2360_v44 = vrot.slane %v2359_v18, 2  ;;  %v7086_v29 = vrot.slane %v6946_v42, %v1375_v62 }
 0x427   : > { %v2228_v38 = vmax.f32 %v2227_v48, %v1913_v45  ;;  %v5843_v45 = vld [vmem:[#allocation3 + $0x3a0] ss:$16 sps:$4 sm:$0xff]  }
 0x428   : > { %v7089_v48 = vrot.slane %v6946_v42, %v1379_v49 }
 0x429   : > { %4000 = vmatpush1.bf16.msra.mxu0 %v5813_v33  ;;  %4164 = vmatpush1.bf16.msra.mxu1 %v5816_v59  ;;  %v1916_v46 = vpop.f32.mrb[72].mxu1  ;;  %v5846_v33 = vld [vmem:[#allocation3 + $0x3a8] ss:$16 sps:$4 sm:$0xff]  }
 0x42a   : > { %v1917_v41 = vadd.f32 %v1916_v46, %v7042_v56  ;;  %v1918_v61 = vpop.f32.mrb[73].mxu1  ;;  %4001 = vmatprep.subr.bf16.mxu0 %v5821_v36  ;;  %4165 = vmatprep.subr.bf16.mxu1 %v5824_v37  ;;  %v5851_v36 = vld [vmem:[#allocation3 + $0x3c4] ss:$16 sps:$4 sm:$0xff]   ;;  %v5854_v37 = vld [vmem:[#allocation3 + $0x3cc] ss:$16 sps:$4 sm:$0xff]  }
 0x42b   : > { %v1919_v54 = vadd.f32 %v1918_v61, %v7047_v30  ;;  %v1920_v55 = vpop.f32.mrb[74].mxu1 }
 0x42c   : > { %v2214_v57 = vmax.f32 %v2213_v34, %v1917_v41  ;;  %v1921_v58 = vadd.f32 %v1920_v55, %v7042_v56  ;;  %v1922_v63 = vpop.f32.mrb[75].mxu1  ;;  %v5849_v55 = vld [vmem:[#allocation3 + $0x3c0] ss:$16 sps:$4 sm:$0xff]  }
 0x42d   : > { %v2229_v13 = vmax.f32 %v2228_v38, %v1919_v54  ;;  %v1923_v1 = vadd.f32 %v1922_v63, %v7047_v30  ;;  %4002 = vmatpush1.bf16.msra.mxu0 %v5819_v50  ;;  %4166 = vmatpush1.bf16.msra.mxu1 %v5822_v51 }
 0x42e   : > { %v2215_v3 = vmax.f32 %v2214_v57, %v1921_v58  ;;  %4003 = vmatprep.subr.bf16.mxu0 %v5827_v52  ;;  %4167 = vmatprep.subr.bf16.mxu1 %v5830_v53  ;;  %v2361_v52 = vmax.f32 %v2359_v18, %v2360_v44  ;;  %v5852_v57 = vld [vmem:[#allocation3 + $0x3c8] ss:$16 sps:$4 sm:$0xff]  }
 0x42f   : > { %v2230_v12 = vmax.f32 %v2229_v13, %v1923_v1  ;;  %v5857_v13 = vld [vmem:[#allocation3 + $0x3e4] ss:$16 sps:$4 sm:$0xff]   ;;  %v5860_v1 = vld [vmem:[#allocation3 + $0x3ec] ss:$16 sps:$4 sm:$0xff]  }
 0x431   : > { %4004 = vmatpush1.bf16.msra.mxu0 %v5825_v0  ;;  %4168 = vmatpush1.bf16.msra.mxu1 %v5828_v2  ;;  %v1926_v7 = vpop.f32.mrb[76].mxu1 }
 0x432   : > { %v1927_v10 = vadd.f32 %v1926_v7, %v7042_v56  ;;  %v1928_v11 = vpop.f32.mrb[77].mxu1  ;;  %4005 = vmatprep.subr.bf16.mxu0 %v5833_v4  ;;  %4169 = vmatprep.subr.bf16.mxu1 %v5836_v5  ;;  %v2362_v4 = vrot.slane %v2361_v52, 1 }
 0x433   : > { %v1929_v15 = vadd.f32 %v1928_v11, %v7047_v30  ;;  %v1930_v16 = vpop.f32.mrb[78].mxu1  ;;  %v5866_v11 = vld [vmem:[#allocation3 + $0x40c] ss:$16 sps:$4 sm:$0xff]  }
 0x434   : > { %v2216_v60 = vmax.f32 %v2215_v3, %v1927_v10  ;;  %v1931_v19 = vadd.f32 %v1930_v16, %v7042_v56  ;;  %v1932_v21 = vpop.f32.mrb[79].mxu1  ;;  %v5863_v10 = vld [vmem:[#allocation3 + $0x404] ss:$16 sps:$4 sm:$0xff]  }
 0x435   : > { %v2231_v24 = vmax.f32 %v2230_v12, %v1929_v15  ;;  %v1933_v39 = vadd.f32 %v1932_v21, %v7047_v30  ;;  %4006 = vmatpush1.bf16.msra.mxu0 %v5831_v8  ;;  %4170 = vmatpush1.bf16.msra.mxu1 %v5834_v9  ;;  %v5855_v12 = vld [vmem:[#allocation3 + $0x3e0] ss:$16 sps:$4 sm:$0xff]   ;;  %v2363_v21 = vmax.f32 %v2361_v52, %v2362_v4  ;;  %v5876_v52 = vld [vmem:[#allocation3 + $0x448] ss:$16 sps:$4 sm:$0xff]  }
 0x436   : > { %v2217_v23 = vmax.f32 %v2216_v60, %v1931_v19  ;;  %4007 = vmatprep.subr.bf16.mxu0 %v5839_v43  ;;  %4171 = vmatprep.subr.bf16.mxu1 %v5842_v14 }
 0x437   : > { %v2232_v27 = vmax.f32 %v2231_v24, %v1933_v39  ;;  %v2381_v44 = vpack.c.bf16 %v2363_v21, %v2363_v21 }
 0x438   : > { %v2340_v56 = vrot.slane %v2217_v23, 4 }
 0x439   : > { %v2346_v47 = vrot.slane %v2232_v27, 4  ;;  %4008 = vmatpush1.bf16.msra.mxu0 %v5837_v20  ;;  %4172 = vmatpush1.bf16.msra.mxu1 %v5840_v22  ;;  %v2082_v30 = vpop.f32.mrb[80].mxu1  ;;  %v5861_v20 = vld [vmem:[#allocation3 + $0x400] ss:$16 sps:$4 sm:$0xff]   ;;  %v5864_v22 = vld [vmem:[#allocation3 + $0x408] ss:$16 sps:$4 sm:$0xff]  }
 0x43a   : > { %v2341_v59 = vmax.f32 %v2217_v23, %v2340_v56  ;;  %v2084_v34 = vpop.f32.mrb[81].mxu1  ;;  %4009 = vmatprep.subr.bf16.mxu0 %v5845_v40  ;;  %4173 = vmatprep.subr.bf16.mxu1 %v5848_v26  ;;  %v2083_v51 = vadd.f32 %v2082_v30, %v7086_v29  ;;  %v5869_v26 = vld [vmem:[#allocation3 + $0x424] ss:$16 sps:$4 sm:$0xff]   ;;  %v5870_v30 = vld [vmem:[#allocation3 + $0x428] ss:$16 sps:$4 sm:$0xff]  }
 0x43b   : > { %v2347_v38 = vmax.f32 %v2232_v27, %v2346_v47  ;;  %v2086_v46 = vpop.f32.mrb[82].mxu1  ;;  %v2085_v42 = vadd.f32 %v2084_v34, %v7089_v48  ;;  %v5872_v27 = vld [vmem:[#allocation3 + $0x42c] ss:$16 sps:$4 sm:$0xff]   ;;  %v5867_v47 = vld [vmem:[#allocation3 + $0x420] ss:$16 sps:$4 sm:$0xff]  }
 0x43c   : > { %v2342_v50 = vrot.slane %v2341_v59, 2  ;;  %v2087_v41 = vadd.f32 %v2086_v46, %v7086_v29  ;;  %v2088_v61 = vpop.f32.mrb[83].mxu1  ;;  %v5878_v34 = vld [vmem:[#allocation3 + $0x44c] ss:$16 sps:$4 sm:$0xff]  }
 0x43d   : > { %v2348_v53 = vrot.slane %v2347_v38, 2  ;;  %v2089_v54 = vadd.f32 %v2088_v61, %v7089_v48  ;;  %4010 = vmatpush1.bf16.msra.mxu0 %v5843_v45  ;;  %4174 = vmatpush1.bf16.msra.mxu1 %v5846_v33  ;;  %v5873_v61 = vld [vmem:[#allocation3 + $0x440] ss:$16 sps:$4 sm:$0xff]  }
 0x43e   : > { %v2343_v58 = vmax.f32 %v2341_v59, %v2342_v50  ;;  %v2263_v63 = vmax.f32 %v2083_v51, %v2087_v41  ;;  %4011 = vmatprep.subr.bf16.mxu0 %v5851_v36  ;;  %4175 = vmatprep.subr.bf16.mxu1 %v5854_v37  ;;  %v5875_v59 = vld [vmem:[#allocation3 + $0x444] ss:$16 sps:$4 sm:$0xff]  }
 0x43f   : > { %v2278_v0 = vmax.f32 %v2085_v42, %v2089_v54  ;;  %v2349_v2 = vmax.f32 %v2347_v38, %v2348_v53  ;;  %v5881_v42 = vld [vmem:[#allocation3 + $0x464] ss:$16 sps:$4 sm:$0xff]   ;;  %v5884_v54 = vld [vmem:[#allocation3 + $0x46c] ss:$16 sps:$4 sm:$0xff]  }
 0x440   : > { %v2344_v3 = vrot.slane %v2343_v58, 1 }
 0x441   : > { %4012 = vmatpush1.bf16.msra.mxu0 %v5849_v55  ;;  %4176 = vmatpush1.bf16.msra.mxu1 %v5852_v57  ;;  %v2092_v5 = vpop.f32.mrb[84].mxu1  ;;  %v2350_v7 = vrot.slane %v2349_v2, 1 }
 0x442   : > { %v2093_v8 = vadd.f32 %v2092_v5, %v7086_v29  ;;  %v2094_v9 = vpop.f32.mrb[85].mxu1  ;;  %4013 = vmatprep.subr.bf16.mxu0 %v5857_v13  ;;  %4177 = vmatprep.subr.bf16.mxu1 %v5860_v1  ;;  %v2345_v43 = vmax.f32 %v2343_v58, %v2344_v3  ;;  %v5879_v58 = vld [vmem:[#allocation3 + $0x460] ss:$16 sps:$4 sm:$0xff]  }
 0x443   : > { %v2095_v14 = vadd.f32 %v2094_v9, %v7089_v48  ;;  %v2096_v15 = vpop.f32.mrb[86].mxu1  ;;  %v2351_v16 = vmax.f32 %v2349_v2, %v2350_v7  ;;  %v5890_v2 = vld [vmem:[#allocation3 + $0x48c] ss:$16 sps:$4 sm:$0xff]   ;;  %v5885_v9 = vld [vmem:[#allocation3 + $0x480] ss:$16 sps:$4 sm:$0xff]  }
 0x444   : > { %v2264_v18 = vmax.f32 %v2263_v63, %v2093_v8  ;;  %v2097_v60 = vadd.f32 %v2096_v15, %v7086_v29  ;;  %v2098_v19 = vpop.f32.mrb[87].mxu1  ;;  %v2378_v23 = vpack.c.bf16 %v2345_v43, %v2345_v43  ;;  %v5882_v63 = vld [vmem:[#allocation3 + $0x468] ss:$16 sps:$4 sm:$0xff]   ;;  %v5893_v43 = vld [vmem:[#allocation3 + $0x4a4] ss:$16 sps:$4 sm:$0xff]  }
 0x445   : > { %v2279_v62 = vmax.f32 %v2278_v0, %v2095_v14  ;;  %v2099_v24 = vadd.f32 %v2098_v19, %v7089_v48  ;;  %4014 = vmatpush1.bf16.msra.mxu0 %v5855_v12  ;;  %4178 = vmatpush1.bf16.msra.mxu1 %v5858_v6  ;;  %v2379_v39 = vpack.c.bf16 %v2351_v16, %v2351_v16  ;;  %v5887_v0 = vld [vmem:[#allocation3 + $0x484] ss:$16 sps:$4 sm:$0xff]   ;;  %v5896_v14 = vld [vmem:[#allocation3 + $0x4ac] ss:$16 sps:$4 sm:$0xff]  }
 0x446   : > { %v2265_v49 = vmax.f32 %v2264_v18, %v2097_v60  ;;  %4024 = vmatprep.subr.bf16.mxu0 %v5863_v10  ;;  %4188 = vmatprep.subr.bf16.mxu1 %v5866_v11  ;;  %v5888_v10 = vld [vmem:[#allocation3 + $0x488] ss:$16 sps:$4 sm:$0xff]   ;;  %v5891_v18 = vld [vmem:[#allocation3 + $0x4a0] ss:$16 sps:$4 sm:$0xff]  }
 0x447   : > { %v2280_v40 = vmax.f32 %v2279_v62, %v2099_v24  ;;  %4015 = vmatprep.mubr.bf16.mxu0 %v2379_v39  ;;  %4179 = vmatprep.mubr.bf16.mxu1 %v2379_v39  ;;  %v5894_v60 = vld [vmem:[#allocation3 + $0x4a8] ss:$16 sps:$4 sm:$0xff]   ;;  %v5899_v62 = vld [vmem:[#allocation3 + $0x4c4] ss:$16 sps:$4 sm:$0xff]   ;;  %v5902_v24 = vld [vmem:[#allocation3 + $0x4cc] ss:$16 sps:$4 sm:$0xff]  }
 0x448   : > { %4016 = vmatmul.mubr.bf16.vlgmr.msra.gmra.mrb[48].mxu0 %v2378_v23  ;;  %4180 = vmatmul.mubr.bf16.vlgmr.msra.gmra.mrb[112].mxu1 %v2378_v23 }
 0x449   : > { %4025 = vmatpush1.bf16.msra.mxu0 %v5861_v20  ;;  %4189 = vmatpush1.bf16.msra.mxu1 %v5864_v22  ;;  %v2102_v56 = vpop.f32.mrb[88].mxu1 }
 0x44a   : > { %v2103_v45 = vadd.f32 %v2102_v56, %v7086_v29  ;;  %4056 = vmatprep.mubr.bf16.mxu0 %v2381_v44  ;;  %4220 = vmatprep.mubr.bf16.mxu1 %v2381_v44  ;;  %v2104_v33 = vpop.f32.mrb[89].mxu1  ;;  %v5900_v44 = vld [vmem:[#allocation3 + $0x4c8] ss:$16 sps:$4 sm:$0xff]  }
 0x44b   : > { %v2105_v36 = vadd.f32 %v2104_v33, %v7089_v48  ;;  %v2106_v37 = vpop.f32.mrb[90].mxu1  ;;  %4026 = vmatprep.subr.bf16.mxu0 %v5869_v26  ;;  %4190 = vmatprep.subr.bf16.mxu1 %v5872_v27  ;;  %v5897_v27 = vld [vmem:[#allocation3 + $0x4c0] ss:$16 sps:$4 sm:$0xff]  }
 0x44c   : > { %v2266_v38 = vmax.f32 %v2265_v49, %v2103_v45  ;;  %v2107_v46 = vadd.f32 %v2106_v37, %v7086_v29  ;;  %v2108_v50 = vpop.f32.mrb[91].mxu1 }
 0x44d   : > { %v2281_v51 = vmax.f32 %v2280_v40, %v2105_v36  ;;  %v2109_v41 = vadd.f32 %v2108_v50, %v7089_v48  ;;  %4027 = vmatpush1.bf16.msra.mxu0 %v5867_v47  ;;  %4191 = vmatpush1.bf16.msra.mxu1 %v5870_v30  ;;  %v5905_v47 = vld [vmem:[#allocation3 + $0x4e4] ss:$16 sps:$4 sm:$0xff]   ;;  %v5908_v30 = vld [vmem:[#allocation3 + $0x4ec] ss:$16 sps:$4 sm:$0xff]  }
 0x44e   : > { %v2267_v53 = vmax.f32 %v2266_v38, %v2107_v46  ;;  %4028 = vmatprep.subr.bf16.mxu0 %v5875_v59  ;;  %4192 = vmatprep.subr.bf16.mxu1 %v5878_v34  ;;  %v5903_v59 = vld [vmem:[#allocation3 + $0x4e0] ss:$16 sps:$4 sm:$0xff]   ;;  %v5906_v34 = vld [vmem:[#allocation3 + $0x4e8] ss:$16 sps:$4 sm:$0xff]   ;;  %v5911_v38 = vld [vmem:[#allocation3 + $0x504] ss:$16 sps:$4 sm:$0xff]  }
 0x44f   : > { %v2282_v55 = vmax.f32 %v2281_v51, %v2109_v41  ;;  %v5914_v46 = vld [vmem:[#allocation3 + $0x50c] ss:$16 sps:$4 sm:$0xff]  }
 0x451   : > { %4029 = vmatpush1.bf16.msra.mxu0 %v5873_v61  ;;  %4193 = vmatpush1.bf16.msra.mxu1 %v5876_v52  ;;  %v2112_v57 = vpop.f32.mrb[92].mxu1 }
 0x452   : > { %v2113_v13 = vadd.f32 %v2112_v57, %v7086_v29  ;;  %v2114_v1 = vpop.f32.mrb[93].mxu1  ;;  %4030 = vmatprep.subr.bf16.mxu0 %v5881_v42  ;;  %4194 = vmatprep.subr.bf16.mxu1 %v5884_v54  ;;  %v5909_v54 = vld [vmem:[#allocation3 + $0x500] ss:$16 sps:$4 sm:$0xff]  }
 0x453   : > { %v2115_v3 = vadd.f32 %v2114_v1, %v7089_v48  ;;  %v2116_v4 = vpop.f32.mrb[94].mxu1 }
 0x454   : > { %v2268_v5 = vmax.f32 %v2267_v53, %v2113_v13  ;;  %v2117_v12 = vadd.f32 %v2116_v4, %v7086_v29  ;;  %v2118_v6 = vpop.f32.mrb[95].mxu1 }
 0x455   : > { %v2283_v7 = vmax.f32 %v2282_v55, %v2115_v3  ;;  %v2119_v8 = vadd.f32 %v2118_v6, %v7089_v48  ;;  %4031 = vmatpush1.bf16.msra.mxu0 %v5879_v58  ;;  %4195 = vmatpush1.bf16.msra.mxu1 %v5882_v63  ;;  %v5912_v55 = vld [vmem:[#allocation3 + $0x508] ss:$16 sps:$4 sm:$0xff]   ;;  %v5917_v58 = vld [vmem:[#allocation3 + $0x524] ss:$16 sps:$4 sm:$0xff]   ;;  %v5920_v63 = vld [vmem:[#allocation3 + $0x52c] ss:$16 sps:$4 sm:$0xff]  }
 0x456   : > { %v2269_v11 = vmax.f32 %v2268_v5, %v2117_v12  ;;  %4032 = vmatprep.subr.bf16.mxu0 %v5887_v0  ;;  %4196 = vmatprep.subr.bf16.mxu1 %v5890_v2  ;;  %v5915_v0 = vld [vmem:[#allocation3 + $0x520] ss:$16 sps:$4 sm:$0xff]   ;;  %v5918_v2 = vld [vmem:[#allocation3 + $0x528] ss:$16 sps:$4 sm:$0xff]   ;;  %v5923_v5 = vld [vmem:[#allocation3 + $0x544] ss:$16 sps:$4 sm:$0xff]  }
 0x457   : > { %v2284_v15 = vmax.f32 %v2283_v7, %v2119_v8  ;;  %v5926_v12 = vld [vmem:[#allocation3 + $0x54c] ss:$16 sps:$4 sm:$0xff]  }
 0x459   : > { %4033 = vmatpush1.bf16.msra.mxu0 %v5885_v9  ;;  %4197 = vmatpush1.bf16.msra.mxu1 %v5888_v10  ;;  %v2122_v16 = vpop.f32.mrb[96].mxu1 }
 0x45a   : > { %v2123_v19 = vadd.f32 %v2122_v16, %v7086_v29  ;;  %v2124_v21 = vpop.f32.mrb[97].mxu1  ;;  %4034 = vmatprep.subr.bf16.mxu0 %v5893_v43  ;;  %4198 = vmatprep.subr.bf16.mxu1 %v5896_v14  ;;  %v5921_v14 = vld [vmem:[#allocation3 + $0x540] ss:$16 sps:$4 sm:$0xff]   ;;  %v2352_v16 = vrot.slane %v7036_v25, 4 }
 0x45b   : > { %v2125_v39 = vadd.f32 %v2124_v21, %v7089_v48  ;;  %v2126_v20 = vpop.f32.mrb[98].mxu1 }
 0x45c   : > { %v2270_v22 = vmax.f32 %v2269_v11, %v2123_v19  ;;  %v2127_v49 = vadd.f32 %v2126_v20, %v7086_v29  ;;  %v2128_v23 = vpop.f32.mrb[99].mxu1  ;;  %v5932_v19 = vld [vmem:[#allocation3 + $0x56c] ss:$16 sps:$4 sm:$0xff]   ;;  %v2353_v20 = vmax.f32 %v7036_v25, %v2352_v16  ;;  %v5933_v25 = vld [vmem:[#allocation3 + $0x580] ss:$16 sps:$4 sm:$0xff]  }
 0x45d   : > { %v2285_v40 = vmax.f32 %v2284_v15, %v2125_v39  ;;  %v2129_v26 = vadd.f32 %v2128_v23, %v7089_v48  ;;  %4035 = vmatpush1.bf16.msra.mxu0 %v5891_v18  ;;  %4199 = vmatpush1.bf16.msra.mxu1 %v5894_v60  ;;  %v5924_v15 = vld [vmem:[#allocation3 + $0x548] ss:$16 sps:$4 sm:$0xff]   ;;  %v5929_v60 = vld [vmem:[#allocation3 + $0x564] ss:$16 sps:$4 sm:$0xff]  }
 0x45e   : > { %v2271_v56 = vmax.f32 %v2270_v22, %v2127_v49  ;;  %4036 = vmatprep.subr.bf16.mxu0 %v5899_v62  ;;  %4200 = vmatprep.subr.bf16.mxu1 %v5902_v24  ;;  %v5927_v24 = vld [vmem:[#allocation3 + $0x560] ss:$16 sps:$4 sm:$0xff]   ;;  %v5930_v39 = vld [vmem:[#allocation3 + $0x568] ss:$16 sps:$4 sm:$0xff]   ;;  %v5935_v23 = vld [vmem:[#allocation3 + $0x584] ss:$16 sps:$4 sm:$0xff]  }
 0x45f   : > { %v2286_v45 = vmax.f32 %v2285_v40, %v2129_v26  ;;  %v5938_v40 = vld [vmem:[#allocation3 + $0x58c] ss:$16 sps:$4 sm:$0xff]   ;;  %v5972_v16 = vld [vmem:[#allocation3 + $0x648] ss:$16 sps:$4 sm:$0xff]  }
 0x461   : > { %4037 = vmatpush1.bf16.msra.mxu0 %v5897_v27  ;;  %4201 = vmatpush1.bf16.msra.mxu1 %v5900_v44  ;;  %v2132_v33 = vpop.f32.mrb[100].mxu1 }
 0x462   : > { %v2133_v36 = vadd.f32 %v2132_v33, %v7086_v29  ;;  %v2134_v37 = vpop.f32.mrb[101].mxu1  ;;  %4038 = vmatprep.subr.bf16.mxu0 %v5905_v47  ;;  %4202 = vmatprep.subr.bf16.mxu1 %v5908_v30  ;;  %v5936_v33 = vld [vmem:[#allocation3 + $0x588] ss:$16 sps:$4 sm:$0xff]  }
 0x463   : > { %v2135_v50 = vadd.f32 %v2134_v37, %v7089_v48  ;;  %v2136_v51 = vpop.f32.mrb[102].mxu1  ;;  %v5944_v37 = vld [vmem:[#allocation3 + $0x5ac] ss:$16 sps:$4 sm:$0xff]  }
 0x464   : > { %v2272_v41 = vmax.f32 %v2271_v56, %v2133_v36  ;;  %v2137_v61 = vadd.f32 %v2136_v51, %v7086_v29  ;;  %v2138_v52 = vpop.f32.mrb[103].mxu1  ;;  %v5941_v36 = vld [vmem:[#allocation3 + $0x5a4] ss:$16 sps:$4 sm:$0xff]  }
 0x465   : > { %v2287_v53 = vmax.f32 %v2286_v45, %v2135_v50  ;;  %v2139_v42 = vadd.f32 %v2138_v52, %v7089_v48  ;;  %4039 = vmatpush1.bf16.msra.mxu0 %v5903_v59  ;;  %4203 = vmatpush1.bf16.msra.mxu1 %v5906_v34  ;;  %v2354_v59 = vrot.slane %v2353_v20, 2  ;;  %v5942_v50 = vld [vmem:[#allocation3 + $0x5a8] ss:$16 sps:$4 sm:$0xff]  }
 0x466   : > { %v2273_v57 = vmax.f32 %v2272_v41, %v2137_v61  ;;  %4040 = vmatprep.subr.bf16.mxu0 %v5911_v38  ;;  %4204 = vmatprep.subr.bf16.mxu1 %v5914_v46  ;;  %v5950_v41 = vld [vmem:[#allocation3 + $0x5cc] ss:$16 sps:$4 sm:$0xff]  }
 0x467   : > { %v2288_v13 = vmax.f32 %v2287_v53, %v2139_v42  ;;  %v2355_v51 = vmax.f32 %v2353_v20, %v2354_v59  ;;  %v5945_v53 = vld [vmem:[#allocation3 + $0x5c0] ss:$16 sps:$4 sm:$0xff]   ;;  %v5948_v42 = vld [vmem:[#allocation3 + $0x5c8] ss:$16 sps:$4 sm:$0xff]   ;;  %v6010_v59 = vld [vmem:[#allocation3 + $0x70c] ss:$16 sps:$4 sm:$0xff]  }
 0x468   : > { %v5984_v20 = vld [vmem:[#allocation3 + $0x688] ss:$16 sps:$4 sm:$0xff]  }
 0x469   : > { %4041 = vmatpush1.bf16.msra.mxu0 %v5909_v54  ;;  %4205 = vmatpush1.bf16.msra.mxu1 %v5912_v55  ;;  %v2142_v1 = vpop.f32.mrb[104].mxu1  ;;  %v2356_v54 = vrot.slane %v2355_v51, 1  ;;  %v5953_v55 = vld [vmem:[#allocation3 + $0x5e4] ss:$16 sps:$4 sm:$0xff]  }
 0x46a   : > { %v2143_v3 = vadd.f32 %v2142_v1, %v7086_v29  ;;  %v2144_v4 = vpop.f32.mrb[105].mxu1  ;;  %4042 = vmatprep.subr.bf16.mxu0 %v5917_v58  ;;  %4206 = vmatprep.subr.bf16.mxu1 %v5920_v63  ;;  %v5951_v63 = vld [vmem:[#allocation3 + $0x5e0] ss:$16 sps:$4 sm:$0xff]  }
 0x46b   : > { %v2145_v6 = vadd.f32 %v2144_v4, %v7089_v48  ;;  %v2146_v7 = vpop.f32.mrb[106].mxu1 }
 0x46c   : > { %v2274_v8 = vmax.f32 %v2273_v57, %v2143_v3  ;;  %v2147_v9 = vadd.f32 %v2146_v7, %v7086_v29  ;;  %v2148_v10 = vpop.f32.mrb[107].mxu1  ;;  %v5956_v57 = vld [vmem:[#allocation3 + $0x5ec] ss:$16 sps:$4 sm:$0xff]   ;;  %v5960_v7 = vld [vmem:[#allocation3 + $0x608] ss:$16 sps:$4 sm:$0xff]  }
 0x46d   : > { %v2289_v11 = vmax.f32 %v2288_v13, %v2145_v6  ;;  %v2149_v43 = vadd.f32 %v2148_v10, %v7089_v48  ;;  %4043 = vmatpush1.bf16.msra.mxu0 %v5915_v0  ;;  %4207 = vmatpush1.bf16.msra.mxu1 %v5918_v2  ;;  %v5954_v13 = vld [vmem:[#allocation3 + $0x5e8] ss:$16 sps:$4 sm:$0xff]   ;;  %v2357_v0 = vmax.f32 %v2355_v51, %v2356_v54  ;;  %v5959_v2 = vld [vmem:[#allocation3 + $0x604] ss:$16 sps:$4 sm:$0xff]   ;;  %v5962_v3 = vld [vmem:[#allocation3 + $0x60c] ss:$16 sps:$4 sm:$0xff]  }
 0x46e   : > { %v2275_v18 = vmax.f32 %v2274_v8, %v2147_v9  ;;  %4044 = vmatprep.subr.bf16.mxu0 %v5923_v5  ;;  %4208 = vmatprep.subr.bf16.mxu1 %v5926_v12  ;;  %v5957_v5 = vld [vmem:[#allocation3 + $0x600] ss:$16 sps:$4 sm:$0xff]   ;;  %v5965_v8 = vld [vmem:[#allocation3 + $0x624] ss:$16 sps:$4 sm:$0xff]   ;;  %v5968_v9 = vld [vmem:[#allocation3 + $0x62c] ss:$16 sps:$4 sm:$0xff]  }
 0x46f   : > { %v2290_v21 = vmax.f32 %v2289_v11, %v2149_v43  ;;  %v2380_v6 = vpack.c.bf16 %v2357_v0, %v2357_v0  ;;  %v5963_v10 = vld [vmem:[#allocation3 + $0x620] ss:$16 sps:$4 sm:$0xff]   ;;  %v5966_v11 = vld [vmem:[#allocation3 + $0x628] ss:$16 sps:$4 sm:$0xff]   ;;  %v5971_v43 = vld [vmem:[#allocation3 + $0x644] ss:$16 sps:$4 sm:$0xff]  }
 0x470   : > { %v6019_v51 = vld [vmem:[#allocation3 + $0x744] ss:$16 sps:$4 sm:$0xff]   ;;  %v6023_v54 = vld [vmem:[#allocation3 + $0x760] ss:$16 sps:$4 sm:$0xff]   ;;  %v6032_v0 = vld [vmem:[#allocation3 + $0x788] ss:$16 sps:$4 sm:$0xff]  }
 0x471   : > { %4045 = vmatpush1.bf16.msra.mxu0 %v5921_v14  ;;  %4209 = vmatpush1.bf16.msra.mxu1 %v5924_v15  ;;  %v2152_v62 = vpop.f32.mrb[108].mxu1  ;;  %v5974_v14 = vld [vmem:[#allocation3 + $0x64c] ss:$16 sps:$4 sm:$0xff]   ;;  %v5969_v15 = vld [vmem:[#allocation3 + $0x640] ss:$16 sps:$4 sm:$0xff]  }
 0x472   : > { %v2153_v22 = vadd.f32 %v2152_v62, %v7086_v29  ;;  %v2154_v49 = vpop.f32.mrb[109].mxu1  ;;  %4046 = vmatprep.subr.bf16.mxu0 %v5929_v60  ;;  %4210 = vmatprep.subr.bf16.mxu1 %v5932_v19  ;;  %v5980_v60 = vld [vmem:[#allocation3 + $0x66c] ss:$16 sps:$4 sm:$0xff]   ;;  %v5975_v19 = vld [vmem:[#allocation3 + $0x660] ss:$16 sps:$4 sm:$0xff]  }
 0x473   : > { %v2155_v26 = vadd.f32 %v2154_v49, %v7089_v48  ;;  %v2156_v27 = vpop.f32.mrb[110].mxu1  ;;  %v5983_v62 = vld [vmem:[#allocation3 + $0x684] ss:$16 sps:$4 sm:$0xff]   ;;  %v5992_v49 = vld [vmem:[#allocation3 + $0x6ac] ss:$16 sps:$4 sm:$0xff]  }
 0x474   : > { %v2276_v44 = vmax.f32 %v2275_v18, %v2153_v22  ;;  %v2157_v56 = vadd.f32 %v2156_v27, %v7086_v29  ;;  %v2158_v47 = vpop.f32.mrb[111].mxu1  ;;  %v5939_v29 = vld [vmem:[#allocation3 + $0x5a0] ss:$16 sps:$4 sm:$0xff]   ;;  %v5977_v18 = vld [vmem:[#allocation3 + $0x664] ss:$16 sps:$4 sm:$0xff]  }
 0x475   : > { %v2291_v30 = vmax.f32 %v2290_v21, %v2155_v26  ;;  %v2159_v45 = vadd.f32 %v2158_v47, %v7089_v48  ;;  %4047 = vmatpush1.bf16.msra.mxu0 %v5927_v24  ;;  %4211 = vmatpush1.bf16.msra.mxu1 %v5930_v39  ;;  %v5947_v48 = vld [vmem:[#allocation3 + $0x5c4] ss:$16 sps:$4 sm:$0xff]   ;;  %v5978_v21 = vld [vmem:[#allocation3 + $0x668] ss:$16 sps:$4 sm:$0xff]   ;;  %v5986_v24 = vld [vmem:[#allocation3 + $0x68c] ss:$16 sps:$4 sm:$0xff]  }
 0x476   : > { %v7125_v34 = vmax.f32 %v2276_v44, %v2157_v56  ;;  %4048 = vmatprep.subr.bf16.mxu0 %v5935_v23  ;;  %4212 = vmatprep.subr.bf16.mxu1 %v5938_v40  ;;  %v5981_v39 = vld [vmem:[#allocation3 + $0x680] ss:$16 sps:$4 sm:$0xff]   ;;  %v5989_v22 = vld [vmem:[#allocation3 + $0x6a4] ss:$16 sps:$4 sm:$0xff]   ;;  %v5990_v40 = vld [vmem:[#allocation3 + $0x6a8] ss:$16 sps:$4 sm:$0xff]  }
 0x477   : > { %v2292_v38 = vmax.f32 %v2291_v30, %v2159_v45  ;;  %v5987_v23 = vld [vmem:[#allocation3 + $0x6a0] ss:$16 sps:$4 sm:$0xff]   ;;  %v5995_v26 = vld [vmem:[#allocation3 + $0x6c4] ss:$16 sps:$4 sm:$0xff]   ;;  %v5998_v27 = vld [vmem:[#allocation3 + $0x6cc] ss:$16 sps:$4 sm:$0xff]  }
 0x478   : > { %v5993_v44 = vld [vmem:[#allocation3 + $0x6c0] ss:$16 sps:$4 sm:$0xff]   ;;  %v5996_v56 = vld [vmem:[#allocation3 + $0x6c8] ss:$16 sps:$4 sm:$0xff]   ;;  %v6001_v47 = vld [vmem:[#allocation3 + $0x6e4] ss:$16 sps:$4 sm:$0xff]  }
 0x479   : > { %v2370_v46 = vrot.slane %v2292_v38, 4  ;;  %4049 = vmatpush1.bf16.msra.mxu0 %v5933_v25  ;;  %4213 = vmatpush1.bf16.msra.mxu1 %v5936_v33  ;;  %v6004_v30 = vld [vmem:[#allocation3 + $0x6ec] ss:$16 sps:$4 sm:$0xff]   ;;  %v5999_v45 = vld [vmem:[#allocation3 + $0x6e0] ss:$16 sps:$4 sm:$0xff]  }
 0x47a   : > { %4050 = vmatprep.subr.bf16.mxu0 %v5941_v36  ;;  %4214 = vmatprep.subr.bf16.mxu1 %v5944_v37  ;;  %v6002_v25 = vld [vmem:[#allocation3 + $0x6e8] ss:$16 sps:$4 sm:$0xff]   ;;  %v6007_v33 = vld [vmem:[#allocation3 + $0x704] ss:$16 sps:$4 sm:$0xff]   ;;  %v6005_v36 = vld [vmem:[#allocation3 + $0x700] ss:$16 sps:$4 sm:$0xff]  }
 0x47b   : > { %v2371_v61 = vmax.f32 %v2292_v38, %v2370_v46  ;;  %v6008_v37 = vld [vmem:[#allocation3 + $0x708] ss:$16 sps:$4 sm:$0xff]   ;;  %v6013_v38 = vld [vmem:[#allocation3 + $0x724] ss:$16 sps:$4 sm:$0xff]   ;;  %v6016_v46 = vld [vmem:[#allocation3 + $0x72c] ss:$16 sps:$4 sm:$0xff]  }
 0x47d   : > { %v2372_v52 = vrot.slane %v2371_v61, 2  ;;  %4051 = vmatpush1.bf16.msra.mxu0 %v5939_v29  ;;  %4215 = vmatpush1.bf16.msra.mxu1 %v5942_v50  ;;  %v6011_v29 = vld [vmem:[#allocation3 + $0x720] ss:$16 sps:$4 sm:$0xff]   ;;  %v6014_v50 = vld [vmem:[#allocation3 + $0x728] ss:$16 sps:$4 sm:$0xff]  }
 0x47e   : > { %4052 = vmatprep.subr.bf16.mxu0 %v5947_v48  ;;  %4216 = vmatprep.subr.bf16.mxu1 %v5950_v41  ;;  %v6022_v48 = vld [vmem:[#allocation3 + $0x74c] ss:$16 sps:$4 sm:$0xff]   ;;  %v6017_v41 = vld [vmem:[#allocation3 + $0x740] ss:$16 sps:$4 sm:$0xff]  }
 0x47f   : > { %v2373_v58 = vmax.f32 %v2371_v61, %v2372_v52  ;;  %v2364_v61 = vrot.slane %v7125_v34, 4  ;;  %v6020_v52 = vld [vmem:[#allocation3 + $0x748] ss:$16 sps:$4 sm:$0xff]  }
 0x481   : > { %4053 = vmatpush1.bf16.msra.mxu0 %v5945_v53  ;;  %4217 = vmatpush1.bf16.msra.mxu1 %v5948_v42  ;;  %v2374_v1 = vrot.slane %v2373_v58, 1  ;;  %v6025_v53 = vld [vmem:[#allocation3 + $0x764] ss:$16 sps:$4 sm:$0xff]   ;;  %v6028_v42 = vld [vmem:[#allocation3 + $0x76c] ss:$16 sps:$4 sm:$0xff]  }
 0x482   : > { %4054 = vmatprep.subr.bf16.mxu0 %v5953_v55  ;;  %4218 = vmatprep.subr.bf16.mxu1 %v5956_v57  ;;  %v2365_v55 = vmax.f32 %v7125_v34, %v2364_v61  ;;  %v6026_v57 = vld [vmem:[#allocation3 + $0x768] ss:$16 sps:$4 sm:$0xff]  }
 0x483   : > { %v2375_v4 = vmax.f32 %v2373_v58, %v2374_v1  ;;  %v6031_v58 = vld [vmem:[#allocation3 + $0x784] ss:$16 sps:$4 sm:$0xff]   ;;  %v6038_v34 = vld [vmem:[#allocation3 + $0x7a8] ss:$16 sps:$4 sm:$0xff]  }
 0x484   : > { %v2366_v1 = vrot.slane %v2365_v55, 2  ;;  %v6098_v61 = vld [vmem:[#allocation5 + $0xf0] ss:$8 sps:$4 sm:$0xff]  }
 0x485   : > { %4055 = vmatpush1.bf16.msra.mxu0 %v5951_v63  ;;  %4219 = vmatpush1.bf16.msra.mxu1 %v5954_v13  ;;  %v2383_v12 = vpack.c.bf16 %v2375_v4, %v2375_v4  ;;  %v6034_v63 = vld [vmem:[#allocation3 + $0x78c] ss:$16 sps:$4 sm:$0xff]   ;;  %v6029_v13 = vld [vmem:[#allocation3 + $0x780] ss:$16 sps:$4 sm:$0xff]  }
 0x486   : > { %4065 = vmatprep.subr.bf16.mxu0 %v5959_v2  ;;  %4229 = vmatprep.subr.bf16.mxu1 %v5962_v3  ;;  %v6037_v2 = vld [vmem:[#allocation3 + $0x7a4] ss:$16 sps:$4 sm:$0xff]   ;;  %v6040_v3 = vld [vmem:[#allocation3 + $0x7ac] ss:$16 sps:$4 sm:$0xff]   ;;  %v6035_v4 = vld [vmem:[#allocation3 + $0x7a0] ss:$16 sps:$4 sm:$0xff]  }
 0x488   : > { %4057 = vmatmul.mubr.bf16.vlgmr.msra.gmra.mrb[48].mxu0 %v2380_v6  ;;  %4221 = vmatmul.mubr.bf16.vlgmr.msra.gmra.mrb[112].mxu1 %v2380_v6  ;;  %v6046_v6 = vld [vmem:[#allocation3 + $0x7cc] ss:$16 sps:$4 sm:$0xff]  }
 0x489   : > { %4066 = vmatpush1.bf16.msra.mxu0 %v5957_v5  ;;  %4097 = vmatprep.mubr.bf16.mxu0 %v2383_v12  ;;  %v2367_v5 = vmax.f32 %v2365_v55, %v2366_v1  ;;  %v6152_v55 = vld [vmem:[%s7228_s13 + $0x8] sm:$0xff]   ;;  %v6157_v1 = vld [vmem:[%s7228_s13 + $0x60] sm:$0xff]  }
 0x48a   : > { %4230 = vmatpush1.bf16.msra.mxu1 %v5960_v7  ;;  %4261 = vmatprep.mubr.bf16.mxu1 %v2383_v12  ;;  %v6043_v12 = vld [vmem:[#allocation3 + $0x7c4] ss:$16 sps:$4 sm:$0xff]   ;;  %v6041_v7 = vld [vmem:[#allocation3 + $0x7c0] ss:$16 sps:$4 sm:$0xff]  }
 0x48b   : > { %4067 = vmatprep.subr.bf16.mxu0 %v5965_v8  ;;  %4231 = vmatprep.subr.bf16.mxu1 %v5968_v9  ;;  %v2368_v8 = vrot.slane %v2367_v5, 1  ;;  %v6044_v9 = vld [vmem:[#allocation3 + $0x7c8] ss:$16 sps:$4 sm:$0xff]  }
 0x48d   : > { %4068 = vmatpush1.bf16.msra.mxu0 %v5963_v10  ;;  %v6049_v10 = vld [vmem:[#allocation3 + $0x7e4] ss:$16 sps:$4 sm:$0xff]  }
 0x48e   : > { %4232 = vmatpush1.bf16.msra.mxu1 %v5966_v11  ;;  %4069 = vmatprep.subr.bf16.mxu0 %v5971_v43  ;;  %v6052_v11 = vld [vmem:[#allocation3 + $0x7ec] ss:$16 sps:$4 sm:$0xff]   ;;  %v6047_v43 = vld [vmem:[#allocation3 + $0x7e0] ss:$16 sps:$4 sm:$0xff]  }
 0x48f   : > { %4233 = vmatprep.subr.bf16.mxu1 %v5974_v14  ;;  %v6050_v14 = vld [vmem:[#allocation3 + $0x7e8] ss:$16 sps:$4 sm:$0xff]  }
 0x491   : > { %4070 = vmatpush1.bf16.msra.mxu0 %v5969_v15  ;;  %v2369_v15 = vmax.f32 %v2367_v5, %v2368_v8 }
 0x492   : > { %4234 = vmatpush1.bf16.msra.mxu1 %v5972_v16  ;;  %4071 = vmatprep.subr.bf16.mxu0 %v5977_v18  ;;  %v6055_v16 = vld [vmem:[#allocation5 + $0x4] ss:$8 sps:$4 sm:$0xff]   ;;  %v6053_v18 = vld [vmem:[#allocation5] ss:$8 sps:$4 sm:$0xff]  }
 0x493   : > { %4235 = vmatprep.subr.bf16.mxu1 %v5980_v60  ;;  %v2382_v60 = vpack.c.bf16 %v2369_v15, %v2369_v15 }
 0x495   : > { %4072 = vmatpush1.bf16.msra.mxu0 %v5975_v19  ;;  %v6058_v19 = vld [vmem:[#allocation5 + $0x14] ss:$8 sps:$4 sm:$0xff]  }
 0x496   : > { %4236 = vmatpush1.bf16.msra.mxu1 %v5978_v21  ;;  %4073 = vmatprep.subr.bf16.mxu0 %v5983_v62  ;;  %v6056_v21 = vld [vmem:[#allocation5 + $0x10] ss:$8 sps:$4 sm:$0xff]   ;;  %v6061_v62 = vld [vmem:[#allocation5 + $0x24] ss:$8 sps:$4 sm:$0xff]  }
 0x497   : > { %4237 = vmatprep.subr.bf16.mxu1 %v5986_v24  ;;  %v6059_v24 = vld [vmem:[#allocation5 + $0x20] ss:$8 sps:$4 sm:$0xff]  }
 0x499   : > { %4074 = vmatpush1.bf16.msra.mxu0 %v5981_v39  ;;  %v6064_v39 = vld [vmem:[#allocation5 + $0x34] ss:$8 sps:$4 sm:$0xff]  }
 0x49a   : > { %4238 = vmatpush1.bf16.msra.mxu1 %v5984_v20  ;;  %4075 = vmatprep.subr.bf16.mxu0 %v5989_v22  ;;  %v6062_v20 = vld [vmem:[#allocation5 + $0x30] ss:$8 sps:$4 sm:$0xff]   ;;  %v6067_v22 = vld [vmem:[#allocation5 + $0x44] ss:$8 sps:$4 sm:$0xff]  }
 0x49b   : > { %4239 = vmatprep.subr.bf16.mxu1 %v5992_v49  ;;  %v6065_v49 = vld [vmem:[#allocation5 + $0x40] ss:$8 sps:$4 sm:$0xff]  }
 0x49d   : > { %4076 = vmatpush1.bf16.msra.mxu0 %v5987_v23  ;;  %v6070_v23 = vld [vmem:[#allocation5 + $0x54] ss:$8 sps:$4 sm:$0xff]  }
 0x49e   : > { %4240 = vmatpush1.bf16.msra.mxu1 %v5990_v40  ;;  %4077 = vmatprep.subr.bf16.mxu0 %v5995_v26  ;;  %v6068_v40 = vld [vmem:[#allocation5 + $0x50] ss:$8 sps:$4 sm:$0xff]   ;;  %v6073_v26 = vld [vmem:[#allocation5 + $0x64] ss:$8 sps:$4 sm:$0xff]  }
 0x49f   : > { %4241 = vmatprep.subr.bf16.mxu1 %v5998_v27  ;;  %v6071_v27 = vld [vmem:[#allocation5 + $0x60] ss:$8 sps:$4 sm:$0xff]  }
 0x4a1   : > { %4078 = vmatpush1.bf16.msra.mxu0 %v5993_v44  ;;  %v6076_v44 = vld [vmem:[#allocation5 + $0x74] ss:$8 sps:$4 sm:$0xff]  }
 0x4a2   : > { %4242 = vmatpush1.bf16.msra.mxu1 %v5996_v56  ;;  %4079 = vmatprep.subr.bf16.mxu0 %v6001_v47  ;;  %v6074_v56 = vld [vmem:[#allocation5 + $0x70] ss:$8 sps:$4 sm:$0xff]   ;;  %v6079_v47 = vld [vmem:[#allocation5 + $0x84] ss:$8 sps:$4 sm:$0xff]  }
 0x4a3   : > { %4243 = vmatprep.subr.bf16.mxu1 %v6004_v30  ;;  %v6077_v30 = vld [vmem:[#allocation5 + $0x80] ss:$8 sps:$4 sm:$0xff]  }
 0x4a5   : > { %4080 = vmatpush1.bf16.msra.mxu0 %v5999_v45  ;;  %v6082_v45 = vld [vmem:[#allocation5 + $0x94] ss:$8 sps:$4 sm:$0xff]  }
 0x4a6   : > { %4244 = vmatpush1.bf16.msra.mxu1 %v6002_v25  ;;  %4081 = vmatprep.subr.bf16.mxu0 %v6007_v33  ;;  %v6080_v25 = vld [vmem:[#allocation5 + $0x90] ss:$8 sps:$4 sm:$0xff]   ;;  %v6085_v33 = vld [vmem:[#allocation5 + $0xa4] ss:$8 sps:$4 sm:$0xff]  }
 0x4a7   : > { %4245 = vmatprep.subr.bf16.mxu1 %v6010_v59  ;;  %v6083_v59 = vld [vmem:[#allocation5 + $0xa0] ss:$8 sps:$4 sm:$0xff]  }
 0x4a9   : > { %4082 = vmatpush1.bf16.msra.mxu0 %v6005_v36  ;;  %v6088_v36 = vld [vmem:[#allocation5 + $0xb4] ss:$8 sps:$4 sm:$0xff]  }
 0x4aa   : > { %4246 = vmatpush1.bf16.msra.mxu1 %v6008_v37  ;;  %4083 = vmatprep.subr.bf16.mxu0 %v6013_v38  ;;  %v6086_v37 = vld [vmem:[#allocation5 + $0xb0] ss:$8 sps:$4 sm:$0xff]   ;;  %v6091_v38 = vld [vmem:[#allocation5 + $0xc4] ss:$8 sps:$4 sm:$0xff]  }
 0x4ab   : > { %4247 = vmatprep.subr.bf16.mxu1 %v6016_v46  ;;  %v6089_v46 = vld [vmem:[#allocation5 + $0xc0] ss:$8 sps:$4 sm:$0xff]  }
 0x4ad   : > { %4084 = vmatpush1.bf16.msra.mxu0 %v6011_v29  ;;  %v6094_v29 = vld [vmem:[#allocation5 + $0xd4] ss:$8 sps:$4 sm:$0xff]  }
 0x4ae   : > { %4248 = vmatpush1.bf16.msra.mxu1 %v6014_v50  ;;  %4085 = vmatprep.subr.bf16.mxu0 %v6019_v51  ;;  %v6092_v50 = vld [vmem:[#allocation5 + $0xd0] ss:$8 sps:$4 sm:$0xff]   ;;  %v6097_v51 = vld [vmem:[#allocation5 + $0xe4] ss:$8 sps:$4 sm:$0xff]  }
 0x4af   : > { %4249 = vmatprep.subr.bf16.mxu1 %v6022_v48  ;;  %v6095_v48 = vld [vmem:[#allocation5 + $0xe0] ss:$8 sps:$4 sm:$0xff]  }
 0x4b1   : > { %4086 = vmatpush1.bf16.msra.mxu0 %v6017_v41  ;;  %v6100_v41 = vld [vmem:[#allocation5 + $0xf4] ss:$8 sps:$4 sm:$0xff]  }
 0x4b2   : > { %4250 = vmatpush1.bf16.msra.mxu1 %v6020_v52  ;;  %4087 = vmatprep.subr.bf16.mxu0 %v6025_v53  ;;  %v6103_v52 = vld [vmem:[#allocation5 + $0x104] ss:$8 sps:$4 sm:$0xff]  }
 0x4b3   : > { %4251 = vmatprep.subr.bf16.mxu1 %v6028_v42  ;;  %v6149_v53 = vld [vmem:[%s7228_s13 + $0x40] sm:$0xff]  }
 0x4b4   : > { %v6150_v42 = vld [vmem:[%s7228_s13] sm:$0xff]  }
 0x4b5   : > { %4088 = vmatpush1.bf16.msra.mxu0 %v6023_v54  ;;  %v6151_v54 = vld [vmem:[%s7228_s13 + $0x48] sm:$0xff]  }
 0x4b6   : > { %4252 = vmatpush1.bf16.msra.mxu1 %v6026_v57  ;;  %4089 = vmatprep.subr.bf16.mxu0 %v6031_v58  ;;  %v6153_v57 = vld [vmem:[%s7228_s13 + $0x50] sm:$0xff]  }
 0x4b7   : > { %4253 = vmatprep.subr.bf16.mxu1 %v6034_v63  ;;  %v6154_v58 = vld [vmem:[%s7228_s13 + $0x10] sm:$0xff]   ;;  %v6155_v63 = vld [vmem:[%s7228_s13 + $0x58] sm:$0xff]  }
 0x4b9   : > { %4090 = vmatpush1.bf16.msra.mxu0 %v6029_v13  ;;  %v6156_v13 = vld [vmem:[%s7228_s13 + $0x18] sm:$0xff]  }
 0x4ba   : > { %4254 = vmatpush1.bf16.msra.mxu1 %v6032_v0  ;;  %4091 = vmatprep.subr.bf16.mxu0 %v6037_v2  ;;  %v6158_v0 = vld [vmem:[%s7228_s13 + $0x20] sm:$0xff]   ;;  %v6159_v2 = vld [vmem:[%s7228_s13 + $0x68] sm:$0xff]  }
 0x4bb   : > { %4255 = vmatprep.subr.bf16.mxu1 %v6040_v3  ;;  %v6160_v3 = vld [vmem:[%s7228_s13 + $0x28] sm:$0xff]  }
 0x4bd   : > { %4092 = vmatpush1.bf16.msra.mxu0 %v6035_v4  ;;  %v7168_v4 = vld [vmem:[%s7225_s10] sm:$0xf] }
 0x4be   : > { %4256 = vmatpush1.bf16.msra.mxu1 %v6038_v34  ;;  %4093 = vmatprep.subr.bf16.mxu0 %v6043_v12  ;;  %v3925_v5 = vrot.slane %v7168_v4, %v6507_v32  ;;  %v3929_v34 = vrot.slane %v7168_v4, %v6504_v31  ;;  %v3937_v12 = vrot.slane %v7168_v4, %v1363_v17 }
 0x4bf   : > { %4257 = vmatprep.subr.bf16.mxu1 %v6046_v6 }
 0x4c1   : > { %4094 = vmatpush1.bf16.msra.mxu0 %v6041_v7 }
 0x4c2   : > { %4258 = vmatpush1.bf16.msra.mxu1 %v6044_v9  ;;  %4095 = vmatprep.subr.bf16.mxu0 %v6049_v10 }
 0x4c3   : > { %4259 = vmatprep.subr.bf16.mxu1 %v6052_v11 }
 0x4c5   : > { %4096 = vmatpush1.bf16.msra.mxu0 %v6047_v43 }
 0x4c6   : > { %4260 = vmatpush1.bf16.msra.mxu1 %v6050_v14  ;;  %4674 = vmatprep.subr.bf16.mxu0 %v6055_v16 }
 0x4c7   : > { %5480 = vmatprep.subr.bf16.mxu1 %v6149_v53  ;;  %v6145_v53 = vld [vmem:[#allocation5 + $0x1e4] ss:$8 sps:$4 sm:$0xff]  }
 0x4c8   : > { %4098 = vmatmul.mubr.bf16.vlgmr.msra.gmra.mrb[48].mxu0 %v2382_v60 }
 0x4c9   : > { %4262 = vmatmul.mubr.bf16.vlgmr.msra.gmra.mrb[112].mxu1 %v2382_v60  ;;  %4675 = vmatpush1.bf16.msra.mxu0 %v6053_v18 }
 0x4ca   : > { %4676 = vmatprep.subr.bf16.mxu0 %v6058_v19  ;;  %5481 = vmatpush3.bf16.msra.mxu1 %v6150_v42  ;;  %v6143_v42 = vld [vmem:[#allocation5 + $0x1e0] ss:$8 sps:$4 sm:$0xff]  }
 0x4cb   : > { %5482 = vmatprep.subr.bf16.mxu1 %v6151_v54 }
 0x4cd   : > { %4677 = vmatpush1.bf16.msra.mxu0 %v6056_v21 }
 0x4ce   : > { %4678 = vmatprep.subr.bf16.mxu0 %v6061_v62  ;;  %5483 = vmatpush3.bf16.msra.mxu1 %v6152_v55  ;;  %v6148_v55 = vld [vmem:[#allocation5 + $0x1f4] ss:$8 sps:$4 sm:$0xff]  }
 0x4cf   : > { %5484 = vmatprep.subr.bf16.mxu1 %v6153_v57  ;;  %v6146_v57 = vld [vmem:[#allocation5 + $0x1f0] ss:$8 sps:$4 sm:$0xff]  }
 0x4d1   : > { %4679 = vmatpush1.bf16.msra.mxu0 %v6059_v24  ;;  %v6101_v24 = vld [vmem:[#allocation5 + $0x100] ss:$8 sps:$4 sm:$0xff]  }
 0x4d2   : > { %4680 = vmatprep.subr.bf16.mxu0 %v6064_v39  ;;  %5485 = vmatpush3.bf16.msra.mxu1 %v6154_v58  ;;  %v6106_v39 = vld [vmem:[#allocation5 + $0x114] ss:$8 sps:$4 sm:$0xff]  }
 0x4d3   : > { %5486 = vmatprep.subr.bf16.mxu1 %v6155_v63 }
 0x4d5   : > { %4681 = vmatpush1.bf16.msra.mxu0 %v6062_v20  ;;  %v6104_v20 = vld [vmem:[#allocation5 + $0x110] ss:$8 sps:$4 sm:$0xff]  }
 0x4d6   : > { %4682 = vmatprep.subr.bf16.mxu0 %v6067_v22  ;;  %5487 = vmatpush3.bf16.msra.mxu1 %v6156_v13  ;;  %v6109_v22 = vld [vmem:[#allocation5 + $0x124] ss:$8 sps:$4 sm:$0xff]   ;;  %v6161_v13 = vld [vmem:[%s7228_s13 + $0x70] sm:$0xff]  }
 0x4d7   : > { %5488 = vmatprep.subr.bf16.mxu1 %v6157_v1  ;;  %v6163_v1 = vld [vmem:[%s7228_s13 + $0x78] sm:$0xff]  }
 0x4d9   : > { %4683 = vmatpush1.bf16.msra.mxu0 %v6065_v49  ;;  %v6107_v49 = vld [vmem:[#allocation5 + $0x120] ss:$8 sps:$4 sm:$0xff]  }
 0x4da   : > { %4684 = vmatprep.subr.bf16.mxu0 %v6070_v23  ;;  %5489 = vmatpush3.bf16.msra.mxu1 %v6158_v0  ;;  %v6112_v23 = vld [vmem:[#allocation5 + $0x134] ss:$8 sps:$4 sm:$0xff]  }
 0x4db   : > { %5490 = vmatprep.subr.bf16.mxu1 %v6159_v2  ;;  %v6164_v0 = vld [vmem:[%s7228_s13 + $0x38] sm:$0xff]   ;;  %v4342_v2 = vld [vmem:[%s7227_s12] sm:$0x3] }
 0x4dd   : > { %4685 = vmatpush1.bf16.msra.mxu0 %v6068_v40  ;;  %v6110_v40 = vld [vmem:[#allocation5 + $0x130] ss:$8 sps:$4 sm:$0xff]  }
 0x4de   : > { %4686 = vmatprep.subr.bf16.mxu0 %v6073_v26  ;;  %5491 = vmatpush3.bf16.msra.mxu1 %v6160_v3  ;;  %v6115_v26 = vld [vmem:[#allocation5 + $0x144] ss:$8 sps:$4 sm:$0xff]   ;;  %v4667_v3 = vrot.slane %v4342_v2, %v6507_v32  ;;  %v4792_v32 = vld [vmem:[%s7246_s24] sm:$0x1] }
 0x4df   : > { %5492 = vmatprep.subr.bf16.mxu1 %v6161_v13 }
 0x4e1   : > { %4687 = vmatpush1.bf16.msra.mxu0 %v6071_v27  ;;  %v6113_v27 = vld [vmem:[#allocation5 + $0x140] ss:$8 sps:$4 sm:$0xff]  }
 0x4e2   : > { %4688 = vmatprep.subr.bf16.mxu0 %v6076_v44  ;;  %v6118_v44 = vld [vmem:[#allocation5 + $0x154] ss:$8 sps:$4 sm:$0xff]  }
 0x4e5   : > { %4689 = vmatpush1.bf16.msra.mxu0 %v6074_v56  ;;  %v6116_v56 = vld [vmem:[#allocation5 + $0x150] ss:$8 sps:$4 sm:$0xff]  }
 0x4e6   : > { %4690 = vmatprep.subr.bf16.mxu0 %v6079_v47  ;;  %v6121_v47 = vld [vmem:[#allocation5 + $0x164] ss:$8 sps:$4 sm:$0xff]  }
 0x4e9   : > { %4691 = vmatpush1.bf16.msra.mxu0 %v6077_v30  ;;  %v6119_v30 = vld [vmem:[#allocation5 + $0x160] ss:$8 sps:$4 sm:$0xff]  }
 0x4ea   : > { %4692 = vmatprep.subr.bf16.mxu0 %v6082_v45  ;;  %v6124_v45 = vld [vmem:[#allocation5 + $0x174] ss:$8 sps:$4 sm:$0xff]  }
 0x4ed   : > { %4693 = vmatpush1.bf16.msra.mxu0 %v6080_v25  ;;  %v6122_v25 = vld [vmem:[#allocation5 + $0x170] ss:$8 sps:$4 sm:$0xff]  }
 0x4ee   : > { %4694 = vmatprep.subr.bf16.mxu0 %v6085_v33  ;;  %v6127_v33 = vld [vmem:[#allocation5 + $0x184] ss:$8 sps:$4 sm:$0xff]  }
 0x4f1   : > { %4695 = vmatpush1.bf16.msra.mxu0 %v6083_v59  ;;  %v6125_v59 = vld [vmem:[#allocation5 + $0x180] ss:$8 sps:$4 sm:$0xff]  }
 0x4f2   : > { %4696 = vmatprep.subr.bf16.mxu0 %v6088_v36  ;;  %v6130_v36 = vld [vmem:[#allocation5 + $0x194] ss:$8 sps:$4 sm:$0xff]  }
 0x4f5   : > { %4697 = vmatpush1.bf16.msra.mxu0 %v6086_v37  ;;  %v6128_v37 = vld [vmem:[#allocation5 + $0x190] ss:$8 sps:$4 sm:$0xff]  }
 0x4f6   : > { %4698 = vmatprep.subr.bf16.mxu0 %v6091_v38  ;;  %v6133_v38 = vld [vmem:[#allocation5 + $0x1a4] ss:$8 sps:$4 sm:$0xff]  }
 0x4f9   : > { %4699 = vmatpush1.bf16.msra.mxu0 %v6089_v46  ;;  %v6131_v46 = vld [vmem:[#allocation5 + $0x1a0] ss:$8 sps:$4 sm:$0xff]  }
 0x4fa   : > { %4700 = vmatprep.subr.bf16.mxu0 %v6094_v29  ;;  %v6136_v29 = vld [vmem:[#allocation5 + $0x1b4] ss:$8 sps:$4 sm:$0xff]  }
 0x4fd   : > { %4701 = vmatpush1.bf16.msra.mxu0 %v6092_v50  ;;  %v6134_v50 = vld [vmem:[#allocation5 + $0x1b0] ss:$8 sps:$4 sm:$0xff]  }
 0x4fe   : > { %4702 = vmatprep.subr.bf16.mxu0 %v6097_v51  ;;  %v6139_v51 = vld [vmem:[#allocation5 + $0x1c4] ss:$8 sps:$4 sm:$0xff]  }
 0x501   : > { %4703 = vmatpush1.bf16.msra.mxu0 %v6095_v48  ;;  %v6137_v48 = vld [vmem:[#allocation5 + $0x1c0] ss:$8 sps:$4 sm:$0xff]  }
 0x502   : > { %4704 = vmatprep.subr.bf16.mxu0 %v6100_v41  ;;  %v6142_v41 = vld [vmem:[#allocation5 + $0x1d4] ss:$8 sps:$4 sm:$0xff]  }
 0x505   : > { %4705 = vmatpush1.bf16.msra.mxu0 %v6098_v61  ;;  %v6140_v61 = vld [vmem:[#allocation5 + $0x1d0] ss:$8 sps:$4 sm:$0xff]  }
 0x506   : > { %4715 = vmatprep.subr.bf16.mxu0 %v6103_v52  ;;  %v3933_v52 = vrot.slane %v7168_v4, %v6513_v35  ;;  %v6162_v35 = vld [vmem:[%s7228_s13 + $0x30] sm:$0xff]   ;;  %v4671_v4 = vrot.slane %v4342_v2, %v6504_v31 }
 0x507   : > { %5493 = vmatpush3.bf16.msra.mxu1 %v6162_v35 }
 0x508   : > { %5494 = vmatprep.subr.bf16.mxu1 %v6163_v1 }
 0x50b   : > { %5495 = vmatpush3.bf16.msra.mxu1 %v6164_v0 }
 0x59b   : > { %v4099_v6 = vpop.f32.mrb[48].mxu0 }
 0x59c   : > { %v5550_v7 = vadd.f32 %v4099_v6, %v3925_v5  ;;  %v7177_v8 = vpop.f32.mrb[112].mxu1  ;;  %v4101_v9 = vpop.f32.mrb[49].mxu0 }
 0x59d   : > { %v5551_v10 = vadd.f32 %v4101_v9, %v3929_v34  ;;  %v4265_v11 = vpop.f32.mrb[113].mxu1  ;;  %v4103_v43 = vpop.f32.mrb[50].mxu0  ;;  %v5552_v54 = vadd.f32 %v7177_v8, %v3933_v52 }
 0x59e   : > { %v4270_v14 = vmax.f32 %v5550_v7, 0.0  ;;  %v5553_v15 = vadd.f32 %v4265_v11, %v3937_v12  ;;  %v4267_v16 = vpop.f32.mrb[114].mxu1  ;;  %v4104_v18 = vpop.f32.mrb[51].mxu0 }
 0x59f   : > { %v4271_v60 = vmax.f32 %v5551_v10, 0.0  ;;  %v4268_v19 = vpop.f32.mrb[115].mxu1  ;;  %v4272_v58 = vmax.f32 %v5552_v54, 0.0 }
 0x5a0   : > { %v4273_v21 = vmax.f32 %v5553_v15, 0.0  ;;  %v4274_v28 = vpack.c.bf16 %v4270_v14, %v4270_v14 }
 0x5a1   : > { %v4275_v62 = vpack.c.bf16 %v4271_v60, %v4271_v60  ;;  %v4276_v63 = vpack.c.bf16 %v4272_v58, %v4272_v58 }
 0x5a2   : > { %v4277_v17 = vpack.c.bf16 %v4273_v21, %v4273_v21 }
 0x5a3   : > { %4706 = vmatprep.mubr.bf16.mxu0 %v4275_v62 }
 0x5a4   : > { %4707 = vmatmul.mubr.bf16.vlgmr.msra.gmra.mrb[52].mxu0 %v4274_v28 }
 0x5a5   : > { %4716 = vmatpush1.bf16.msra.mxu0 %v6101_v24  ;;  %4747 = vmatprep.mubr.bf16.mxu0 %v4277_v17 }
 0x5a6   : > { %4717 = vmatprep.subr.bf16.mxu0 %v6106_v39 }
 0x5a9   : > { %4718 = vmatpush1.bf16.msra.mxu0 %v6104_v20 }
 0x5aa   : > { %4719 = vmatprep.subr.bf16.mxu0 %v6109_v22 }
 0x5ad   : > { %4720 = vmatpush1.bf16.msra.mxu0 %v6107_v49 }
 0x5ae   : > { %4721 = vmatprep.subr.bf16.mxu0 %v6112_v23 }
 0x5b1   : > { %4722 = vmatpush1.bf16.msra.mxu0 %v6110_v40 }
 0x5b2   : > { %4723 = vmatprep.subr.bf16.mxu0 %v6115_v26 }
 0x5b5   : > { %4724 = vmatpush1.bf16.msra.mxu0 %v6113_v27 }
 0x5b6   : > { %4725 = vmatprep.subr.bf16.mxu0 %v6118_v44 }
 0x5b9   : > { %4726 = vmatpush1.bf16.msra.mxu0 %v6116_v56 }
 0x5ba   : > { %4727 = vmatprep.subr.bf16.mxu0 %v6121_v47 }
 0x5bd   : > { %4728 = vmatpush1.bf16.msra.mxu0 %v6119_v30 }
 0x5be   : > { %4729 = vmatprep.subr.bf16.mxu0 %v6124_v45 }
 0x5c1   : > { %4730 = vmatpush1.bf16.msra.mxu0 %v6122_v25 }
 0x5c2   : > { %4731 = vmatprep.subr.bf16.mxu0 %v6127_v33 }
 0x5c5   : > { %4732 = vmatpush1.bf16.msra.mxu0 %v6125_v59 }
 0x5c6   : > { %4733 = vmatprep.subr.bf16.mxu0 %v6130_v36 }
 0x5c9   : > { %4734 = vmatpush1.bf16.msra.mxu0 %v6128_v37 }
 0x5ca   : > { %4735 = vmatprep.subr.bf16.mxu0 %v6133_v38 }
 0x5cd   : > { %4736 = vmatpush1.bf16.msra.mxu0 %v6131_v46 }
 0x5ce   : > { %4737 = vmatprep.subr.bf16.mxu0 %v6136_v29 }
 0x5d1   : > { %4738 = vmatpush1.bf16.msra.mxu0 %v6134_v50 }
 0x5d2   : > { %4739 = vmatprep.subr.bf16.mxu0 %v6139_v51 }
 0x5d5   : > { %4740 = vmatpush1.bf16.msra.mxu0 %v6137_v48 }
 0x5d6   : > { %4741 = vmatprep.subr.bf16.mxu0 %v6142_v41 }
 0x5d9   : > { %4742 = vmatpush1.bf16.msra.mxu0 %v6140_v61 }
 0x5da   : > { %4743 = vmatprep.subr.bf16.mxu0 %v6145_v53 }
 0x5dd   : > { %4744 = vmatpush1.bf16.msra.mxu0 %v6143_v42 }
 0x5de   : > { %4745 = vmatprep.subr.bf16.mxu0 %v6148_v55 }
 0x5e1   : > { %4746 = vmatpush1.bf16.msra.mxu0 %v6146_v57 }
 0x5e4   : > { %4748 = vmatmul.mubr.bf16.vlgmr.msra.gmra.mrb[52].mxu0 %v4276_v63 }
 0x6b7   : > { %v4749_v5 = vpop.f32.mrb[52].mxu0 }
 0x6b8   : > { %v5554_v34 = vadd.f32 %v4749_v5, %v4667_v3  ;;  %v4751_v12 = vpop.f32.mrb[53].mxu0 }
 0x6b9   : > { %v5555_v6 = vadd.f32 %v4751_v12, %v4671_v4  ;;  %v4753_v7 = vpop.f32.mrb[54].mxu0 }
 0x6ba   : > { %v4756_v8 = vmax.f32 %v5554_v34, 0.0  ;;  %v4754_v9 = vpop.f32.mrb[55].mxu0 }
 0x6bb   : > { %v4757_v10 = vmax.f32 %v5555_v6, 0.0 }
 0x6bc   : > { %v4758_v43 = vpack.c.bf16 %v4756_v8, %v4756_v8 }
 0x6bd   : > { %v4759_v11 = vpack.c.bf16 %v4757_v10, %v4757_v10 }
 0x6bf   : > { %4921 = vmatprep.mubr.bf16.mxu1 %v4759_v11 }
 0x6c0   : > { %4922 = vmatmul.mubr.bf16.vlgmr.msra.gmra.mrb[116].mxu1 %v4758_v43 }
 0x793   : > { %v5496_v14 = vpop.f32.mrb[116].mxu1 }
 0x794   : > { %v5497_v15 = vpop.f32.mrb[117].mxu1 }
 0x795   : > { %v5498_v31 = vadd.f32 %v5497_v15, %v5496_v14  ;;  %v5499_v16 = vpop.f32.mrb[118].mxu1 }
 0x796   : > { %v5500_v18 = vpop.f32.mrb[119].mxu1 }
 0x797   : > { %v4924_v60 = vadd.f32 %v5498_v31, %v4792_v32 }
 0x799   : > { %4930 = vst.msk [vmem:[%s548_s21] sm:$0x1] %vm4929_vm1, %v4924_v60 }
 0x79a PF: > { %s7248_s25 = sld [smem:[#allocation10_spill]]  ;;  %s7249_s18 = sld [smem:[#allocation9_spill]] }
 0x79b   : > { %s7250_s19 = sld [smem:[#allocation11_spill]] }
 0x7a0   : > { %s27_s20 = sadd.s32 1, %s7248_s25  }
 0x7a1   : > { %p24_p6 = scmp.ge.s32.totalorder %s27_s20, 4  }
 0x7a3   :  { %26 = sbr.rel (!%p24_p6) target bundleno = 6 (0x6), region = 127 }
 0x7aa   :  { %4948 = vsyncpa [#allocation4], 1 }
 0x7ab   :  { %4950 = vsyncpa [#allocation4 + $0x1], 1 }
 0x7ac   :  { %4951 = vsyncpa [#allocation6], 1 }

// kernel: pointnet_tnet_forward.3
= control target key start
LH: loop header
LB: loop body
LE: loop exit
PB: predicated region body
PF: predicated region fallthrough
CT: control target
= control target key end

     0   :  { %s8613_s0 = inlined_call_operand.vmem [shape: f32[2,128,3], index: 0, kind: input, shape index: {}]   ;;  %s8614_s1 = inlined_call_operand.vmem [shape: f32[2,3,64], index: 1, kind: input, shape index: {}]   ;;  %s8615_s2 = inlined_call_operand.vmem [shape: f32[1,64], index: 2, kind: input, shape index: {}]   ;;  %s8616_s3 = inlined_call_operand.vmem [shape: bf16[64,64], index: 3, kind: input, shape index: {}]   ;;  %s8617_s4 = inlined_call_operand.vmem [shape: f32[1,64], index: 4, kind: input, shape index: {}]   ;;  %s8618_s5 = inlined_call_operand.vmem [shape: bf16[64,128], index: 5, kind: input, shape index: {}]   ;;  %s8619_s6 = inlined_call_operand.vmem [shape: f32[1,128], index: 6, kind: input, shape index: {}]   ;;  %s8620_s7 = inlined_call_operand.vmem [shape: bf16[128,1024], index: 7, kind: input, shape index: {}]   ;;  %s8621_s8 = inlined_call_operand.vmem [shape: f32[1,1024], index: 8, kind: input, shape index: {}]   ;;  %s8622_s9 = inlined_call_operand.vmem [shape: bf16[1024,512], index: 9, kind: input, shape index: {}]   ;;  %s8623_s10 = inlined_call_operand.vmem [shape: f32[1,512], index: 10, kind: input, shape index: {}]   ;;  %s8624_s11 = inlined_call_operand.vmem [shape: bf16[512,256], index: 11, kind: input, shape index: {}]   ;;  %s8625_s12 = inlined_call_operand.vmem [shape: f32[1,256], index: 12, kind: input, shape index: {}]   ;;  %s8626_s13 = inlined_call_operand.vmem [shape: bf16[256,4], index: 13, kind: input, shape index: {}]   ;;  %s8627_s14 = inlined_call_operand.vmem [shape: f32[1,4], index: 14, kind: input, shape index: {}]   ;;  %s8628_s15 = inlined_call_operand.hbm [shape: f32[2,128,1024], index: 15, kind: output, shape index: {0}]   ;;  %s8629_s16 = inlined_call_operand.hbm [shape: f32[2,1,4], index: 16, kind: output, shape index: {1}]  }
   0x1   :  { %8632 = sst [smem:[#allocation12_spill]] %s8613_s0 }
   0x2   :  { %8633 = sst [smem:[#allocation13_spill]] %s8614_s1 }
   0x3   :  { %8634 = sst [smem:[#allocation14_spill]] %s8615_s2 }
   0x4   :  { %8635 = sst [smem:[#allocation15_spill]] %s8616_s3 }
   0x5   :  { %8636 = sst [smem:[#allocation16_spill]] %s8617_s4 }
   0x6   :  { %8637 = sst [smem:[#allocation17_spill]] %s8618_s5 }
   0x7   :  { %8638 = sst [smem:[#allocation18_spill]] %s8619_s6 }
   0x8   :  { %22 = vsyncpa [#allocation4], 0 }
   0x9   :  { %24 = vsyncpa [#allocation4 + $0x1], 0 }
   0xa   :  { %25 = vsyncpa [#allocation6], 0 }
   0xb   :  { %27 = vsyncpa [#allocation6 + $0x1], 0  ;;  %s6612_s21 = smov 0   ;;  %s6614_s22 = smov 0  }
   0xc   :  { %s6616_s23 = smov 0   ;;  %s6618_s24 = smov 0  }
   0xd   :  { %s6620_s25 = smov 0   ;;  %s6622_s26 = smov 0  }
   0xe LB: > { %8639 = sst [smem:[#allocation9_spill]] %s6514_s25  ;;  %s5241_s27 = sadd.s32 4294967295, %s6518_s26   ;;  %s6518_s26 = sphi %s6622_s26, %s33_s26   ;;  %s6514_s25 = sphi %s6620_s25, %s8653_s25   ;;  %s6510_s24 = sphi %s6618_s24, %s8652_s24   ;;  %s6506_s23 = sphi %s6616_s23, %s8656_s23   ;;  %s6502_s22 = sphi %s6614_s22, %s8655_s22   ;;  %s6498_s21 = sphi %s6612_s21, %s8654_s21  }
   0xf   : > { %s5242_s28 = sadd.s32 4294967294, %s6518_s26   ;;  %s45_s29 = sadd.s32 1, %s6514_s25 }
  0x10   : > { %s381_s30 = sadd.s32 1, %s6506_s23  ;;  %p47_p0 = scmp.ge.s32.totalorder %s45_s29, 2 }
  0x11   : > { %p391_p1 = scmp.ne.s32.totalorder %s6506_s23, %s6502_s22  ;;  %p392_p2 = scmp.eq.s32.totalorder %s5241_s27, 1 }
  0x12   : > { %p397_p3 = scmp.ne.s32.totalorder %s6502_s22, %s6498_s21  ;;  %s8658_s29 = smov (%p47_p0, %s45_s29), 0 }
  0x13   : > { %8640 = sst [smem:[#allocation10_spill]] %s8658_s29  ;;  %p6652_p4 = por %p392_p2, %p391_p1 }
  0x14   : > { %p398_p5 = scmp.eq.s32.totalorder %s5242_s28, 1  ;;  %s376_s17 = ssub.s32 %s6514_s25, %s8658_s29 }
  0x15   : > { %p5245_p6 = scmp.ge.s32.totalorder %s6518_s26, 1  ;;  %p379_p7 = scmp.eq.s32.totalorder %s376_s17, 0 }
  0x16   : > { %p6659_p8 = por %p398_p5, %p397_p3  ;;  %p501_p9 = scmp.lt.s32.totalorder %s6518_s26, 3 }
  0x17   : > { %s6665_s19 = scalar_select %p379_p7, %s6506_s23, %s381_s30  }
  0x18   : > { %p502_p10 = pnand %p5245_p6, %p501_p9 }
  0x19   : > { %8643 = sst [smem:[#allocation11_spill]] %s6665_s19  ;;  %p564_p11 = scmp.lt.s32.totalorder (!%p502_p10), %s6510_s24, 1  ;;  %v6520_v0 = vmov (!%p502_p10), 1   ;;  %v6521_v1 = vmov (!%p502_p10), 0   ;;  %v6522_v8 = vmov (!%p502_p10), 2   ;;  %v676_v25 = vlaneseq (!%p502_p10) }
  0x1a   : > { %505 = sbr.rel (%p502_p10) target bundleno = 1919 (0x77f), region = 80  ;;  %5879 = vset.pattern.permute.xlu1 (!%p502_p10), %v6520_v0  ;;  %5878 = vset.pattern.permute.xlu0 (!%p502_p10), %v6521_v1  ;;  %s8644_s29 = sld [smem:[#allocation12_spill]] (!%p502_p10)  ;;  %vm982_vm0 = vcmask (!%p502_p10), 523264  }
  0x1b   : > { %s8645_s3 = sld [smem:[#allocation15_spill]] (!%p502_p10)  ;;  %v6731_v28 = vshrl.u32 (!%p502_p10), %v676_v25, 7  ;;  %s8646_s1 = sld [smem:[#allocation13_spill]] (!%p502_p10) }
  0x1c   : > { %s8647_s5 = sld [smem:[#allocation17_spill]] (!%p502_p10)  ;;  %s8648_s2 = sld [smem:[#allocation14_spill]] (!%p502_p10) }
  0x1d   : > { %v6737_v31 = vsub.s32 (!%p502_p10), 0, %v6731_v28  ;;  %v6740_v32 = vsub.s32 (!%p502_p10), 1, %v6731_v28  ;;  %v6743_v34 = vsub.s32 (!%p502_p10), 2, %v6731_v28  ;;  %s8649_s4 = sld [smem:[#allocation16_spill]] (!%p502_p10)  ;;  %s8650_s6 = sld [smem:[#allocation18_spill]] (!%p502_p10) }
  0x1e   : > { %s5684_s19 = sshll.u32 (!%p502_p10), %s6510_s24, 14 }
  0x21   : > { %s6671_s20 = scalar_select %p564_p11, %s6510_s24, 1  ;;  %v5903_v9 = vld [vmem:[%s8645_s3] sm:$0xff]   ;;  %v5904_v10 = vld [vmem:[%s8645_s3 + $0x8] sm:$0xff]   ;;  %v5905_v12 = vld [vmem:[%s8645_s3 + $0x10] sm:$0xff]  }
  0x22   : > { %5731 = vmatprep.subr.bf16.mxu0 %v5903_v9  ;;  %v5906_v14 = vld [vmem:[%s8645_s3 + $0x18] sm:$0xff]   ;;  %v5907_v36 = vld [vmem:[%s8647_s5] sm:$0xff]   ;;  %v5908_v37 = vld [vmem:[%s8647_s5 + $0x8] sm:$0xff]  }
  0x23   : > { %s5683_s27 = sshll.u32 %s6671_s20, 7  ;;  %5732 = vmatpush3.bf16.msra.mxu0 %v5903_v9  ;;  %s5249_s25 = sshll.u32 %s6671_s20, 2  ;;  %5755 = vmatprep.subr.bf16.mxu1 %v5907_v36  ;;  %v6773_v59 = vld [vmem:[%s8648_s2] ss:$0 sm:$0xff] }
  0x24   : > { %s6677_s30 = scalar_lea.vmem %s8644_s29, %s5683_s27  ;;  %5733 = vmatprep.subr.bf16.mxu0 %v5904_v10  ;;  %s576_s28 = scalar_lea.vmem %s8646_s1, %s5249_s25  ;;  %5756 = vmatpush3.bf16.msra.mxu1 %v5907_v36 }
  0x25   : > { %v579_v2 = vld [vmem:[%s6677_s30] sm:$0xff]  ;;  %v580_v3 = vld [vmem:[%s6677_s30 + $0x8] sm:$0xff]  ;;  %v581_v4 = vld [vmem:[%s6677_s30 + $0x10] sm:$0xff]  ;;  %5757 = vmatprep.subr.bf16.mxu1 %v5908_v37  ;;  %s7299_s1 = sand.u32 1, %s6502_s22   ;;  %s8528_s20 = scalar_lea.hbm %s8628_s15, %s5684_s19 }
  0x26   : > { %697 = vperm.xlu1 %5879, %v579_v2   ;;  %598 = vperm.xlu0 %5878, %v579_v2   ;;  %v582_v5 = vld [vmem:[%s6677_s30 + $0x18] sm:$0xff]  ;;  %v584_v6 = vld [vmem:[%s6677_s30 + $0x28] sm:$0xff]  ;;  %v585_v7 = vld [vmem:[%s6677_s30 + $0x30] sm:$0xff]  ;;  %s5089_s2 = scalar_lea.sflag [#allocation4], %s7299_s1  ;;  %s6523_s29 = smov [#allocation3]  }
  0x27   : > { %v583_v11 = vld [vmem:[%s6677_s30 + $0x20] sm:$0xff]  ;;  %5734 = vmatpush3.bf16.msra.mxu0 %v5904_v10  ;;  %v586_v13 = vld [vmem:[%s6677_s30 + $0x38] sm:$0xff]  ;;  %v588_v15 = vld [vmem:[%s6677_s30 + $0x48] sm:$0xff]  ;;  %s6412_s3 = sshll.u32 %s6523_s29, 4  ;;  %s6413_s3 = int_to_ptr.vmem [resolvable:$false] %s6412_s3 }
  0x28   : > { %5735 = vmatprep.subr.bf16.mxu0 %v5905_v12  ;;  %v589_v16 = vld [vmem:[%s6677_s30 + $0x50] sm:$0xff]  ;;  %v591_v17 = vld [vmem:[%s6677_s30 + $0x60] sm:$0xff]  ;;  %v592_v18 = vld [vmem:[%s6677_s30 + $0x68] sm:$0xff]  ;;  %5758 = vmatpush3.bf16.msra.mxu1 %v5908_v37  ;;  %s6414_s25 = scalar_lea.vmem %s6413_s3, 32768 }
  0x29   : > { %v587_v19 = vld [vmem:[%s6677_s30 + $0x40] sm:$0xff]  ;;  %v593_v20 = vld [vmem:[%s6677_s30 + $0x70] sm:$0xff]  ;;  %v590_v21 = vld [vmem:[%s6677_s30 + $0x58] sm:$0xff] }
  0x2a   : > { %701 = vperm.xlu1 %5879, %v580_v3   ;;  %603 = vperm.xlu0 %5878, %v580_v3   ;;  %v594_v22 = vld [vmem:[%s6677_s30 + $0x78] sm:$0xff]  ;;  %v595_v33 = vld [vmem:[%s576_s28] sm:$0x7]  ;;  %s5246_s28 = sshll.u32 %s7299_s1, 10 }
  0x2b   : > { %5736 = vmatpush3.bf16.msra.mxu0 %v5905_v12  ;;  %v6752_v39 = vrot.slane %v595_v33, %v6737_v31  ;;  %v6755_v40 = vrot.slane %v595_v33, %v6740_v32  ;;  %v6758_v41 = vrot.slane %v595_v33, %v6743_v34  ;;  %s7355_s27 = scalar_lea.vmem [#allocation3], %s5246_s28 }
  0x2c   : > { %5737 = vmatprep.subr.bf16.mxu0 %v5906_v14 }
  0x2e   : > { %5880 = vset.pattern.permute.xlu1 %v6521_v1  ;;  %608 = vperm.xlu0 %5878, %v581_v4  }
  0x2f   : > { %613 = vperm.xlu1 %5880, %v582_v5   ;;  %5738 = vmatpush3.bf16.msra.mxu0 %v5906_v14 }
  0x32   : > { %5881 = vset.pattern.permute.xlu0 %v6520_v0 }
  0x33   : > { %5882 = vset.pattern.permute.xlu1 %v6520_v0  ;;  %705 = vperm.xlu0 %5881, %v581_v4  }
  0x34   : > { %709 = vperm.xlu1 %5882, %v582_v5  }
  0x37   : > { %717 = vperm.xlu0 %5881, %v584_v6  }
  0x38   : > { %5883 = vset.pattern.permute.xlu1 %v6522_v8 }
  0x39   : > { %797 = vperm.xlu1 %5883, %v579_v2  }
  0x3b   : > { %721 = vperm.xlu0 %5881, %v585_v7  }
  0x3d   : > { %805 = vperm.xlu1 %5883, %v581_v4  }
  0x3f   : > { %5887 = vset.pattern.permute.xlu0 %v6522_v8 }
  0x40   : > { %801 = vperm.xlu0 %5887, %v580_v3  }
  0x41   : > { %809 = vperm.xlu1 %5883, %v582_v5  }
  0x44   : > { %813 = vperm.xlu0 %5887, %v583_v11  }
  0x45   : > { %5884 = vset.pattern.permute.xlu1 %v6521_v1 }
  0x46   : > { %623 = vperm.xlu1 %5884, %v584_v6  }
  0x48   : > { %825 = vperm.xlu0 %5887, %v586_v13  }
  0x4a   : > { %5885 = vset.pattern.permute.xlu1 %v6520_v0 }
  0x4b   : > { %713 = vperm.xlu1 %5885, %v583_v11  }
  0x4c   : > { %833 = vperm.xlu0 %5887, %v588_v15  }
  0x4f   : > { %5886 = vset.pattern.permute.xlu1 %v6521_v1 }
  0x50   : > { %628 = vperm.xlu1 %5886, %v585_v7   ;;  %5895 = vset.pattern.permute.xlu0 %v6521_v1 }
  0x51   : > { %618 = vperm.xlu0 %5895, %v583_v11  }
  0x54   : > { %633 = vperm.xlu1 %5886, %v586_v13  }
  0x55   : > { %643 = vperm.xlu0 %5895, %v588_v15  }
  0x58   : > { %5888 = vset.pattern.permute.xlu1 %v6520_v0 }
  0x59   : > { %725 = vperm.xlu1 %5888, %v586_v13   ;;  %648 = vperm.xlu0 %5895, %v589_v16  }
  0x5d   : > { %5889 = vset.pattern.permute.xlu1 %v6522_v8  ;;  %658 = vperm.xlu0 %5895, %v591_v17  }
  0x5e   : > { %817 = vperm.xlu1 %5889, %v584_v6  }
  0x61   : > { %5896 = vset.pattern.permute.xlu0 %v6520_v0 }
  0x62   : > { %821 = vperm.xlu1 %5889, %v585_v7   ;;  %737 = vperm.xlu0 %5896, %v589_v16  }
  0x66   : > { %5890 = vset.pattern.permute.xlu1 %v6521_v1  ;;  %749 = vperm.xlu0 %5896, %v592_v18  }
  0x67   : > { %638 = vperm.xlu1 %5890, %v587_v19  }
  0x6a   : > { %753 = vperm.xlu0 %5896, %v593_v20  }
  0x6b   : > { %5891 = vset.pattern.permute.xlu1 %v6520_v0 }
  0x6c   : > { %729 = vperm.xlu1 %5891, %v587_v19  }
  0x6e   : > { %5901 = vset.pattern.permute.xlu0 %v6522_v8 }
  0x6f   : > { %845 = vperm.xlu0 %5901, %v591_v17  }
  0x70   : > { %733 = vperm.xlu1 %5891, %v588_v15  }
  0x73   : > { %857 = vperm.xlu0 %5901, %v594_v22  }
  0x74   : > { %5892 = vset.pattern.permute.xlu1 %v6521_v1 }
  0x75   : > { %653 = vperm.xlu1 %5892, %v590_v21  }
  0x79   : > { %5893 = vset.pattern.permute.xlu1 %v6520_v0 }
  0x7a   : > { %741 = vperm.xlu1 %5893, %v590_v21  }
  0x7e   : > { %5894 = vset.pattern.permute.xlu1 %v6522_v8 }
  0x7f   : > { %829 = vperm.xlu1 %5894, %v587_v19  }
  0x83   : > { %837 = vperm.xlu1 %5894, %v589_v16  }
  0x87   : > { %841 = vperm.xlu1 %5894, %v590_v21  }
  0x8b   : > { %5897 = vset.pattern.permute.xlu1 %v6521_v1 }
  0x8c   : > { %663 = vperm.xlu1 %5897, %v592_v18  }
  0x90   : > { %5898 = vset.pattern.permute.xlu1 %v6520_v0 }
  0x91   : > { %745 = vperm.xlu1 %5898, %v591_v17  }
  0x95   : > { %5899 = vset.pattern.permute.xlu1 %v6521_v1 }
  0x96   : > { %668 = vperm.xlu1 %5899, %v593_v20  }
  0x9a   : > { %673 = vperm.xlu1 %5899, %v594_v22  }
  0x9e   : > { %5900 = vset.pattern.permute.xlu1 %v6520_v0 }
  0x9f   : > { %757 = vperm.xlu1 %5900, %v594_v22  }
  0xa3   : > { %5902 = vset.pattern.permute.xlu1 %v6522_v8 }
  0xa4   : > { %849 = vperm.xlu1 %5902, %v592_v18  }
  0xa5   : > { %v698_v23 = vpop.permute.xlu1 %697  ;;  %v599_v24 = vpop.permute.xlu0 %598 }
  0xa6   : > { %v764_v45 = vmul.f32 %v6755_v40, %v698_v23  ;;  %v680_v46 = vmul.f32 %v6752_v39, %v599_v24 }
  0xa8   : > { %853 = vperm.xlu1 %5902, %v593_v20   ;;  %v780_v51 = vadd.f32 %v764_v45, %v680_v46 }
  0xa9   : > { %v702_v26 = vpop.permute.xlu1 %701  ;;  %v604_v27 = vpop.permute.xlu0 %603 }
  0xaa   : > { %v765_v52 = vmul.f32 %v6755_v40, %v702_v26  ;;  %v681_v53 = vmul.f32 %v6752_v39, %v604_v27 }
  0xac   : > { %v781_v62 = vadd.f32 %v765_v52, %v681_v53 }
  0xad   : > { %v609_v29 = vpop.permute.xlu0 %608 }
  0xae   : > { %v614_v30 = vpop.permute.xlu1 %613  ;;  %v682_v43 = vmul.f32 %v6752_v39, %v609_v29 }
  0xaf   : > { %v683_v58 = vmul.f32 %v6752_v39, %v614_v30 }
  0xb2   : > { %v706_v35 = vpop.permute.xlu0 %705 }
  0xb3   : > { %v710_v38 = vpop.permute.xlu1 %709  ;;  %v766_v44 = vmul.f32 %v6755_v40, %v706_v35 }
  0xb4   : > { %v767_v55 = vmul.f32 %v6755_v40, %v710_v38 }
  0xb5   : > { %v782_v50 = vadd.f32 %v766_v44, %v682_v43 }
  0xb6   : > { %v718_v42 = vpop.permute.xlu0 %717  ;;  %v783_v2 = vadd.f32 %v767_v55, %v683_v58 }
  0xb7   : > { %v769_v33 = vmul.f32 %v6755_v40, %v718_v42 }
  0xb8   : > { %v798_v47 = vpop.permute.xlu1 %797 }
  0xb9   : > { %v864_v48 = vmul.f32 %v6758_v41, %v798_v47 }
  0xba   : > { %v722_v49 = vpop.permute.xlu0 %721 }
  0xbb   : > { %v880_v57 = vadd.f32 %v864_v48, %v780_v51  ;;  %v770_v45 = vmul.f32 %v6755_v40, %v722_v49 }
  0xbc   : > { %v806_v54 = vpop.permute.xlu1 %805 }
  0xbd   : > { %v866_v56 = vmul.f32 %v6758_v41, %v806_v54  ;;  %v903_v5 = vadd.f32 %v6773_v59, %v880_v57 }
  0xbf   : > { %v882_v60 = vadd.f32 %v866_v56, %v782_v50  ;;  %v802_v61 = vpop.permute.xlu0 %801  ;;  %v919_v12 = vmax.f32 %v903_v5, 0.0 }
  0xc0   : > { %v865_v63 = vmul.f32 %v6758_v41, %v802_v61  ;;  %v810_v0 = vpop.permute.xlu1 %809 }
  0xc1   : > { %v867_v3 = vmul.f32 %v6758_v41, %v810_v0  ;;  %v905_v6 = vadd.f32 %v6773_v59, %v882_v60 }
  0xc2   : > { %v881_v4 = vadd.f32 %v865_v63, %v781_v62 }
  0xc3   : > { %v883_v7 = vadd.f32 %v867_v3, %v783_v2  ;;  %v814_v8 = vpop.permute.xlu0 %813  ;;  %v921_v14 = vmax.f32 %v905_v6, 0.0 }
  0xc4   : > { %v904_v9 = vadd.f32 %v6773_v59, %v881_v4  ;;  %v868_v26 = vmul.f32 %v6758_v41, %v814_v8 }
  0xc5   : > { %v906_v10 = vadd.f32 %v6773_v59, %v883_v7  ;;  %v624_v11 = vpop.permute.xlu1 %623 }
  0xc6   : > { %v920_v13 = vmax.f32 %v904_v9, 0.0  ;;  %v685_v35 = vmul.f32 %v6752_v39, %v624_v11 }
  0xc7   : > { %v922_v15 = vmax.f32 %v906_v10, 0.0  ;;  %v826_v16 = vpop.permute.xlu0 %825 }
  0xc8   : > { %v935_v17 = vpack.c.bf16 %v920_v13, %v919_v12  ;;  %v871_v37 = vmul.f32 %v6758_v41, %v826_v16  ;;  %v785_v46 = vadd.f32 %v769_v33, %v685_v35 }
  0xc9   : > { %v936_v18 = vpack.c.bf16 %v922_v15, %v921_v14 }
  0xca   : > { %v714_v19 = vpop.permute.xlu1 %713  ;;  %5739 = vmatprep.mubr.msk.bf16.mxu0 %vm982_vm0, %v935_v17 }
  0xcb   : > { %5740 = vmatmul.mubr.msk.bf16.vlgmr.msra.gmra.mrb[0].mxu0 %vm982_vm0, %v936_v18  ;;  %v834_v20 = vpop.permute.xlu0 %833  ;;  %v768_v25 = vmul.f32 %v6755_v40, %v714_v19 }
  0xcc   : > { %v873_v11 = vmul.f32 %v6758_v41, %v834_v20 }
  0xcf   : > { %v629_v21 = vpop.permute.xlu1 %628 }
  0xd0   : > { %v619_v22 = vpop.permute.xlu0 %618  ;;  %v686_v47 = vmul.f32 %v6752_v39, %v629_v21 }
  0xd1   : > { %v684_v24 = vmul.f32 %v6752_v39, %v619_v22 }
  0xd2   : > { %v786_v53 = vadd.f32 %v770_v45, %v686_v47 }
  0xd3   : > { %v634_v23 = vpop.permute.xlu1 %633  ;;  %v784_v27 = vadd.f32 %v768_v25, %v684_v24 }
  0xd4   : > { %v687_v36 = vmul.f32 %v6752_v39, %v634_v23  ;;  %v644_v3 = vpop.permute.xlu0 %643 }
  0xd5   : > { %v884_v38 = vadd.f32 %v868_v26, %v784_v27  ;;  %v689_v10 = vmul.f32 %v6752_v39, %v644_v3  ;;  %v5909_v3 = vld [vmem:[%s8647_s5 + $0x10] sm:$0xff]  }
  0xd6   : > { %5759 = vmatprep.subr.bf16.mxu1 %v5909_v3 }
  0xd7   : > { %v907_v50 = vadd.f32 %v6773_v59, %v884_v38  ;;  %5760 = vmatpush3.bf16.msra.mxu1 %v5909_v3 }
  0xd8   : > { %v726_v29 = vpop.permute.xlu1 %725  ;;  %v649_v5 = vpop.permute.xlu0 %648 }
  0xd9   : > { %v771_v30 = vmul.f32 %v6755_v40, %v726_v29  ;;  %v923_v56 = vmax.f32 %v907_v50, 0.0  ;;  %v690_v18 = vmul.f32 %v6752_v39, %v649_v5 }
  0xdb   : > { %v787_v43 = vadd.f32 %v771_v30, %v687_v36 }
  0xdc   : > { %v659_v8 = vpop.permute.xlu0 %658 }
  0xdd   : > { %v818_v44 = vpop.permute.xlu1 %817  ;;  %v887_v51 = vadd.f32 %v871_v37, %v787_v43 }
  0xde   : > { %v869_v48 = vmul.f32 %v6758_v41, %v818_v44 }
  0xdf   : > { %v910_v57 = vadd.f32 %v6773_v59, %v887_v51 }
  0xe0   : > { %v885_v42 = vadd.f32 %v869_v48, %v785_v46 }
  0xe1   : > { %v822_v52 = vpop.permute.xlu1 %821  ;;  %v926_v63 = vmax.f32 %v910_v57, 0.0  ;;  %v738_v14 = vpop.permute.xlu0 %737 }
  0xe2   : > { %v908_v54 = vadd.f32 %v6773_v59, %v885_v42  ;;  %v870_v55 = vmul.f32 %v6758_v41, %v822_v52  ;;  %v774_v19 = vmul.f32 %v6755_v40, %v738_v14 }
  0xe4   : > { %v924_v58 = vmax.f32 %v908_v54, 0.0  ;;  %v886_v49 = vadd.f32 %v870_v55, %v786_v53  ;;  %v790_v20 = vadd.f32 %v774_v19, %v690_v18 }
  0xe5   : > { %v750_v53 = vpop.permute.xlu0 %749 }
  0xe6   : > { %v937_v60 = vpack.c.bf16 %v924_v58, %v923_v56  ;;  %v909_v61 = vadd.f32 %v6773_v59, %v886_v49  ;;  %v639_v62 = vpop.permute.xlu1 %638 }
  0xe7   : > { %v688_v16 = vmul.f32 %v6752_v39, %v639_v62 }
  0xe8   : > { %v925_v0 = vmax.f32 %v909_v61, 0.0  ;;  %5743 = vmatprep.mubr.msk.bf16.mxu0 %vm982_vm0, %v937_v60  ;;  %v692_v60 = vmul.f32 %v6752_v39, %v659_v8 }
  0xe9   : > { %v754_v55 = vpop.permute.xlu0 %753 }
  0xea   : > { %v938_v2 = vpack.c.bf16 %v926_v63, %v925_v0 }
  0xeb   : > { %v730_v4 = vpop.permute.xlu1 %729 }
  0xec   : > { %5744 = vmatmul.mubr.msk.bf16.gmra.mrb[4].mxu0 %vm982_vm0, %v938_v2  ;;  %v772_v15 = vmul.f32 %v6755_v40, %v730_v4  ;;  %v777_v4 = vmul.f32 %v6755_v40, %v750_v53 }
  0xee   : > { %v788_v22 = vadd.f32 %v772_v15, %v688_v16  ;;  %v846_v49 = vpop.permute.xlu0 %845 }
  0xef   : > { %v734_v6 = vpop.permute.xlu1 %733  ;;  %v876_v62 = vmul.f32 %v6758_v41, %v846_v49 }
  0xf0   : > { %v773_v9 = vmul.f32 %v6755_v40, %v734_v6 }
  0xf2   : > { %v789_v12 = vadd.f32 %v773_v9, %v689_v10  ;;  %v858_v2 = vpop.permute.xlu0 %857 }
  0xf3   : > { %v879_v9 = vmul.f32 %v6758_v41, %v858_v2 }
  0xf4   : > { %v654_v7 = vpop.permute.xlu1 %653  ;;  %v889_v17 = vadd.f32 %v873_v11, %v789_v12  ;;  %v5910_v11 = vld [vmem:[%s8647_s5 + $0x18] sm:$0xff]  }
  0xf5   : > { %v691_v35 = vmul.f32 %v6752_v39, %v654_v7  ;;  %5761 = vmatprep.subr.bf16.mxu1 %v5910_v11 }
  0xf6   : > { %v912_v24 = vadd.f32 %v6773_v59, %v889_v17  ;;  %5762 = vmatpush3.bf16.msra.mxu1 %v5910_v11 }
  0xf8   : > { %v928_v33 = vmax.f32 %v912_v24, 0.0 }
  0xf9   : > { %v742_v13 = vpop.permute.xlu1 %741 }
  0xfa   : > { %v775_v27 = vmul.f32 %v6755_v40, %v742_v13  ;;  %v778_v13 = vmul.f32 %v6755_v40, %v754_v55  ;;  %v1350_v55 = vld [vmem:[%s8620_s7 + $0x130] sm:$0xff] }
  0xfc   : > { %v791_v43 = vadd.f32 %v775_v27, %v691_v35 }
  0xfe   : > { %v830_v21 = vpop.permute.xlu1 %829 }
  0xff   : > { %v872_v23 = vmul.f32 %v6758_v41, %v830_v21 }
 0x101   : > { %v888_v25 = vadd.f32 %v872_v23, %v788_v22 }
 0x102   : > { %v838_v26 = vpop.permute.xlu1 %837 }
 0x103   : > { %v911_v29 = vadd.f32 %v6773_v59, %v888_v25  ;;  %v874_v30 = vmul.f32 %v6758_v41, %v838_v26 }
 0x105   : > { %v927_v36 = vmax.f32 %v911_v29, 0.0  ;;  %v890_v37 = vadd.f32 %v874_v30, %v790_v20 }
 0x106   : > { %v842_v38 = vpop.permute.xlu1 %841 }
 0x107   : > { %v939_v44 = vpack.c.bf16 %v928_v33, %v927_v36  ;;  %v875_v45 = vmul.f32 %v6758_v41, %v842_v38  ;;  %v913_v46 = vadd.f32 %v6773_v59, %v890_v37  ;;  %v1316_v33 = vld [vmem:[%s8620_s7 + $0x20] sm:$0xff]  ;;  %v1318_v36 = vld [vmem:[%s8620_s7 + $0x30] sm:$0xff] }
 0x109   : > { %v891_v47 = vadd.f32 %v875_v45, %v791_v43  ;;  %5747 = vmatprep.mubr.msk.bf16.mxu0 %vm982_vm0, %v939_v44  ;;  %v929_v51 = vmax.f32 %v913_v46, 0.0  ;;  %v1322_v43 = vld [vmem:[%s8620_s7 + $0x50] sm:$0xff] }
 0x10a   : > { %v1326_v44 = vld [vmem:[%s8620_s7 + $0x70] sm:$0xff] }
 0x10b   : > { %v914_v48 = vadd.f32 %v6773_v59, %v891_v47  ;;  %v664_v50 = vpop.permute.xlu1 %663  ;;  %v5290_v45 = vcombine.high %v1322_v43, %v1326_v44  ;;  %v1330_v46 = vld [vmem:[%s8620_s7 + $0x90] sm:$0xff] }
 0x10c   : > { %v693_v5 = vmul.f32 %v6752_v39, %v664_v50  ;;  %v1334_v47 = vld [vmem:[%s8620_s7 + $0xb0] sm:$0xff] }
 0x10d   : > { %v930_v42 = vmax.f32 %v914_v48, 0.0  ;;  %v5289_v48 = vcombine.low %v1322_v43, %v1326_v44  ;;  %v5298_v50 = vcombine.high %v1330_v46, %v1334_v47 }
 0x10e   : > { %v793_v12 = vadd.f32 %v777_v4, %v693_v5 }
 0x10f   : > { %v940_v52 = vpack.c.bf16 %v930_v42, %v929_v51  ;;  %v1338_v51 = vld [vmem:[%s8620_s7 + $0xd0] sm:$0xff] }
 0x110   : > { %v746_v54 = vpop.permute.xlu1 %745  ;;  %v1342_v42 = vld [vmem:[%s8620_s7 + $0xf0] sm:$0xff] }
 0x111   : > { %5748 = vmatmul.mubr.msk.bf16.gmra.mrb[8].mxu0 %vm982_vm0, %v940_v52  ;;  %v776_v58 = vmul.f32 %v6755_v40, %v746_v54  ;;  %v5297_v52 = vcombine.low %v1330_v46, %v1334_v47  ;;  %v5306_v53 = vcombine.high %v1338_v51, %v1342_v42  ;;  %v1346_v54 = vld [vmem:[%s8620_s7 + $0x110] sm:$0xff] }
 0x112   : > { %v5314_v49 = vcombine.high %v1346_v54, %v1350_v55  ;;  %v5313_v5 = vcombine.low %v1346_v54, %v1350_v55 }
 0x113   : > { %v792_v61 = vadd.f32 %v776_v58, %v692_v60 }
 0x115   : > { %v669_v56 = vpop.permute.xlu1 %668  ;;  %v892_v7 = vadd.f32 %v876_v62, %v792_v61  ;;  %v1354_v62 = vld [vmem:[%s8620_s7 + $0x150] sm:$0xff] }
 0x116   : > { %v694_v14 = vmul.f32 %v6752_v39, %v669_v56  ;;  %v6886_v56 = vld [vmem:[%s8649_s4] ss:$0 sm:$0xff]  ;;  %s5109_s4 = sshll.u32 %s7355_s27, 4  ;;  %s8531_s4 = int_to_ptr.vmem [resolvable:$true] %s5109_s4 }
 0x117   : > { %v915_v16 = vadd.f32 %v6773_v59, %v892_v7  ;;  %s6408_s17 = scalar_lea.vmem %s8531_s4, 16384  ;;  %p6415_p1 = scmp.lt.s32.totalorder %s8531_s4, %s6413_s3 }
 0x118   : > { %v794_v21 = vadd.f32 %v778_v13, %v694_v14  ;;  %v1324_v13 = vld [vmem:[%s8620_s7 + $0x60] sm:$0xff]  ;;  %p6409_p12 = scmp.ne.s32.totalorder %s8531_s4, %s6408_s17  ;;  %p6416_p2 = scmp.lt.s32.totalorder %s6414_s25, %s6408_s17 }
 0x119   : > { %v674_v57 = vpop.permute.xlu1 %673  ;;  %v931_v24 = vmax.f32 %v915_v16, 0.0 }
 0x11a   : > { %v695_v6 = vmul.f32 %v6752_v39, %v674_v57  ;;  %v5305_v57 = vcombine.low %v1338_v51, %v1342_v42  ;;  %p6410_p13 = pnand %p6409_p12, %p6652_p4  ;;  %p6417_p3 = por %p6416_p2, %p6415_p1 }
 0x11c   : > { %p6411_p0 = pneg %p6410_p13 }
 0x11e   : > { %v758_v63 = vpop.permute.xlu1 %757  ;;  %p6418_p5 = pnand %p6417_p3, %p6411_p0 }
 0x11f   : > { %v779_v0 = vmul.f32 %v6755_v40, %v758_v63  ;;  %v1358_v63 = vld [vmem:[%s8620_s7 + $0x170] sm:$0xff] }
 0x120   : > { %v5322_v7 = vcombine.high %v1354_v62, %v1358_v63 }
 0x121   : > { %v795_v8 = vadd.f32 %v779_v0, %v695_v6 }
 0x123   : > { %v850_v10 = vpop.permute.xlu1 %849  ;;  %v895_v17 = vadd.f32 %v879_v9, %v795_v8 }
 0x124   : > { %v877_v15 = vmul.f32 %v6758_v41, %v850_v10 }
 0x125   : > { %v918_v25 = vadd.f32 %v6773_v59, %v895_v17 }
 0x126   : > { %v893_v18 = vadd.f32 %v877_v15, %v793_v12  ;;  %v1320_v12 = vld [vmem:[%s8620_s7 + $0x40] sm:$0xff]  ;;  %v5321_v15 = vcombine.low %v1354_v62, %v1358_v63 }
 0x127   : > { %v854_v19 = vpop.permute.xlu1 %853  ;;  %v934_v27 = vmax.f32 %v918_v25, 0.0  ;;  %v1340_v25 = vld [vmem:[%s8620_s7 + $0xe0] sm:$0xff] }
 0x128   : > { %v916_v22 = vadd.f32 %v6773_v59, %v893_v18  ;;  %v878_v23 = vmul.f32 %v6758_v41, %v854_v19  ;;  %v6847_v41 = vld [vmem:[%s8620_s7] sm:$0xff]  ;;  %v5286_v18 = vcombine.high %v1320_v12, %v1324_v13 }
 0x129   : > { %v5278_v35 = vcombine.high %v6847_v41, %v1316_v33  ;;  %v5277_v17 = vcombine.low %v6847_v41, %v1316_v33  ;;  %v1328_v19 = vld [vmem:[%s8620_s7 + $0x80] sm:$0xff] }
 0x12a   : > { %v932_v40 = vmax.f32 %v916_v22, 0.0  ;;  %v894_v20 = vadd.f32 %v878_v23, %v794_v21  ;;  %v1332_v21 = vld [vmem:[%s8620_s7 + $0xa0] sm:$0xff]  ;;  %v5285_v22 = vcombine.low %v1320_v12, %v1324_v13 }
 0x12b   : > { %1738 = vmatprep.subr.bf16.mxu1 %v5278_v35  ;;  %v5294_v23 = vcombine.high %v1328_v19, %v1332_v21  ;;  %v1356_v41 = vld [vmem:[%s8620_s7 + $0x160] sm:$0xff] }
 0x12c   : > { %v941_v39 = vpack.c.bf16 %v932_v40, %v931_v24  ;;  %v917_v26 = vadd.f32 %v6773_v59, %v894_v20  ;;  %v1314_v59 = vld [vmem:[%s8620_s7 + $0x10] sm:$0xff]  ;;  %v1336_v24 = vld [vmem:[%s8620_s7 + $0xc0] sm:$0xff]  ;;  %v5293_v40 = vcombine.low %v1328_v19, %v1332_v21 }
 0x12d   : > { %v5281_v37 = vcombine.low %v1314_v59, %v1318_v36  ;;  %v5282_v38 = vcombine.high %v1314_v59, %v1318_v36  ;;  %v5302_v20 = vcombine.high %v1336_v24, %v1340_v25 }
 0x12e   : > { %v933_v29 = vmax.f32 %v917_v26, 0.0  ;;  %5751 = vmatprep.mubr.msk.bf16.mxu0 %vm982_vm0, %v941_v39  ;;  %v1344_v39 = vld [vmem:[%s8620_s7 + $0x100] sm:$0xff] }
 0x12f   : > { %1964 = vmatprep.subr.bf16.mxu0 %v5282_v38  ;;  %v1348_v26 = vld [vmem:[%s8620_s7 + $0x120] sm:$0xff] }
 0x130   : > { %v942_v30 = vpack.c.bf16 %v934_v27, %v933_v29  ;;  %1965 = vmatpush1.bf16.msra.mxu0 %v5281_v37  ;;  %v5301_v27 = vcombine.low %v1336_v24, %v1340_v25  ;;  %v5310_v29 = vcombine.high %v1344_v39, %v1348_v26  ;;  %v5309_v33 = vcombine.low %v1344_v39, %v1348_v26 }
 0x131   : > { %1966 = vmatprep.subr.bf16.mxu0 %v5290_v45 }
 0x132   : > { %5752 = vmatmul.mubr.msk.bf16.gmra.mrb[12].mxu0 %vm982_vm0, %v942_v30  ;;  %v1352_v30 = vld [vmem:[%s8620_s7 + $0x140] sm:$0xff] }
 0x133   : > { %1996 = vmatprep.mubr.bf16.mxu0 %v6521_v1  ;;  %v5318_v59 = vcombine.high %v1352_v30, %v1356_v41  ;;  %v5317_v35 = vcombine.low %v1352_v30, %v1356_v41 }
 0x134   : > { %1967 = vmatpush1.bf16.msra.mxu0 %v5289_v48 }
 0x135   : > { %1968 = vmatprep.subr.bf16.mxu0 %v5298_v50 }
 0x138   : > { %1969 = vmatpush1.bf16.msra.mxu0 %v5297_v52 }
 0x139   : > { %1970 = vmatprep.subr.bf16.mxu0 %v5306_v53 }
 0x13c   : > { %1971 = vmatpush1.bf16.msra.mxu0 %v5305_v57 }
 0x13d   : > { %1972 = vmatprep.subr.bf16.mxu0 %v5314_v49 }
 0x140   : > { %1973 = vmatpush1.bf16.msra.mxu0 %v5313_v5 }
 0x141   : > { %1974 = vmatprep.subr.bf16.mxu0 %v5322_v7  ;;  %v1364_v7 = vld [vmem:[%s8620_s7 + $0x1a0] sm:$0xff] }
 0x144   : > { %1975 = vmatpush1.bf16.msra.mxu0 %v5321_v15  ;;  %v1372_v15 = vld [vmem:[%s8620_s7 + $0x1e0] sm:$0xff] }
 0x19e   : > { %v5741_v58 = vpop.f32.mrb[0].mxu0 }
 0x19f   : > { %v1050_v60 = vadd.f32 %v5741_v58, %v6886_v56  ;;  %v1041_v61 = vpop.f32.mrb[1].mxu0 }
 0x1a0   : > { %v1042_v0 = vadd.f32 %v6886_v56, %v1041_v61  ;;  %v5742_v2 = vpop.f32.mrb[2].mxu0 }
 0x1a1   : > { %v1053_v3 = vadd.f32 %v5742_v2, %v6886_v56  ;;  %v1044_v4 = vpop.f32.mrb[3].mxu0  ;;  %v1106_v8 = vmax.f32 %v1050_v60, 0.0 }
 0x1a2   : > { %v1045_v6 = vadd.f32 %v6886_v56, %v1044_v4  ;;  %v1104_v10 = vmax.f32 %v1042_v0, 0.0 }
 0x1a3   : > { %v1107_v9 = vmax.f32 %v1053_v3, 0.0 }
 0x1a4   : > { %v1105_v11 = vmax.f32 %v1045_v6, 0.0  ;;  %v1360_v6 = vld [vmem:[%s8620_s7 + $0x180] sm:$0xff] }
 0x1a5   : > { %v1121_v14 = vpack.c.bf16 %v1107_v9, %v1106_v8  ;;  %v1362_v8 = vld [vmem:[%s8620_s7 + $0x190] sm:$0xff]  ;;  %v5326_v9 = vcombine.high %v1360_v6, %v1364_v7 }
 0x1a6   : > { %v1120_v16 = vpack.c.bf16 %v1105_v11, %v1104_v10  ;;  %v1366_v10 = vld [vmem:[%s8620_s7 + $0x1b0] sm:$0xff]  ;;  %v5325_v11 = vcombine.low %v1360_v6, %v1364_v7  ;;  %v1345_v7 = vld [vmem:[%s8620_s7 + $0x108] sm:$0xff] }
 0x1a7   : > { %v5329_v12 = vcombine.low %v1362_v8, %v1366_v10  ;;  %v5330_v13 = vcombine.high %v1362_v8, %v1366_v10  ;;  %v1349_v8 = vld [vmem:[%s8620_s7 + $0x128] sm:$0xff] }
 0x1a8   : > { %5763 = vmatprep.mubr.msk.bf16.mxu1 %vm982_vm0, %v1120_v16  ;;  %v1370_v16 = vld [vmem:[%s8620_s7 + $0x1d0] sm:$0xff]  ;;  %v5312_v10 = vcombine.high %v1345_v7, %v1349_v8 }
 0x1a9   : > { %5764 = vmatmul.mubr.msk.bf16.vlgmr.msra.gmra.mrb[0].mxu1 %vm982_vm0, %v1121_v14  ;;  %1976 = vmatprep.subr.bf16.mxu0 %v5330_v13  ;;  %v1368_v14 = vld [vmem:[%s8620_s7 + $0x1c0] sm:$0xff]  ;;  %v5311_v13 = vcombine.low %v1345_v7, %v1349_v8 }
 0x1aa   : > { %1739 = vmatpush1.bf16.msra.mxu1 %v5277_v17  ;;  %1977 = vmatpush1.bf16.msra.mxu0 %v5329_v12  ;;  %v5334_v17 = vcombine.high %v1368_v14, %v1372_v15  ;;  %v5333_v19 = vcombine.low %v1368_v14, %v1372_v15  ;;  %v1357_v12 = vld [vmem:[%s8620_s7 + $0x168] sm:$0xff] }
 0x1ab   : > { %1740 = vmatprep.subr.bf16.mxu1 %v5286_v18  ;;  %v1374_v18 = vld [vmem:[%s8620_s7 + $0x1f0] sm:$0xff]  ;;  %v1361_v15 = vld [vmem:[%s8620_s7 + $0x188] sm:$0xff] }
 0x1ac   : > { %v5337_v21 = vcombine.low %v1370_v16, %v1374_v18 }
 0x1ae   : > { %1741 = vmatpush1.bf16.msra.mxu1 %v5285_v22  ;;  %v5338_v22 = vcombine.high %v1370_v16, %v1374_v18  ;;  %v1365_v16 = vld [vmem:[%s8620_s7 + $0x1a8] sm:$0xff] }
 0x1af   : > { %1742 = vmatprep.subr.bf16.mxu1 %v5294_v23  ;;  %v5328_v18 = vcombine.high %v1361_v15, %v1365_v16 }
 0x1b0   : > { %1978 = vmatprep.subr.bf16.mxu0 %v5338_v22  ;;  %v7046_v22 = vld [vmem:[%s8620_s7 + $0x18] sm:$0xff] }
 0x1b1   : > { %1979 = vmatpush1.bf16.msra.mxu0 %v5337_v21  ;;  %v1373_v21 = vld [vmem:[%s8620_s7 + $0x1e8] sm:$0xff] }
 0x1b2   : > { %1743 = vmatpush1.bf16.msra.mxu1 %v5293_v40 }
 0x1b3   : > { %1744 = vmatprep.subr.bf16.mxu1 %v5302_v20 }
 0x1b6   : > { %1745 = vmatpush1.bf16.msra.mxu1 %v5301_v27 }
 0x1b7   : > { %1746 = vmatprep.subr.bf16.mxu1 %v5310_v29 }
 0x1ba   : > { %1747 = vmatpush1.bf16.msra.mxu1 %v5309_v33 }
 0x1bb   : > { %1748 = vmatprep.subr.bf16.mxu1 %v5318_v59 }
 0x1be   : > { %1749 = vmatpush1.bf16.msra.mxu1 %v5317_v35 }
 0x1bf   : > { %v5745_v36 = vpop.f32.mrb[4].mxu0  ;;  %1750 = vmatprep.subr.bf16.mxu1 %v5326_v9 }
 0x1c0   : > { %v1066_v37 = vadd.f32 %v5745_v36, %v6886_v56  ;;  %v1057_v38 = vpop.f32.mrb[5].mxu0  ;;  %v1313_v36 = vld [vmem:[%s8620_s7 + $0x8] sm:$0xff] }
 0x1c1   : > { %v1058_v43 = vadd.f32 %v6886_v56, %v1057_v38  ;;  %v5746_v44 = vpop.f32.mrb[6].mxu0 }
 0x1c2   : > { %v1069_v45 = vadd.f32 %v5746_v44, %v6886_v56  ;;  %v1060_v46 = vpop.f32.mrb[7].mxu0  ;;  %v1110_v48 = vmax.f32 %v1066_v37, 0.0  ;;  %1751 = vmatpush1.bf16.msra.mxu1 %v5325_v11  ;;  %v1353_v11 = vld [vmem:[%s8620_s7 + $0x148] sm:$0xff] }
 0x1c3   : > { %v1061_v47 = vadd.f32 %v6886_v56, %v1060_v46  ;;  %v1108_v51 = vmax.f32 %v1058_v43, 0.0  ;;  %1752 = vmatprep.subr.bf16.mxu1 %v5334_v17  ;;  %v6983_v43 = vld [vmem:[%s8650_s6] ss:$0 sm:$0xff]  ;;  %v5320_v14 = vcombine.high %v1353_v11, %v1357_v12  ;;  %v5319_v17 = vcombine.low %v1353_v11, %v1357_v12 }
 0x1c4   : > { %v1111_v50 = vmax.f32 %v1069_v45, 0.0 }
 0x1c5   : > { %v1109_v42 = vmax.f32 %v1061_v47, 0.0 }
 0x1c6   : > { %v1123_v52 = vpack.c.bf16 %v1111_v50, %v1110_v48  ;;  %1753 = vmatpush1.bf16.msra.mxu1 %v5333_v19  ;;  %v1369_v19 = vld [vmem:[%s8620_s7 + $0x1c8] sm:$0xff] }
 0x1c7   : > { %v1122_v53 = vpack.c.bf16 %v1109_v42, %v1108_v51 }
 0x1c9   : > { %5767 = vmatprep.mubr.msk.bf16.mxu1 %vm982_vm0, %v1122_v53 }
 0x1ca   : > { %5768 = vmatmul.mubr.msk.bf16.gmra.mrb[4].mxu1 %vm982_vm0, %v1123_v52 }
 0x1e4   : > { %v5749_v54 = vpop.f32.mrb[8].mxu0 }
 0x1e5   : > { %v1082_v55 = vadd.f32 %v5749_v54, %v6886_v56  ;;  %v1073_v57 = vpop.f32.mrb[9].mxu0 }
 0x1e6   : > { %v1074_v58 = vadd.f32 %v6886_v56, %v1073_v57  ;;  %v5750_v49 = vpop.f32.mrb[10].mxu0  ;;  %v1321_v57 = vld [vmem:[%s8620_s7 + $0x48] sm:$0xff] }
 0x1e7   : > { %v1085_v60 = vadd.f32 %v5750_v49, %v6886_v56  ;;  %v1076_v61 = vpop.f32.mrb[11].mxu0  ;;  %v1114_v63 = vmax.f32 %v1082_v55, 0.0 }
 0x1e8   : > { %v1077_v62 = vadd.f32 %v6886_v56, %v1076_v61  ;;  %v1112_v2 = vmax.f32 %v1074_v58, 0.0  ;;  %v1325_v58 = vld [vmem:[%s8620_s7 + $0x68] sm:$0xff] }
 0x1e9   : > { %v1115_v0 = vmax.f32 %v1085_v60, 0.0  ;;  %v5288_v61 = vcombine.high %v1321_v57, %v1325_v58 }
 0x1ea   : > { %v1113_v3 = vmax.f32 %v1077_v62, 0.0  ;;  %v1329_v62 = vld [vmem:[%s8620_s7 + $0x88] sm:$0xff] }
 0x1eb   : > { %v1125_v4 = vpack.c.bf16 %v1115_v0, %v1114_v63  ;;  %v1333_v63 = vld [vmem:[%s8620_s7 + $0xa8] sm:$0xff]  ;;  %v5287_v0 = vcombine.low %v1321_v57, %v1325_v58 }
 0x1ec   : > { %v1124_v5 = vpack.c.bf16 %v1113_v3, %v1112_v2  ;;  %v5296_v2 = vcombine.high %v1329_v62, %v1333_v63  ;;  %v1337_v3 = vld [vmem:[%s8620_s7 + $0xc8] sm:$0xff] }
 0x1ee   : > { %5771 = vmatprep.mubr.msk.bf16.mxu1 %vm982_vm0, %v1124_v5  ;;  %v5295_v5 = vcombine.low %v1329_v62, %v1333_v63 }
 0x1ef   : > { %5772 = vmatmul.mubr.msk.bf16.gmra.mrb[8].mxu1 %vm982_vm0, %v1125_v4  ;;  %v1341_v4 = vld [vmem:[%s8620_s7 + $0xe8] sm:$0xff] }
 0x1f0   : > { %v5304_v6 = vcombine.high %v1337_v3, %v1341_v4  ;;  %v5303_v9 = vcombine.low %v1337_v3, %v1341_v4 }
 0x205   : > { %v5753_v23 = vpop.f32.mrb[12].mxu0 }
 0x206   : > { %v1098_v24 = vadd.f32 %v5753_v23, %v6886_v56  ;;  %v1089_v25 = vpop.f32.mrb[13].mxu0  ;;  %v7051_v23 = vld [vmem:[%s8620_s7 + $0x38] sm:$0xff] }
 0x207   : > { %v1090_v40 = vadd.f32 %v6886_v56, %v1089_v25  ;;  %v5754_v20 = vpop.f32.mrb[14].mxu0  ;;  %v5283_v25 = vcombine.low %v7046_v22, %v7051_v23 }
 0x208   : > { %v1101_v39 = vadd.f32 %v5754_v20, %v6886_v56  ;;  %v1092_v26 = vpop.f32.mrb[15].mxu0  ;;  %v1118_v29 = vmax.f32 %v1098_v24, 0.0  ;;  %v5327_v24 = vcombine.low %v1361_v15, %v1365_v16  ;;  %v5336_v20 = vcombine.high %v1369_v19, %v1373_v21  ;;  %v1331_v16 = vld [vmem:[%s8620_s7 + $0x98] sm:$0xff] }
 0x209   : > { %v1093_v27 = vadd.f32 %v6886_v56, %v1092_v26  ;;  %v1116_v41 = vmax.f32 %v1090_v40, 0.0  ;;  %v1317_v56 = vld [vmem:[%s8620_s7 + $0x28] sm:$0xff] }
 0x20a   : > { %v1119_v30 = vmax.f32 %v1101_v39, 0.0  ;;  %v5279_v37 = vcombine.low %v1313_v36, %v1317_v56  ;;  %v5280_v38 = vcombine.high %v1313_v36, %v1317_v56 }
 0x20b   : > { %v1117_v33 = vmax.f32 %v1093_v27, 0.0 }
 0x20c   : > { %v1127_v59 = vpack.c.bf16 %v1119_v30, %v1118_v29  ;;  %1851 = vmatprep.subr.bf16.mxu1 %v5280_v38 }
 0x20d   : > { %v1126_v35 = vpack.c.bf16 %v1117_v33, %v1116_v41  ;;  %v5335_v33 = vcombine.low %v1369_v19, %v1373_v21  ;;  %v1339_v21 = vld [vmem:[%s8620_s7 + $0xd8] sm:$0xff] }
 0x20f   : > { %5775 = vmatprep.mubr.msk.bf16.mxu1 %vm982_vm0, %v1126_v35  ;;  %v5284_v35 = vcombine.high %v7046_v22, %v7051_v23  ;;  %v1347_v22 = vld [vmem:[%s8620_s7 + $0x118] sm:$0xff] }
 0x210   : > { %5776 = vmatmul.mubr.msk.bf16.gmra.mrb[12].mxu1 %vm982_vm0, %v1127_v59  ;;  %v1351_v23 = vld [vmem:[%s8620_s7 + $0x138] sm:$0xff] }
 0x211   : > { %1770 = vmatprep.mubr.bf16.mxu1 %v6521_v1 }
 0x27c   : > { %v5765_v44 = vpop.f32.mrb[0].mxu1 }
 0x27d   : > { %v1234_v45 = vadd.f32 %v5765_v44, %v6983_v43  ;;  %v1225_v46 = vpop.f32.mrb[1].mxu1 }
 0x27e   : > { %v1226_v47 = vadd.f32 %v6983_v43, %v1225_v46  ;;  %v5766_v48 = vpop.f32.mrb[2].mxu1 }
 0x27f   : > { %v1237_v50 = vadd.f32 %v5766_v48, %v6983_v43  ;;  %v1228_v51 = vpop.f32.mrb[3].mxu1  ;;  %v1290_v52 = vmax.f32 %v1234_v45, 0.0 }
 0x280   : > { %v1229_v42 = vadd.f32 %v6983_v43, %v1228_v51  ;;  %v1288_v54 = vmax.f32 %v1226_v47, 0.0 }
 0x281   : > { %v1291_v53 = vmax.f32 %v1237_v50, 0.0 }
 0x282   : > { %v1289_v55 = vmax.f32 %v1229_v42, 0.0 }
 0x283   : > { %v6995_v49 = vpack.c.bf16 %v1291_v53, %v1290_v52 }
 0x284   : > { %v6997_v60 = vpack.c.bf16 %v1289_v55, %v1288_v54 }
 0x286   : > { %1771 = vmatmul.mubr.bf16.vlgmr.msra.gmra.mrb[16].mxu1 %v6997_v60  ;;  %1997 = vmatmul.mubr.bf16.vlgmr.msra.gmra.mrb[16].mxu0 %v6997_v60 }
 0x287   : > { %1780 = vmatprep.mubr.bf16.mxu1 %v6521_v1  ;;  %2006 = vmatprep.mubr.bf16.mxu0 %v6521_v1 }
 0x288   : > { %1852 = vmatpush1.bf16.msra.mxu1 %v5279_v37 }
 0x289   : > { %1853 = vmatprep.subr.bf16.mxu1 %v5288_v61 }
 0x28c   : > { %1854 = vmatpush1.bf16.msra.mxu1 %v5287_v0 }
 0x28d   : > { %1855 = vmatprep.subr.bf16.mxu1 %v5296_v2 }
 0x28e   : > { %1781 = vmatmul.mubr.bf16.gmra.mrb[20].mxu1 %v6995_v49  ;;  %2007 = vmatmul.mubr.bf16.gmra.mrb[20].mxu0 %v6995_v49 }
 0x28f   : > { %1790 = vmatprep.mubr.bf16.mxu1 %v6521_v1  ;;  %2016 = vmatprep.mubr.bf16.mxu0 %v6521_v1 }
 0x290   : > { %1856 = vmatpush1.bf16.msra.mxu1 %v5295_v5 }
 0x291   : > { %1857 = vmatprep.subr.bf16.mxu1 %v5304_v6 }
 0x294   : > { %1858 = vmatpush1.bf16.msra.mxu1 %v5303_v9 }
 0x295   : > { %1859 = vmatprep.subr.bf16.mxu1 %v5312_v10 }
 0x298   : > { %1860 = vmatpush1.bf16.msra.mxu1 %v5311_v13 }
 0x299   : > { %1861 = vmatprep.subr.bf16.mxu1 %v5320_v14  ;;  %v1327_v14 = vld [vmem:[%s8620_s7 + $0x78] sm:$0xff] }
 0x29c   : > { %1862 = vmatpush1.bf16.msra.mxu1 %v5319_v17  ;;  %v1335_v17 = vld [vmem:[%s8620_s7 + $0xb8] sm:$0xff] }
 0x29d   : > { %v5769_v40 = vpop.f32.mrb[4].mxu1  ;;  %1863 = vmatprep.subr.bf16.mxu1 %v5328_v18  ;;  %v5300_v19 = vcombine.high %v1331_v16, %v1335_v17 }
 0x29e   : > { %v1250_v39 = vadd.f32 %v5769_v40, %v6983_v43  ;;  %v1241_v26 = vpop.f32.mrb[5].mxu1  ;;  %v5299_v40 = vcombine.low %v1331_v16, %v1335_v17  ;;  %v5973_v16 = vld [vmem:[%s8622_s9 + $0x144] ss:$16 sps:$4 sm:$0xff]   ;;  %v5971_v17 = vld [vmem:[%s8622_s9 + $0x140] ss:$16 sps:$4 sm:$0xff]  }
 0x29f   : > { %v1242_v27 = vadd.f32 %v6983_v43, %v1241_v26  ;;  %v5770_v29 = vpop.f32.mrb[6].mxu1  ;;  %v1355_v26 = vld [vmem:[%s8620_s7 + $0x158] sm:$0xff] }
 0x2a0   : > { %v1253_v30 = vadd.f32 %v5770_v29, %v6983_v43  ;;  %v1244_v41 = vpop.f32.mrb[7].mxu1  ;;  %1864 = vmatpush1.bf16.msra.mxu1 %v5327_v24  ;;  %v1294_v36 = vmax.f32 %v1250_v39, 0.0  ;;  %v1343_v24 = vld [vmem:[%s8620_s7 + $0xf8] sm:$0xff]  ;;  %v5316_v39 = vcombine.high %v1347_v22, %v1351_v23  ;;  %v5911_v29 = vld [vmem:[%s8622_s9] ss:$16 sps:$4 sm:$0xff]  }
 0x2a1   : > { %v1245_v59 = vadd.f32 %v6983_v43, %v1244_v41  ;;  %1865 = vmatprep.subr.bf16.mxu1 %v5336_v20  ;;  %v1292_v37 = vmax.f32 %v1242_v27, 0.0  ;;  %v5308_v20 = vcombine.high %v1339_v21, %v1343_v24  ;;  %v1359_v27 = vld [vmem:[%s8620_s7 + $0x178] sm:$0xff]  ;;  %v5315_v41 = vcombine.low %v1347_v22, %v1351_v23  ;;  %v5983_v22 = vld [vmem:[%s8622_s9 + $0x180] ss:$16 sps:$4 sm:$0xff]  }
 0x2a2   : > { %v1295_v56 = vmax.f32 %v1253_v30, 0.0  ;;  %v5913_v30 = vld [vmem:[%s8622_s9 + $0x4] ss:$16 sps:$4 sm:$0xff]   ;;  %v5944_v23 = vld [vmem:[%s8622_s9 + $0xa8] ss:$16 sps:$4 sm:$0xff]  }
 0x2a3   : > { %v1293_v38 = vmax.f32 %v1245_v59, 0.0  ;;  %4099 = vmatprep.subr.bf16.mxu0 %v5913_v30  ;;  %v1363_v59 = vld [vmem:[%s8620_s7 + $0x198] sm:$0xff]  ;;  %v1400_v30 = vsub.s32 5, %v6731_v28 }
 0x2a4   : > { %v7061_v44 = vpack.c.bf16 %v1295_v56, %v1294_v36  ;;  %1866 = vmatpush1.bf16.msra.mxu1 %v5335_v33  ;;  %v5324_v33 = vcombine.high %v1355_v26, %v1359_v27  ;;  %4100 = vmatpush1.bf16.msra.mxu0 %v5911_v29  ;;  %v5323_v36 = vcombine.low %v1355_v26, %v1359_v27  ;;  %v1396_v26 = vsub.s32 4, %v6731_v28  ;;  %v5950_v27 = vld [vmem:[%s8622_s9 + $0xc8] ss:$16 sps:$4 sm:$0xff]   ;;  %v7304_v29 = vld [vmem:[%s8621_s8] sm:$0xff] }
 0x2a5   : > { %v7063_v45 = vpack.c.bf16 %v1293_v38, %v1292_v37  ;;  %2077 = vmatprep.subr.bf16.mxu1 %v5284_v35  ;;  %v1367_v35 = vld [vmem:[%s8620_s7 + $0x1b8] sm:$0xff] }
 0x2a6   : > { %v5332_v56 = vcombine.high %v1363_v59, %v1367_v35  ;;  %v1371_v37 = vld [vmem:[%s8620_s7 + $0x1d8] sm:$0xff] }
 0x2a7   : > { %1791 = vmatmul.mubr.bf16.gmra.mrb[24].mxu1 %v7063_v45  ;;  %2017 = vmatmul.mubr.bf16.gmra.mrb[24].mxu0 %v7063_v45  ;;  %v1375_v38 = vld [vmem:[%s8620_s7 + $0x1f8] sm:$0xff] }
 0x2a8   : > { %1800 = vmatprep.mubr.bf16.mxu1 %v6521_v1  ;;  %2026 = vmatprep.mubr.bf16.mxu0 %v6521_v1 }
 0x2af   : > { %1801 = vmatmul.mubr.bf16.gmra.mrb[28].mxu1 %v7061_v44  ;;  %2027 = vmatmul.mubr.bf16.gmra.mrb[28].mxu0 %v7061_v44 }
 0x2b0   : > { %1810 = vmatprep.mubr.bf16.mxu1 %v6521_v1  ;;  %2036 = vmatprep.mubr.bf16.mxu0 %v6521_v1 }
 0x2c2   : > { %v5773_v46 = vpop.f32.mrb[8].mxu1 }
 0x2c3   : > { %v1266_v47 = vadd.f32 %v5773_v46, %v6983_v43  ;;  %v1257_v48 = vpop.f32.mrb[9].mxu1  ;;  %v5331_v46 = vcombine.low %v1363_v59, %v1367_v35  ;;  %v5995_v59 = vld [vmem:[%s8622_s9 + $0x1c0] ss:$16 sps:$4 sm:$0xff]   ;;  %v7320_v35 = vrot.slane %v7304_v29, %v6737_v31 }
 0x2c4   : > { %v1258_v50 = vadd.f32 %v6983_v43, %v1257_v48  ;;  %v5774_v51 = vpop.f32.mrb[10].mxu1  ;;  %v5339_v48 = vcombine.low %v1371_v37, %v1375_v38 }
 0x2c5   : > { %v1269_v42 = vadd.f32 %v5774_v51, %v6983_v43  ;;  %v1260_v52 = vpop.f32.mrb[11].mxu1  ;;  %v1298_v54 = vmax.f32 %v1266_v47, 0.0  ;;  %v5340_v47 = vcombine.high %v1371_v37, %v1375_v38  ;;  %v5919_v51 = vld [vmem:[%s8622_s9 + $0x24] ss:$16 sps:$4 sm:$0xff]   ;;  %v7334_v37 = vrot.slane %v7304_v29, %v1400_v30  ;;  %v5964_v38 = vld [vmem:[%s8622_s9 + $0x10c] ss:$16 sps:$4 sm:$0xff]  }
 0x2c6   : > { %v1261_v53 = vadd.f32 %v6983_v43, %v1260_v52  ;;  %v1296_v57 = vmax.f32 %v1258_v50, 0.0  ;;  %v5916_v50 = vld [vmem:[%s8622_s9 + $0xc] ss:$16 sps:$4 sm:$0xff]   ;;  %4101 = vmatprep.subr.bf16.mxu0 %v5919_v51  ;;  %v5925_v52 = vld [vmem:[%s8622_s9 + $0x44] ss:$16 sps:$4 sm:$0xff]  }
 0x2c7   : > { %v1299_v55 = vmax.f32 %v1269_v42, 0.0  ;;  %v5917_v42 = vld [vmem:[%s8622_s9 + $0x20] ss:$16 sps:$4 sm:$0xff]  }
 0x2c8   : > { %v1297_v58 = vmax.f32 %v1261_v53, 0.0  ;;  %4102 = vmatpush1.bf16.msra.mxu0 %v5917_v42  ;;  %v5923_v53 = vld [vmem:[%s8622_s9 + $0x40] ss:$16 sps:$4 sm:$0xff]  }
 0x2c9   : > { %v7077_v61 = vpack.c.bf16 %v1299_v55, %v1298_v54  ;;  %4103 = vmatprep.subr.bf16.mxu0 %v5925_v52  ;;  %v5931_v54 = vld [vmem:[%s8622_s9 + $0x64] ss:$16 sps:$4 sm:$0xff]   ;;  %v5929_v55 = vld [vmem:[%s8622_s9 + $0x60] ss:$16 sps:$4 sm:$0xff]  }
 0x2ca   : > { %v7079_v62 = vpack.c.bf16 %v1297_v58, %v1296_v57  ;;  %v5937_v57 = vld [vmem:[%s8622_s9 + $0x84] ss:$16 sps:$4 sm:$0xff]   ;;  %v5935_v58 = vld [vmem:[%s8622_s9 + $0x80] ss:$16 sps:$4 sm:$0xff]  }
 0x2cc   : > { %1811 = vmatmul.mubr.bf16.gmra.mrb[32].mxu1 %v7079_v62  ;;  %2037 = vmatmul.mubr.bf16.gmra.mrb[32].mxu0 %v7079_v62 }
 0x2cd   : > { %1820 = vmatprep.mubr.bf16.mxu1 %v6521_v1  ;;  %2046 = vmatprep.mubr.bf16.mxu0 %v6521_v1 }
 0x2ce   : > { %4104 = vmatpush1.bf16.msra.mxu0 %v5923_v53 }
 0x2cf   : > { %4105 = vmatprep.subr.bf16.mxu0 %v5931_v54  ;;  %v5962_v54 = vld [vmem:[%s8622_s9 + $0x108] ss:$16 sps:$4 sm:$0xff]  }
 0x2d2   : > { %4106 = vmatpush1.bf16.msra.mxu0 %v5929_v55 }
 0x2d3   : > { %4107 = vmatprep.subr.bf16.mxu0 %v5937_v57 }
 0x2d4   : > { %1821 = vmatmul.mubr.bf16.gmra.mrb[36].mxu1 %v7077_v61  ;;  %2047 = vmatmul.mubr.bf16.gmra.mrb[36].mxu0 %v7077_v61 }
 0x2d5   : > { %1830 = vmatprep.mubr.bf16.mxu1 %v6521_v1  ;;  %2056 = vmatprep.mubr.bf16.mxu0 %v6521_v1 }
 0x2d6   : > { %4108 = vmatpush1.bf16.msra.mxu0 %v5935_v58 }
 0x2e3   : > { %v5777_v63 = vpop.f32.mrb[12].mxu1 }
 0x2e4   : > { %v1282_v0 = vadd.f32 %v5777_v63, %v6983_v43  ;;  %v1273_v2 = vpop.f32.mrb[13].mxu1  ;;  %v5943_v63 = vld [vmem:[%s8622_s9 + $0xa4] ss:$16 sps:$4 sm:$0xff]  }
 0x2e5   : > { %v1274_v3 = vadd.f32 %v6983_v43, %v1273_v2  ;;  %v5778_v4 = vpop.f32.mrb[14].mxu1  ;;  %4109 = vmatprep.subr.bf16.mxu0 %v5943_v63  ;;  %v5949_v2 = vld [vmem:[%s8622_s9 + $0xc4] ss:$16 sps:$4 sm:$0xff]  }
 0x2e6   : > { %v1285_v5 = vadd.f32 %v5778_v4, %v6983_v43  ;;  %v1276_v6 = vpop.f32.mrb[15].mxu1  ;;  %v1302_v8 = vmax.f32 %v1282_v0, 0.0  ;;  %v5941_v0 = vld [vmem:[%s8622_s9 + $0xa0] ss:$16 sps:$4 sm:$0xff]   ;;  %v5955_v4 = vld [vmem:[%s8622_s9 + $0xe4] ss:$16 sps:$4 sm:$0xff]  }
 0x2e7   : > { %v1277_v7 = vadd.f32 %v6983_v43, %v1276_v6  ;;  %v1300_v10 = vmax.f32 %v1274_v3, 0.0  ;;  %v1323_v43 = vld [vmem:[%s8620_s7 + $0x58] sm:$0xff]  ;;  %4110 = vmatpush1.bf16.msra.mxu0 %v5941_v0  ;;  %v5947_v3 = vld [vmem:[%s8622_s9 + $0xc0] ss:$16 sps:$4 sm:$0xff]   ;;  %v5961_v6 = vld [vmem:[%s8622_s9 + $0x104] ss:$16 sps:$4 sm:$0xff]  }
 0x2e8   : > { %v1303_v9 = vmax.f32 %v1285_v5, 0.0  ;;  %v5292_v15 = vcombine.high %v1323_v43, %v1327_v14  ;;  %v5291_v18 = vcombine.low %v1323_v43, %v1327_v14  ;;  %4111 = vmatprep.subr.bf16.mxu0 %v5949_v2  ;;  %v5953_v5 = vld [vmem:[%s8622_s9 + $0xe0] ss:$16 sps:$4 sm:$0xff]   ;;  %v5967_v43 = vld [vmem:[%s8622_s9 + $0x124] ss:$16 sps:$4 sm:$0xff]  }
 0x2e9   : > { %v1301_v11 = vmax.f32 %v1277_v7, 0.0  ;;  %v5914_v7 = vld [vmem:[%s8622_s9 + $0x8] ss:$16 sps:$4 sm:$0xff]   ;;  %v5970_v0 = vld [vmem:[%s8622_s9 + $0x12c] ss:$16 sps:$4 sm:$0xff]  }
 0x2ea   : > { %v7093_v12 = vpack.c.bf16 %v1303_v9, %v1302_v8  ;;  %v5922_v8 = vld [vmem:[%s8622_s9 + $0x2c] ss:$16 sps:$4 sm:$0xff]   ;;  %v5959_v9 = vld [vmem:[%s8622_s9 + $0x100] ss:$16 sps:$4 sm:$0xff]   ;;  %v5926_v14 = vld [vmem:[%s8622_s9 + $0x48] ss:$16 sps:$4 sm:$0xff]  }
 0x2eb   : > { %v7095_v13 = vpack.c.bf16 %v1301_v11, %v1300_v10  ;;  %4112 = vmatpush1.bf16.msra.mxu0 %v5947_v3  ;;  %v5920_v10 = vld [vmem:[%s8622_s9 + $0x28] ss:$16 sps:$4 sm:$0xff]   ;;  %v5928_v11 = vld [vmem:[%s8622_s9 + $0x4c] ss:$16 sps:$4 sm:$0xff]  }
 0x2ec   : > { %4113 = vmatprep.subr.bf16.mxu0 %v5955_v4 }
 0x2ed   : > { %1831 = vmatmul.mubr.bf16.gmra.mrb[40].mxu1 %v7095_v13  ;;  %2057 = vmatmul.mubr.bf16.gmra.mrb[40].mxu0 %v7095_v13 }
 0x2ee   : > { %1840 = vmatprep.mubr.bf16.mxu1 %v6521_v1  ;;  %2066 = vmatprep.mubr.bf16.mxu0 %v6521_v1 }
 0x2ef   : > { %4114 = vmatpush1.bf16.msra.mxu0 %v5953_v5 }
 0x2f0   : > { %4115 = vmatprep.subr.bf16.mxu0 %v5961_v6  ;;  %v6009_v6 = vld [vmem:[%s8622_s9 + $0x204] ss:$16 sps:$4 sm:$0xff]  }
 0x2f3   : > { %4116 = vmatpush1.bf16.msra.mxu0 %v5959_v9 }
 0x2f4   : > { %4117 = vmatprep.subr.bf16.mxu0 %v5967_v43 }
 0x2f5   : > { %1841 = vmatmul.mubr.bf16.gmra.mrb[44].mxu1 %v7093_v12  ;;  %2067 = vmatmul.mubr.bf16.gmra.mrb[44].mxu0 %v7093_v12 }
 0x2f6   : > { %1883 = vmatprep.mubr.bf16.mxu1 %v6521_v1 }
 0x2fd   : > { %1884 = vmatmul.mubr.bf16.vlgmr.msra.gmra.mrb[48].mxu1 %v6997_v60 }
 0x2fe   : > { %1893 = vmatprep.mubr.bf16.mxu1 %v6521_v1  ;;  %2078 = vmatpush1.bf16.msra.mxu1 %v5283_v25  ;;  %v5307_v25 = vcombine.low %v1339_v21, %v1343_v24  ;;  %v5977_v21 = vld [vmem:[%s8622_s9 + $0x160] ss:$16 sps:$4 sm:$0xff]   ;;  %v5938_v24 = vld [vmem:[%s8622_s9 + $0x88] ss:$16 sps:$4 sm:$0xff]  }
 0x2ff   : > { %2079 = vmatprep.subr.bf16.mxu1 %v5292_v15  ;;  %v5934_v15 = vld [vmem:[%s8622_s9 + $0x6c] ss:$16 sps:$4 sm:$0xff]  }
 0x302   : > { %2080 = vmatpush1.bf16.msra.mxu1 %v5291_v18  ;;  %v5932_v18 = vld [vmem:[%s8622_s9 + $0x68] ss:$16 sps:$4 sm:$0xff]  }
 0x303   : > { %2081 = vmatprep.subr.bf16.mxu1 %v5300_v19  ;;  %v5940_v19 = vld [vmem:[%s8622_s9 + $0x8c] ss:$16 sps:$4 sm:$0xff]  }
 0x305   : > { %1894 = vmatmul.mubr.bf16.gmra.mrb[52].mxu1 %v6995_v49 }
 0x306   : > { %1903 = vmatprep.mubr.bf16.mxu1 %v6521_v1  ;;  %2082 = vmatpush1.bf16.msra.mxu1 %v5299_v40  ;;  %v5946_v40 = vld [vmem:[%s8622_s9 + $0xac] ss:$16 sps:$4 sm:$0xff]  }
 0x307   : > { %2083 = vmatprep.subr.bf16.mxu1 %v5308_v20  ;;  %v5985_v20 = vld [vmem:[%s8622_s9 + $0x184] ss:$16 sps:$4 sm:$0xff]  }
 0x30a   : > { %2084 = vmatpush1.bf16.msra.mxu1 %v5307_v25  ;;  %v5952_v25 = vld [vmem:[%s8622_s9 + $0xcc] ss:$16 sps:$4 sm:$0xff]  }
 0x30b   : > { %2085 = vmatprep.subr.bf16.mxu1 %v5316_v39  ;;  %v5989_v39 = vld [vmem:[%s8622_s9 + $0x1a0] ss:$16 sps:$4 sm:$0xff]  }
 0x30d   : > { %1904 = vmatmul.mubr.bf16.gmra.mrb[56].mxu1 %v7063_v45 }
 0x30e   : > { %1913 = vmatprep.mubr.bf16.mxu1 %v6521_v1  ;;  %2086 = vmatpush1.bf16.msra.mxu1 %v5315_v41  ;;  %v5958_v41 = vld [vmem:[%s8622_s9 + $0xec] ss:$16 sps:$4 sm:$0xff]  }
 0x30f   : > { %2087 = vmatprep.subr.bf16.mxu1 %v5324_v33  ;;  %v5997_v33 = vld [vmem:[%s8622_s9 + $0x1c4] ss:$16 sps:$4 sm:$0xff]  }
 0x312   : > { %2088 = vmatpush1.bf16.msra.mxu1 %v5323_v36  ;;  %v7323_v36 = vrot.slane %v7304_v29, %v1396_v26 }
 0x313   : > { %2089 = vmatprep.subr.bf16.mxu1 %v5332_v56  ;;  %v5956_v56 = vld [vmem:[%s8622_s9 + $0xe8] ss:$16 sps:$4 sm:$0xff]  }
 0x315   : > { %1914 = vmatmul.mubr.bf16.gmra.mrb[60].mxu1 %v7061_v44 }
 0x316   : > { %1923 = vmatprep.mubr.bf16.mxu1 %v6521_v1  ;;  %2090 = vmatpush1.bf16.msra.mxu1 %v5331_v46  ;;  %v6003_v46 = vld [vmem:[%s8622_s9 + $0x1e4] ss:$16 sps:$4 sm:$0xff]  }
 0x317   : > { %2091 = vmatprep.subr.bf16.mxu1 %v5340_v47 }
 0x31a   : > { %2092 = vmatpush1.bf16.msra.mxu1 %v5339_v48 }
 0x31b   : > { %4263 = vmatprep.subr.bf16.mxu1 %v5916_v50  ;;  %v6001_v50 = vld [vmem:[%s8622_s9 + $0x1e0] ss:$16 sps:$4 sm:$0xff]  }
 0x31d   : > { %1924 = vmatmul.mubr.bf16.gmra.mrb[64].mxu1 %v7079_v62 }
 0x31e   : > { %1933 = vmatprep.mubr.bf16.mxu1 %v6521_v1 }
 0x325   : > { %1934 = vmatmul.mubr.bf16.gmra.mrb[68].mxu1 %v7077_v61 }
 0x326   : > { %1943 = vmatprep.mubr.bf16.mxu1 %v6521_v1 }
 0x32d   : > { %1944 = vmatmul.mubr.bf16.gmra.mrb[72].mxu1 %v7095_v13 }
 0x32e   : > { %1953 = vmatprep.mubr.bf16.mxu1 %v6521_v1 }
 0x335   : > { %1954 = vmatmul.mubr.bf16.gmra.mrb[76].mxu1 %v7093_v12 }
 0x336   : > { %2109 = vmatprep.mubr.bf16.mxu1 %v6521_v1 }
 0x33d   : > { %2110 = vmatmul.mubr.bf16.vlgmr.msra.gmra.mrb[80].mxu1 %v6997_v60  ;;  %v5965_v60 = vld [vmem:[%s8622_s9 + $0x120] ss:$16 sps:$4 sm:$0xff]  }
 0x33e   : > { %2119 = vmatprep.mubr.bf16.mxu1 %v6521_v1  ;;  %4264 = vmatpush1.bf16.msra.mxu1 %v5914_v7 }
 0x33f   : > { %4265 = vmatprep.subr.bf16.mxu1 %v5922_v8  ;;  %4118 = vmatpush1.bf16.msra.mxu0 %v5965_v60 }
 0x340   : > { %4119 = vmatprep.subr.bf16.mxu0 %v5973_v16 }
 0x342   : > { %4266 = vmatpush1.bf16.msra.mxu1 %v5920_v10 }
 0x343   : > { %4267 = vmatprep.subr.bf16.mxu1 %v5928_v11  ;;  %4120 = vmatpush1.bf16.msra.mxu0 %v5971_v17  ;;  %v5968_v11 = vld [vmem:[%s8622_s9 + $0x128] ss:$16 sps:$4 sm:$0xff]  }
 0x345   : > { %2120 = vmatmul.mubr.bf16.gmra.mrb[84].mxu1 %v6995_v49  ;;  %v5979_v49 = vld [vmem:[%s8622_s9 + $0x164] ss:$16 sps:$4 sm:$0xff]  }
 0x346   : > { %2129 = vmatprep.mubr.bf16.mxu1 %v6521_v1  ;;  %4268 = vmatpush1.bf16.msra.mxu1 %v5926_v14 }
 0x347   : > { %4269 = vmatprep.subr.bf16.mxu1 %v5934_v15  ;;  %4121 = vmatprep.subr.bf16.mxu0 %v5979_v49  ;;  %v5974_v49 = vld [vmem:[%s8622_s9 + $0x148] ss:$16 sps:$4 sm:$0xff]  }
 0x348   : > { %4122 = vmatpush1.bf16.msra.mxu0 %v5977_v21 }
 0x349   : > { %4123 = vmatprep.subr.bf16.mxu0 %v5985_v20 }
 0x34a   : > { %4270 = vmatpush1.bf16.msra.mxu1 %v5932_v18 }
 0x34b   : > { %4271 = vmatprep.subr.bf16.mxu1 %v5940_v19 }
 0x34c   : > { %4124 = vmatpush1.bf16.msra.mxu0 %v5983_v22  ;;  %v5982_v22 = vld [vmem:[%s8622_s9 + $0x16c] ss:$16 sps:$4 sm:$0xff]  }
 0x34d   : > { %2130 = vmatmul.mubr.bf16.gmra.mrb[88].mxu1 %v7063_v45  ;;  %v5991_v45 = vld [vmem:[%s8622_s9 + $0x1a4] ss:$16 sps:$4 sm:$0xff]  }
 0x34e   : > { %2139 = vmatprep.mubr.bf16.mxu1 %v6521_v1  ;;  %4272 = vmatpush1.bf16.msra.mxu1 %v5938_v24 }
 0x34f   : > { %4273 = vmatprep.subr.bf16.mxu1 %v5946_v40  ;;  %4125 = vmatprep.subr.bf16.mxu0 %v5991_v45 }
 0x350   : > { %4126 = vmatpush1.bf16.msra.mxu0 %v5989_v39 }
 0x351   : > { %4127 = vmatprep.subr.bf16.mxu0 %v5997_v33 }
 0x352   : > { %4274 = vmatpush1.bf16.msra.mxu1 %v5944_v23 }
 0x353   : > { %4275 = vmatprep.subr.bf16.mxu1 %v5952_v25 }
 0x354   : > { %4128 = vmatpush1.bf16.msra.mxu0 %v5995_v59 }
 0x355   : > { %2140 = vmatmul.mubr.bf16.gmra.mrb[92].mxu1 %v7061_v44  ;;  %v7331_v44 = vrot.slane %v7304_v29, %v6740_v32  ;;  %4129 = vmatprep.subr.bf16.mxu0 %v6003_v46  ;;  %v5980_v46 = vld [vmem:[%s8622_s9 + $0x168] ss:$16 sps:$4 sm:$0xff]  }
 0x356   : > { %2149 = vmatprep.mubr.bf16.mxu1 %v6521_v1  ;;  %4276 = vmatpush1.bf16.msra.mxu1 %v5950_v27 }
 0x357   : > { %4277 = vmatprep.subr.bf16.mxu1 %v5958_v41 }
 0x358   : > { %4130 = vmatpush1.bf16.msra.mxu0 %v6001_v50  ;;  %v5986_v50 = vld [vmem:[%s8622_s9 + $0x188] ss:$16 sps:$4 sm:$0xff]  }
 0x359   : > { %v1772_v47 = vpop.f32.mrb[16].mxu1  ;;  %v1998_v48 = vpop.f32.mrb[16].mxu0  ;;  %4140 = vmatprep.subr.bf16.mxu0 %v6009_v6 }
 0x35a   : > { %v1773_v51 = vadd.f32 %v1772_v47, %v7320_v35  ;;  %v1999_v42 = vadd.f32 %v1998_v48, %v7323_v36  ;;  %v1774_v52 = vpop.f32.mrb[17].mxu1  ;;  %v2000_v53 = vpop.f32.mrb[17].mxu0  ;;  %4278 = vmatpush1.bf16.msra.mxu1 %v5956_v56 }
 0x35b   : > { %v1775_v55 = vadd.f32 %v1774_v52, %v7331_v44  ;;  %v2001_v57 = vadd.f32 %v2000_v53, %v7334_v37  ;;  %v1776_v58 = vpop.f32.mrb[18].mxu1  ;;  %v2002_v63 = vpop.f32.mrb[18].mxu0  ;;  %4279 = vmatprep.subr.bf16.mxu1 %v5964_v38  ;;  %v6000_v52 = vld [vmem:[%s8622_s9 + $0x1cc] ss:$16 sps:$4 sm:$0xff]   ;;  %v5998_v53 = vld [vmem:[%s8622_s9 + $0x1c8] ss:$16 sps:$4 sm:$0xff]  }
 0x35c   : > { %2190 = vst [vmem:[%s7355_s27] sm:$0xff] %v1773_v51  ;;  %2194 = vst [vmem:[%s7355_s27 + $0x20] sm:$0xff] %v1999_v42  ;;  %v1777_v2 = vadd.f32 %v1776_v58, %v7320_v35  ;;  %v2003_v3 = vadd.f32 %v2002_v63, %v7323_v36  ;;  %v1778_v4 = vpop.f32.mrb[19].mxu1  ;;  %v2004_v5 = vpop.f32.mrb[19].mxu0 }
 0x35d   : > { %2191 = vst [vmem:[%s7355_s27 + $0x8] sm:$0xff] %v1775_v55  ;;  %2195 = vst [vmem:[%s7355_s27 + $0x28] sm:$0xff] %v2001_v57  ;;  %v1779_v7 = vadd.f32 %v1778_v4, %v7331_v44  ;;  %v2005_v8 = vadd.f32 %v2004_v5, %v7334_v37  ;;  %2150 = vmatmul.mubr.bf16.gmra.mrb[96].mxu1 %v7079_v62  ;;  %v5976_v62 = vld [vmem:[%s8622_s9 + $0x14c] ss:$16 sps:$4 sm:$0xff]  }
 0x35e   : > { %2198 = vst [vmem:[%s7355_s27 + $0x40] sm:$0xff] %v1777_v2  ;;  %v2330_v9 = vmax.f32 %v1773_v51, %v1777_v2  ;;  %2202 = vst [vmem:[%s7355_s27 + $0x60] sm:$0xff] %v2003_v3  ;;  %v2390_v10 = vmax.f32 %v1999_v42, %v2003_v3  ;;  %2159 = vmatprep.mubr.bf16.mxu1 %v6521_v1  ;;  %4280 = vmatpush1.bf16.msra.mxu1 %v5962_v54  ;;  %v5994_v51 = vld [vmem:[%s8622_s9 + $0x1ac] ss:$16 sps:$4 sm:$0xff]   ;;  %v5992_v42 = vld [vmem:[%s8622_s9 + $0x1a8] ss:$16 sps:$4 sm:$0xff]  }
 0x35f   : > { %2199 = vst [vmem:[%s7355_s27 + $0x48] sm:$0xff] %v1779_v7  ;;  %v2345_v43 = vmax.f32 %v1775_v55, %v1779_v7  ;;  %2203 = vst [vmem:[%s7355_s27 + $0x68] sm:$0xff] %v2005_v8  ;;  %v2405_v60 = vmax.f32 %v2001_v57, %v2005_v8  ;;  %4281 = vmatprep.subr.bf16.mxu1 %v5970_v0  ;;  %v6012_v54 = vld [vmem:[%s8622_s9 + $0x20c] ss:$16 sps:$4 sm:$0xff]  }
 0x361   : > { %v1782_v14 = vpop.f32.mrb[20].mxu1  ;;  %v2008_v15 = vpop.f32.mrb[20].mxu0 }
 0x362   : > { %v1783_v16 = vadd.f32 %v1782_v14, %v7320_v35  ;;  %v2009_v17 = vadd.f32 %v2008_v15, %v7323_v36  ;;  %v1784_v18 = vpop.f32.mrb[21].mxu1  ;;  %v2010_v19 = vpop.f32.mrb[21].mxu0  ;;  %4282 = vmatpush1.bf16.msra.mxu1 %v5968_v11 }
 0x363   : > { %v1785_v21 = vadd.f32 %v1784_v18, %v7331_v44  ;;  %v2011_v24 = vadd.f32 %v2010_v19, %v7334_v37  ;;  %v1786_v40 = vpop.f32.mrb[22].mxu1  ;;  %v2012_v20 = vpop.f32.mrb[22].mxu0  ;;  %4283 = vmatprep.subr.bf16.mxu1 %v5976_v62 }
 0x364   : > { %2206 = vst [vmem:[%s7355_s27 + $0x80] sm:$0xff] %v1783_v16  ;;  %v2331_v23 = vmax.f32 %v2330_v9, %v1783_v16  ;;  %2210 = vst [vmem:[%s7355_s27 + $0xa0] sm:$0xff] %v2009_v17  ;;  %v2391_v25 = vmax.f32 %v2390_v10, %v2009_v17  ;;  %v1787_v45 = vadd.f32 %v1786_v40, %v7320_v35  ;;  %v1788_v26 = vpop.f32.mrb[23].mxu1  ;;  %v2014_v27 = vpop.f32.mrb[23].mxu0 }
 0x365   : > { %v2013_v39 = vadd.f32 %v2012_v20, %v7323_v36  ;;  %2207 = vst [vmem:[%s7355_s27 + $0x88] sm:$0xff] %v1785_v21  ;;  %v2346_v30 = vmax.f32 %v2345_v43, %v1785_v21  ;;  %2211 = vst [vmem:[%s7355_s27 + $0xa8] sm:$0xff] %v2011_v24  ;;  %v2406_v41 = vmax.f32 %v2405_v60, %v2011_v24  ;;  %2160 = vmatmul.mubr.bf16.gmra.mrb[100].mxu1 %v7077_v61  ;;  %v5988_v61 = vld [vmem:[%s8622_s9 + $0x18c] ss:$16 sps:$4 sm:$0xff]  }
 0x366   : > { %v1789_v33 = vadd.f32 %v1788_v26, %v7331_v44  ;;  %v2015_v59 = vadd.f32 %v2014_v27, %v7334_v37  ;;  %2214 = vst [vmem:[%s7355_s27 + $0xc0] sm:$0xff] %v1787_v45  ;;  %v2332_v56 = vmax.f32 %v2331_v23, %v1787_v45  ;;  %2169 = vmatprep.mubr.bf16.mxu1 %v6521_v1 }
 0x367   : > { %2218 = vst [vmem:[%s7355_s27 + $0xe0] sm:$0xff] %v2013_v39  ;;  %v2392_v38 = vmax.f32 %v2391_v25, %v2013_v39  ;;  %4284 = vmatpush1.bf16.msra.mxu1 %v5974_v49 }
 0x368   : > { %2215 = vst [vmem:[%s7355_s27 + $0xc8] sm:$0xff] %v1789_v33  ;;  %v2347_v47 = vmax.f32 %v2346_v30, %v1789_v33  ;;  %2219 = vst [vmem:[%s7355_s27 + $0xe8] sm:$0xff] %v2015_v59  ;;  %v2407_v48 = vmax.f32 %v2406_v41, %v2015_v59  ;;  %4285 = vmatprep.subr.bf16.mxu1 %v5982_v22 }
 0x36b   : > { %4286 = vmatpush1.bf16.msra.mxu1 %v5980_v46 }
 0x36c   : > { %4287 = vmatprep.subr.bf16.mxu1 %v5988_v61 }
 0x36d   : > { %2170 = vmatmul.mubr.bf16.gmra.mrb[104].mxu1 %v7095_v13  ;;  %v6004_v13 = vld [vmem:[%s8622_s9 + $0x1e8] ss:$16 sps:$4 sm:$0xff]  }
 0x36e   : > { %2179 = vmatprep.mubr.bf16.mxu1 %v6521_v1  ;;  %v6006_v1 = vld [vmem:[%s8622_s9 + $0x1ec] ss:$16 sps:$4 sm:$0xff]  }
 0x36f   : > { %4288 = vmatpush1.bf16.msra.mxu1 %v5986_v50 }
 0x370   : > { %4289 = vmatprep.subr.bf16.mxu1 %v5994_v51 }
 0x373   : > { %4290 = vmatpush1.bf16.msra.mxu1 %v5992_v42 }
 0x374   : > { %4291 = vmatprep.subr.bf16.mxu1 %v6000_v52 }
 0x375   : > { %2180 = vmatmul.mubr.bf16.gmra.mrb[108].mxu1 %v7093_v12 }
 0x377   : > { %4292 = vmatpush1.bf16.msra.mxu1 %v5998_v53 }
 0x378   : > { %4293 = vmatprep.subr.bf16.mxu1 %v6006_v1 }
 0x37a   : > { %v1792_v55 = vpop.f32.mrb[24].mxu1  ;;  %v2018_v57 = vpop.f32.mrb[24].mxu0 }
 0x37b   : > { %4294 = vmatpush1.bf16.msra.mxu1 %v6004_v13  ;;  %v1793_v58 = vadd.f32 %v1792_v55, %v7320_v35  ;;  %v2019_v63 = vadd.f32 %v2018_v57, %v7323_v36  ;;  %v1794_v12 = vpop.f32.mrb[25].mxu1  ;;  %v2020_v0 = vpop.f32.mrb[25].mxu0 }
 0x37c   : > { %4304 = vmatprep.subr.bf16.mxu1 %v6012_v54  ;;  %v1795_v2 = vadd.f32 %v1794_v12, %v7331_v44  ;;  %v2021_v3 = vadd.f32 %v2020_v0, %v7334_v37  ;;  %v1796_v4 = vpop.f32.mrb[26].mxu1  ;;  %v2022_v5 = vpop.f32.mrb[26].mxu0 }
 0x37d   : > { %2222 = vst [vmem:[%s7355_s27 + $0x100] sm:$0xff] %v1793_v58  ;;  %v2333_v6 = vmax.f32 %v2332_v56, %v1793_v58  ;;  %2226 = vst [vmem:[%s7355_s27 + $0x120] sm:$0xff] %v2019_v63  ;;  %v2393_v7 = vmax.f32 %v2392_v38, %v2019_v63  ;;  %v1797_v8 = vadd.f32 %v1796_v4, %v7320_v35  ;;  %v1798_v10 = vpop.f32.mrb[27].mxu1  ;;  %v2024_v11 = vpop.f32.mrb[27].mxu0 }
 0x37e   : > { %v2023_v9 = vadd.f32 %v2022_v5, %v7323_v36  ;;  %2223 = vst [vmem:[%s7355_s27 + $0x108] sm:$0xff] %v1795_v2  ;;  %v2348_v43 = vmax.f32 %v2347_v47, %v1795_v2  ;;  %2227 = vst [vmem:[%s7355_s27 + $0x128] sm:$0xff] %v2021_v3  ;;  %v2408_v60 = vmax.f32 %v2407_v48, %v2021_v3 }
 0x37f   : > { %v1799_v62 = vadd.f32 %v1798_v10, %v7331_v44  ;;  %v2025_v14 = vadd.f32 %v2024_v11, %v7334_v37  ;;  %2230 = vst [vmem:[%s7355_s27 + $0x140] sm:$0xff] %v1797_v8  ;;  %v2334_v15 = vmax.f32 %v2333_v6, %v1797_v8 }
 0x380   : > { %2234 = vst [vmem:[%s7355_s27 + $0x160] sm:$0xff] %v2023_v9  ;;  %v2394_v16 = vmax.f32 %v2393_v7, %v2023_v9 }
 0x381   : > { %2231 = vst [vmem:[%s7355_s27 + $0x148] sm:$0xff] %v1799_v62  ;;  %v2349_v17 = vmax.f32 %v2348_v43, %v1799_v62  ;;  %2235 = vst [vmem:[%s7355_s27 + $0x168] sm:$0xff] %v2025_v14  ;;  %v2409_v18 = vmax.f32 %v2408_v60, %v2025_v14 }
 0x382   : > { %v1802_v19 = vpop.f32.mrb[28].mxu1  ;;  %v2028_v49 = vpop.f32.mrb[28].mxu0 }
 0x383   : > { %v1803_v21 = vadd.f32 %v1802_v19, %v7320_v35  ;;  %v2029_v24 = vadd.f32 %v2028_v49, %v7323_v36  ;;  %v1804_v40 = vpop.f32.mrb[29].mxu1  ;;  %v2030_v20 = vpop.f32.mrb[29].mxu0 }
 0x384   : > { %v1805_v22 = vadd.f32 %v1804_v40, %v7331_v44  ;;  %v2031_v23 = vadd.f32 %v2030_v20, %v7334_v37  ;;  %v1806_v25 = vpop.f32.mrb[30].mxu1  ;;  %v2032_v45 = vpop.f32.mrb[30].mxu0 }
 0x385   : > { %2238 = vst [vmem:[%s7355_s27 + $0x180] sm:$0xff] %v1803_v21  ;;  %v2335_v39 = vmax.f32 %v2334_v15, %v1803_v21  ;;  %2242 = vst [vmem:[%s7355_s27 + $0x1a0] sm:$0xff] %v2029_v24  ;;  %v2395_v26 = vmax.f32 %v2394_v16, %v2029_v24  ;;  %v1807_v27 = vadd.f32 %v1806_v25, %v7320_v35  ;;  %v1808_v41 = vpop.f32.mrb[31].mxu1  ;;  %v2034_v33 = vpop.f32.mrb[31].mxu0 }
 0x386   : > { %v2033_v30 = vadd.f32 %v2032_v45, %v7323_v36  ;;  %2239 = vst [vmem:[%s7355_s27 + $0x188] sm:$0xff] %v1805_v22  ;;  %v2350_v59 = vmax.f32 %v2349_v17, %v1805_v22  ;;  %2243 = vst [vmem:[%s7355_s27 + $0x1a8] sm:$0xff] %v2031_v23  ;;  %v2410_v56 = vmax.f32 %v2409_v18, %v2031_v23 }
 0x387   : > { %v1809_v38 = vadd.f32 %v1808_v41, %v7331_v44  ;;  %v2035_v46 = vadd.f32 %v2034_v33, %v7334_v37  ;;  %2246 = vst [vmem:[%s7355_s27 + $0x1c0] sm:$0xff] %v1807_v27  ;;  %v2336_v47 = vmax.f32 %v2335_v39, %v1807_v27 }
 0x388   : > { %2250 = vst [vmem:[%s7355_s27 + $0x1e0] sm:$0xff] %v2033_v30  ;;  %v2396_v48 = vmax.f32 %v2395_v26, %v2033_v30 }
 0x389   : > { %2247 = vst [vmem:[%s7355_s27 + $0x1c8] sm:$0xff] %v1809_v38  ;;  %v2351_v61 = vmax.f32 %v2350_v59, %v1809_v38  ;;  %2251 = vst [vmem:[%s7355_s27 + $0x1e8] sm:$0xff] %v2035_v46  ;;  %v2411_v50 = vmax.f32 %v2410_v56, %v2035_v46 }
 0x39f   : > { %v1812_v51 = vpop.f32.mrb[32].mxu1  ;;  %v2038_v42 = vpop.f32.mrb[32].mxu0 }
 0x3a0   : > { %v1813_v52 = vadd.f32 %v1812_v51, %v7320_v35  ;;  %v2039_v53 = vadd.f32 %v2038_v42, %v7323_v36  ;;  %v1814_v1 = vpop.f32.mrb[33].mxu1  ;;  %v2040_v13 = vpop.f32.mrb[33].mxu0 }
 0x3a1   : > { %v1815_v54 = vadd.f32 %v1814_v1, %v7331_v44  ;;  %v2041_v55 = vadd.f32 %v2040_v13, %v7334_v37  ;;  %v1816_v57 = vpop.f32.mrb[34].mxu1  ;;  %v2042_v58 = vpop.f32.mrb[34].mxu0 }
 0x3a2   : > { %2254 = vst [vmem:[%s7355_s27 + $0x200] sm:$0xff] %v1813_v52  ;;  %v2337_v63 = vmax.f32 %v2336_v47, %v1813_v52  ;;  %2258 = vst [vmem:[%s7355_s27 + $0x220] sm:$0xff] %v2039_v53  ;;  %v2397_v12 = vmax.f32 %v2396_v48, %v2039_v53  ;;  %v1817_v0 = vadd.f32 %v1816_v57, %v7320_v35  ;;  %v1818_v3 = vpop.f32.mrb[35].mxu1  ;;  %v2044_v4 = vpop.f32.mrb[35].mxu0 }
 0x3a3   : > { %v2043_v2 = vadd.f32 %v2042_v58, %v7323_v36  ;;  %2255 = vst [vmem:[%s7355_s27 + $0x208] sm:$0xff] %v1815_v54  ;;  %v2352_v5 = vmax.f32 %v2351_v61, %v1815_v54  ;;  %2259 = vst [vmem:[%s7355_s27 + $0x228] sm:$0xff] %v2041_v55  ;;  %v2412_v6 = vmax.f32 %v2411_v50, %v2041_v55 }
 0x3a4   : > { %v1819_v7 = vadd.f32 %v1818_v3, %v7331_v44  ;;  %v2045_v8 = vadd.f32 %v2044_v4, %v7334_v37  ;;  %2262 = vst [vmem:[%s7355_s27 + $0x240] sm:$0xff] %v1817_v0  ;;  %v2338_v9 = vmax.f32 %v2337_v63, %v1817_v0 }
 0x3a5   : > { %2266 = vst [vmem:[%s7355_s27 + $0x260] sm:$0xff] %v2043_v2  ;;  %v2398_v10 = vmax.f32 %v2397_v12, %v2043_v2 }
 0x3a6   : > { %2263 = vst [vmem:[%s7355_s27 + $0x248] sm:$0xff] %v1819_v7  ;;  %v2353_v11 = vmax.f32 %v2352_v5, %v1819_v7  ;;  %2267 = vst [vmem:[%s7355_s27 + $0x268] sm:$0xff] %v2045_v8  ;;  %v2413_v43 = vmax.f32 %v2412_v6, %v2045_v8 }
 0x3a7   : > { %v1822_v60 = vpop.f32.mrb[36].mxu1  ;;  %v2048_v62 = vpop.f32.mrb[36].mxu0 }
 0x3a8   : > { %v1823_v14 = vadd.f32 %v1822_v60, %v7320_v35  ;;  %v2049_v15 = vadd.f32 %v2048_v62, %v7323_v36  ;;  %v1824_v16 = vpop.f32.mrb[37].mxu1  ;;  %v2050_v17 = vpop.f32.mrb[37].mxu0 }
 0x3a9   : > { %v1825_v18 = vadd.f32 %v1824_v16, %v7331_v44  ;;  %v2051_v19 = vadd.f32 %v2050_v17, %v7334_v37  ;;  %v1826_v49 = vpop.f32.mrb[38].mxu1  ;;  %v2052_v21 = vpop.f32.mrb[38].mxu0 }
 0x3aa   : > { %2270 = vst [vmem:[%s7355_s27 + $0x280] sm:$0xff] %v1823_v14  ;;  %v2339_v24 = vmax.f32 %v2338_v9, %v1823_v14  ;;  %2274 = vst [vmem:[%s7355_s27 + $0x2a0] sm:$0xff] %v2049_v15  ;;  %v2399_v40 = vmax.f32 %v2398_v10, %v2049_v15  ;;  %v1827_v20 = vadd.f32 %v1826_v49, %v7320_v35  ;;  %v1828_v23 = vpop.f32.mrb[39].mxu1  ;;  %v2054_v25 = vpop.f32.mrb[39].mxu0  ;;  %v1392_v15 = vsub.s32 3, %v6731_v28 }
 0x3ab   : > { %v2053_v22 = vadd.f32 %v2052_v21, %v7323_v36  ;;  %2271 = vst [vmem:[%s7355_s27 + $0x288] sm:$0xff] %v1825_v18  ;;  %v2354_v45 = vmax.f32 %v2353_v11, %v1825_v18  ;;  %2275 = vst [vmem:[%s7355_s27 + $0x2a8] sm:$0xff] %v2051_v19  ;;  %v2414_v39 = vmax.f32 %v2413_v43, %v2051_v19 }
 0x3ac   : > { %v1829_v26 = vadd.f32 %v1828_v23, %v7331_v44  ;;  %v2055_v27 = vadd.f32 %v2054_v25, %v7334_v37  ;;  %2278 = vst [vmem:[%s7355_s27 + $0x2c0] sm:$0xff] %v1827_v20  ;;  %v2340_v30 = vmax.f32 %v2339_v24, %v1827_v20 }
 0x3ad   : > { %2282 = vst [vmem:[%s7355_s27 + $0x2e0] sm:$0xff] %v2053_v22  ;;  %v2400_v41 = vmax.f32 %v2399_v40, %v2053_v22 }
 0x3ae   : > { %2279 = vst [vmem:[%s7355_s27 + $0x2c8] sm:$0xff] %v1829_v26  ;;  %v2355_v33 = vmax.f32 %v2354_v45, %v1829_v26  ;;  %2283 = vst [vmem:[%s7355_s27 + $0x2e8] sm:$0xff] %v2055_v27  ;;  %v2415_v59 = vmax.f32 %v2414_v39, %v2055_v27 }
 0x3c0   : > { %v1832_v56 = vpop.f32.mrb[40].mxu1  ;;  %v2058_v38 = vpop.f32.mrb[40].mxu0 }
 0x3c1   : > { %v1833_v46 = vadd.f32 %v1832_v56, %v7320_v35  ;;  %v2059_v47 = vadd.f32 %v2058_v38, %v7323_v36  ;;  %v1834_v48 = vpop.f32.mrb[41].mxu1  ;;  %v2060_v61 = vpop.f32.mrb[41].mxu0 }
 0x3c2   : > { %v1835_v50 = vadd.f32 %v1834_v48, %v7331_v44  ;;  %v2061_v51 = vadd.f32 %v2060_v61, %v7334_v37  ;;  %v1836_v42 = vpop.f32.mrb[42].mxu1  ;;  %v2062_v52 = vpop.f32.mrb[42].mxu0 }
 0x3c3   : > { %2286 = vst [vmem:[%s7355_s27 + $0x300] sm:$0xff] %v1833_v46  ;;  %v2341_v53 = vmax.f32 %v2340_v30, %v1833_v46  ;;  %2290 = vst [vmem:[%s7355_s27 + $0x320] sm:$0xff] %v2059_v47  ;;  %v2401_v1 = vmax.f32 %v2400_v41, %v2059_v47  ;;  %v1837_v13 = vadd.f32 %v1836_v42, %v7320_v35  ;;  %v1838_v55 = vpop.f32.mrb[43].mxu1  ;;  %v2064_v57 = vpop.f32.mrb[43].mxu0 }
 0x3c4   : > { %v2063_v54 = vadd.f32 %v2062_v52, %v7323_v36  ;;  %2287 = vst [vmem:[%s7355_s27 + $0x308] sm:$0xff] %v1835_v50  ;;  %v2356_v58 = vmax.f32 %v2355_v33, %v1835_v50  ;;  %2291 = vst [vmem:[%s7355_s27 + $0x328] sm:$0xff] %v2061_v51  ;;  %v2416_v63 = vmax.f32 %v2415_v59, %v2061_v51 }
 0x3c5   : > { %v1839_v12 = vadd.f32 %v1838_v55, %v7331_v44  ;;  %v2065_v0 = vadd.f32 %v2064_v57, %v7334_v37  ;;  %2294 = vst [vmem:[%s7355_s27 + $0x340] sm:$0xff] %v1837_v13  ;;  %v2342_v2 = vmax.f32 %v2341_v53, %v1837_v13 }
 0x3c6   : > { %2298 = vst [vmem:[%s7355_s27 + $0x360] sm:$0xff] %v2063_v54  ;;  %v2402_v3 = vmax.f32 %v2401_v1, %v2063_v54 }
 0x3c7   : > { %2295 = vst [vmem:[%s7355_s27 + $0x348] sm:$0xff] %v1839_v12  ;;  %v2357_v4 = vmax.f32 %v2356_v58, %v1839_v12  ;;  %2299 = vst [vmem:[%s7355_s27 + $0x368] sm:$0xff] %v2065_v0  ;;  %v2417_v5 = vmax.f32 %v2416_v63, %v2065_v0 }
 0x3c8   : > { %v1842_v6 = vpop.f32.mrb[44].mxu1  ;;  %v2068_v7 = vpop.f32.mrb[44].mxu0 }
 0x3c9   : > { %v1843_v8 = vadd.f32 %v1842_v6, %v7320_v35  ;;  %v2069_v9 = vadd.f32 %v2068_v7, %v7323_v36  ;;  %v1844_v10 = vpop.f32.mrb[45].mxu1  ;;  %v2070_v11 = vpop.f32.mrb[45].mxu0  ;;  %v6007_v6 = vld [vmem:[%s8622_s9 + $0x200] ss:$16 sps:$4 sm:$0xff]   ;;  %v6010_v7 = vld [vmem:[%s8622_s9 + $0x208] ss:$16 sps:$4 sm:$0xff]  }
 0x3ca   : > { %v1845_v43 = vadd.f32 %v1844_v10, %v7331_v44  ;;  %v2071_v60 = vadd.f32 %v2070_v11, %v7334_v37  ;;  %v1846_v62 = vpop.f32.mrb[46].mxu1  ;;  %v2072_v14 = vpop.f32.mrb[46].mxu0  ;;  %v6015_v10 = vld [vmem:[%s8622_s9 + $0x224] ss:$16 sps:$4 sm:$0xff]   ;;  %v6018_v11 = vld [vmem:[%s8622_s9 + $0x22c] ss:$16 sps:$4 sm:$0xff]  }
 0x3cb   : > { %2302 = vst [vmem:[%s7355_s27 + $0x380] sm:$0xff] %v1843_v8  ;;  %v2343_v16 = vmax.f32 %v2342_v2, %v1843_v8  ;;  %2306 = vst [vmem:[%s7355_s27 + $0x3a0] sm:$0xff] %v2069_v9  ;;  %v2403_v17 = vmax.f32 %v2402_v3, %v2069_v9  ;;  %v1847_v18 = vadd.f32 %v1846_v62, %v7320_v35  ;;  %v1848_v49 = vpop.f32.mrb[47].mxu1  ;;  %v2074_v21 = vpop.f32.mrb[47].mxu0  ;;  %v6013_v62 = vld [vmem:[%s8622_s9 + $0x220] ss:$16 sps:$4 sm:$0xff]  }
 0x3cc   : > { %v2073_v19 = vadd.f32 %v2072_v14, %v7323_v36  ;;  %2303 = vst [vmem:[%s7355_s27 + $0x388] sm:$0xff] %v1845_v43  ;;  %v2358_v24 = vmax.f32 %v2357_v4, %v1845_v43  ;;  %2307 = vst [vmem:[%s7355_s27 + $0x3a8] sm:$0xff] %v2071_v60  ;;  %v2418_v40 = vmax.f32 %v2417_v5, %v2071_v60  ;;  %v6016_v14 = vld [vmem:[%s8622_s9 + $0x228] ss:$16 sps:$4 sm:$0xff]  }
 0x3cd   : > { %v1849_v20 = vadd.f32 %v1848_v49, %v7331_v44  ;;  %v2075_v22 = vadd.f32 %v2074_v21, %v7334_v37  ;;  %2310 = vst [vmem:[%s7355_s27 + $0x3c0] sm:$0xff] %v1847_v18  ;;  %v2344_v23 = vmax.f32 %v2343_v16, %v1847_v18  ;;  %v7536_v35 = vrot.slane %v7304_v29, %v6743_v34  ;;  %v6021_v18 = vld [vmem:[%s8622_s9 + $0x244] ss:$16 sps:$4 sm:$0xff]  }
 0x3ce   : > { %2314 = vst [vmem:[%s7355_s27 + $0x3e0] sm:$0xff] %v2073_v19  ;;  %v7532_v25 = vmax.f32 %v2403_v17, %v2073_v19  ;;  %v7545_v44 = vrot.slane %v7304_v29, %v1392_v15  ;;  %v6024_v19 = vld [vmem:[%s8622_s9 + $0x24c] ss:$16 sps:$4 sm:$0xff]  }
 0x3cf   : > { %2311 = vst [vmem:[%s7355_s27 + $0x3c8] sm:$0xff] %v1849_v20  ;;  %v2359_v36 = vmax.f32 %v2358_v24, %v1849_v20  ;;  %2315 = vst [vmem:[%s7355_s27 + $0x3e8] sm:$0xff] %v2075_v22  ;;  %v7540_v45 = vmax.f32 %v2418_v40, %v2075_v22  ;;  %v2485_v37 = vrot.slane %v2344_v23, 4 }
 0x3d0   : > { %v1885_v26 = vpop.f32.mrb[48].mxu1 }
 0x3d1   : > { %v2491_v39 = vrot.slane %v2359_v36, 4  ;;  %v2486_v27 = vmax.f32 %v2344_v23, %v2485_v37  ;;  %v1886_v30 = vadd.f32 %v1885_v26, %v7536_v35  ;;  %v1887_v41 = vpop.f32.mrb[49].mxu1  ;;  %v6022_v37 = vld [vmem:[%s8622_s9 + $0x248] ss:$16 sps:$4 sm:$0xff]   ;;  %v6027_v26 = vld [vmem:[%s8622_s9 + $0x264] ss:$16 sps:$4 sm:$0xff]  }
 0x3d2   : > { %v1888_v59 = vadd.f32 %v1887_v41, %v7545_v44  ;;  %v1889_v56 = vpop.f32.mrb[50].mxu1 }
 0x3d3   : > { %v2492_v33 = vmax.f32 %v2359_v36, %v2491_v39  ;;  %v2487_v38 = vrot.slane %v2486_v27, 2  ;;  %2192 = vst [vmem:[%s7355_s27 + $0x10] sm:$0xff] %v1886_v30  ;;  %v1890_v46 = vadd.f32 %v1889_v56, %v7536_v35  ;;  %v1891_v47 = vpop.f32.mrb[51].mxu1  ;;  %v6019_v36 = vld [vmem:[%s8622_s9 + $0x240] ss:$16 sps:$4 sm:$0xff]  }
 0x3d4   : > { %2193 = vst [vmem:[%s7355_s27 + $0x18] sm:$0xff] %v1888_v59  ;;  %v1892_v48 = vadd.f32 %v1891_v47, %v7545_v44  ;;  %v6036_v47 = vld [vmem:[%s8622_s9 + $0x28c] ss:$16 sps:$4 sm:$0xff]  }
 0x3d5   : > { %v2493_v29 = vrot.slane %v2492_v33, 2  ;;  %v2488_v61 = vmax.f32 %v2486_v27, %v2487_v38  ;;  %2200 = vst [vmem:[%s7355_s27 + $0x50] sm:$0xff] %v1890_v46  ;;  %v2360_v50 = vmax.f32 %v1886_v30, %v1890_v46  ;;  %v6030_v27 = vld [vmem:[%s8622_s9 + $0x26c] ss:$16 sps:$4 sm:$0xff]   ;;  %v6033_v46 = vld [vmem:[%s8622_s9 + $0x284] ss:$16 sps:$4 sm:$0xff]  }
 0x3d6   : > { %2201 = vst [vmem:[%s7355_s27 + $0x58] sm:$0xff] %v1892_v48  ;;  %v2375_v51 = vmax.f32 %v1888_v59, %v1892_v48  ;;  %v6028_v59 = vld [vmem:[%s8622_s9 + $0x268] ss:$16 sps:$4 sm:$0xff]  }
 0x3d7   : > { %v2494_v42 = vmax.f32 %v2492_v33, %v2493_v29  ;;  %v2489_v52 = vrot.slane %v2488_v61, 1  ;;  %v6025_v33 = vld [vmem:[%s8622_s9 + $0x260] ss:$16 sps:$4 sm:$0xff]  }
 0x3d8   : > { %v1895_v53 = vpop.f32.mrb[52].mxu1 }
 0x3d9   : > { %v2495_v1 = vrot.slane %v2494_v42, 1  ;;  %v2490_v13 = vmax.f32 %v2488_v61, %v2489_v52  ;;  %v1896_v54 = vadd.f32 %v1895_v53, %v7536_v35  ;;  %v1897_v55 = vpop.f32.mrb[53].mxu1  ;;  %v6031_v53 = vld [vmem:[%s8622_s9 + $0x280] ss:$16 sps:$4 sm:$0xff]  }
 0x3da   : > { %v1898_v57 = vadd.f32 %v1897_v55, %v7545_v44  ;;  %v1899_v58 = vpop.f32.mrb[54].mxu1  ;;  %v6042_v55 = vld [vmem:[%s8622_s9 + $0x2ac] ss:$16 sps:$4 sm:$0xff]  }
 0x3db   : > { %v2496_v63 = vmax.f32 %v2494_v42, %v2495_v1  ;;  %2208 = vst [vmem:[%s7355_s27 + $0x90] sm:$0xff] %v1896_v54  ;;  %v2361_v12 = vmax.f32 %v2360_v50, %v1896_v54  ;;  %v1900_v0 = vadd.f32 %v1899_v58, %v7536_v35  ;;  %v1901_v2 = vpop.f32.mrb[55].mxu1  ;;  %v2533_v8 = vpack.c.bf16 %v2490_v13, %v2490_v13  ;;  %v6034_v1 = vld [vmem:[%s8622_s9 + $0x288] ss:$16 sps:$4 sm:$0xff]   ;;  %v6039_v54 = vld [vmem:[%s8622_s9 + $0x2a4] ss:$16 sps:$4 sm:$0xff]  }
 0x3dc   : > { %2209 = vst [vmem:[%s7355_s27 + $0x98] sm:$0xff] %v1898_v57  ;;  %v2376_v3 = vmax.f32 %v2375_v51, %v1898_v57  ;;  %v1902_v4 = vadd.f32 %v1901_v2, %v7545_v44 }
 0x3dd   : > { %v2534_v5 = vpack.c.bf16 %v2496_v63, %v2496_v63  ;;  %2216 = vst [vmem:[%s7355_s27 + $0xd0] sm:$0xff] %v1900_v0  ;;  %v2362_v9 = vmax.f32 %v2361_v12, %v1900_v0  ;;  %v6037_v63 = vld [vmem:[%s8622_s9 + $0x2a0] ss:$16 sps:$4 sm:$0xff]   ;;  %v6040_v12 = vld [vmem:[%s8622_s9 + $0x2a8] ss:$16 sps:$4 sm:$0xff]  }
 0x3de   : > { %2217 = vst [vmem:[%s7355_s27 + $0xd8] sm:$0xff] %v1902_v4  ;;  %v2377_v43 = vmax.f32 %v2376_v3, %v1902_v4  ;;  %v6045_v3 = vld [vmem:[%s8622_s9 + $0x2c4] ss:$16 sps:$4 sm:$0xff]   ;;  %v6048_v4 = vld [vmem:[%s8622_s9 + $0x2cc] ss:$16 sps:$4 sm:$0xff]  }
 0x3df   : > { %4131 = vmatprep.mubr.bf16.mxu0 %v2534_v5  ;;  %4295 = vmatprep.mubr.bf16.mxu1 %v2534_v5 }
 0x3e0   : > { %4132 = vmatmul.mubr.bf16.vlgmr.msra.gmra.mrb[48].mxu0 %v2533_v8  ;;  %4296 = vmatmul.mubr.bf16.vlgmr.msra.gmra.mrb[112].mxu1 %v2533_v8  ;;  %v1905_v60 = vpop.f32.mrb[56].mxu1 }
 0x3e1   : > { %4141 = vmatpush1.bf16.msra.mxu0 %v6007_v6  ;;  %4305 = vmatpush1.bf16.msra.mxu1 %v6010_v7  ;;  %v1906_v16 = vadd.f32 %v1905_v60, %v7536_v35  ;;  %v1907_v17 = vpop.f32.mrb[57].mxu1  ;;  %v6046_v60 = vld [vmem:[%s8622_s9 + $0x2c8] ss:$16 sps:$4 sm:$0xff]  }
 0x3e2   : > { %4142 = vmatprep.subr.bf16.mxu0 %v6015_v10  ;;  %4306 = vmatprep.subr.bf16.mxu1 %v6018_v11  ;;  %v1908_v49 = vadd.f32 %v1907_v17, %v7545_v44  ;;  %v1909_v21 = vpop.f32.mrb[58].mxu1 }
 0x3e3   : > { %2224 = vst [vmem:[%s7355_s27 + $0x110] sm:$0xff] %v1906_v16  ;;  %v2363_v24 = vmax.f32 %v2362_v9, %v1906_v16  ;;  %v1910_v40 = vadd.f32 %v1909_v21, %v7536_v35  ;;  %v1911_v20 = vpop.f32.mrb[59].mxu1  ;;  %v6054_v16 = vld [vmem:[%s8622_s9 + $0x2ec] ss:$16 sps:$4 sm:$0xff]  }
 0x3e4   : > { %2225 = vst [vmem:[%s7355_s27 + $0x118] sm:$0xff] %v1908_v49  ;;  %v2378_v22 = vmax.f32 %v2377_v43, %v1908_v49  ;;  %v1912_v23 = vadd.f32 %v1911_v20, %v7545_v44  ;;  %v6043_v43 = vld [vmem:[%s8622_s9 + $0x2c0] ss:$16 sps:$4 sm:$0xff]   ;;  %v6052_v49 = vld [vmem:[%s8622_s9 + $0x2e8] ss:$16 sps:$4 sm:$0xff]  }
 0x3e5   : > { %4143 = vmatpush1.bf16.msra.mxu0 %v6013_v62  ;;  %4307 = vmatpush1.bf16.msra.mxu1 %v6016_v14  ;;  %2232 = vst [vmem:[%s7355_s27 + $0x150] sm:$0xff] %v1910_v40  ;;  %v2364_v39 = vmax.f32 %v2363_v24, %v1910_v40  ;;  %v6051_v14 = vld [vmem:[%s8622_s9 + $0x2e4] ss:$16 sps:$4 sm:$0xff]   ;;  %v6060_v20 = vld [vmem:[%s8622_s9 + $0x30c] ss:$16 sps:$4 sm:$0xff]  }
 0x3e6   : > { %4144 = vmatprep.subr.bf16.mxu0 %v6021_v18  ;;  %4308 = vmatprep.subr.bf16.mxu1 %v6024_v19  ;;  %2233 = vst [vmem:[%s7355_s27 + $0x158] sm:$0xff] %v1912_v23  ;;  %v2379_v30 = vmax.f32 %v2378_v22, %v1912_v23  ;;  %v6049_v19 = vld [vmem:[%s8622_s9 + $0x2e0] ss:$16 sps:$4 sm:$0xff]   ;;  %v6057_v40 = vld [vmem:[%s8622_s9 + $0x304] ss:$16 sps:$4 sm:$0xff]  }
 0x3e8   : > { %v1915_v41 = vpop.f32.mrb[60].mxu1 }
 0x3e9   : > { %4145 = vmatpush1.bf16.msra.mxu0 %v6019_v36  ;;  %4309 = vmatpush1.bf16.msra.mxu1 %v6022_v37  ;;  %v1916_v56 = vadd.f32 %v1915_v41, %v7536_v35  ;;  %v1917_v38 = vpop.f32.mrb[61].mxu1  ;;  %v6058_v41 = vld [vmem:[%s8622_s9 + $0x308] ss:$16 sps:$4 sm:$0xff]  }
 0x3ea   : > { %4146 = vmatprep.subr.bf16.mxu0 %v6027_v26  ;;  %4310 = vmatprep.subr.bf16.mxu1 %v6030_v27  ;;  %v1918_v29 = vadd.f32 %v1917_v38, %v7545_v44  ;;  %v1919_v48 = vpop.f32.mrb[62].mxu1 }
 0x3eb   : > { %2240 = vst [vmem:[%s7355_s27 + $0x190] sm:$0xff] %v1916_v56  ;;  %v2365_v61 = vmax.f32 %v2364_v39, %v1916_v56  ;;  %v1920_v50 = vadd.f32 %v1919_v48, %v7536_v35  ;;  %v1921_v51 = vpop.f32.mrb[63].mxu1  ;;  %v6066_v56 = vld [vmem:[%s8622_s9 + $0x32c] ss:$16 sps:$4 sm:$0xff]  }
 0x3ec   : > { %2241 = vst [vmem:[%s7355_s27 + $0x198] sm:$0xff] %v1918_v29  ;;  %v2380_v42 = vmax.f32 %v2379_v30, %v1918_v29  ;;  %v1922_v52 = vadd.f32 %v1921_v51, %v7545_v44  ;;  %v6055_v30 = vld [vmem:[%s8622_s9 + $0x300] ss:$16 sps:$4 sm:$0xff]   ;;  %v6064_v29 = vld [vmem:[%s8622_s9 + $0x328] ss:$16 sps:$4 sm:$0xff]  }
 0x3ed   : > { %4147 = vmatpush1.bf16.msra.mxu0 %v6025_v33  ;;  %4311 = vmatpush1.bf16.msra.mxu1 %v6028_v59  ;;  %2248 = vst [vmem:[%s7355_s27 + $0x1d0] sm:$0xff] %v1920_v50  ;;  %v2366_v13 = vmax.f32 %v2365_v61, %v1920_v50  ;;  %v6063_v59 = vld [vmem:[%s8622_s9 + $0x324] ss:$16 sps:$4 sm:$0xff]   ;;  %v6072_v51 = vld [vmem:[%s8622_s9 + $0x34c] ss:$16 sps:$4 sm:$0xff]  }
 0x3ee   : > { %4148 = vmatprep.subr.bf16.mxu0 %v6033_v46  ;;  %4312 = vmatprep.subr.bf16.mxu1 %v6036_v47  ;;  %2249 = vst [vmem:[%s7355_s27 + $0x1d8] sm:$0xff] %v1922_v52  ;;  %v2381_v57 = vmax.f32 %v2380_v42, %v1922_v52  ;;  %v6061_v47 = vld [vmem:[%s8622_s9 + $0x320] ss:$16 sps:$4 sm:$0xff]   ;;  %v6069_v50 = vld [vmem:[%s8622_s9 + $0x344] ss:$16 sps:$4 sm:$0xff]  }
 0x3f0   : > { %v1925_v58 = vpop.f32.mrb[64].mxu1 }
 0x3f1   : > { %4149 = vmatpush1.bf16.msra.mxu0 %v6031_v53  ;;  %4313 = vmatpush1.bf16.msra.mxu1 %v6034_v1  ;;  %v1926_v0 = vadd.f32 %v1925_v58, %v7536_v35  ;;  %v1927_v2 = vpop.f32.mrb[65].mxu1  ;;  %v6070_v58 = vld [vmem:[%s8622_s9 + $0x348] ss:$16 sps:$4 sm:$0xff]  }
 0x3f2   : > { %4150 = vmatprep.subr.bf16.mxu0 %v6039_v54  ;;  %4314 = vmatprep.subr.bf16.mxu1 %v6042_v55  ;;  %v1928_v5 = vadd.f32 %v1927_v2, %v7545_v44  ;;  %v1929_v6 = vpop.f32.mrb[66].mxu1 }
 0x3f3   : > { %2256 = vst [vmem:[%s7355_s27 + $0x210] sm:$0xff] %v1926_v0  ;;  %v2367_v7 = vmax.f32 %v2366_v13, %v1926_v0  ;;  %v1930_v8 = vadd.f32 %v1929_v6, %v7536_v35  ;;  %v1931_v9 = vpop.f32.mrb[67].mxu1  ;;  %v6078_v0 = vld [vmem:[%s8622_s9 + $0x36c] ss:$16 sps:$4 sm:$0xff]   ;;  %v6076_v6 = vld [vmem:[%s8622_s9 + $0x368] ss:$16 sps:$4 sm:$0xff]  }
 0x3f4   : > { %2257 = vst [vmem:[%s7355_s27 + $0x218] sm:$0xff] %v1928_v5  ;;  %v2382_v10 = vmax.f32 %v2381_v57, %v1928_v5  ;;  %v1932_v11 = vadd.f32 %v1931_v9, %v7545_v44  ;;  %v6067_v57 = vld [vmem:[%s8622_s9 + $0x340] ss:$16 sps:$4 sm:$0xff]   ;;  %v6081_v9 = vld [vmem:[%s8622_s9 + $0x384] ss:$16 sps:$4 sm:$0xff]  }
 0x3f5   : > { %4151 = vmatpush1.bf16.msra.mxu0 %v6037_v63  ;;  %4315 = vmatpush1.bf16.msra.mxu1 %v6040_v12  ;;  %2264 = vst [vmem:[%s7355_s27 + $0x250] sm:$0xff] %v1930_v8  ;;  %v2368_v62 = vmax.f32 %v2367_v7, %v1930_v8  ;;  %v6075_v12 = vld [vmem:[%s8622_s9 + $0x364] ss:$16 sps:$4 sm:$0xff]   ;;  %v6073_v5 = vld [vmem:[%s8622_s9 + $0x360] ss:$16 sps:$4 sm:$0xff]  }
 0x3f6   : > { %4152 = vmatprep.subr.bf16.mxu0 %v6045_v3  ;;  %4316 = vmatprep.subr.bf16.mxu1 %v6048_v4  ;;  %2265 = vst [vmem:[%s7355_s27 + $0x258] sm:$0xff] %v1932_v11  ;;  %v2383_v17 = vmax.f32 %v2382_v10, %v1932_v11  ;;  %v2515_v3 = vrot.slane %v7540_v45, 4  ;;  %v6084_v10 = vld [vmem:[%s8622_s9 + $0x38c] ss:$16 sps:$4 sm:$0xff]   ;;  %v1404_v11 = vsub.s32 6, %v6731_v28 }
 0x3f8   : > { %v1935_v18 = vpop.f32.mrb[68].mxu1 }
 0x3f9   : > { %4153 = vmatpush1.bf16.msra.mxu0 %v6043_v43  ;;  %4317 = vmatpush1.bf16.msra.mxu1 %v6046_v60  ;;  %v1936_v21 = vadd.f32 %v1935_v18, %v7536_v35  ;;  %v1937_v24 = vpop.f32.mrb[69].mxu1 }
 0x3fa   : > { %4154 = vmatprep.subr.bf16.mxu0 %v6051_v14  ;;  %4318 = vmatprep.subr.bf16.mxu1 %v6054_v16  ;;  %v1938_v22 = vadd.f32 %v1937_v24, %v7545_v44  ;;  %v1939_v23 = vpop.f32.mrb[70].mxu1  ;;  %v2516_v14 = vmax.f32 %v7540_v45, %v2515_v3  ;;  %v6082_v45 = vld [vmem:[%s8622_s9 + $0x388] ss:$16 sps:$4 sm:$0xff]   ;;  %v6097_v3 = vld [vmem:[%s8622_s9 + $0x3e0] ss:$16 sps:$4 sm:$0xff]  }
 0x3fb   : > { %2272 = vst [vmem:[%s7355_s27 + $0x290] sm:$0xff] %v1936_v21  ;;  %v2369_v36 = vmax.f32 %v2368_v62, %v1936_v21  ;;  %v1940_v37 = vadd.f32 %v1939_v23, %v7536_v35  ;;  %v1941_v39 = vpop.f32.mrb[71].mxu1  ;;  %v1408_v62 = vsub.s32 7, %v6731_v28  ;;  %v6079_v21 = vld [vmem:[%s8622_s9 + $0x380] ss:$16 sps:$4 sm:$0xff]  }
 0x3fc   : > { %2273 = vst [vmem:[%s7355_s27 + $0x298] sm:$0xff] %v1938_v22  ;;  %v2384_v26 = vmax.f32 %v2383_v17, %v1938_v22  ;;  %v1942_v27 = vadd.f32 %v1941_v39, %v7545_v44  ;;  %v6343_v28 = vld [vmem:[%s8624_s11 + $0x100] ss:$8 sps:$4 sm:$0xff]  }
 0x3fd   : > { %4155 = vmatpush1.bf16.msra.mxu0 %v6049_v19  ;;  %4319 = vmatpush1.bf16.msra.mxu1 %v6052_v49  ;;  %2280 = vst [vmem:[%s7355_s27 + $0x2d0] sm:$0xff] %v1940_v37  ;;  %v2370_v33 = vmax.f32 %v2369_v36, %v1940_v37  ;;  %v2517_v36 = vrot.slane %v2516_v14, 2 }
 0x3fe   : > { %4156 = vmatprep.subr.bf16.mxu0 %v6057_v40  ;;  %4320 = vmatprep.subr.bf16.mxu1 %v6060_v20  ;;  %2281 = vst [vmem:[%s7355_s27 + $0x2d8] sm:$0xff] %v1942_v27  ;;  %v2385_v38 = vmax.f32 %v2384_v26, %v1942_v27  ;;  %v6090_v20 = vld [vmem:[%s8622_s9 + $0x3ac] ss:$16 sps:$4 sm:$0xff]   ;;  %v6085_v27 = vld [vmem:[%s8622_s9 + $0x3a0] ss:$16 sps:$4 sm:$0xff]  }
 0x400   : > { %v1945_v46 = vpop.f32.mrb[72].mxu1 }
 0x401   : > { %4157 = vmatpush1.bf16.msra.mxu0 %v6055_v30  ;;  %4321 = vmatpush1.bf16.msra.mxu1 %v6058_v41  ;;  %v1946_v48 = vadd.f32 %v1945_v46, %v7536_v35  ;;  %v1947_v61 = vpop.f32.mrb[73].mxu1  ;;  %v6088_v30 = vld [vmem:[%s8622_s9 + $0x3a8] ss:$16 sps:$4 sm:$0xff]  }
 0x402   : > { %4158 = vmatprep.subr.bf16.mxu0 %v6063_v59  ;;  %4322 = vmatprep.subr.bf16.mxu1 %v6066_v56  ;;  %v1948_v42 = vadd.f32 %v1947_v61, %v7545_v44  ;;  %v1949_v52 = vpop.f32.mrb[74].mxu1  ;;  %v6093_v56 = vld [vmem:[%s8622_s9 + $0x3c4] ss:$16 sps:$4 sm:$0xff]  }
 0x403   : > { %2288 = vst [vmem:[%s7355_s27 + $0x310] sm:$0xff] %v1946_v48  ;;  %v2371_v53 = vmax.f32 %v2370_v33, %v1946_v48  ;;  %v1950_v1 = vadd.f32 %v1949_v52, %v7536_v35  ;;  %v1951_v13 = vpop.f32.mrb[75].mxu1 }
 0x404   : > { %2289 = vst [vmem:[%s7355_s27 + $0x318] sm:$0xff] %v1948_v42  ;;  %v2386_v54 = vmax.f32 %v2385_v38, %v1948_v42  ;;  %v1952_v55 = vadd.f32 %v1951_v13, %v7545_v44  ;;  %v6096_v38 = vld [vmem:[%s8622_s9 + $0x3cc] ss:$16 sps:$4 sm:$0xff]  }
 0x405   : > { %4159 = vmatpush1.bf16.msra.mxu0 %v6061_v47  ;;  %4323 = vmatpush1.bf16.msra.mxu1 %v6064_v29  ;;  %2296 = vst [vmem:[%s7355_s27 + $0x350] sm:$0xff] %v1950_v1  ;;  %v2372_v63 = vmax.f32 %v2371_v53, %v1950_v1  ;;  %v6091_v53 = vld [vmem:[%s8622_s9 + $0x3c0] ss:$16 sps:$4 sm:$0xff]   ;;  %v6094_v1 = vld [vmem:[%s8622_s9 + $0x3c8] ss:$16 sps:$4 sm:$0xff]  }
 0x406   : > { %4160 = vmatprep.subr.bf16.mxu0 %v6069_v50  ;;  %4324 = vmatprep.subr.bf16.mxu1 %v6072_v51  ;;  %2297 = vst [vmem:[%s7355_s27 + $0x358] sm:$0xff] %v1952_v55  ;;  %v2387_v2 = vmax.f32 %v2386_v54, %v1952_v55  ;;  %v2518_v51 = vmax.f32 %v2516_v14, %v2517_v36  ;;  %v6099_v55 = vld [vmem:[%s8622_s9 + $0x3e4] ss:$16 sps:$4 sm:$0xff]  }
 0x408   : > { %v1955_v4 = vpop.f32.mrb[76].mxu1 }
 0x409   : > { %4161 = vmatpush1.bf16.msra.mxu0 %v6067_v57  ;;  %4325 = vmatpush1.bf16.msra.mxu1 %v6070_v58  ;;  %v1956_v7 = vadd.f32 %v1955_v4, %v7536_v35  ;;  %v1957_v8 = vpop.f32.mrb[77].mxu1  ;;  %v6102_v57 = vld [vmem:[%s8622_s9 + $0x3ec] ss:$16 sps:$4 sm:$0xff]   ;;  %v6100_v4 = vld [vmem:[%s8622_s9 + $0x3e8] ss:$16 sps:$4 sm:$0xff]  }
 0x40a   : > { %4162 = vmatprep.subr.bf16.mxu0 %v6075_v12  ;;  %4326 = vmatprep.subr.bf16.mxu1 %v6078_v0  ;;  %v1958_v43 = vadd.f32 %v1957_v8, %v7545_v44  ;;  %v1959_v60 = vpop.f32.mrb[78].mxu1  ;;  %v2519_v0 = vrot.slane %v2518_v51, 1  ;;  %v6105_v8 = vld [vmem:[%s8622_s9 + $0x404] ss:$16 sps:$4 sm:$0xff]  }
 0x40b   : > { %2304 = vst [vmem:[%s7355_s27 + $0x390] sm:$0xff] %v1956_v7  ;;  %v2373_v16 = vmax.f32 %v2372_v63, %v1956_v7  ;;  %v1960_v17 = vadd.f32 %v1959_v60, %v7536_v35  ;;  %v1961_v18 = vpop.f32.mrb[79].mxu1  ;;  %v6407_v35 = vld [vmem:[%s8621_s8] sm:$0xff] }
 0x40c   : > { %2305 = vst [vmem:[%s7355_s27 + $0x398] sm:$0xff] %v1958_v43  ;;  %v2388_v19 = vmax.f32 %v2387_v2, %v1958_v43  ;;  %v1962_v49 = vadd.f32 %v1961_v18, %v7545_v44  ;;  %v7767_v40 = vrot.slane %v6407_v35, %v1404_v11  ;;  %v6087_v44 = vld [vmem:[%s8622_s9 + $0x3a4] ss:$16 sps:$4 sm:$0xff]   ;;  %v7776_v23 = vrot.slane %v6407_v35, %v1408_v62 }
 0x40d   : > { %4163 = vmatpush1.bf16.msra.mxu0 %v6073_v5  ;;  %4327 = vmatpush1.bf16.msra.mxu1 %v6076_v6  ;;  %2312 = vst [vmem:[%s7355_s27 + $0x3d0] sm:$0xff] %v1960_v17  ;;  %v2374_v24 = vmax.f32 %v2373_v16, %v1960_v17  ;;  %v2520_v17 = vmax.f32 %v2518_v51, %v2519_v0 }
 0x40e   : > { %4164 = vmatprep.subr.bf16.mxu0 %v6081_v9  ;;  %4328 = vmatprep.subr.bf16.mxu1 %v6084_v10  ;;  %2313 = vst [vmem:[%s7355_s27 + $0x3d8] sm:$0xff] %v1962_v49  ;;  %v2389_v22 = vmax.f32 %v2388_v19, %v1962_v49  ;;  %v6108_v9 = vld [vmem:[%s8622_s9 + $0x40c] ss:$16 sps:$4 sm:$0xff]  }
 0x40f   : > { %v2497_v37 = vrot.slane %v2374_v24, 4  ;;  %v2538_v36 = vpack.c.bf16 %v2520_v17, %v2520_v17 }
 0x410   : > { %v2503_v39 = vrot.slane %v2389_v22, 4  ;;  %v2111_v26 = vpop.f32.mrb[80].mxu1 }
 0x411   : > { %4165 = vmatpush1.bf16.msra.mxu0 %v6079_v21  ;;  %4329 = vmatpush1.bf16.msra.mxu1 %v6082_v45  ;;  %v2498_v41 = vmax.f32 %v2374_v24, %v2497_v37  ;;  %v2112_v33 = vadd.f32 %v2111_v26, %v7767_v40  ;;  %v2113_v59 = vpop.f32.mrb[81].mxu1  ;;  %v6103_v21 = vld [vmem:[%s8622_s9 + $0x400] ss:$16 sps:$4 sm:$0xff]   ;;  %v6106_v45 = vld [vmem:[%s8622_s9 + $0x408] ss:$16 sps:$4 sm:$0xff]  }
 0x412   : > { %4166 = vmatprep.subr.bf16.mxu0 %v6087_v44  ;;  %4330 = vmatprep.subr.bf16.mxu1 %v6090_v20  ;;  %v2504_v46 = vmax.f32 %v2389_v22, %v2503_v39  ;;  %v2114_v47 = vadd.f32 %v2113_v59, %v7776_v23  ;;  %v2115_v29 = vpop.f32.mrb[82].mxu1  ;;  %v6111_v20 = vld [vmem:[%s8622_s9 + $0x424] ss:$16 sps:$4 sm:$0xff]   ;;  %v6114_v22 = vld [vmem:[%s8622_s9 + $0x42c] ss:$16 sps:$4 sm:$0xff]  }
 0x413   : > { %v2499_v48 = vrot.slane %v2498_v41, 2  ;;  %2196 = vst [vmem:[%s7355_s27 + $0x30] sm:$0xff] %v2112_v33  ;;  %v2116_v61 = vadd.f32 %v2115_v29, %v7767_v40  ;;  %v2117_v50 = vpop.f32.mrb[83].mxu1  ;;  %v6109_v39 = vld [vmem:[%s8622_s9 + $0x420] ss:$16 sps:$4 sm:$0xff]  }
 0x414   : > { %v2505_v42 = vrot.slane %v2504_v46, 2  ;;  %2197 = vst [vmem:[%s7355_s27 + $0x38] sm:$0xff] %v2114_v47  ;;  %v2118_v52 = vadd.f32 %v2117_v50, %v7776_v23  ;;  %v6112_v26 = vld [vmem:[%s8622_s9 + $0x428] ss:$16 sps:$4 sm:$0xff]  }
 0x415   : > { %4167 = vmatpush1.bf16.msra.mxu0 %v6085_v27  ;;  %4331 = vmatpush1.bf16.msra.mxu1 %v6088_v30  ;;  %v2500_v13 = vmax.f32 %v2498_v41, %v2499_v48  ;;  %2204 = vst [vmem:[%s7355_s27 + $0x70] sm:$0xff] %v2116_v61  ;;  %v2420_v54 = vmax.f32 %v2112_v33, %v2116_v61  ;;  %v6117_v41 = vld [vmem:[%s8622_s9 + $0x444] ss:$16 sps:$4 sm:$0xff]   ;;  %v6120_v33 = vld [vmem:[%s8622_s9 + $0x44c] ss:$16 sps:$4 sm:$0xff]  }
 0x416   : > { %4168 = vmatprep.subr.bf16.mxu0 %v6093_v56  ;;  %4332 = vmatprep.subr.bf16.mxu1 %v6096_v38  ;;  %2205 = vst [vmem:[%s7355_s27 + $0x78] sm:$0xff] %v2118_v52  ;;  %v2435_v58 = vmax.f32 %v2114_v47, %v2118_v52  ;;  %v2506_v63 = vmax.f32 %v2504_v46, %v2505_v42  ;;  %v6115_v61 = vld [vmem:[%s8622_s9 + $0x440] ss:$16 sps:$4 sm:$0xff]   ;;  %v6118_v50 = vld [vmem:[%s8622_s9 + $0x448] ss:$16 sps:$4 sm:$0xff]  }
 0x417   : > { %v2501_v12 = vrot.slane %v2500_v13, 1  ;;  %v6123_v42 = vld [vmem:[%s8622_s9 + $0x464] ss:$16 sps:$4 sm:$0xff]   ;;  %v6126_v52 = vld [vmem:[%s8622_s9 + $0x46c] ss:$16 sps:$4 sm:$0xff]  }
 0x418   : > { %v2121_v2 = vpop.f32.mrb[84].mxu1  ;;  %v2507_v5 = vrot.slane %v2506_v63, 1 }
 0x419   : > { %4169 = vmatpush1.bf16.msra.mxu0 %v6091_v53  ;;  %4333 = vmatpush1.bf16.msra.mxu1 %v6094_v1  ;;  %v2122_v6 = vadd.f32 %v2121_v2, %v7767_v40  ;;  %v2123_v7 = vpop.f32.mrb[85].mxu1  ;;  %v2502_v10 = vmax.f32 %v2500_v13, %v2501_v12  ;;  %v6121_v13 = vld [vmem:[%s8622_s9 + $0x460] ss:$16 sps:$4 sm:$0xff]  }
 0x41a   : > { %4170 = vmatprep.subr.bf16.mxu0 %v6099_v55  ;;  %4334 = vmatprep.subr.bf16.mxu1 %v6102_v57  ;;  %v2124_v11 = vadd.f32 %v2123_v7, %v7776_v23  ;;  %v2125_v43 = vpop.f32.mrb[86].mxu1  ;;  %v2508_v60 = vmax.f32 %v2506_v63, %v2507_v5  ;;  %v6132_v63 = vld [vmem:[%s8622_s9 + $0x48c] ss:$16 sps:$4 sm:$0xff]   ;;  %v6127_v7 = vld [vmem:[%s8622_s9 + $0x480] ss:$16 sps:$4 sm:$0xff]  }
 0x41b   : > { %2212 = vst [vmem:[%s7355_s27 + $0xb0] sm:$0xff] %v2122_v6  ;;  %v2421_v62 = vmax.f32 %v2420_v54, %v2122_v6  ;;  %v2126_v14 = vadd.f32 %v2125_v43, %v7767_v40  ;;  %v2127_v16 = vpop.f32.mrb[87].mxu1  ;;  %v2535_v35 = vpack.c.bf16 %v2502_v10, %v2502_v10  ;;  %v6124_v54 = vld [vmem:[%s8622_s9 + $0x468] ss:$16 sps:$4 sm:$0xff]   ;;  %v6135_v10 = vld [vmem:[%s8622_s9 + $0x4a4] ss:$16 sps:$4 sm:$0xff]  }
 0x41c   : > { %2213 = vst [vmem:[%s7355_s27 + $0xb8] sm:$0xff] %v2124_v11  ;;  %v2436_v18 = vmax.f32 %v2435_v58, %v2124_v11  ;;  %v2128_v19 = vadd.f32 %v2127_v16, %v7776_v23  ;;  %v2536_v49 = vpack.c.bf16 %v2508_v60, %v2508_v60  ;;  %v6129_v58 = vld [vmem:[%s8622_s9 + $0x484] ss:$16 sps:$4 sm:$0xff]   ;;  %v6138_v11 = vld [vmem:[%s8622_s9 + $0x4ac] ss:$16 sps:$4 sm:$0xff]  }
 0x41d   : > { %4171 = vmatpush1.bf16.msra.mxu0 %v6097_v3  ;;  %4335 = vmatpush1.bf16.msra.mxu1 %v6100_v4  ;;  %2220 = vst [vmem:[%s7355_s27 + $0xf0] sm:$0xff] %v2126_v14  ;;  %v2422_v24 = vmax.f32 %v2421_v62, %v2126_v14  ;;  %v6133_v62 = vld [vmem:[%s8622_s9 + $0x4a0] ss:$16 sps:$4 sm:$0xff]   ;;  %v6136_v14 = vld [vmem:[%s8622_s9 + $0x4a8] ss:$16 sps:$4 sm:$0xff]  }
 0x41e   : > { %4181 = vmatprep.subr.bf16.mxu0 %v6105_v8  ;;  %4345 = vmatprep.subr.bf16.mxu1 %v6108_v9  ;;  %2221 = vst [vmem:[%s7355_s27 + $0xf8] sm:$0xff] %v2128_v19  ;;  %v2437_v44 = vmax.f32 %v2436_v18, %v2128_v19  ;;  %v6130_v8 = vld [vmem:[%s8622_s9 + $0x488] ss:$16 sps:$4 sm:$0xff]   ;;  %v6141_v18 = vld [vmem:[%s8622_s9 + $0x4c4] ss:$16 sps:$4 sm:$0xff]  }
 0x41f   : > { %4172 = vmatprep.mubr.bf16.mxu0 %v2536_v49  ;;  %4336 = vmatprep.mubr.bf16.mxu1 %v2536_v49  ;;  %v6144_v19 = vld [vmem:[%s8622_s9 + $0x4cc] ss:$16 sps:$4 sm:$0xff]  }
 0x420   : > { %4173 = vmatmul.mubr.bf16.vlgmr.msra.gmra.mrb[48].mxu0 %v2535_v35  ;;  %4337 = vmatmul.mubr.bf16.vlgmr.msra.gmra.mrb[112].mxu1 %v2535_v35  ;;  %v2131_v37 = vpop.f32.mrb[88].mxu1 }
 0x421   : > { %4182 = vmatpush1.bf16.msra.mxu0 %v6103_v21  ;;  %4346 = vmatpush1.bf16.msra.mxu1 %v6106_v45  ;;  %v2132_v27 = vadd.f32 %v2131_v37, %v7767_v40  ;;  %v2133_v30 = vpop.f32.mrb[89].mxu1 }
 0x422   : > { %4213 = vmatprep.mubr.bf16.mxu0 %v2538_v36  ;;  %4377 = vmatprep.mubr.bf16.mxu1 %v2538_v36  ;;  %v2134_v59 = vadd.f32 %v2133_v30, %v7776_v23  ;;  %v2135_v56 = vpop.f32.mrb[90].mxu1  ;;  %v6142_v36 = vld [vmem:[%s8622_s9 + $0x4c8] ss:$16 sps:$4 sm:$0xff]  }
 0x423   : > { %4183 = vmatprep.subr.bf16.mxu0 %v6111_v20  ;;  %4347 = vmatprep.subr.bf16.mxu1 %v6114_v22  ;;  %2228 = vst [vmem:[%s7355_s27 + $0x130] sm:$0xff] %v2132_v27  ;;  %v2423_v38 = vmax.f32 %v2422_v24, %v2132_v27  ;;  %v2136_v46 = vadd.f32 %v2135_v56, %v7767_v40  ;;  %v2137_v47 = vpop.f32.mrb[91].mxu1  ;;  %v6139_v22 = vld [vmem:[%s8622_s9 + $0x4c0] ss:$16 sps:$4 sm:$0xff]  }
 0x424   : > { %2229 = vst [vmem:[%s7355_s27 + $0x138] sm:$0xff] %v2134_v59  ;;  %v2438_v29 = vmax.f32 %v2437_v44, %v2134_v59  ;;  %v2138_v48 = vadd.f32 %v2137_v47, %v7776_v23 }
 0x425   : > { %4184 = vmatpush1.bf16.msra.mxu0 %v6109_v39  ;;  %4348 = vmatpush1.bf16.msra.mxu1 %v6112_v26  ;;  %2236 = vst [vmem:[%s7355_s27 + $0x170] sm:$0xff] %v2136_v46  ;;  %v2424_v51 = vmax.f32 %v2423_v38, %v2136_v46  ;;  %v6147_v39 = vld [vmem:[%s8622_s9 + $0x4e4] ss:$16 sps:$4 sm:$0xff]   ;;  %v6150_v26 = vld [vmem:[%s8622_s9 + $0x4ec] ss:$16 sps:$4 sm:$0xff]  }
 0x426   : > { %4185 = vmatprep.subr.bf16.mxu0 %v6117_v41  ;;  %4349 = vmatprep.subr.bf16.mxu1 %v6120_v33  ;;  %2237 = vst [vmem:[%s7355_s27 + $0x178] sm:$0xff] %v2138_v48  ;;  %v2439_v53 = vmax.f32 %v2438_v29, %v2138_v48  ;;  %v6145_v41 = vld [vmem:[%s8622_s9 + $0x4e0] ss:$16 sps:$4 sm:$0xff]   ;;  %v6148_v33 = vld [vmem:[%s8622_s9 + $0x4e8] ss:$16 sps:$4 sm:$0xff]  }
 0x427   : > { %v6153_v38 = vld [vmem:[%s8622_s9 + $0x504] ss:$16 sps:$4 sm:$0xff]   ;;  %v6156_v46 = vld [vmem:[%s8622_s9 + $0x50c] ss:$16 sps:$4 sm:$0xff]  }
 0x428   : > { %v2141_v1 = vpop.f32.mrb[92].mxu1 }
 0x429   : > { %4186 = vmatpush1.bf16.msra.mxu0 %v6115_v61  ;;  %4350 = vmatpush1.bf16.msra.mxu1 %v6118_v50  ;;  %v2142_v55 = vadd.f32 %v2141_v1, %v7767_v40  ;;  %v2143_v57 = vpop.f32.mrb[93].mxu1 }
 0x42a   : > { %4187 = vmatprep.subr.bf16.mxu0 %v6123_v42  ;;  %4351 = vmatprep.subr.bf16.mxu1 %v6126_v52  ;;  %v2144_v12 = vadd.f32 %v2143_v57, %v7776_v23  ;;  %v2145_v0 = vpop.f32.mrb[94].mxu1  ;;  %v6151_v52 = vld [vmem:[%s8622_s9 + $0x500] ss:$16 sps:$4 sm:$0xff]  }
 0x42b   : > { %2244 = vst [vmem:[%s7355_s27 + $0x1b0] sm:$0xff] %v2142_v55  ;;  %v2425_v2 = vmax.f32 %v2424_v51, %v2142_v55  ;;  %v2146_v3 = vadd.f32 %v2145_v0, %v7767_v40  ;;  %v2147_v4 = vpop.f32.mrb[95].mxu1 }
 0x42c   : > { %2245 = vst [vmem:[%s7355_s27 + $0x1b8] sm:$0xff] %v2144_v12  ;;  %v2440_v5 = vmax.f32 %v2439_v53, %v2144_v12  ;;  %v2148_v6 = vadd.f32 %v2147_v4, %v7776_v23  ;;  %v6154_v53 = vld [vmem:[%s8622_s9 + $0x508] ss:$16 sps:$4 sm:$0xff]  }
 0x42d   : > { %4188 = vmatpush1.bf16.msra.mxu0 %v6121_v13  ;;  %4352 = vmatpush1.bf16.msra.mxu1 %v6124_v54  ;;  %2252 = vst [vmem:[%s7355_s27 + $0x1f0] sm:$0xff] %v2146_v3  ;;  %v2426_v9 = vmax.f32 %v2425_v2, %v2146_v3  ;;  %v6159_v13 = vld [vmem:[%s8622_s9 + $0x524] ss:$16 sps:$4 sm:$0xff]   ;;  %v6162_v54 = vld [vmem:[%s8622_s9 + $0x52c] ss:$16 sps:$4 sm:$0xff]  }
 0x42e   : > { %4189 = vmatprep.subr.bf16.mxu0 %v6129_v58  ;;  %4353 = vmatprep.subr.bf16.mxu1 %v6132_v63  ;;  %2253 = vst [vmem:[%s7355_s27 + $0x1f8] sm:$0xff] %v2148_v6  ;;  %v2441_v43 = vmax.f32 %v2440_v5, %v2148_v6  ;;  %v6157_v58 = vld [vmem:[%s8622_s9 + $0x520] ss:$16 sps:$4 sm:$0xff]   ;;  %v6160_v63 = vld [vmem:[%s8622_s9 + $0x528] ss:$16 sps:$4 sm:$0xff]  }
 0x42f   : > { %v6165_v2 = vld [vmem:[%s8622_s9 + $0x544] ss:$16 sps:$4 sm:$0xff]   ;;  %v6168_v3 = vld [vmem:[%s8622_s9 + $0x54c] ss:$16 sps:$4 sm:$0xff]  }
 0x430   : > { %v2151_v60 = vpop.f32.mrb[96].mxu1 }
 0x431   : > { %4190 = vmatpush1.bf16.msra.mxu0 %v6127_v7  ;;  %4354 = vmatpush1.bf16.msra.mxu1 %v6130_v8  ;;  %v2152_v16 = vadd.f32 %v2151_v60, %v7767_v40  ;;  %v2153_v17 = vpop.f32.mrb[97].mxu1  ;;  %v2509_v60 = vrot.slane %v7532_v25, 4 }
 0x432   : > { %4191 = vmatprep.subr.bf16.mxu0 %v6135_v10  ;;  %4355 = vmatprep.subr.bf16.mxu1 %v6138_v11  ;;  %v2154_v49 = vadd.f32 %v2153_v17, %v7776_v23  ;;  %v2155_v21 = vpop.f32.mrb[98].mxu1  ;;  %v6163_v11 = vld [vmem:[%s8622_s9 + $0x540] ss:$16 sps:$4 sm:$0xff]  }
 0x433   : > { %2260 = vst [vmem:[%s7355_s27 + $0x230] sm:$0xff] %v2152_v16  ;;  %v2427_v45 = vmax.f32 %v2426_v9, %v2152_v16  ;;  %v2156_v24 = vadd.f32 %v2155_v21, %v7767_v40  ;;  %v2157_v35 = vpop.f32.mrb[99].mxu1  ;;  %v6174_v16 = vld [vmem:[%s8622_s9 + $0x56c] ss:$16 sps:$4 sm:$0xff]   ;;  %v2510_v21 = vmax.f32 %v7532_v25, %v2509_v60  ;;  %v6214_v60 = vld [vmem:[%s8622_s9 + $0x648] ss:$16 sps:$4 sm:$0xff]  }
 0x434   : > { %2261 = vst [vmem:[%s7355_s27 + $0x238] sm:$0xff] %v2154_v49  ;;  %v2442_v44 = vmax.f32 %v2441_v43, %v2154_v49  ;;  %v2158_v20 = vadd.f32 %v2157_v35, %v7776_v23  ;;  %v6166_v43 = vld [vmem:[%s8622_s9 + $0x548] ss:$16 sps:$4 sm:$0xff]   ;;  %v6177_v35 = vld [vmem:[%s8622_s9 + $0x584] ss:$16 sps:$4 sm:$0xff]  }
 0x435   : > { %4192 = vmatpush1.bf16.msra.mxu0 %v6133_v62  ;;  %4356 = vmatpush1.bf16.msra.mxu1 %v6136_v14  ;;  %2268 = vst [vmem:[%s7355_s27 + $0x270] sm:$0xff] %v2156_v24  ;;  %v2428_v37 = vmax.f32 %v2427_v45, %v2156_v24  ;;  %v6171_v14 = vld [vmem:[%s8622_s9 + $0x564] ss:$16 sps:$4 sm:$0xff]   ;;  %v6172_v49 = vld [vmem:[%s8622_s9 + $0x568] ss:$16 sps:$4 sm:$0xff]  }
 0x436   : > { %4193 = vmatprep.subr.bf16.mxu0 %v6141_v18  ;;  %4357 = vmatprep.subr.bf16.mxu1 %v6144_v19  ;;  %2269 = vst [vmem:[%s7355_s27 + $0x278] sm:$0xff] %v2158_v20  ;;  %v2443_v27 = vmax.f32 %v2442_v44, %v2158_v20  ;;  %v6169_v19 = vld [vmem:[%s8622_s9 + $0x560] ss:$16 sps:$4 sm:$0xff]   ;;  %v6180_v44 = vld [vmem:[%s8622_s9 + $0x58c] ss:$16 sps:$4 sm:$0xff]  }
 0x438   : > { %v2161_v30 = vpop.f32.mrb[100].mxu1 }
 0x439   : > { %4194 = vmatpush1.bf16.msra.mxu0 %v6139_v22  ;;  %4358 = vmatpush1.bf16.msra.mxu1 %v6142_v36  ;;  %v2162_v59 = vadd.f32 %v2161_v30, %v7767_v40  ;;  %v2163_v56 = vpop.f32.mrb[101].mxu1  ;;  %v6178_v30 = vld [vmem:[%s8622_s9 + $0x588] ss:$16 sps:$4 sm:$0xff]  }
 0x43a   : > { %4195 = vmatprep.subr.bf16.mxu0 %v6147_v39  ;;  %4359 = vmatprep.subr.bf16.mxu1 %v6150_v26  ;;  %v2164_v47 = vadd.f32 %v2163_v56, %v7776_v23  ;;  %v2165_v29 = vpop.f32.mrb[102].mxu1 }
 0x43b   : > { %2276 = vst [vmem:[%s7355_s27 + $0x2b0] sm:$0xff] %v2162_v59  ;;  %v2429_v48 = vmax.f32 %v2428_v37, %v2162_v59  ;;  %v2166_v61 = vadd.f32 %v2165_v29, %v7767_v40  ;;  %v2167_v50 = vpop.f32.mrb[103].mxu1  ;;  %v6189_v29 = vld [vmem:[%s8622_s9 + $0x5c4] ss:$16 sps:$4 sm:$0xff]  }
 0x43c   : > { %2277 = vst [vmem:[%s7355_s27 + $0x2b8] sm:$0xff] %v2164_v47  ;;  %v2444_v51 = vmax.f32 %v2443_v27, %v2164_v47  ;;  %v2168_v42 = vadd.f32 %v2167_v50, %v7776_v23  ;;  %v6175_v27 = vld [vmem:[%s8622_s9 + $0x580] ss:$16 sps:$4 sm:$0xff]  }
 0x43d   : > { %4196 = vmatpush1.bf16.msra.mxu0 %v6145_v41  ;;  %4360 = vmatpush1.bf16.msra.mxu1 %v6148_v33  ;;  %2284 = vst [vmem:[%s7355_s27 + $0x2f0] sm:$0xff] %v2166_v61  ;;  %v2430_v1 = vmax.f32 %v2429_v48, %v2166_v61  ;;  %v2511_v41 = vrot.slane %v2510_v21, 2  ;;  %v6192_v48 = vld [vmem:[%s8622_s9 + $0x5cc] ss:$16 sps:$4 sm:$0xff]  }
 0x43e   : > { %4197 = vmatprep.subr.bf16.mxu0 %v6153_v38  ;;  %4361 = vmatprep.subr.bf16.mxu1 %v6156_v46  ;;  %2285 = vst [vmem:[%s7355_s27 + $0x2f8] sm:$0xff] %v2168_v42  ;;  %v2445_v55 = vmax.f32 %v2444_v51, %v2168_v42  ;;  %v6181_v38 = vld [vmem:[%s8622_s9 + $0x5a0] ss:$16 sps:$4 sm:$0xff]   ;;  %v6184_v46 = vld [vmem:[%s8622_s9 + $0x5a8] ss:$16 sps:$4 sm:$0xff]  }
 0x43f   : > { %v2512_v47 = vmax.f32 %v2510_v21, %v2511_v41  ;;  %v6187_v51 = vld [vmem:[%s8622_s9 + $0x5c0] ss:$16 sps:$4 sm:$0xff]   ;;  %v6190_v42 = vld [vmem:[%s8622_s9 + $0x5c8] ss:$16 sps:$4 sm:$0xff]   ;;  %v6252_v41 = vld [vmem:[%s8622_s9 + $0x70c] ss:$16 sps:$4 sm:$0xff]  }
 0x440   : > { %v2171_v57 = vpop.f32.mrb[104].mxu1  ;;  %v6226_v21 = vld [vmem:[%s8622_s9 + $0x688] ss:$16 sps:$4 sm:$0xff]  }
 0x441   : > { %4198 = vmatpush1.bf16.msra.mxu0 %v6151_v52  ;;  %4362 = vmatpush1.bf16.msra.mxu1 %v6154_v53  ;;  %v2172_v12 = vadd.f32 %v2171_v57, %v7767_v40  ;;  %v2173_v0 = vpop.f32.mrb[105].mxu1  ;;  %v2513_v52 = vrot.slane %v2512_v47, 1  ;;  %v6195_v53 = vld [vmem:[%s8622_s9 + $0x5e4] ss:$16 sps:$4 sm:$0xff]  }
 0x442   : > { %4199 = vmatprep.subr.bf16.mxu0 %v6159_v13  ;;  %4363 = vmatprep.subr.bf16.mxu1 %v6162_v54  ;;  %v2174_v4 = vadd.f32 %v2173_v0, %v7776_v23  ;;  %v2175_v5 = vpop.f32.mrb[106].mxu1  ;;  %v6193_v54 = vld [vmem:[%s8622_s9 + $0x5e0] ss:$16 sps:$4 sm:$0xff]  }
 0x443   : > { %2292 = vst [vmem:[%s7355_s27 + $0x330] sm:$0xff] %v2172_v12  ;;  %v2431_v6 = vmax.f32 %v2430_v1, %v2172_v12  ;;  %v2176_v7 = vadd.f32 %v2175_v5, %v7767_v40  ;;  %v2177_v8 = vpop.f32.mrb[107].mxu1  ;;  %v6198_v1 = vld [vmem:[%s8622_s9 + $0x5ec] ss:$16 sps:$4 sm:$0xff]   ;;  %v6202_v5 = vld [vmem:[%s8622_s9 + $0x608] ss:$16 sps:$4 sm:$0xff]  }
 0x444   : > { %2293 = vst [vmem:[%s7355_s27 + $0x338] sm:$0xff] %v2174_v4  ;;  %v2446_v9 = vmax.f32 %v2445_v55, %v2174_v4  ;;  %v2178_v10 = vadd.f32 %v2177_v8, %v7776_v23  ;;  %v6196_v55 = vld [vmem:[%s8622_s9 + $0x5e8] ss:$16 sps:$4 sm:$0xff]   ;;  %v6204_v12 = vld [vmem:[%s8622_s9 + $0x60c] ss:$16 sps:$4 sm:$0xff]  }
 0x445   : > { %4200 = vmatpush1.bf16.msra.mxu0 %v6157_v58  ;;  %4364 = vmatpush1.bf16.msra.mxu1 %v6160_v63  ;;  %2300 = vst [vmem:[%s7355_s27 + $0x370] sm:$0xff] %v2176_v7  ;;  %v2432_v62 = vmax.f32 %v2431_v6, %v2176_v7  ;;  %v2514_v58 = vmax.f32 %v2512_v47, %v2513_v52  ;;  %v6201_v63 = vld [vmem:[%s8622_s9 + $0x604] ss:$16 sps:$4 sm:$0xff]   ;;  %v6210_v7 = vld [vmem:[%s8622_s9 + $0x62c] ss:$16 sps:$4 sm:$0xff]  }
 0x446   : > { %4201 = vmatprep.subr.bf16.mxu0 %v6165_v2  ;;  %4365 = vmatprep.subr.bf16.mxu1 %v6168_v3  ;;  %2301 = vst [vmem:[%s7355_s27 + $0x378] sm:$0xff] %v2178_v10  ;;  %v2447_v17 = vmax.f32 %v2446_v9, %v2178_v10  ;;  %v6199_v2 = vld [vmem:[%s8622_s9 + $0x600] ss:$16 sps:$4 sm:$0xff]   ;;  %v6207_v6 = vld [vmem:[%s8622_s9 + $0x624] ss:$16 sps:$4 sm:$0xff]  }
 0x447   : > { %v2537_v4 = vpack.c.bf16 %v2514_v58, %v2514_v58  ;;  %v6205_v8 = vld [vmem:[%s8622_s9 + $0x620] ss:$16 sps:$4 sm:$0xff]   ;;  %v6208_v9 = vld [vmem:[%s8622_s9 + $0x628] ss:$16 sps:$4 sm:$0xff]   ;;  %v6213_v10 = vld [vmem:[%s8622_s9 + $0x644] ss:$16 sps:$4 sm:$0xff]  }
 0x448   : > { %v2181_v18 = vpop.f32.mrb[108].mxu1  ;;  %v6261_v47 = vld [vmem:[%s8622_s9 + $0x744] ss:$16 sps:$4 sm:$0xff]   ;;  %v6265_v52 = vld [vmem:[%s8622_s9 + $0x760] ss:$16 sps:$4 sm:$0xff]  }
 0x449   : > { %4202 = vmatpush1.bf16.msra.mxu0 %v6163_v11  ;;  %4366 = vmatpush1.bf16.msra.mxu1 %v6166_v43  ;;  %v2182_v45 = vadd.f32 %v2181_v18, %v7767_v40  ;;  %v2183_v24 = vpop.f32.mrb[109].mxu1  ;;  %v6216_v11 = vld [vmem:[%s8622_s9 + $0x64c] ss:$16 sps:$4 sm:$0xff]   ;;  %v6211_v43 = vld [vmem:[%s8622_s9 + $0x640] ss:$16 sps:$4 sm:$0xff]  }
 0x44a   : > { %4203 = vmatprep.subr.bf16.mxu0 %v6171_v14  ;;  %4367 = vmatprep.subr.bf16.mxu1 %v6174_v16  ;;  %v2184_v20 = vadd.f32 %v2183_v24, %v7776_v23  ;;  %v2185_v22 = vpop.f32.mrb[110].mxu1  ;;  %v6222_v14 = vld [vmem:[%s8622_s9 + $0x66c] ss:$16 sps:$4 sm:$0xff]   ;;  %v6217_v16 = vld [vmem:[%s8622_s9 + $0x660] ss:$16 sps:$4 sm:$0xff]  }
 0x44b   : > { %2308 = vst [vmem:[%s7355_s27 + $0x3b0] sm:$0xff] %v2182_v45  ;;  %v2433_v36 = vmax.f32 %v2432_v62, %v2182_v45  ;;  %v2186_v25 = vadd.f32 %v2185_v22, %v7767_v40  ;;  %v2187_v37 = vpop.f32.mrb[111].mxu1  ;;  %v6183_v40 = vld [vmem:[%s8622_s9 + $0x5a4] ss:$16 sps:$4 sm:$0xff]   ;;  %v6234_v24 = vld [vmem:[%s8622_s9 + $0x6ac] ss:$16 sps:$4 sm:$0xff]  }
 0x44c   : > { %2309 = vst [vmem:[%s7355_s27 + $0x3b8] sm:$0xff] %v2184_v20  ;;  %v2448_v39 = vmax.f32 %v2447_v17, %v2184_v20  ;;  %v2188_v26 = vadd.f32 %v2187_v37, %v7776_v23  ;;  %v6186_v23 = vld [vmem:[%s8622_s9 + $0x5ac] ss:$16 sps:$4 sm:$0xff]   ;;  %v6219_v62 = vld [vmem:[%s8622_s9 + $0x664] ss:$16 sps:$4 sm:$0xff]  }
 0x44d   : > { %4204 = vmatpush1.bf16.msra.mxu0 %v6169_v19  ;;  %4368 = vmatpush1.bf16.msra.mxu1 %v6172_v49  ;;  %2316 = vst [vmem:[%s7355_s27 + $0x3f0] sm:$0xff] %v2186_v25  ;;  %v8029_v33 = vmax.f32 %v2433_v36, %v2186_v25  ;;  %v6220_v17 = vld [vmem:[%s8622_s9 + $0x668] ss:$16 sps:$4 sm:$0xff]   ;;  %v6225_v18 = vld [vmem:[%s8622_s9 + $0x684] ss:$16 sps:$4 sm:$0xff]  }
 0x44e   : > { %4205 = vmatprep.subr.bf16.mxu0 %v6177_v35  ;;  %4369 = vmatprep.subr.bf16.mxu1 %v6180_v44  ;;  %2317 = vst [vmem:[%s7355_s27 + $0x3f8] sm:$0xff] %v2188_v26  ;;  %v2449_v59 = vmax.f32 %v2448_v39, %v2188_v26  ;;  %v6228_v19 = vld [vmem:[%s8622_s9 + $0x68c] ss:$16 sps:$4 sm:$0xff]   ;;  %v6223_v49 = vld [vmem:[%s8622_s9 + $0x680] ss:$16 sps:$4 sm:$0xff]  }
 0x44f   : > { %v6231_v45 = vld [vmem:[%s8622_s9 + $0x6a4] ss:$16 sps:$4 sm:$0xff]   ;;  %v6229_v35 = vld [vmem:[%s8622_s9 + $0x6a0] ss:$16 sps:$4 sm:$0xff]   ;;  %v6232_v44 = vld [vmem:[%s8622_s9 + $0x6a8] ss:$16 sps:$4 sm:$0xff]  }
 0x450   : > { %v2527_v56 = vrot.slane %v2449_v59, 4  ;;  %v6237_v20 = vld [vmem:[%s8622_s9 + $0x6c4] ss:$16 sps:$4 sm:$0xff]   ;;  %v6240_v22 = vld [vmem:[%s8622_s9 + $0x6cc] ss:$16 sps:$4 sm:$0xff]  }
 0x451   : > { %4206 = vmatpush1.bf16.msra.mxu0 %v6175_v27  ;;  %4370 = vmatpush1.bf16.msra.mxu1 %v6178_v30  ;;  %v6235_v36 = vld [vmem:[%s8622_s9 + $0x6c0] ss:$16 sps:$4 sm:$0xff]   ;;  %v6238_v25 = vld [vmem:[%s8622_s9 + $0x6c8] ss:$16 sps:$4 sm:$0xff]   ;;  %v6243_v37 = vld [vmem:[%s8622_s9 + $0x6e4] ss:$16 sps:$4 sm:$0xff]  }
 0x452   : > { %4207 = vmatprep.subr.bf16.mxu0 %v6183_v40  ;;  %4371 = vmatprep.subr.bf16.mxu1 %v6186_v23  ;;  %v2528_v61 = vmax.f32 %v2449_v59, %v2527_v56  ;;  %v6246_v39 = vld [vmem:[%s8622_s9 + $0x6ec] ss:$16 sps:$4 sm:$0xff]   ;;  %v6241_v26 = vld [vmem:[%s8622_s9 + $0x6e0] ss:$16 sps:$4 sm:$0xff]   ;;  %v6244_v27 = vld [vmem:[%s8622_s9 + $0x6e8] ss:$16 sps:$4 sm:$0xff]  }
 0x453   : > { %v6249_v30 = vld [vmem:[%s8622_s9 + $0x704] ss:$16 sps:$4 sm:$0xff]   ;;  %v6247_v40 = vld [vmem:[%s8622_s9 + $0x700] ss:$16 sps:$4 sm:$0xff]   ;;  %v6250_v23 = vld [vmem:[%s8622_s9 + $0x708] ss:$16 sps:$4 sm:$0xff]  }
 0x454   : > { %v2529_v50 = vrot.slane %v2528_v61, 2  ;;  %v6255_v59 = vld [vmem:[%s8622_s9 + $0x724] ss:$16 sps:$4 sm:$0xff]   ;;  %v6258_v56 = vld [vmem:[%s8622_s9 + $0x72c] ss:$16 sps:$4 sm:$0xff]  }
 0x455   : > { %4208 = vmatpush1.bf16.msra.mxu0 %v6181_v38  ;;  %4372 = vmatpush1.bf16.msra.mxu1 %v6184_v46  ;;  %v6253_v38 = vld [vmem:[%s8622_s9 + $0x720] ss:$16 sps:$4 sm:$0xff]   ;;  %v6256_v46 = vld [vmem:[%s8622_s9 + $0x728] ss:$16 sps:$4 sm:$0xff]   ;;  %v6279_v58 = vld [vmem:[%s8622_s9 + $0x7a4] ss:$16 sps:$4 sm:$0xff]  }
 0x456   : > { %4209 = vmatprep.subr.bf16.mxu0 %v6189_v29  ;;  %4373 = vmatprep.subr.bf16.mxu1 %v6192_v48  ;;  %v2530_v13 = vmax.f32 %v2528_v61, %v2529_v50  ;;  %v6264_v29 = vld [vmem:[%s8622_s9 + $0x74c] ss:$16 sps:$4 sm:$0xff]   ;;  %v6259_v48 = vld [vmem:[%s8622_s9 + $0x740] ss:$16 sps:$4 sm:$0xff]   ;;  %v2521_v61 = vrot.slane %v8029_v33, 4 }
 0x457   : > { %v6262_v50 = vld [vmem:[%s8622_s9 + $0x748] ss:$16 sps:$4 sm:$0xff]  }
 0x458   : > { %v2531_v57 = vrot.slane %v2530_v13, 1 }
 0x459   : > { %4210 = vmatpush1.bf16.msra.mxu0 %v6187_v51  ;;  %4374 = vmatpush1.bf16.msra.mxu1 %v6190_v42  ;;  %v6267_v51 = vld [vmem:[%s8622_s9 + $0x764] ss:$16 sps:$4 sm:$0xff]   ;;  %v6270_v42 = vld [vmem:[%s8622_s9 + $0x76c] ss:$16 sps:$4 sm:$0xff]  }
 0x45a   : > { %4211 = vmatprep.subr.bf16.mxu0 %v6195_v53  ;;  %4375 = vmatprep.subr.bf16.mxu1 %v6198_v1  ;;  %v2532_v0 = vmax.f32 %v2530_v13, %v2531_v57  ;;  %v2522_v53 = vmax.f32 %v8029_v33, %v2521_v61  ;;  %v6268_v1 = vld [vmem:[%s8622_s9 + $0x768] ss:$16 sps:$4 sm:$0xff]   ;;  %v6273_v13 = vld [vmem:[%s8622_s9 + $0x784] ss:$16 sps:$4 sm:$0xff]   ;;  %v6271_v33 = vld [vmem:[%s8622_s9 + $0x780] ss:$16 sps:$4 sm:$0xff]  }
 0x45b   : > { %v6274_v57 = vld [vmem:[%s8622_s9 + $0x788] ss:$16 sps:$4 sm:$0xff]  }
 0x45c   : > { %v2540_v3 = vpack.c.bf16 %v2532_v0, %v2532_v0  ;;  %v6340_v61 = vld [vmem:[%s8624_s11 + $0xf0] ss:$8 sps:$4 sm:$0xff]  }
 0x45d   : > { %4212 = vmatpush1.bf16.msra.mxu0 %v6193_v54  ;;  %4376 = vmatpush1.bf16.msra.mxu1 %v6196_v55  ;;  %v6276_v54 = vld [vmem:[%s8622_s9 + $0x78c] ss:$16 sps:$4 sm:$0xff]   ;;  %v2523_v55 = vrot.slane %v2522_v53, 2 }
 0x45e   : > { %4222 = vmatprep.subr.bf16.mxu0 %v6201_v63  ;;  %4386 = vmatprep.subr.bf16.mxu1 %v6204_v12  ;;  %v6282_v63 = vld [vmem:[%s8622_s9 + $0x7ac] ss:$16 sps:$4 sm:$0xff]   ;;  %v6277_v12 = vld [vmem:[%s8622_s9 + $0x7a0] ss:$16 sps:$4 sm:$0xff]  }
 0x45f   : > { %v2524_v0 = vmax.f32 %v2522_v53, %v2523_v55  ;;  %v6394_v53 = vld [vmem:[%s8626_s13 + $0x8] sm:$0xff]   ;;  %v6399_v55 = vld [vmem:[%s8626_s13 + $0x60] sm:$0xff]  }
 0x460   : > { %4214 = vmatmul.mubr.bf16.vlgmr.msra.gmra.mrb[48].mxu0 %v2537_v4  ;;  %4378 = vmatmul.mubr.bf16.vlgmr.msra.gmra.mrb[112].mxu1 %v2537_v4  ;;  %v6288_v4 = vld [vmem:[%s8622_s9 + $0x7cc] ss:$16 sps:$4 sm:$0xff]  }
 0x461   : > { %4223 = vmatpush1.bf16.msra.mxu0 %v6199_v2  ;;  %4254 = vmatprep.mubr.bf16.mxu0 %v2540_v3  ;;  %v6280_v2 = vld [vmem:[%s8622_s9 + $0x7a8] ss:$16 sps:$4 sm:$0xff]  }
 0x462   : > { %4387 = vmatpush1.bf16.msra.mxu1 %v6202_v5  ;;  %4418 = vmatprep.mubr.bf16.mxu1 %v2540_v3  ;;  %v6285_v3 = vld [vmem:[%s8622_s9 + $0x7c4] ss:$16 sps:$4 sm:$0xff]   ;;  %v6283_v5 = vld [vmem:[%s8622_s9 + $0x7c0] ss:$16 sps:$4 sm:$0xff]  }
 0x463   : > { %4224 = vmatprep.subr.bf16.mxu0 %v6207_v6  ;;  %4388 = vmatprep.subr.bf16.mxu1 %v6210_v7  ;;  %v2525_v6 = vrot.slane %v2524_v0, 1  ;;  %v6286_v7 = vld [vmem:[%s8622_s9 + $0x7c8] ss:$16 sps:$4 sm:$0xff]  }
 0x465   : > { %4225 = vmatpush1.bf16.msra.mxu0 %v6205_v8  ;;  %v6291_v8 = vld [vmem:[%s8622_s9 + $0x7e4] ss:$16 sps:$4 sm:$0xff]  }
 0x466   : > { %4389 = vmatpush1.bf16.msra.mxu1 %v6208_v9  ;;  %4226 = vmatprep.subr.bf16.mxu0 %v6213_v10  ;;  %v6294_v9 = vld [vmem:[%s8622_s9 + $0x7ec] ss:$16 sps:$4 sm:$0xff]   ;;  %v6289_v10 = vld [vmem:[%s8622_s9 + $0x7e0] ss:$16 sps:$4 sm:$0xff]  }
 0x467   : > { %4390 = vmatprep.subr.bf16.mxu1 %v6216_v11  ;;  %v6292_v11 = vld [vmem:[%s8622_s9 + $0x7e8] ss:$16 sps:$4 sm:$0xff]  }
 0x469   : > { %4227 = vmatpush1.bf16.msra.mxu0 %v6211_v43  ;;  %v2526_v43 = vmax.f32 %v2524_v0, %v2525_v6 }
 0x46a   : > { %4391 = vmatpush1.bf16.msra.mxu1 %v6214_v60  ;;  %4228 = vmatprep.subr.bf16.mxu0 %v6219_v62  ;;  %v6297_v60 = vld [vmem:[%s8624_s11 + $0x4] ss:$8 sps:$4 sm:$0xff]   ;;  %v6295_v62 = vld [vmem:[%s8624_s11] ss:$8 sps:$4 sm:$0xff]  }
 0x46b   : > { %4392 = vmatprep.subr.bf16.mxu1 %v6222_v14  ;;  %v2539_v14 = vpack.c.bf16 %v2526_v43, %v2526_v43 }
 0x46d   : > { %4229 = vmatpush1.bf16.msra.mxu0 %v6217_v16  ;;  %v6300_v16 = vld [vmem:[%s8624_s11 + $0x14] ss:$8 sps:$4 sm:$0xff]  }
 0x46e   : > { %4393 = vmatpush1.bf16.msra.mxu1 %v6220_v17  ;;  %4230 = vmatprep.subr.bf16.mxu0 %v6225_v18  ;;  %v6298_v17 = vld [vmem:[%s8624_s11 + $0x10] ss:$8 sps:$4 sm:$0xff]   ;;  %v6303_v18 = vld [vmem:[%s8624_s11 + $0x24] ss:$8 sps:$4 sm:$0xff]  }
 0x46f   : > { %4394 = vmatprep.subr.bf16.mxu1 %v6228_v19  ;;  %v6301_v19 = vld [vmem:[%s8624_s11 + $0x20] ss:$8 sps:$4 sm:$0xff]  }
 0x471   : > { %4231 = vmatpush1.bf16.msra.mxu0 %v6223_v49  ;;  %v6306_v49 = vld [vmem:[%s8624_s11 + $0x34] ss:$8 sps:$4 sm:$0xff]  }
 0x472   : > { %4395 = vmatpush1.bf16.msra.mxu1 %v6226_v21  ;;  %4232 = vmatprep.subr.bf16.mxu0 %v6231_v45  ;;  %v6304_v21 = vld [vmem:[%s8624_s11 + $0x30] ss:$8 sps:$4 sm:$0xff]   ;;  %v6309_v45 = vld [vmem:[%s8624_s11 + $0x44] ss:$8 sps:$4 sm:$0xff]  }
 0x473   : > { %4396 = vmatprep.subr.bf16.mxu1 %v6234_v24  ;;  %v6307_v24 = vld [vmem:[%s8624_s11 + $0x40] ss:$8 sps:$4 sm:$0xff]  }
 0x475   : > { %4233 = vmatpush1.bf16.msra.mxu0 %v6229_v35  ;;  %v6312_v35 = vld [vmem:[%s8624_s11 + $0x54] ss:$8 sps:$4 sm:$0xff]  }
 0x476   : > { %4397 = vmatpush1.bf16.msra.mxu1 %v6232_v44  ;;  %4234 = vmatprep.subr.bf16.mxu0 %v6237_v20  ;;  %v6310_v44 = vld [vmem:[%s8624_s11 + $0x50] ss:$8 sps:$4 sm:$0xff]   ;;  %v6315_v20 = vld [vmem:[%s8624_s11 + $0x64] ss:$8 sps:$4 sm:$0xff]  }
 0x477   : > { %4398 = vmatprep.subr.bf16.mxu1 %v6240_v22  ;;  %v6313_v22 = vld [vmem:[%s8624_s11 + $0x60] ss:$8 sps:$4 sm:$0xff]  }
 0x479   : > { %4235 = vmatpush1.bf16.msra.mxu0 %v6235_v36  ;;  %v6318_v36 = vld [vmem:[%s8624_s11 + $0x74] ss:$8 sps:$4 sm:$0xff]  }
 0x47a   : > { %4399 = vmatpush1.bf16.msra.mxu1 %v6238_v25  ;;  %4236 = vmatprep.subr.bf16.mxu0 %v6243_v37  ;;  %v6316_v25 = vld [vmem:[%s8624_s11 + $0x70] ss:$8 sps:$4 sm:$0xff]   ;;  %v6321_v37 = vld [vmem:[%s8624_s11 + $0x84] ss:$8 sps:$4 sm:$0xff]  }
 0x47b   : > { %4400 = vmatprep.subr.bf16.mxu1 %v6246_v39  ;;  %v6319_v39 = vld [vmem:[%s8624_s11 + $0x80] ss:$8 sps:$4 sm:$0xff]  }
 0x47d   : > { %4237 = vmatpush1.bf16.msra.mxu0 %v6241_v26  ;;  %v6324_v26 = vld [vmem:[%s8624_s11 + $0x94] ss:$8 sps:$4 sm:$0xff]  }
 0x47e   : > { %4401 = vmatpush1.bf16.msra.mxu1 %v6244_v27  ;;  %4238 = vmatprep.subr.bf16.mxu0 %v6249_v30  ;;  %v6322_v27 = vld [vmem:[%s8624_s11 + $0x90] ss:$8 sps:$4 sm:$0xff]   ;;  %v6327_v30 = vld [vmem:[%s8624_s11 + $0xa4] ss:$8 sps:$4 sm:$0xff]  }
 0x47f   : > { %4402 = vmatprep.subr.bf16.mxu1 %v6252_v41  ;;  %v6325_v41 = vld [vmem:[%s8624_s11 + $0xa0] ss:$8 sps:$4 sm:$0xff]  }
 0x481   : > { %4239 = vmatpush1.bf16.msra.mxu0 %v6247_v40  ;;  %v6330_v40 = vld [vmem:[%s8624_s11 + $0xb4] ss:$8 sps:$4 sm:$0xff]  }
 0x482   : > { %4403 = vmatpush1.bf16.msra.mxu1 %v6250_v23  ;;  %4240 = vmatprep.subr.bf16.mxu0 %v6255_v59  ;;  %v6328_v23 = vld [vmem:[%s8624_s11 + $0xb0] ss:$8 sps:$4 sm:$0xff]   ;;  %v6333_v59 = vld [vmem:[%s8624_s11 + $0xc4] ss:$8 sps:$4 sm:$0xff]  }
 0x483   : > { %4404 = vmatprep.subr.bf16.mxu1 %v6258_v56  ;;  %v6331_v56 = vld [vmem:[%s8624_s11 + $0xc0] ss:$8 sps:$4 sm:$0xff]  }
 0x485   : > { %4241 = vmatpush1.bf16.msra.mxu0 %v6253_v38  ;;  %v6336_v38 = vld [vmem:[%s8624_s11 + $0xd4] ss:$8 sps:$4 sm:$0xff]  }
 0x486   : > { %4405 = vmatpush1.bf16.msra.mxu1 %v6256_v46  ;;  %4242 = vmatprep.subr.bf16.mxu0 %v6261_v47  ;;  %v6334_v46 = vld [vmem:[%s8624_s11 + $0xd0] ss:$8 sps:$4 sm:$0xff]   ;;  %v6339_v47 = vld [vmem:[%s8624_s11 + $0xe4] ss:$8 sps:$4 sm:$0xff]  }
 0x487   : > { %4406 = vmatprep.subr.bf16.mxu1 %v6264_v29  ;;  %v6337_v29 = vld [vmem:[%s8624_s11 + $0xe0] ss:$8 sps:$4 sm:$0xff]  }
 0x489   : > { %4243 = vmatpush1.bf16.msra.mxu0 %v6259_v48  ;;  %v6342_v48 = vld [vmem:[%s8624_s11 + $0xf4] ss:$8 sps:$4 sm:$0xff]  }
 0x48a   : > { %4407 = vmatpush1.bf16.msra.mxu1 %v6262_v50  ;;  %4244 = vmatprep.subr.bf16.mxu0 %v6267_v51  ;;  %v6345_v50 = vld [vmem:[%s8624_s11 + $0x104] ss:$8 sps:$4 sm:$0xff]  }
 0x48b   : > { %4408 = vmatprep.subr.bf16.mxu1 %v6270_v42  ;;  %v6391_v51 = vld [vmem:[%s8626_s13 + $0x40] sm:$0xff]  }
 0x48c   : > { %v6392_v42 = vld [vmem:[%s8626_s13] sm:$0xff]  }
 0x48d   : > { %4245 = vmatpush1.bf16.msra.mxu0 %v6265_v52  ;;  %v6393_v52 = vld [vmem:[%s8626_s13 + $0x48] sm:$0xff]  }
 0x48e   : > { %4409 = vmatpush1.bf16.msra.mxu1 %v6268_v1  ;;  %4246 = vmatprep.subr.bf16.mxu0 %v6273_v13  ;;  %v6395_v1 = vld [vmem:[%s8626_s13 + $0x50] sm:$0xff]  }
 0x48f   : > { %4410 = vmatprep.subr.bf16.mxu1 %v6276_v54  ;;  %v6396_v13 = vld [vmem:[%s8626_s13 + $0x10] sm:$0xff]   ;;  %v6397_v54 = vld [vmem:[%s8626_s13 + $0x58] sm:$0xff]  }
 0x491   : > { %4247 = vmatpush1.bf16.msra.mxu0 %v6271_v33  ;;  %v6398_v33 = vld [vmem:[%s8626_s13 + $0x18] sm:$0xff]  }
 0x492   : > { %4411 = vmatpush1.bf16.msra.mxu1 %v6274_v57  ;;  %4248 = vmatprep.subr.bf16.mxu0 %v6279_v58  ;;  %v6400_v57 = vld [vmem:[%s8626_s13 + $0x20] sm:$0xff]   ;;  %v6401_v58 = vld [vmem:[%s8626_s13 + $0x68] sm:$0xff]  }
 0x493   : > { %4412 = vmatprep.subr.bf16.mxu1 %v6282_v63  ;;  %v6402_v63 = vld [vmem:[%s8626_s13 + $0x28] sm:$0xff]  }
 0x495   : > { %4249 = vmatpush1.bf16.msra.mxu0 %v6277_v12  ;;  %v8400_v12 = vld [vmem:[%s8623_s10] sm:$0xf] }
 0x496   : > { %4413 = vmatpush1.bf16.msra.mxu1 %v6280_v2  ;;  %4250 = vmatprep.subr.bf16.mxu0 %v6285_v3  ;;  %v4082_v0 = vrot.slane %v8400_v12, %v6737_v31  ;;  %v4086_v2 = vrot.slane %v8400_v12, %v6740_v32  ;;  %v4094_v3 = vrot.slane %v8400_v12, %v1392_v15 }
 0x497   : > { %4414 = vmatprep.subr.bf16.mxu1 %v6288_v4 }
 0x499   : > { %4251 = vmatpush1.bf16.msra.mxu0 %v6283_v5 }
 0x49a   : > { %4415 = vmatpush1.bf16.msra.mxu1 %v6286_v7  ;;  %4252 = vmatprep.subr.bf16.mxu0 %v6291_v8 }
 0x49b   : > { %4416 = vmatprep.subr.bf16.mxu1 %v6294_v9 }
 0x49d   : > { %4253 = vmatpush1.bf16.msra.mxu0 %v6289_v10 }
 0x49e   : > { %4417 = vmatpush1.bf16.msra.mxu1 %v6292_v11  ;;  %4831 = vmatprep.subr.bf16.mxu0 %v6297_v60 }
 0x49f   : > { %5709 = vmatprep.subr.bf16.mxu1 %v6391_v51  ;;  %v6387_v51 = vld [vmem:[%s8624_s11 + $0x1e4] ss:$8 sps:$4 sm:$0xff]  }
 0x4a0   : > { %4255 = vmatmul.mubr.bf16.vlgmr.msra.gmra.mrb[48].mxu0 %v2539_v14 }
 0x4a1   : > { %4419 = vmatmul.mubr.bf16.vlgmr.msra.gmra.mrb[112].mxu1 %v2539_v14  ;;  %4832 = vmatpush1.bf16.msra.mxu0 %v6295_v62 }
 0x4a2   : > { %4833 = vmatprep.subr.bf16.mxu0 %v6300_v16  ;;  %5710 = vmatpush3.bf16.msra.mxu1 %v6392_v42  ;;  %v6385_v42 = vld [vmem:[%s8624_s11 + $0x1e0] ss:$8 sps:$4 sm:$0xff]  }
 0x4a3   : > { %5711 = vmatprep.subr.bf16.mxu1 %v6393_v52 }
 0x4a5   : > { %4834 = vmatpush1.bf16.msra.mxu0 %v6298_v17 }
 0x4a6   : > { %4835 = vmatprep.subr.bf16.mxu0 %v6303_v18  ;;  %5712 = vmatpush3.bf16.msra.mxu1 %v6394_v53  ;;  %v6390_v53 = vld [vmem:[%s8624_s11 + $0x1f4] ss:$8 sps:$4 sm:$0xff]  }
 0x4a7   : > { %5713 = vmatprep.subr.bf16.mxu1 %v6395_v1 }
 0x4a9   : > { %4836 = vmatpush1.bf16.msra.mxu0 %v6301_v19  ;;  %v6348_v19 = vld [vmem:[%s8624_s11 + $0x114] ss:$8 sps:$4 sm:$0xff]  }
 0x4aa   : > { %4837 = vmatprep.subr.bf16.mxu0 %v6306_v49  ;;  %5714 = vmatpush3.bf16.msra.mxu1 %v6396_v13 }
 0x4ab   : > { %5715 = vmatprep.subr.bf16.mxu1 %v6397_v54  ;;  %v6403_v54 = vld [vmem:[%s8626_s13 + $0x70] sm:$0xff]  }
 0x4ad   : > { %4838 = vmatpush1.bf16.msra.mxu0 %v6304_v21  ;;  %v6346_v21 = vld [vmem:[%s8624_s11 + $0x110] ss:$8 sps:$4 sm:$0xff]  }
 0x4ae   : > { %4839 = vmatprep.subr.bf16.mxu0 %v6309_v45  ;;  %5716 = vmatpush3.bf16.msra.mxu1 %v6398_v33  ;;  %v6351_v45 = vld [vmem:[%s8624_s11 + $0x124] ss:$8 sps:$4 sm:$0xff]   ;;  %v6404_v33 = vld [vmem:[%s8626_s13 + $0x30] sm:$0xff]  }
 0x4af   : > { %5717 = vmatprep.subr.bf16.mxu1 %v6399_v55  ;;  %v6405_v55 = vld [vmem:[%s8626_s13 + $0x78] sm:$0xff]  }
 0x4b1   : > { %4840 = vmatpush1.bf16.msra.mxu0 %v6307_v24  ;;  %v6349_v24 = vld [vmem:[%s8624_s11 + $0x120] ss:$8 sps:$4 sm:$0xff]  }
 0x4b2   : > { %4841 = vmatprep.subr.bf16.mxu0 %v6312_v35  ;;  %5718 = vmatpush3.bf16.msra.mxu1 %v6400_v57  ;;  %v6354_v35 = vld [vmem:[%s8624_s11 + $0x134] ss:$8 sps:$4 sm:$0xff]  }
 0x4b3   : > { %5719 = vmatprep.subr.bf16.mxu1 %v6401_v58  ;;  %v6406_v57 = vld [vmem:[%s8626_s13 + $0x38] sm:$0xff]   ;;  %v4499_v58 = vld [vmem:[%s8625_s12] sm:$0x3] }
 0x4b5   : > { %4842 = vmatpush1.bf16.msra.mxu0 %v6310_v44  ;;  %v6352_v44 = vld [vmem:[%s8624_s11 + $0x130] ss:$8 sps:$4 sm:$0xff]  }
 0x4b6   : > { %4843 = vmatprep.subr.bf16.mxu0 %v6315_v20  ;;  %5720 = vmatpush3.bf16.msra.mxu1 %v6402_v63  ;;  %v6357_v20 = vld [vmem:[%s8624_s11 + $0x144] ss:$8 sps:$4 sm:$0xff]   ;;  %v4824_v63 = vrot.slane %v4499_v58, %v6737_v31 }
 0x4b7   : > { %5721 = vmatprep.subr.bf16.mxu1 %v6403_v54 }
 0x4b9   : > { %4844 = vmatpush1.bf16.msra.mxu0 %v6313_v22  ;;  %v6355_v22 = vld [vmem:[%s8624_s11 + $0x140] ss:$8 sps:$4 sm:$0xff]  }
 0x4ba   : > { %4845 = vmatprep.subr.bf16.mxu0 %v6318_v36  ;;  %v6360_v36 = vld [vmem:[%s8624_s11 + $0x154] ss:$8 sps:$4 sm:$0xff]   ;;  %5722 = vmatpush3.bf16.msra.mxu1 %v6404_v33 }
 0x4bb   : > { %5723 = vmatprep.subr.bf16.mxu1 %v6405_v55 }
 0x4bd   : > { %4846 = vmatpush1.bf16.msra.mxu0 %v6316_v25  ;;  %v6358_v25 = vld [vmem:[%s8624_s11 + $0x150] ss:$8 sps:$4 sm:$0xff]  }
 0x4be   : > { %4847 = vmatprep.subr.bf16.mxu0 %v6321_v37  ;;  %v6363_v37 = vld [vmem:[%s8624_s11 + $0x164] ss:$8 sps:$4 sm:$0xff]   ;;  %5724 = vmatpush3.bf16.msra.mxu1 %v6406_v57 }
 0x4c1   : > { %4848 = vmatpush1.bf16.msra.mxu0 %v6319_v39  ;;  %v6361_v39 = vld [vmem:[%s8624_s11 + $0x160] ss:$8 sps:$4 sm:$0xff]  }
 0x4c2   : > { %4849 = vmatprep.subr.bf16.mxu0 %v6324_v26  ;;  %v6366_v26 = vld [vmem:[%s8624_s11 + $0x174] ss:$8 sps:$4 sm:$0xff]  }
 0x4c5   : > { %4850 = vmatpush1.bf16.msra.mxu0 %v6322_v27  ;;  %v6364_v27 = vld [vmem:[%s8624_s11 + $0x170] ss:$8 sps:$4 sm:$0xff]  }
 0x4c6   : > { %4851 = vmatprep.subr.bf16.mxu0 %v6327_v30  ;;  %v6369_v30 = vld [vmem:[%s8624_s11 + $0x184] ss:$8 sps:$4 sm:$0xff]  }
 0x4c9   : > { %4852 = vmatpush1.bf16.msra.mxu0 %v6325_v41  ;;  %v6367_v41 = vld [vmem:[%s8624_s11 + $0x180] ss:$8 sps:$4 sm:$0xff]  }
 0x4ca   : > { %4853 = vmatprep.subr.bf16.mxu0 %v6330_v40  ;;  %v6372_v40 = vld [vmem:[%s8624_s11 + $0x194] ss:$8 sps:$4 sm:$0xff]  }
 0x4cd   : > { %4854 = vmatpush1.bf16.msra.mxu0 %v6328_v23  ;;  %v6370_v23 = vld [vmem:[%s8624_s11 + $0x190] ss:$8 sps:$4 sm:$0xff]  }
 0x4ce   : > { %4855 = vmatprep.subr.bf16.mxu0 %v6333_v59  ;;  %v6375_v59 = vld [vmem:[%s8624_s11 + $0x1a4] ss:$8 sps:$4 sm:$0xff]  }
 0x4d1   : > { %4856 = vmatpush1.bf16.msra.mxu0 %v6331_v56  ;;  %v6373_v56 = vld [vmem:[%s8624_s11 + $0x1a0] ss:$8 sps:$4 sm:$0xff]  }
 0x4d2   : > { %4857 = vmatprep.subr.bf16.mxu0 %v6336_v38  ;;  %v6378_v38 = vld [vmem:[%s8624_s11 + $0x1b4] ss:$8 sps:$4 sm:$0xff]  }
 0x4d5   : > { %4858 = vmatpush1.bf16.msra.mxu0 %v6334_v46  ;;  %v6376_v46 = vld [vmem:[%s8624_s11 + $0x1b0] ss:$8 sps:$4 sm:$0xff]  }
 0x4d6   : > { %4859 = vmatprep.subr.bf16.mxu0 %v6339_v47  ;;  %v6381_v47 = vld [vmem:[%s8624_s11 + $0x1c4] ss:$8 sps:$4 sm:$0xff]  }
 0x4d9   : > { %4860 = vmatpush1.bf16.msra.mxu0 %v6337_v29  ;;  %v6379_v29 = vld [vmem:[%s8624_s11 + $0x1c0] ss:$8 sps:$4 sm:$0xff]  }
 0x4da   : > { %4861 = vmatprep.subr.bf16.mxu0 %v6342_v48  ;;  %v6384_v48 = vld [vmem:[%s8624_s11 + $0x1d4] ss:$8 sps:$4 sm:$0xff]  }
 0x4dd   : > { %4862 = vmatpush1.bf16.msra.mxu0 %v6340_v61  ;;  %v6382_v61 = vld [vmem:[%s8624_s11 + $0x1d0] ss:$8 sps:$4 sm:$0xff]  }
 0x4de   : > { %4872 = vmatprep.subr.bf16.mxu0 %v6345_v50  ;;  %v4090_v50 = vrot.slane %v8400_v12, %v6743_v34  ;;  %v6388_v34 = vld [vmem:[%s8624_s11 + $0x1f0] ss:$8 sps:$4 sm:$0xff]   ;;  %v4828_v12 = vrot.slane %v4499_v58, %v6740_v32 }
 0x573   : > { %v4256_v4 = vpop.f32.mrb[48].mxu0 }
 0x574   : > { %v5779_v5 = vadd.f32 %v4256_v4, %v4082_v0  ;;  %v8409_v6 = vpop.f32.mrb[112].mxu1  ;;  %v4258_v7 = vpop.f32.mrb[49].mxu0 }
 0x575   : > { %v5780_v8 = vadd.f32 %v4258_v7, %v4086_v2  ;;  %v4422_v9 = vpop.f32.mrb[113].mxu1  ;;  %v4260_v10 = vpop.f32.mrb[50].mxu0  ;;  %v5781_v52 = vadd.f32 %v8409_v6, %v4090_v50 }
 0x576   : > { %v4427_v11 = vmax.f32 %v5779_v5, 0.0  ;;  %v5782_v43 = vadd.f32 %v4422_v9, %v4094_v3  ;;  %v4424_v60 = vpop.f32.mrb[114].mxu1  ;;  %v4261_v62 = vpop.f32.mrb[51].mxu0 }
 0x577   : > { %v4428_v14 = vmax.f32 %v5780_v8, 0.0  ;;  %v4425_v16 = vpop.f32.mrb[115].mxu1  ;;  %v4429_v1 = vmax.f32 %v5781_v52, 0.0 }
 0x578   : > { %v4430_v17 = vmax.f32 %v5782_v43, 0.0  ;;  %v4431_v15 = vpack.c.bf16 %v4427_v11, %v4427_v11 }
 0x579   : > { %v4432_v18 = vpack.c.bf16 %v4428_v14, %v4428_v14  ;;  %v4433_v13 = vpack.c.bf16 %v4429_v1, %v4429_v1 }
 0x57a   : > { %v4434_v49 = vpack.c.bf16 %v4430_v17, %v4430_v17 }
 0x57b   : > { %4863 = vmatprep.mubr.bf16.mxu0 %v4432_v18 }
 0x57c   : > { %4864 = vmatmul.mubr.bf16.vlgmr.msra.gmra.mrb[52].mxu0 %v4431_v15 }
 0x57d   : > { %4873 = vmatpush1.bf16.msra.mxu0 %v6343_v28  ;;  %4904 = vmatprep.mubr.bf16.mxu0 %v4434_v49 }
 0x57e   : > { %4874 = vmatprep.subr.bf16.mxu0 %v6348_v19 }
 0x581   : > { %4875 = vmatpush1.bf16.msra.mxu0 %v6346_v21 }
 0x582   : > { %4876 = vmatprep.subr.bf16.mxu0 %v6351_v45 }
 0x585   : > { %4877 = vmatpush1.bf16.msra.mxu0 %v6349_v24 }
 0x586   : > { %4878 = vmatprep.subr.bf16.mxu0 %v6354_v35 }
 0x589   : > { %4879 = vmatpush1.bf16.msra.mxu0 %v6352_v44 }
 0x58a   : > { %4880 = vmatprep.subr.bf16.mxu0 %v6357_v20 }
 0x58d   : > { %4881 = vmatpush1.bf16.msra.mxu0 %v6355_v22 }
 0x58e   : > { %4882 = vmatprep.subr.bf16.mxu0 %v6360_v36 }
 0x591   : > { %4883 = vmatpush1.bf16.msra.mxu0 %v6358_v25 }
 0x592   : > { %4884 = vmatprep.subr.bf16.mxu0 %v6363_v37 }
 0x595   : > { %4885 = vmatpush1.bf16.msra.mxu0 %v6361_v39 }
 0x596   : > { %4886 = vmatprep.subr.bf16.mxu0 %v6366_v26 }
 0x599   : > { %4887 = vmatpush1.bf16.msra.mxu0 %v6364_v27 }
 0x59a   : > { %4888 = vmatprep.subr.bf16.mxu0 %v6369_v30 }
 0x59d   : > { %4889 = vmatpush1.bf16.msra.mxu0 %v6367_v41 }
 0x59e   : > { %4890 = vmatprep.subr.bf16.mxu0 %v6372_v40 }
 0x5a1   : > { %4891 = vmatpush1.bf16.msra.mxu0 %v6370_v23 }
 0x5a2   : > { %4892 = vmatprep.subr.bf16.mxu0 %v6375_v59 }
 0x5a5   : > { %4893 = vmatpush1.bf16.msra.mxu0 %v6373_v56 }
 0x5a6   : > { %4894 = vmatprep.subr.bf16.mxu0 %v6378_v38 }
 0x5a9   : > { %4895 = vmatpush1.bf16.msra.mxu0 %v6376_v46 }
 0x5aa   : > { %4896 = vmatprep.subr.bf16.mxu0 %v6381_v47 }
 0x5ad   : > { %4897 = vmatpush1.bf16.msra.mxu0 %v6379_v29 }
 0x5ae   : > { %4898 = vmatprep.subr.bf16.mxu0 %v6384_v48 }
 0x5b1   : > { %4899 = vmatpush1.bf16.msra.mxu0 %v6382_v61 }
 0x5b2   : > { %4900 = vmatprep.subr.bf16.mxu0 %v6387_v51 }
 0x5b5   : > { %4901 = vmatpush1.bf16.msra.mxu0 %v6385_v42 }
 0x5b6   : > { %4902 = vmatprep.subr.bf16.mxu0 %v6390_v53 }
 0x5b9   : > { %4903 = vmatpush1.bf16.msra.mxu0 %v6388_v34 }
 0x5bc   : > { %4905 = vmatmul.mubr.bf16.vlgmr.msra.gmra.mrb[52].mxu0 %v4433_v13 }
 0x68f   : > { %v4906_v0 = vpop.f32.mrb[52].mxu0 }
 0x690   : > { %v5783_v2 = vadd.f32 %v4906_v0, %v4824_v63  ;;  %v4908_v3 = vpop.f32.mrb[53].mxu0 }
 0x691   : > { %v5784_v4 = vadd.f32 %v4908_v3, %v4828_v12  ;;  %v4910_v5 = vpop.f32.mrb[54].mxu0 }
 0x692   : > { %v4913_v6 = vmax.f32 %v5783_v2, 0.0  ;;  %v4911_v7 = vpop.f32.mrb[55].mxu0 }
 0x693   : > { %v4914_v8 = vmax.f32 %v5784_v4, 0.0 }
 0x694   : > { %v4915_v10 = vpack.c.bf16 %v4913_v6, %v4913_v6 }
 0x695   : > { %v4916_v9 = vpack.c.bf16 %v4914_v8, %v4914_v8 }
 0x697   : > { %5078 = vmatprep.mubr.bf16.mxu1 %v4916_v9 }
 0x698   : > { %5079 = vmatmul.mubr.bf16.vlgmr.msra.gmra.mrb[116].mxu1 %v4915_v10 }
 0x699   : > { %6421 = shalt.err (!%p6418_p5)
}
 0x69a   : > { %s6422_s27 = scalar_lea.hbm %s8528_s20, 16384  ;;  %s6426_s30 = scalar_lea.hbm %s8628_s15, 32768 }
 0x69b   : > { %p6423_p6 = scmp.ne.s32.totalorder %s8528_s20, %s6422_s27  ;;  %p6427_p10 = scmp.lt.u32.totalorder %s8528_s20, %s8628_s15 }
 0x69c   : > { %p6428_p11 = scmp.lt.u32.totalorder %s6426_s30, %s6422_s27  ;;  %p6430_p13 = scmp.lt.u32.totalorder %s6422_s27, %s8528_s20 }
 0x69d   : > { %p6424_p7 = pnand %p6423_p6, %p6652_p4 }
 0x69e   : > { %p6429_p12 = por %p6428_p11, %p6427_p10 }
 0x69f   : > { %p6425_p9 = pneg %p6424_p7 }
 0x6a0   : > { %p6431_p0 = por %p6430_p13, %p6429_p12 }
 0x6a2   : > { %p6432_p1 = pnand %p6431_p0, %p6425_p9 }
 0x6a4   : > { %6435 = shalt.err (!%p6432_p1)
}
 0x6a5   : > { %s6524_s17 = smov 1024   ;;  %s6525_s25 = smov 64   ;;  %v4949_v32 = vld [vmem:[%s8627_s14] sm:$0x1]  ;;  %vm5086_vm1 = vcmask 24576  }
 0x6a6   : > { %5813 = dma.vmem_to_hbm [thread:$0]  (%p6652_p4), %s8531_s4, 16384, %s8528_s20, %s5089_s2, %s6524_s17, %s6524_s17, %s6525_s25  }
 0x6a7   : > { %s5680_s27 = sshll.u32 %s6510_s24, 4  ;;  %s562_s30 = scalar_lea.vmem [#allocation5], %s7299_s1 }
 0x6a8   : > { %s5125_s29 = sshll.u32 %s562_s30, 4  ;;  %s8565_s6 = scalar_lea.hbm %s8629_s16, %s5680_s27  ;;  %s8567_s29 = int_to_ptr.vmem [resolvable:$true] %s5125_s29 }
 0x6a9   : > { %s5094_s20 = scalar_lea.sflag [#allocation6], %s7299_s1  ;;  %s6436_s24 = scalar_lea.vmem %s8567_s29, 16 }
 0x6aa   : > { %p6437_p2 = scmp.ne.s32.totalorder %s8567_s29, %s6436_s24  ;;  %s6526_s4 = smov [#allocation5]  }
 0x6ab   : > { %s6440_s2 = sshll.u32 %s6526_s4, 4  ;;  %s6441_s2 = int_to_ptr.vmem [resolvable:$false] %s6440_s2 }
 0x6ac   : > { %p6438_p3 = pnand %p6437_p2, %p6652_p4  ;;  %s6442_s17 = scalar_lea.vmem %s6441_s2, 32 }
 0x6ad   : > { %p6443_p6 = scmp.lt.s32.totalorder %s8567_s29, %s6441_s2  ;;  %p6444_p7 = scmp.lt.s32.totalorder %s6442_s17, %s6436_s24 }
 0x6ae   : > { %p6439_p5 = pneg %p6438_p3 }
 0x6af   : > { %p6445_p9 = por %p6444_p7, %p6443_p6 }
 0x6b1   : > { %p6446_p10 = pnand %p6445_p9, %p6439_p5 }
 0x76b   : > { %v5725_v31 = vpop.f32.mrb[116].mxu1 }
 0x76c   : > { %v5726_v11 = vpop.f32.mrb[117].mxu1 }
 0x76d   : > { %v5727_v43 = vadd.f32 %v5726_v11, %v5725_v31  ;;  %v5728_v60 = vpop.f32.mrb[118].mxu1 }
 0x76e   : > { %v5729_v62 = vpop.f32.mrb[119].mxu1 }
 0x76f   : > { %v5081_v14 = vadd.f32 %v5727_v43, %v4949_v32 }
 0x771   : > { %5087 = vst.msk [vmem:[%s562_s30] sm:$0x1] %vm5086_vm1, %v5081_v14 }
 0x772   : > { %6449 = shalt.err (!%p6446_p10)
}
 0x773   : > { %s6450_s5 = scalar_lea.hbm %s8565_s6, 16  ;;  %s6454_s19 = scalar_lea.hbm %s8629_s16, 32 }
 0x774   : > { %p6451_p11 = scmp.ne.s32.totalorder %s8565_s6, %s6450_s5  ;;  %p6455_p0 = scmp.lt.u32.totalorder %s8565_s6, %s8629_s16 }
 0x775   : > { %p6456_p1 = scmp.lt.u32.totalorder %s6454_s19, %s6450_s5  ;;  %p6458_p3 = scmp.lt.u32.totalorder %s6450_s5, %s8565_s6 }
 0x776   : > { %p6452_p12 = pnand %p6451_p11, %p6652_p4 }
 0x777   : > { %p6457_p2 = por %p6456_p1, %p6455_p0 }
 0x778   : > { %p6453_p13 = pneg %p6452_p12 }
 0x779   : > { %p6459_p5 = por %p6458_p3, %p6457_p2 }
 0x77b   : > { %p6460_p6 = pnand %p6459_p5, %p6453_p13 }
 0x77d   : > { %6463 = shalt.err (!%p6460_p6)
}
 0x77e   : > { %5814 = dma.vmem_to_hbm [thread:$0]  (%p6652_p4), %s8567_s29, 16, %s8565_s6, %s5094_s20  }
 0x77f PF: > { %p5824_p7 = scmp.ge.s32.totalorder %s6518_s26, 2  ;;  %s5137_s30 = sand.u32 1, %s6498_s21  }
 0x780   : > { %s5138_s3 = scalar_lea.sflag [#allocation4], %s5137_s30 }
 0x781   : > { %p5818_p9 = pnand %p5824_p7, %p6659_p8 }
 0x783   : > { %6489 = dma.done.wait (!%p5818_p9), %s5138_s3, 16384  }
 0x784   : > { %6491 = vsyncadd (!%p5818_p9), %s5138_s3, 4294950912  ;;  %s5147_s24 = scalar_lea.sflag [#allocation6], %s5137_s30 }
 0x785   : > { %6493 = dma.done.wait (!%p5818_p9), %s5147_s24, 16  }
 0x786   : > { %6495 = vsyncadd (!%p5818_p9), %s5147_s24, 4294967280  ;;  %s33_s26 = sadd.s32 1, %s6518_s26   ;;  %s8651_s6 = sld [smem:[#allocation11_spill]] }
 0x787   : > { %p30_p10 = scmp.ge.s32.totalorder %s33_s26, 4   ;;  %s8652_s24 = sld [smem:[#allocation9_spill]] }
 0x788   : > { %s8653_s25 = sld [smem:[#allocation10_spill]]  ;;  %s8654_s21 = smov %s6502_s22 }
 0x789   : > { %s8655_s22 = smov %s6506_s23  ;;  %32 = sbr.rel (!%p30_p10) target bundleno = 14 (0xe), region = 143 }
 0x78c   : > { %s8656_s23 = smov %s8651_s6 }
 0x790   :  { %5151 = vsyncpa [#allocation4], 1 }
 0x791   :  { %5153 = vsyncpa [#allocation4 + $0x1], 1 }
 0x792   :  { %5154 = vsyncpa [#allocation6], 1 }
 0x793   :  { %5156 = vsyncpa [#allocation6 + $0x1], 1 }

</bundles_post_ra>
